<compile_context>
chip_gen: v6e
topology: v6e:2x2x1
jax: 0.10.0
libtpu: 0.0.40
codegen_flags: <defaults>
</compile_context>

<pallas_src>
import jax
import jax.numpy as jnp
from jax import lax
from jax.experimental import pallas as pl
from jax.experimental.pallas import tpu as pltpu

# ---------------- synthetic config (small shapes) ----------------
VOCAB = 50
HIDDEN = 32          # embedding_dim / hidden_size of the synthetic base model
NUM_LABELS = 5       # len(label2id)
BATCH = 2
SEQ = 8
PAD_LABEL = -100

LANE_L = 128         # lane-dense padded width (classifier + packed output)
SUB_L = 8            # sublane-friendly padded label width for CRF recursions
NEG = -1.0e9         # finite "minus infinity" for padded labels (no inf-inf NaNs)

LABEL2ID = {"O": 0, "B-PER": 1, "I-PER": 2, "B-LOC": 3, "I-LOC": 4}
ID2LABEL = {v: k for k, v in LABEL2ID.items()}


# ===== Fused kernel: encoder+classifier + CRF logZ + gold path + Viterbi ======
def _fused_ner_crf_kernel(x_ref, we_ref, be_ref, wc_ref, bc_ref,
                          tt_ref, tflat_ref, mask_ref, lab_ref, out_ref):
    # x_ref    : [T*BP, H]        time-major embedded tokens (row = t*BP + b)
    # we_ref   : [H, H]           synthetic encoder weight
    # be_ref   : [1, H]           synthetic encoder bias
    # wc_ref   : [H, LANE_L]      classifier weight, zero-padded past NUM_LABELS
    # bc_ref   : [1, LANE_L]      classifier bias, NEG-padded past NUM_LABELS
    # tt_ref   : [SUB_L, SUB_L]   transposed transitions tt[cur, prev], 0-padded
    # tflat_ref: [1, SUB_L*SUB_L] trans[prev, cur] flattened (prev*SUB_L + cur)
    # mask_ref : [T, BP, 1]       combined mask (f32 0/1), time-major
    # lab_ref  : [T, BP, 1]       adjusted gold labels (int32), time-major
    # out_ref  : [BP, LANE_L]     OUT packed: lanes 0..T-1 tags, lane T = logZ-joint
    T, BP, _ = mask_ref.shape
    LS = tt_ref.shape[0]
    LANE = out_ref.shape[1]

    # ---- synthetic base model + classifier (one MXU pass over all T*BP rows) ----
    h = jnp.tanh(
        jnp.dot(x_ref[...], we_ref[...], preferred_element_type=jnp.float32)
        + be_ref[...])
    # dropout(p=0.1): identity in eval mode.
    logits = (jnp.dot(h, wc_ref[...], preferred_element_type=jnp.float32)
              + bc_ref[...])                        # [T*BP, LANE]; stays in vregs

    trans_t = tt_ref[...]                                        # [LS, LS] (cur, prev)
    trans_flat_b = jnp.broadcast_to(tflat_ref[...], (BP, LS * LS))

    # Per-step views, all hoisted once (reused by both CRF loops + gold path).
    emit = [logits[t * BP:(t + 1) * BP, :LS] for t in range(T)]  # aligned (BP, LS)
    mvals = [mask_ref[t] for t in range(T)]                      # [BP, 1] f32
    mbool = [jnp.broadcast_to(mvals[t], (BP, LS)) > 0.0 for t in range(T)]
    lab = [lab_ref[t] for t in range(T)]                         # [BP, 1] int32

    cur_iota = lax.broadcasted_iota(jnp.int32, (BP, LS), 1)
    prev_iota = lax.broadcasted_iota(jnp.int32, (BP, LS, LS), 2)
    pair_iota = lax.broadcasted_iota(jnp.int32, (BP, LS * LS), 1)

    # ---- CRF log-partition (forward algorithm), fully unrolled over T ----
    alpha = emit[0]
    for t in range(1, T):
        # inner[b, cur, prev] = alpha[b, prev] + trans[prev, cur] + emit[b, cur]
        inner = alpha[:, None, :] + trans_t[None, :, :] + emit[t][:, :, None]
        mx = jnp.max(inner, axis=-1)                             # [BP, LS]
        new_alpha = mx + jnp.log(jnp.sum(jnp.exp(inner - mx[:, :, None]), axis=-1))
        alpha = jnp.where(mbool[t], new_alpha, alpha)
    amax = jnp.max(alpha, axis=-1, keepdims=True)                # [BP, 1]
    logz = amax + jnp.log(
        jnp.sum(jnp.exp(alpha - amax), axis=-1, keepdims=True))  # [BP, 1]

    # ---- gold-path (joint) score, in-kernel (no logits writeback needed) ----
    joint = jnp.zeros((BP, 1), jnp.float32)
    for t in range(T - 1):
        ge = jnp.sum(jnp.where(lab[t] == cur_iota, emit[t], 0.0),
                     axis=-1, keepdims=True)                     # emit[t, tag_t]
        pair = lab[t] * LS + lab[t + 1]                          # [BP, 1]
        ts = jnp.sum(jnp.where(pair == pair_iota, trans_flat_b, 0.0),
                     axis=-1, keepdims=True)                     # trans[tag_t, tag_t+1]
        joint = joint + ge * mvals[t] + ts * mvals[t + 1]
    len_f = mvals[0]
    for t in range(1, T):
        len_f = len_f + mvals[t]
    last_idx = len_f.astype(jnp.int32) - 1                       # [BP, 1]
    last_tag = lab[0]
    for t in range(1, T):
        last_tag = jnp.where(last_idx == t, lab[t], last_tag)
    last_emit = jnp.sum(jnp.where(last_tag == cur_iota, emit[T - 1], 0.0),
                        axis=-1, keepdims=True)
    joint = joint + last_emit * mvals[T - 1]

    nll = logz - joint                                           # [BP, 1]

    # ---- Viterbi decode, fully unrolled; backpointers live in vregs ----
    valpha = emit[0]
    bps = []
    for t in range(1, T):
        scores = valpha[:, None, :] + trans_t[None, :, :]        # [BP, LS, LS]
        best = jnp.max(scores, axis=-1)                          # [BP, LS]
        # argmax via compare + min-iota (Mosaic-safe single-operand reductions);
        # exact equality holds because `best` is the max of the same values.
        argbest = jnp.min(
            jnp.where(scores == best[:, :, None], prev_iota, LS), axis=-1)
        bps.append(jnp.where(mbool[t], argbest, cur_iota))       # identity if masked
        valpha = jnp.where(mbool[t], best + emit[t], valpha)
    vmax = jnp.max(valpha, axis=-1, keepdims=True)
    cur = jnp.min(jnp.where(valpha == vmax, cur_iota, LS),
                  axis=-1, keepdims=True)                        # [BP, 1] last tag

    # Backtrace directly onto the lane-dense packed canvas, stored once.
    lane_iota = lax.broadcasted_iota(jnp.int32, (BP, LANE), 1)
    canvas = jnp.where(lane_iota == (T - 1), cur.astype(jnp.float32), 0.0)
    for t in range(T - 2, -1, -1):
        bp = bps[t]                                              # bp at step t+1
        cur = jnp.sum(jnp.where(cur == cur_iota, bp, 0), axis=-1, keepdims=True)
        canvas = jnp.where(lane_iota == t, cur.astype(jnp.float32), canvas)
    canvas = jnp.where(lane_iota == T, nll, canvas)              # lane T: logZ - joint
    out_ref[...] = canvas                                        # single lane-dense store


def fused_ner_crf(x_emb_tm, w_enc, b_enc, w_cls_pad, b_cls_pad,
                  trans_t_pad, trans_flat, mask_tm, lab_tm):
    T, BP, _ = mask_tm.shape
    n, h = x_emb_tm.shape
    lp = w_cls_pad.shape[1]
    ls = trans_t_pad.shape[0]
    return pl.pallas_call(
        _fused_ner_crf_kernel,
        out_shape=jax.ShapeDtypeStruct((BP, lp), jnp.float32),
        grid=(1,),
        in_specs=[
            pl.BlockSpec((n, h), lambda i: (0, 0)),
            pl.BlockSpec((h, h), lambda i: (0, 0)),
            pl.BlockSpec((1, h), lambda i: (0, 0)),
            pl.BlockSpec((h, lp), lambda i: (0, 0)),
            pl.BlockSpec((1, lp), lambda i: (0, 0)),
            pl.BlockSpec((ls, ls), lambda i: (0, 0)),
            pl.BlockSpec((1, ls * ls), lambda i: (0, 0)),
            pl.BlockSpec((T, BP, 1), lambda i: (0, 0, 0)),
            pl.BlockSpec((T, BP, 1), lambda i: (0, 0, 0)),
        ],
        out_specs=pl.BlockSpec((BP, lp), lambda i: (0, 0)),
        compiler_params=pltpu.CompilerParams(dimension_semantics=("arbitrary",)),
    )(x_emb_tm, w_enc, b_enc, w_cls_pad, b_cls_pad, trans_t_pad, trans_flat,
      mask_tm, lab_tm)


# ================= parameters & model wrapper =================
def init_params(key):
    ks = jax.random.split(key, 6)
    s = 0.1
    return {
        "emb": jax.random.normal(ks[0], (VOCAB, HIDDEN), jnp.float32) * s,
        "w_enc": jax.random.normal(ks[1], (HIDDEN, HIDDEN), jnp.float32) * s,
        "b_enc": jax.random.normal(ks[2], (1, HIDDEN), jnp.float32) * s,
        "w_cls": jax.random.normal(ks[3], (HIDDEN, NUM_LABELS), jnp.float32) * s,
        "b_cls": jax.random.normal(ks[4], (1, NUM_LABELS), jnp.float32) * s,
        "trans": jax.random.normal(ks[5], (NUM_LABELS, NUM_LABELS), jnp.float32) * s,
    }


def ner_model_with_crf_forward(params, input_ids, attention_mask=None, labels=None):
    B, T = input_ids.shape
    if attention_mask is None:
        attention_mask = input_ids != 0
    attention_mask = attention_mask.astype(jnp.bool_)

    # ---- create_combined_mask / adjust_labels_for_crf ----
    labels_mask = labels != PAD_LABEL
    mask = jnp.logical_and(attention_mask, labels_mask)              # [B, T] bool
    maskf = mask.astype(jnp.float32)
    adjusted_labels = jnp.where(labels == PAD_LABEL, 0, labels).astype(jnp.int32)

    # ---- pad batch to a full sublane tile (8) for aligned per-step slices ----
    BP = ((B + 7) // 8) * 8
    pad_b = BP - B
    ids_p = jnp.pad(input_ids, ((0, pad_b), (0, 0)))
    maskf_p = jnp.pad(maskf, ((0, pad_b), (0, 0)))
    lab_p = jnp.pad(adjusted_labels, ((0, pad_b), (0, 0)))

    # ---- pad label axis: lane-dense classifier, sublane-wide CRF ----
    w_cls_pad = jnp.zeros((HIDDEN, LANE_L), jnp.float32).at[:, :NUM_LABELS].set(
        params["w_cls"])
    b_cls_pad = jnp.full((1, LANE_L), NEG, jnp.float32).at[:, :NUM_LABELS].set(
        params["b_cls"])
    trans_pad = jnp.zeros((SUB_L, SUB_L), jnp.float32).at[
        :NUM_LABELS, :NUM_LABELS].set(params["trans"])
    trans_t_pad = trans_pad.T                                        # tt[cur, prev]
    trans_flat = trans_pad.reshape(1, SUB_L * SUB_L)                 # [1, 64]

    # ---- time-major inputs for the fused kernel ----
    x_emb_tm = jnp.take(params["emb"], ids_p.T.reshape(-1), axis=0)  # [T*BP, H]
    mask_tm = maskf_p.T[:, :, None]                                  # [T, BP, 1]
    lab_tm = lab_p.T[:, :, None]                                     # [T, BP, 1] int32

    packed = fused_ner_crf(x_emb_tm, params["w_enc"], params["b_enc"],
                           w_cls_pad, b_cls_pad, trans_t_pad, trans_flat,
                           mask_tm, lab_tm)                          # [BP, 128]

    tags_bt = packed[:B, :T].astype(jnp.int32)                       # viterbi tags
    loss = jnp.sum(packed[:B, T])                                    # sum_b (logZ - joint)

    # ---- pad_predictions: [-100] + decoded_tags + [-100]*(T - len - 1) ----
    lengths = jnp.sum(mask.astype(jnp.int32), axis=1)                # [B]
    pos = jnp.arange(T)[None, :]
    shifted = jnp.concatenate(
        [jnp.full((B, 1), PAD_LABEL, jnp.int32), tags_bt[:, : T - 1]], axis=1)
    valid = (pos >= 1) & ((pos - 1) < lengths[:, None])
    predictions = jnp.where(valid, shifted, PAD_LABEL)               # [B, T]

    return {"loss": loss, "predictions": predictions}


if __name__ == "__main__":
    key = jax.random.PRNGKey(0)
    pkey, dkey, lkey = jax.random.split(key, 3)
    params = init_params(pkey)

    # synthetic batch: prefix-valid sequences of length 7 and 5 (SEQ=8)
    seq_lengths = jnp.array([7, 5], dtype=jnp.int32)
    pos = jnp.arange(SEQ)[None, :]
    valid = pos < seq_lengths[:, None]
    input_ids = jnp.where(
        valid, jax.random.randint(dkey, (BATCH, SEQ), 1, VOCAB), 0
    ).astype(jnp.int32)
    labels = jnp.where(
        valid, jax.random.randint(lkey, (BATCH, SEQ), 0, NUM_LABELS), PAD_LABEL
    ).astype(jnp.int32)
    attention_mask = input_ids != 0

    fwd = jax.jit(ner_model_with_crf_forward)
    out = fwd(params, input_ids, attention_mask, labels)
    out = jax.block_until_ready(out)
    assert out["loss"].shape == ()
    assert out["predictions"].shape == (BATCH, SEQ)
    print("KERNEL_OK")
</pallas_src>

<mosaic_0001>
module attributes {stable_mosaic.version = 11 : i64} {
  func.func @_fused_ner_crf_kernel(%arg0: i32, %arg1: memref<64x32xf32, #tpu.memory_space<vmem>>, %arg2: memref<32x32xf32, #tpu.memory_space<vmem>>, %arg3: memref<1x32xf32, #tpu.memory_space<vmem>>, %arg4: memref<32x128xf32, #tpu.memory_space<vmem>>, %arg5: memref<1x128xf32, #tpu.memory_space<vmem>>, %arg6: memref<8x8xf32, #tpu.memory_space<vmem>>, %arg7: memref<1x64xf32, #tpu.memory_space<vmem>>, %arg8: memref<8x8x1xf32, #tpu.memory_space<vmem>>, %arg9: memref<8x8x1xi32, #tpu.memory_space<vmem>>, %arg10: memref<8x128xf32, #tpu.memory_space<vmem>>) attributes {dimension_semantics = [#tpu.dimension_semantics<arbitrary>], iteration_bounds = array<i64: 1>, scalar_prefetch = 0 : i64, scratch_operands = 0 : i64, tpu.core_type = #tpu.core_type<tc>, window_params = [{pipeline_mode = #tpu.pipeline_mode<synchronous>, transform_indices = @transform_0, window_bounds = array<i64: 64, 32>}, {pipeline_mode = #tpu.pipeline_mode<synchronous>, transform_indices = @transform_1, window_bounds = array<i64: 32, 32>}, {pipeline_mode = #tpu.pipeline_mode<synchronous>, transform_indices = @transform_2, window_bounds = array<i64: 1, 32>}, {pipeline_mode = #tpu.pipeline_mode<synchronous>, transform_indices = @transform_3, window_bounds = array<i64: 32, 128>}, {pipeline_mode = #tpu.pipeline_mode<synchronous>, transform_indices = @transform_4, window_bounds = array<i64: 1, 128>}, {pipeline_mode = #tpu.pipeline_mode<synchronous>, transform_indices = @transform_5, window_bounds = array<i64: 8, 8>}, {pipeline_mode = #tpu.pipeline_mode<synchronous>, transform_indices = @transform_6, window_bounds = array<i64: 1, 64>}, {pipeline_mode = #tpu.pipeline_mode<synchronous>, transform_indices = @transform_7, window_bounds = array<i64: 8, 8, 1>}, {pipeline_mode = #tpu.pipeline_mode<synchronous>, transform_indices = @transform_8, window_bounds = array<i64: 8, 8, 1>}, {pipeline_mode = #tpu.pipeline_mode<synchronous>, transform_indices = @transform_9, window_bounds = array<i64: 8, 128>}]} {
    %c0 = arith.constant 0 : index
    %c0_0 = arith.constant 0 : index
    %0 = vector.load %arg1[%c0, %c0_0] : memref<64x32xf32, #tpu.memory_space<vmem>>, vector<64x32xf32>
    %c0_1 = arith.constant 0 : index
    %c0_2 = arith.constant 0 : index
    %1 = vector.load %arg2[%c0_1, %c0_2] : memref<32x32xf32, #tpu.memory_space<vmem>>, vector<32x32xf32>
    %cst = arith.constant dense<0.000000e+00> : vector<64x32xf32>
    %2 = tpu.matmul %0, %1, %cst {dimension_numbers = #tpu.dot_dimension_numbers<[1], [0], [0], [1], [0, 0, 1, 1], [], []>} : vector<64x32xf32>, vector<32x32xf32>, vector<64x32xf32> -> vector<64x32xf32>
    %c0_3 = arith.constant 0 : index
    %c0_4 = arith.constant 0 : index
    %3 = vector.load %arg3[%c0_3, %c0_4] : memref<1x32xf32, #tpu.memory_space<vmem>>, vector<1x32xf32>
    %4 = vector.broadcast %3 : vector<1x32xf32> to vector<64x32xf32>
    %5 = arith.addf %2, %4 : vector<64x32xf32>
    %6 = math.tanh %5 : vector<64x32xf32>
    %c0_5 = arith.constant 0 : index
    %c0_6 = arith.constant 0 : index
    %7 = vector.load %arg4[%c0_5, %c0_6] : memref<32x128xf32, #tpu.memory_space<vmem>>, vector<32x128xf32>
    %cst_7 = arith.constant dense<0.000000e+00> : vector<64x128xf32>
    %8 = tpu.matmul %6, %7, %cst_7 {dimension_numbers = #tpu.dot_dimension_numbers<[1], [0], [0], [1], [0, 0, 1, 1], [], []>} : vector<64x32xf32>, vector<32x128xf32>, vector<64x128xf32> -> vector<64x128xf32>
    %c0_8 = arith.constant 0 : index
    %c0_9 = arith.constant 0 : index
    %9 = vector.load %arg5[%c0_8, %c0_9] : memref<1x128xf32, #tpu.memory_space<vmem>>, vector<1x128xf32>
    %10 = vector.broadcast %9 : vector<1x128xf32> to vector<64x128xf32>
    %11 = arith.addf %8, %10 : vector<64x128xf32>
    %c0_10 = arith.constant 0 : index
    %c0_11 = arith.constant 0 : index
    %12 = vector.load %arg6[%c0_10, %c0_11] : memref<8x8xf32, #tpu.memory_space<vmem>>, vector<8x8xf32>
    %c0_12 = arith.constant 0 : index
    %c0_13 = arith.constant 0 : index
    %13 = vector.load %arg7[%c0_12, %c0_13] : memref<1x64xf32, #tpu.memory_space<vmem>>, vector<1x64xf32>
    %14 = vector.shape_cast %13 : vector<1x64xf32> to vector<1x64xf32>
    %15 = vector.broadcast %14 : vector<1x64xf32> to vector<8x64xf32>
    %16 = vector.extract_strided_slice %11 {offsets = [0, 0], sizes = [8, 8], strides = [1, 1]} : vector<64x128xf32> to vector<8x8xf32>
    %17 = vector.extract_strided_slice %11 {offsets = [8, 0], sizes = [8, 8], strides = [1, 1]} : vector<64x128xf32> to vector<8x8xf32>
    %18 = vector.extract_strided_slice %11 {offsets = [16, 0], sizes = [8, 8], strides = [1, 1]} : vector<64x128xf32> to vector<8x8xf32>
    %19 = vector.extract_strided_slice %11 {offsets = [24, 0], sizes = [8, 8], strides = [1, 1]} : vector<64x128xf32> to vector<8x8xf32>
    %20 = vector.extract_strided_slice %11 {offsets = [32, 0], sizes = [8, 8], strides = [1, 1]} : vector<64x128xf32> to vector<8x8xf32>
    %21 = vector.extract_strided_slice %11 {offsets = [40, 0], sizes = [8, 8], strides = [1, 1]} : vector<64x128xf32> to vector<8x8xf32>
    %22 = vector.extract_strided_slice %11 {offsets = [48, 0], sizes = [8, 8], strides = [1, 1]} : vector<64x128xf32> to vector<8x8xf32>
    %23 = vector.extract_strided_slice %11 {offsets = [56, 0], sizes = [8, 8], strides = [1, 1]} : vector<64x128xf32> to vector<8x8xf32>
    %c0_14 = arith.constant 0 : index
    %c0_15 = arith.constant 0 : index
    %c0_16 = arith.constant 0 : index
    %24 = vector.load %arg8[%c0_14, %c0_15, %c0_16] : memref<8x8x1xf32, #tpu.memory_space<vmem>>, vector<1x8x1xf32>
    %25 = vector.shape_cast %24 : vector<1x8x1xf32> to vector<8x1xf32>
    %c1 = arith.constant 1 : index
    %c0_17 = arith.constant 0 : index
    %c0_18 = arith.constant 0 : index
    %26 = vector.load %arg8[%c1, %c0_17, %c0_18] : memref<8x8x1xf32, #tpu.memory_space<vmem>>, vector<1x8x1xf32>
    %27 = vector.shape_cast %26 : vector<1x8x1xf32> to vector<8x1xf32>
    %c2 = arith.constant 2 : index
    %c0_19 = arith.constant 0 : index
    %c0_20 = arith.constant 0 : index
    %28 = vector.load %arg8[%c2, %c0_19, %c0_20] : memref<8x8x1xf32, #tpu.memory_space<vmem>>, vector<1x8x1xf32>
    %29 = vector.shape_cast %28 : vector<1x8x1xf32> to vector<8x1xf32>
    %c3 = arith.constant 3 : index
    %c0_21 = arith.constant 0 : index
    %c0_22 = arith.constant 0 : index
    %30 = vector.load %arg8[%c3, %c0_21, %c0_22] : memref<8x8x1xf32, #tpu.memory_space<vmem>>, vector<1x8x1xf32>
    %31 = vector.shape_cast %30 : vector<1x8x1xf32> to vector<8x1xf32>
    %c4 = arith.constant 4 : index
    %c0_23 = arith.constant 0 : index
    %c0_24 = arith.constant 0 : index
    %32 = vector.load %arg8[%c4, %c0_23, %c0_24] : memref<8x8x1xf32, #tpu.memory_space<vmem>>, vector<1x8x1xf32>
    %33 = vector.shape_cast %32 : vector<1x8x1xf32> to vector<8x1xf32>
    %c5 = arith.constant 5 : index
    %c0_25 = arith.constant 0 : index
    %c0_26 = arith.constant 0 : index
    %34 = vector.load %arg8[%c5, %c0_25, %c0_26] : memref<8x8x1xf32, #tpu.memory_space<vmem>>, vector<1x8x1xf32>
    %35 = vector.shape_cast %34 : vector<1x8x1xf32> to vector<8x1xf32>
    %c6 = arith.constant 6 : index
    %c0_27 = arith.constant 0 : index
    %c0_28 = arith.constant 0 : index
    %36 = vector.load %arg8[%c6, %c0_27, %c0_28] : memref<8x8x1xf32, #tpu.memory_space<vmem>>, vector<1x8x1xf32>
    %37 = vector.shape_cast %36 : vector<1x8x1xf32> to vector<8x1xf32>
    %c7 = arith.constant 7 : index
    %c0_29 = arith.constant 0 : index
    %c0_30 = arith.constant 0 : index
    %38 = vector.load %arg8[%c7, %c0_29, %c0_30] : memref<8x8x1xf32, #tpu.memory_space<vmem>>, vector<1x8x1xf32>
    %39 = vector.shape_cast %38 : vector<1x8x1xf32> to vector<8x1xf32>
    %40 = vector.shape_cast %27 : vector<8x1xf32> to vector<8x1xf32>
    %41 = vector.broadcast %40 : vector<8x1xf32> to vector<8x8xf32>
    %cst_31 = arith.constant 0.000000e+00 : f32
    %42 = vector.broadcast %cst_31 : f32 to vector<8x8xf32>
    %43 = arith.cmpf ogt, %41, %42 : vector<8x8xf32>
    %44 = vector.shape_cast %29 : vector<8x1xf32> to vector<8x1xf32>
    %45 = vector.broadcast %44 : vector<8x1xf32> to vector<8x8xf32>
    %cst_32 = arith.constant 0.000000e+00 : f32
    %46 = vector.broadcast %cst_32 : f32 to vector<8x8xf32>
    %47 = arith.cmpf ogt, %45, %46 : vector<8x8xf32>
    %48 = vector.shape_cast %31 : vector<8x1xf32> to vector<8x1xf32>
    %49 = vector.broadcast %48 : vector<8x1xf32> to vector<8x8xf32>
    %cst_33 = arith.constant 0.000000e+00 : f32
    %50 = vector.broadcast %cst_33 : f32 to vector<8x8xf32>
    %51 = arith.cmpf ogt, %49, %50 : vector<8x8xf32>
    %52 = vector.shape_cast %33 : vector<8x1xf32> to vector<8x1xf32>
    %53 = vector.broadcast %52 : vector<8x1xf32> to vector<8x8xf32>
    %cst_34 = arith.constant 0.000000e+00 : f32
    %54 = vector.broadcast %cst_34 : f32 to vector<8x8xf32>
    %55 = arith.cmpf ogt, %53, %54 : vector<8x8xf32>
    %56 = vector.shape_cast %35 : vector<8x1xf32> to vector<8x1xf32>
    %57 = vector.broadcast %56 : vector<8x1xf32> to vector<8x8xf32>
    %cst_35 = arith.constant 0.000000e+00 : f32
    %58 = vector.broadcast %cst_35 : f32 to vector<8x8xf32>
    %59 = arith.cmpf ogt, %57, %58 : vector<8x8xf32>
    %60 = vector.shape_cast %37 : vector<8x1xf32> to vector<8x1xf32>
    %61 = vector.broadcast %60 : vector<8x1xf32> to vector<8x8xf32>
    %cst_36 = arith.constant 0.000000e+00 : f32
    %62 = vector.broadcast %cst_36 : f32 to vector<8x8xf32>
    %63 = arith.cmpf ogt, %61, %62 : vector<8x8xf32>
    %64 = vector.shape_cast %39 : vector<8x1xf32> to vector<8x1xf32>
    %65 = vector.broadcast %64 : vector<8x1xf32> to vector<8x8xf32>
    %cst_37 = arith.constant 0.000000e+00 : f32
    %66 = vector.broadcast %cst_37 : f32 to vector<8x8xf32>
    %67 = arith.cmpf ogt, %65, %66 : vector<8x8xf32>
    %c0_38 = arith.constant 0 : index
    %c0_39 = arith.constant 0 : index
    %c0_40 = arith.constant 0 : index
    %68 = vector.load %arg9[%c0_38, %c0_39, %c0_40] : memref<8x8x1xi32, #tpu.memory_space<vmem>>, vector<1x8x1xi32>
    %69 = vector.shape_cast %68 : vector<1x8x1xi32> to vector<8x1xi32>
    %c1_41 = arith.constant 1 : index
    %c0_42 = arith.constant 0 : index
    %c0_43 = arith.constant 0 : index
    %70 = vector.load %arg9[%c1_41, %c0_42, %c0_43] : memref<8x8x1xi32, #tpu.memory_space<vmem>>, vector<1x8x1xi32>
    %71 = vector.shape_cast %70 : vector<1x8x1xi32> to vector<8x1xi32>
    %c2_44 = arith.constant 2 : index
    %c0_45 = arith.constant 0 : index
    %c0_46 = arith.constant 0 : index
    %72 = vector.load %arg9[%c2_44, %c0_45, %c0_46] : memref<8x8x1xi32, #tpu.memory_space<vmem>>, vector<1x8x1xi32>
    %73 = vector.shape_cast %72 : vector<1x8x1xi32> to vector<8x1xi32>
    %c3_47 = arith.constant 3 : index
    %c0_48 = arith.constant 0 : index
    %c0_49 = arith.constant 0 : index
    %74 = vector.load %arg9[%c3_47, %c0_48, %c0_49] : memref<8x8x1xi32, #tpu.memory_space<vmem>>, vector<1x8x1xi32>
    %75 = vector.shape_cast %74 : vector<1x8x1xi32> to vector<8x1xi32>
    %c4_50 = arith.constant 4 : index
    %c0_51 = arith.constant 0 : index
    %c0_52 = arith.constant 0 : index
    %76 = vector.load %arg9[%c4_50, %c0_51, %c0_52] : memref<8x8x1xi32, #tpu.memory_space<vmem>>, vector<1x8x1xi32>
    %77 = vector.shape_cast %76 : vector<1x8x1xi32> to vector<8x1xi32>
    %c5_53 = arith.constant 5 : index
    %c0_54 = arith.constant 0 : index
    %c0_55 = arith.constant 0 : index
    %78 = vector.load %arg9[%c5_53, %c0_54, %c0_55] : memref<8x8x1xi32, #tpu.memory_space<vmem>>, vector<1x8x1xi32>
    %79 = vector.shape_cast %78 : vector<1x8x1xi32> to vector<8x1xi32>
    %c6_56 = arith.constant 6 : index
    %c0_57 = arith.constant 0 : index
    %c0_58 = arith.constant 0 : index
    %80 = vector.load %arg9[%c6_56, %c0_57, %c0_58] : memref<8x8x1xi32, #tpu.memory_space<vmem>>, vector<1x8x1xi32>
    %81 = vector.shape_cast %80 : vector<1x8x1xi32> to vector<8x1xi32>
    %c7_59 = arith.constant 7 : index
    %c0_60 = arith.constant 0 : index
    %c0_61 = arith.constant 0 : index
    %82 = vector.load %arg9[%c7_59, %c0_60, %c0_61] : memref<8x8x1xi32, #tpu.memory_space<vmem>>, vector<1x8x1xi32>
    %83 = vector.shape_cast %82 : vector<1x8x1xi32> to vector<8x1xi32>
    %84 = tpu.iota {dimensions = array<i32: 1>} : vector<8x8xi32>
    %85 = tpu.iota {dimensions = array<i32: 2>} : vector<8x8x8xi32>
    %86 = tpu.iota {dimensions = array<i32: 1>} : vector<8x64xi32>
    %87 = vector.shape_cast %16 : vector<8x8xf32> to vector<8x1x8xf32>
    %88 = vector.shape_cast %12 : vector<8x8xf32> to vector<1x8x8xf32>
    %89 = vector.broadcast %87 : vector<8x1x8xf32> to vector<8x8x8xf32>
    %90 = vector.broadcast %88 : vector<1x8x8xf32> to vector<8x8x8xf32>
    %91 = arith.addf %89, %90 : vector<8x8x8xf32>
    %92 = vector.shape_cast %17 : vector<8x8xf32> to vector<8x8x1xf32>
    %93 = vector.broadcast %92 : vector<8x8x1xf32> to vector<8x8x8xf32>
    %94 = arith.addf %91, %93 : vector<8x8x8xf32>
    %cst_62 = arith.constant dense<0xFF800000> : vector<8x8xf32>
    %95 = vector.multi_reduction <maximumf>, %94, %cst_62 [2] : vector<8x8x8xf32> to vector<8x8xf32>
    %96 = vector.shape_cast %95 : vector<8x8xf32> to vector<8x8x1xf32>
    %97 = vector.broadcast %96 : vector<8x8x1xf32> to vector<8x8x8xf32>
    %98 = arith.subf %94, %97 : vector<8x8x8xf32>
    %99 = math.exp %98 : vector<8x8x8xf32>
    %cst_63 = arith.constant dense<0.000000e+00> : vector<8x8xf32>
    %100 = vector.multi_reduction <add>, %99, %cst_63 [2] : vector<8x8x8xf32> to vector<8x8xf32>
    %101 = math.log %100 : vector<8x8xf32>
    %102 = arith.addf %95, %101 : vector<8x8xf32>
    %103 = arith.select %43, %102, %16 : vector<8x8xi1>, vector<8x8xf32>
    %104 = vector.shape_cast %103 : vector<8x8xf32> to vector<8x1x8xf32>
    %105 = vector.shape_cast %12 : vector<8x8xf32> to vector<1x8x8xf32>
    %106 = vector.broadcast %104 : vector<8x1x8xf32> to vector<8x8x8xf32>
    %107 = vector.broadcast %105 : vector<1x8x8xf32> to vector<8x8x8xf32>
    %108 = arith.addf %106, %107 : vector<8x8x8xf32>
    %109 = vector.shape_cast %18 : vector<8x8xf32> to vector<8x8x1xf32>
    %110 = vector.broadcast %109 : vector<8x8x1xf32> to vector<8x8x8xf32>
    %111 = arith.addf %108, %110 : vector<8x8x8xf32>
    %cst_64 = arith.constant dense<0xFF800000> : vector<8x8xf32>
    %112 = vector.multi_reduction <maximumf>, %111, %cst_64 [2] : vector<8x8x8xf32> to vector<8x8xf32>
    %113 = vector.shape_cast %112 : vector<8x8xf32> to vector<8x8x1xf32>
    %114 = vector.broadcast %113 : vector<8x8x1xf32> to vector<8x8x8xf32>
    %115 = arith.subf %111, %114 : vector<8x8x8xf32>
    %116 = math.exp %115 : vector<8x8x8xf32>
    %cst_65 = arith.constant dense<0.000000e+00> : vector<8x8xf32>
    %117 = vector.multi_reduction <add>, %116, %cst_65 [2] : vector<8x8x8xf32> to vector<8x8xf32>
    %118 = math.log %117 : vector<8x8xf32>
    %119 = arith.addf %112, %118 : vector<8x8xf32>
    %120 = arith.select %47, %119, %103 : vector<8x8xi1>, vector<8x8xf32>
    %121 = vector.shape_cast %120 : vector<8x8xf32> to vector<8x1x8xf32>
    %122 = vector.shape_cast %12 : vector<8x8xf32> to vector<1x8x8xf32>
    %123 = vector.broadcast %121 : vector<8x1x8xf32> to vector<8x8x8xf32>
    %124 = vector.broadcast %122 : vector<1x8x8xf32> to vector<8x8x8xf32>
    %125 = arith.addf %123, %124 : vector<8x8x8xf32>
    %126 = vector.shape_cast %19 : vector<8x8xf32> to vector<8x8x1xf32>
    %127 = vector.broadcast %126 : vector<8x8x1xf32> to vector<8x8x8xf32>
    %128 = arith.addf %125, %127 : vector<8x8x8xf32>
    %cst_66 = arith.constant dense<0xFF800000> : vector<8x8xf32>
    %129 = vector.multi_reduction <maximumf>, %128, %cst_66 [2] : vector<8x8x8xf32> to vector<8x8xf32>
    %130 = vector.shape_cast %129 : vector<8x8xf32> to vector<8x8x1xf32>
    %131 = vector.broadcast %130 : vector<8x8x1xf32> to vector<8x8x8xf32>
    %132 = arith.subf %128, %131 : vector<8x8x8xf32>
    %133 = math.exp %132 : vector<8x8x8xf32>
    %cst_67 = arith.constant dense<0.000000e+00> : vector<8x8xf32>
    %134 = vector.multi_reduction <add>, %133, %cst_67 [2] : vector<8x8x8xf32> to vector<8x8xf32>
    %135 = math.log %134 : vector<8x8xf32>
    %136 = arith.addf %129, %135 : vector<8x8xf32>
    %137 = arith.select %51, %136, %120 : vector<8x8xi1>, vector<8x8xf32>
    %138 = vector.shape_cast %137 : vector<8x8xf32> to vector<8x1x8xf32>
    %139 = vector.shape_cast %12 : vector<8x8xf32> to vector<1x8x8xf32>
    %140 = vector.broadcast %138 : vector<8x1x8xf32> to vector<8x8x8xf32>
    %141 = vector.broadcast %139 : vector<1x8x8xf32> to vector<8x8x8xf32>
    %142 = arith.addf %140, %141 : vector<8x8x8xf32>
    %143 = vector.shape_cast %20 : vector<8x8xf32> to vector<8x8x1xf32>
    %144 = vector.broadcast %143 : vector<8x8x1xf32> to vector<8x8x8xf32>
    %145 = arith.addf %142, %144 : vector<8x8x8xf32>
    %cst_68 = arith.constant dense<0xFF800000> : vector<8x8xf32>
    %146 = vector.multi_reduction <maximumf>, %145, %cst_68 [2] : vector<8x8x8xf32> to vector<8x8xf32>
    %147 = vector.shape_cast %146 : vector<8x8xf32> to vector<8x8x1xf32>
    %148 = vector.broadcast %147 : vector<8x8x1xf32> to vector<8x8x8xf32>
    %149 = arith.subf %145, %148 : vector<8x8x8xf32>
    %150 = math.exp %149 : vector<8x8x8xf32>
    %cst_69 = arith.constant dense<0.000000e+00> : vector<8x8xf32>
    %151 = vector.multi_reduction <add>, %150, %cst_69 [2] : vector<8x8x8xf32> to vector<8x8xf32>
    %152 = math.log %151 : vector<8x8xf32>
    %153 = arith.addf %146, %152 : vector<8x8xf32>
    %154 = arith.select %55, %153, %137 : vector<8x8xi1>, vector<8x8xf32>
    %155 = vector.shape_cast %154 : vector<8x8xf32> to vector<8x1x8xf32>
    %156 = vector.shape_cast %12 : vector<8x8xf32> to vector<1x8x8xf32>
    %157 = vector.broadcast %155 : vector<8x1x8xf32> to vector<8x8x8xf32>
    %158 = vector.broadcast %156 : vector<1x8x8xf32> to vector<8x8x8xf32>
    %159 = arith.addf %157, %158 : vector<8x8x8xf32>
    %160 = vector.shape_cast %21 : vector<8x8xf32> to vector<8x8x1xf32>
    %161 = vector.broadcast %160 : vector<8x8x1xf32> to vector<8x8x8xf32>
    %162 = arith.addf %159, %161 : vector<8x8x8xf32>
    %cst_70 = arith.constant dense<0xFF800000> : vector<8x8xf32>
    %163 = vector.multi_reduction <maximumf>, %162, %cst_70 [2] : vector<8x8x8xf32> to vector<8x8xf32>
    %164 = vector.shape_cast %163 : vector<8x8xf32> to vector<8x8x1xf32>
    %165 = vector.broadcast %164 : vector<8x8x1xf32> to vector<8x8x8xf32>
    %166 = arith.subf %162, %165 : vector<8x8x8xf32>
    %167 = math.exp %166 : vector<8x8x8xf32>
    %cst_71 = arith.constant dense<0.000000e+00> : vector<8x8xf32>
    %168 = vector.multi_reduction <add>, %167, %cst_71 [2] : vector<8x8x8xf32> to vector<8x8xf32>
    %169 = math.log %168 : vector<8x8xf32>
    %170 = arith.addf %163, %169 : vector<8x8xf32>
    %171 = arith.select %59, %170, %154 : vector<8x8xi1>, vector<8x8xf32>
    %172 = vector.shape_cast %171 : vector<8x8xf32> to vector<8x1x8xf32>
    %173 = vector.shape_cast %12 : vector<8x8xf32> to vector<1x8x8xf32>
    %174 = vector.broadcast %172 : vector<8x1x8xf32> to vector<8x8x8xf32>
    %175 = vector.broadcast %173 : vector<1x8x8xf32> to vector<8x8x8xf32>
    %176 = arith.addf %174, %175 : vector<8x8x8xf32>
    %177 = vector.shape_cast %22 : vector<8x8xf32> to vector<8x8x1xf32>
    %178 = vector.broadcast %177 : vector<8x8x1xf32> to vector<8x8x8xf32>
    %179 = arith.addf %176, %178 : vector<8x8x8xf32>
    %cst_72 = arith.constant dense<0xFF800000> : vector<8x8xf32>
    %180 = vector.multi_reduction <maximumf>, %179, %cst_72 [2] : vector<8x8x8xf32> to vector<8x8xf32>
    %181 = vector.shape_cast %180 : vector<8x8xf32> to vector<8x8x1xf32>
    %182 = vector.broadcast %181 : vector<8x8x1xf32> to vector<8x8x8xf32>
    %183 = arith.subf %179, %182 : vector<8x8x8xf32>
    %184 = math.exp %183 : vector<8x8x8xf32>
    %cst_73 = arith.constant dense<0.000000e+00> : vector<8x8xf32>
    %185 = vector.multi_reduction <add>, %184, %cst_73 [2] : vector<8x8x8xf32> to vector<8x8xf32>
    %186 = math.log %185 : vector<8x8xf32>
    %187 = arith.addf %180, %186 : vector<8x8xf32>
    %188 = arith.select %63, %187, %171 : vector<8x8xi1>, vector<8x8xf32>
    %189 = vector.shape_cast %188 : vector<8x8xf32> to vector<8x1x8xf32>
    %190 = vector.shape_cast %12 : vector<8x8xf32> to vector<1x8x8xf32>
    %191 = vector.broadcast %189 : vector<8x1x8xf32> to vector<8x8x8xf32>
    %192 = vector.broadcast %190 : vector<1x8x8xf32> to vector<8x8x8xf32>
    %193 = arith.addf %191, %192 : vector<8x8x8xf32>
    %194 = vector.shape_cast %23 : vector<8x8xf32> to vector<8x8x1xf32>
    %195 = vector.broadcast %194 : vector<8x8x1xf32> to vector<8x8x8xf32>
    %196 = arith.addf %193, %195 : vector<8x8x8xf32>
    %cst_74 = arith.constant dense<0xFF800000> : vector<8x8xf32>
    %197 = vector.multi_reduction <maximumf>, %196, %cst_74 [2] : vector<8x8x8xf32> to vector<8x8xf32>
    %198 = vector.shape_cast %197 : vector<8x8xf32> to vector<8x8x1xf32>
    %199 = vector.broadcast %198 : vector<8x8x1xf32> to vector<8x8x8xf32>
    %200 = arith.subf %196, %199 : vector<8x8x8xf32>
    %201 = math.exp %200 : vector<8x8x8xf32>
    %cst_75 = arith.constant dense<0.000000e+00> : vector<8x8xf32>
    %202 = vector.multi_reduction <add>, %201, %cst_75 [2] : vector<8x8x8xf32> to vector<8x8xf32>
    %203 = math.log %202 : vector<8x8xf32>
    %204 = arith.addf %197, %203 : vector<8x8xf32>
    %205 = arith.select %67, %204, %188 : vector<8x8xi1>, vector<8x8xf32>
    %cst_76 = arith.constant dense<0xFF800000> : vector<8xf32>
    %206 = vector.multi_reduction <maximumf>, %205, %cst_76 [1] : vector<8x8xf32> to vector<8xf32>
    %207 = vector.shape_cast %206 : vector<8xf32> to vector<8x1xf32>
    %208 = vector.broadcast %207 : vector<8x1xf32> to vector<8x8xf32>
    %209 = arith.subf %205, %208 : vector<8x8xf32>
    %210 = math.exp %209 : vector<8x8xf32>
    %cst_77 = arith.constant dense<0.000000e+00> : vector<8xf32>
    %211 = vector.multi_reduction <add>, %210, %cst_77 [1] : vector<8x8xf32> to vector<8xf32>
    %212 = vector.shape_cast %211 : vector<8xf32> to vector<8x1xf32>
    %213 = math.log %212 : vector<8x1xf32>
    %214 = arith.addf %207, %213 : vector<8x1xf32>
    %cst_78 = arith.constant 0.000000e+00 : f32
    %215 = vector.broadcast %cst_78 : f32 to vector<8x1xf32>
    %216 = vector.broadcast %69 : vector<8x1xi32> to vector<8x8xi32>
    %217 = arith.cmpi eq, %216, %84 : vector<8x8xi32>
    %cst_79 = arith.constant 0.000000e+00 : f32
    %218 = vector.broadcast %cst_79 : f32 to vector<8x8xf32>
    %219 = arith.select %217, %16, %218 : vector<8x8xi1>, vector<8x8xf32>
    %cst_80 = arith.constant dense<0.000000e+00> : vector<8xf32>
    %220 = vector.multi_reduction <add>, %219, %cst_80 [1] : vector<8x8xf32> to vector<8xf32>
    %221 = vector.shape_cast %220 : vector<8xf32> to vector<8x1xf32>
    %c8_i32 = arith.constant 8 : i32
    %222 = vector.broadcast %c8_i32 : i32 to vector<8x1xi32>
    %223 = arith.muli %69, %222 : vector<8x1xi32>
    %224 = arith.addi %223, %71 : vector<8x1xi32>
    %225 = vector.broadcast %224 : vector<8x1xi32> to vector<8x64xi32>
    %226 = arith.cmpi eq, %225, %86 : vector<8x64xi32>
    %cst_81 = arith.constant 0.000000e+00 : f32
    %227 = vector.broadcast %cst_81 : f32 to vector<8x64xf32>
    %228 = arith.select %226, %15, %227 : vector<8x64xi1>, vector<8x64xf32>
    %cst_82 = arith.constant dense<0.000000e+00> : vector<8xf32>
    %229 = vector.multi_reduction <add>, %228, %cst_82 [1] : vector<8x64xf32> to vector<8xf32>
    %230 = vector.shape_cast %229 : vector<8xf32> to vector<8x1xf32>
    %231 = arith.mulf %221, %25 : vector<8x1xf32>
    %232 = arith.addf %215, %231 : vector<8x1xf32>
    %233 = arith.mulf %230, %27 : vector<8x1xf32>
    %234 = arith.addf %232, %233 : vector<8x1xf32>
    %235 = vector.broadcast %71 : vector<8x1xi32> to vector<8x8xi32>
    %236 = arith.cmpi eq, %235, %84 : vector<8x8xi32>
    %cst_83 = arith.constant 0.000000e+00 : f32
    %237 = vector.broadcast %cst_83 : f32 to vector<8x8xf32>
    %238 = arith.select %236, %17, %237 : vector<8x8xi1>, vector<8x8xf32>
    %cst_84 = arith.constant dense<0.000000e+00> : vector<8xf32>
    %239 = vector.multi_reduction <add>, %238, %cst_84 [1] : vector<8x8xf32> to vector<8xf32>
    %240 = vector.shape_cast %239 : vector<8xf32> to vector<8x1xf32>
    %c8_i32_85 = arith.constant 8 : i32
    %241 = vector.broadcast %c8_i32_85 : i32 to vector<8x1xi32>
    %242 = arith.muli %71, %241 : vector<8x1xi32>
    %243 = arith.addi %242, %73 : vector<8x1xi32>
    %244 = vector.broadcast %243 : vector<8x1xi32> to vector<8x64xi32>
    %245 = arith.cmpi eq, %244, %86 : vector<8x64xi32>
    %cst_86 = arith.constant 0.000000e+00 : f32
    %246 = vector.broadcast %cst_86 : f32 to vector<8x64xf32>
    %247 = arith.select %245, %15, %246 : vector<8x64xi1>, vector<8x64xf32>
    %cst_87 = arith.constant dense<0.000000e+00> : vector<8xf32>
    %248 = vector.multi_reduction <add>, %247, %cst_87 [1] : vector<8x64xf32> to vector<8xf32>
    %249 = vector.shape_cast %248 : vector<8xf32> to vector<8x1xf32>
    %250 = arith.mulf %240, %27 : vector<8x1xf32>
    %251 = arith.addf %234, %250 : vector<8x1xf32>
    %252 = arith.mulf %249, %29 : vector<8x1xf32>
    %253 = arith.addf %251, %252 : vector<8x1xf32>
    %254 = vector.broadcast %73 : vector<8x1xi32> to vector<8x8xi32>
    %255 = arith.cmpi eq, %254, %84 : vector<8x8xi32>
    %cst_88 = arith.constant 0.000000e+00 : f32
    %256 = vector.broadcast %cst_88 : f32 to vector<8x8xf32>
    %257 = arith.select %255, %18, %256 : vector<8x8xi1>, vector<8x8xf32>
    %cst_89 = arith.constant dense<0.000000e+00> : vector<8xf32>
    %258 = vector.multi_reduction <add>, %257, %cst_89 [1] : vector<8x8xf32> to vector<8xf32>
    %259 = vector.shape_cast %258 : vector<8xf32> to vector<8x1xf32>
    %c8_i32_90 = arith.constant 8 : i32
    %260 = vector.broadcast %c8_i32_90 : i32 to vector<8x1xi32>
    %261 = arith.muli %73, %260 : vector<8x1xi32>
    %262 = arith.addi %261, %75 : vector<8x1xi32>
    %263 = vector.broadcast %262 : vector<8x1xi32> to vector<8x64xi32>
    %264 = arith.cmpi eq, %263, %86 : vector<8x64xi32>
    %cst_91 = arith.constant 0.000000e+00 : f32
    %265 = vector.broadcast %cst_91 : f32 to vector<8x64xf32>
    %266 = arith.select %264, %15, %265 : vector<8x64xi1>, vector<8x64xf32>
    %cst_92 = arith.constant dense<0.000000e+00> : vector<8xf32>
    %267 = vector.multi_reduction <add>, %266, %cst_92 [1] : vector<8x64xf32> to vector<8xf32>
    %268 = vector.shape_cast %267 : vector<8xf32> to vector<8x1xf32>
    %269 = arith.mulf %259, %29 : vector<8x1xf32>
    %270 = arith.addf %253, %269 : vector<8x1xf32>
    %271 = arith.mulf %268, %31 : vector<8x1xf32>
    %272 = arith.addf %270, %271 : vector<8x1xf32>
    %273 = vector.broadcast %75 : vector<8x1xi32> to vector<8x8xi32>
    %274 = arith.cmpi eq, %273, %84 : vector<8x8xi32>
    %cst_93 = arith.constant 0.000000e+00 : f32
    %275 = vector.broadcast %cst_93 : f32 to vector<8x8xf32>
    %276 = arith.select %274, %19, %275 : vector<8x8xi1>, vector<8x8xf32>
    %cst_94 = arith.constant dense<0.000000e+00> : vector<8xf32>
    %277 = vector.multi_reduction <add>, %276, %cst_94 [1] : vector<8x8xf32> to vector<8xf32>
    %278 = vector.shape_cast %277 : vector<8xf32> to vector<8x1xf32>
    %c8_i32_95 = arith.constant 8 : i32
    %279 = vector.broadcast %c8_i32_95 : i32 to vector<8x1xi32>
    %280 = arith.muli %75, %279 : vector<8x1xi32>
    %281 = arith.addi %280, %77 : vector<8x1xi32>
    %282 = vector.broadcast %281 : vector<8x1xi32> to vector<8x64xi32>
    %283 = arith.cmpi eq, %282, %86 : vector<8x64xi32>
    %cst_96 = arith.constant 0.000000e+00 : f32
    %284 = vector.broadcast %cst_96 : f32 to vector<8x64xf32>
    %285 = arith.select %283, %15, %284 : vector<8x64xi1>, vector<8x64xf32>
    %cst_97 = arith.constant dense<0.000000e+00> : vector<8xf32>
    %286 = vector.multi_reduction <add>, %285, %cst_97 [1] : vector<8x64xf32> to vector<8xf32>
    %287 = vector.shape_cast %286 : vector<8xf32> to vector<8x1xf32>
    %288 = arith.mulf %278, %31 : vector<8x1xf32>
    %289 = arith.addf %272, %288 : vector<8x1xf32>
    %290 = arith.mulf %287, %33 : vector<8x1xf32>
    %291 = arith.addf %289, %290 : vector<8x1xf32>
    %292 = vector.broadcast %77 : vector<8x1xi32> to vector<8x8xi32>
    %293 = arith.cmpi eq, %292, %84 : vector<8x8xi32>
    %cst_98 = arith.constant 0.000000e+00 : f32
    %294 = vector.broadcast %cst_98 : f32 to vector<8x8xf32>
    %295 = arith.select %293, %20, %294 : vector<8x8xi1>, vector<8x8xf32>
    %cst_99 = arith.constant dense<0.000000e+00> : vector<8xf32>
    %296 = vector.multi_reduction <add>, %295, %cst_99 [1] : vector<8x8xf32> to vector<8xf32>
    %297 = vector.shape_cast %296 : vector<8xf32> to vector<8x1xf32>
    %c8_i32_100 = arith.constant 8 : i32
    %298 = vector.broadcast %c8_i32_100 : i32 to vector<8x1xi32>
    %299 = arith.muli %77, %298 : vector<8x1xi32>
    %300 = arith.addi %299, %79 : vector<8x1xi32>
    %301 = vector.broadcast %300 : vector<8x1xi32> to vector<8x64xi32>
    %302 = arith.cmpi eq, %301, %86 : vector<8x64xi32>
    %cst_101 = arith.constant 0.000000e+00 : f32
    %303 = vector.broadcast %cst_101 : f32 to vector<8x64xf32>
    %304 = arith.select %302, %15, %303 : vector<8x64xi1>, vector<8x64xf32>
    %cst_102 = arith.constant dense<0.000000e+00> : vector<8xf32>
    %305 = vector.multi_reduction <add>, %304, %cst_102 [1] : vector<8x64xf32> to vector<8xf32>
    %306 = vector.shape_cast %305 : vector<8xf32> to vector<8x1xf32>
    %307 = arith.mulf %297, %33 : vector<8x1xf32>
    %308 = arith.addf %291, %307 : vector<8x1xf32>
    %309 = arith.mulf %306, %35 : vector<8x1xf32>
    %310 = arith.addf %308, %309 : vector<8x1xf32>
    %311 = vector.broadcast %79 : vector<8x1xi32> to vector<8x8xi32>
    %312 = arith.cmpi eq, %311, %84 : vector<8x8xi32>
    %cst_103 = arith.constant 0.000000e+00 : f32
    %313 = vector.broadcast %cst_103 : f32 to vector<8x8xf32>
    %314 = arith.select %312, %21, %313 : vector<8x8xi1>, vector<8x8xf32>
    %cst_104 = arith.constant dense<0.000000e+00> : vector<8xf32>
    %315 = vector.multi_reduction <add>, %314, %cst_104 [1] : vector<8x8xf32> to vector<8xf32>
    %316 = vector.shape_cast %315 : vector<8xf32> to vector<8x1xf32>
    %c8_i32_105 = arith.constant 8 : i32
    %317 = vector.broadcast %c8_i32_105 : i32 to vector<8x1xi32>
    %318 = arith.muli %79, %317 : vector<8x1xi32>
    %319 = arith.addi %318, %81 : vector<8x1xi32>
    %320 = vector.broadcast %319 : vector<8x1xi32> to vector<8x64xi32>
    %321 = arith.cmpi eq, %320, %86 : vector<8x64xi32>
    %cst_106 = arith.constant 0.000000e+00 : f32
    %322 = vector.broadcast %cst_106 : f32 to vector<8x64xf32>
    %323 = arith.select %321, %15, %322 : vector<8x64xi1>, vector<8x64xf32>
    %cst_107 = arith.constant dense<0.000000e+00> : vector<8xf32>
    %324 = vector.multi_reduction <add>, %323, %cst_107 [1] : vector<8x64xf32> to vector<8xf32>
    %325 = vector.shape_cast %324 : vector<8xf32> to vector<8x1xf32>
    %326 = arith.mulf %316, %35 : vector<8x1xf32>
    %327 = arith.addf %310, %326 : vector<8x1xf32>
    %328 = arith.mulf %325, %37 : vector<8x1xf32>
    %329 = arith.addf %327, %328 : vector<8x1xf32>
    %330 = vector.broadcast %81 : vector<8x1xi32> to vector<8x8xi32>
    %331 = arith.cmpi eq, %330, %84 : vector<8x8xi32>
    %cst_108 = arith.constant 0.000000e+00 : f32
    %332 = vector.broadcast %cst_108 : f32 to vector<8x8xf32>
    %333 = arith.select %331, %22, %332 : vector<8x8xi1>, vector<8x8xf32>
    %cst_109 = arith.constant dense<0.000000e+00> : vector<8xf32>
    %334 = vector.multi_reduction <add>, %333, %cst_109 [1] : vector<8x8xf32> to vector<8xf32>
    %335 = vector.shape_cast %334 : vector<8xf32> to vector<8x1xf32>
    %c8_i32_110 = arith.constant 8 : i32
    %336 = vector.broadcast %c8_i32_110 : i32 to vector<8x1xi32>
    %337 = arith.muli %81, %336 : vector<8x1xi32>
    %338 = arith.addi %337, %83 : vector<8x1xi32>
    %339 = vector.broadcast %338 : vector<8x1xi32> to vector<8x64xi32>
    %340 = arith.cmpi eq, %339, %86 : vector<8x64xi32>
    %cst_111 = arith.constant 0.000000e+00 : f32
    %341 = vector.broadcast %cst_111 : f32 to vector<8x64xf32>
    %342 = arith.select %340, %15, %341 : vector<8x64xi1>, vector<8x64xf32>
    %cst_112 = arith.constant dense<0.000000e+00> : vector<8xf32>
    %343 = vector.multi_reduction <add>, %342, %cst_112 [1] : vector<8x64xf32> to vector<8xf32>
    %344 = vector.shape_cast %343 : vector<8xf32> to vector<8x1xf32>
    %345 = arith.mulf %335, %37 : vector<8x1xf32>
    %346 = arith.addf %329, %345 : vector<8x1xf32>
    %347 = arith.mulf %344, %39 : vector<8x1xf32>
    %348 = arith.addf %346, %347 : vector<8x1xf32>
    %349 = arith.addf %25, %27 : vector<8x1xf32>
    %350 = arith.addf %349, %29 : vector<8x1xf32>
    %351 = arith.addf %350, %31 : vector<8x1xf32>
    %352 = arith.addf %351, %33 : vector<8x1xf32>
    %353 = arith.addf %352, %35 : vector<8x1xf32>
    %354 = arith.addf %353, %37 : vector<8x1xf32>
    %355 = arith.addf %354, %39 : vector<8x1xf32>
    %356 = arith.fptosi %355 : vector<8x1xf32> to vector<8x1xi32>
    %c1_i32 = arith.constant 1 : i32
    %357 = vector.broadcast %c1_i32 : i32 to vector<8x1xi32>
    %358 = arith.subi %356, %357 : vector<8x1xi32>
    %c1_i32_113 = arith.constant 1 : i32
    %359 = vector.broadcast %c1_i32_113 : i32 to vector<8x1xi32>
    %360 = arith.cmpi eq, %358, %359 : vector<8x1xi32>
    %361 = arith.select %360, %71, %69 : vector<8x1xi1>, vector<8x1xi32>
    %c2_i32 = arith.constant 2 : i32
    %362 = vector.broadcast %c2_i32 : i32 to vector<8x1xi32>
    %363 = arith.cmpi eq, %358, %362 : vector<8x1xi32>
    %364 = arith.select %363, %73, %361 : vector<8x1xi1>, vector<8x1xi32>
    %c3_i32 = arith.constant 3 : i32
    %365 = vector.broadcast %c3_i32 : i32 to vector<8x1xi32>
    %366 = arith.cmpi eq, %358, %365 : vector<8x1xi32>
    %367 = arith.select %366, %75, %364 : vector<8x1xi1>, vector<8x1xi32>
    %c4_i32 = arith.constant 4 : i32
    %368 = vector.broadcast %c4_i32 : i32 to vector<8x1xi32>
    %369 = arith.cmpi eq, %358, %368 : vector<8x1xi32>
    %370 = arith.select %369, %77, %367 : vector<8x1xi1>, vector<8x1xi32>
    %c5_i32 = arith.constant 5 : i32
    %371 = vector.broadcast %c5_i32 : i32 to vector<8x1xi32>
    %372 = arith.cmpi eq, %358, %371 : vector<8x1xi32>
    %373 = arith.select %372, %79, %370 : vector<8x1xi1>, vector<8x1xi32>
    %c6_i32 = arith.constant 6 : i32
    %374 = vector.broadcast %c6_i32 : i32 to vector<8x1xi32>
    %375 = arith.cmpi eq, %358, %374 : vector<8x1xi32>
    %376 = arith.select %375, %81, %373 : vector<8x1xi1>, vector<8x1xi32>
    %c7_i32 = arith.constant 7 : i32
    %377 = vector.broadcast %c7_i32 : i32 to vector<8x1xi32>
    %378 = arith.cmpi eq, %358, %377 : vector<8x1xi32>
    %379 = arith.select %378, %83, %376 : vector<8x1xi1>, vector<8x1xi32>
    %380 = vector.broadcast %379 : vector<8x1xi32> to vector<8x8xi32>
    %381 = arith.cmpi eq, %380, %84 : vector<8x8xi32>
    %cst_114 = arith.constant 0.000000e+00 : f32
    %382 = vector.broadcast %cst_114 : f32 to vector<8x8xf32>
    %383 = arith.select %381, %23, %382 : vector<8x8xi1>, vector<8x8xf32>
    %cst_115 = arith.constant dense<0.000000e+00> : vector<8xf32>
    %384 = vector.multi_reduction <add>, %383, %cst_115 [1] : vector<8x8xf32> to vector<8xf32>
    %385 = vector.shape_cast %384 : vector<8xf32> to vector<8x1xf32>
    %386 = arith.mulf %385, %39 : vector<8x1xf32>
    %387 = arith.addf %348, %386 : vector<8x1xf32>
    %388 = arith.subf %214, %387 : vector<8x1xf32>
    %389 = vector.shape_cast %16 : vector<8x8xf32> to vector<8x1x8xf32>
    %390 = vector.shape_cast %12 : vector<8x8xf32> to vector<1x8x8xf32>
    %391 = vector.broadcast %389 : vector<8x1x8xf32> to vector<8x8x8xf32>
    %392 = vector.broadcast %390 : vector<1x8x8xf32> to vector<8x8x8xf32>
    %393 = arith.addf %391, %392 : vector<8x8x8xf32>
    %cst_116 = arith.constant dense<0xFF800000> : vector<8x8xf32>
    %394 = vector.multi_reduction <maximumf>, %393, %cst_116 [2] : vector<8x8x8xf32> to vector<8x8xf32>
    %395 = vector.shape_cast %394 : vector<8x8xf32> to vector<8x8x1xf32>
    %396 = vector.broadcast %395 : vector<8x8x1xf32> to vector<8x8x8xf32>
    %397 = arith.cmpf oeq, %393, %396 : vector<8x8x8xf32>
    %c8_i32_117 = arith.constant 8 : i32
    %398 = vector.broadcast %c8_i32_117 : i32 to vector<8x8x8xi32>
    %399 = arith.select %397, %85, %398 : vector<8x8x8xi1>, vector<8x8x8xi32>
    %cst_118 = arith.constant dense<2147483647> : vector<8x8xi32>
    %400 = vector.multi_reduction <minsi>, %399, %cst_118 [2] : vector<8x8x8xi32> to vector<8x8xi32>
    %401 = arith.select %43, %400, %84 : vector<8x8xi1>, vector<8x8xi32>
    %402 = arith.addf %394, %17 : vector<8x8xf32>
    %403 = arith.select %43, %402, %16 : vector<8x8xi1>, vector<8x8xf32>
    %404 = vector.shape_cast %403 : vector<8x8xf32> to vector<8x1x8xf32>
    %405 = vector.shape_cast %12 : vector<8x8xf32> to vector<1x8x8xf32>
    %406 = vector.broadcast %404 : vector<8x1x8xf32> to vector<8x8x8xf32>
    %407 = vector.broadcast %405 : vector<1x8x8xf32> to vector<8x8x8xf32>
    %408 = arith.addf %406, %407 : vector<8x8x8xf32>
    %cst_119 = arith.constant dense<0xFF800000> : vector<8x8xf32>
    %409 = vector.multi_reduction <maximumf>, %408, %cst_119 [2] : vector<8x8x8xf32> to vector<8x8xf32>
    %410 = vector.shape_cast %409 : vector<8x8xf32> to vector<8x8x1xf32>
    %411 = vector.broadcast %410 : vector<8x8x1xf32> to vector<8x8x8xf32>
    %412 = arith.cmpf oeq, %408, %411 : vector<8x8x8xf32>
    %c8_i32_120 = arith.constant 8 : i32
    %413 = vector.broadcast %c8_i32_120 : i32 to vector<8x8x8xi32>
    %414 = arith.select %412, %85, %413 : vector<8x8x8xi1>, vector<8x8x8xi32>
    %cst_121 = arith.constant dense<2147483647> : vector<8x8xi32>
    %415 = vector.multi_reduction <minsi>, %414, %cst_121 [2] : vector<8x8x8xi32> to vector<8x8xi32>
    %416 = arith.select %47, %415, %84 : vector<8x8xi1>, vector<8x8xi32>
    %417 = arith.addf %409, %18 : vector<8x8xf32>
    %418 = arith.select %47, %417, %403 : vector<8x8xi1>, vector<8x8xf32>
    %419 = vector.shape_cast %418 : vector<8x8xf32> to vector<8x1x8xf32>
    %420 = vector.shape_cast %12 : vector<8x8xf32> to vector<1x8x8xf32>
    %421 = vector.broadcast %419 : vector<8x1x8xf32> to vector<8x8x8xf32>
    %422 = vector.broadcast %420 : vector<1x8x8xf32> to vector<8x8x8xf32>
    %423 = arith.addf %421, %422 : vector<8x8x8xf32>
    %cst_122 = arith.constant dense<0xFF800000> : vector<8x8xf32>
    %424 = vector.multi_reduction <maximumf>, %423, %cst_122 [2] : vector<8x8x8xf32> to vector<8x8xf32>
    %425 = vector.shape_cast %424 : vector<8x8xf32> to vector<8x8x1xf32>
    %426 = vector.broadcast %425 : vector<8x8x1xf32> to vector<8x8x8xf32>
    %427 = arith.cmpf oeq, %423, %426 : vector<8x8x8xf32>
    %c8_i32_123 = arith.constant 8 : i32
    %428 = vector.broadcast %c8_i32_123 : i32 to vector<8x8x8xi32>
    %429 = arith.select %427, %85, %428 : vector<8x8x8xi1>, vector<8x8x8xi32>
    %cst_124 = arith.constant dense<2147483647> : vector<8x8xi32>
    %430 = vector.multi_reduction <minsi>, %429, %cst_124 [2] : vector<8x8x8xi32> to vector<8x8xi32>
    %431 = arith.select %51, %430, %84 : vector<8x8xi1>, vector<8x8xi32>
    %432 = arith.addf %424, %19 : vector<8x8xf32>
    %433 = arith.select %51, %432, %418 : vector<8x8xi1>, vector<8x8xf32>
    %434 = vector.shape_cast %433 : vector<8x8xf32> to vector<8x1x8xf32>
    %435 = vector.shape_cast %12 : vector<8x8xf32> to vector<1x8x8xf32>
    %436 = vector.broadcast %434 : vector<8x1x8xf32> to vector<8x8x8xf32>
    %437 = vector.broadcast %435 : vector<1x8x8xf32> to vector<8x8x8xf32>
    %438 = arith.addf %436, %437 : vector<8x8x8xf32>
    %cst_125 = arith.constant dense<0xFF800000> : vector<8x8xf32>
    %439 = vector.multi_reduction <maximumf>, %438, %cst_125 [2] : vector<8x8x8xf32> to vector<8x8xf32>
    %440 = vector.shape_cast %439 : vector<8x8xf32> to vector<8x8x1xf32>
    %441 = vector.broadcast %440 : vector<8x8x1xf32> to vector<8x8x8xf32>
    %442 = arith.cmpf oeq, %438, %441 : vector<8x8x8xf32>
    %c8_i32_126 = arith.constant 8 : i32
    %443 = vector.broadcast %c8_i32_126 : i32 to vector<8x8x8xi32>
    %444 = arith.select %442, %85, %443 : vector<8x8x8xi1>, vector<8x8x8xi32>
    %cst_127 = arith.constant dense<2147483647> : vector<8x8xi32>
    %445 = vector.multi_reduction <minsi>, %444, %cst_127 [2] : vector<8x8x8xi32> to vector<8x8xi32>
    %446 = arith.select %55, %445, %84 : vector<8x8xi1>, vector<8x8xi32>
    %447 = arith.addf %439, %20 : vector<8x8xf32>
    %448 = arith.select %55, %447, %433 : vector<8x8xi1>, vector<8x8xf32>
    %449 = vector.shape_cast %448 : vector<8x8xf32> to vector<8x1x8xf32>
    %450 = vector.shape_cast %12 : vector<8x8xf32> to vector<1x8x8xf32>
    %451 = vector.broadcast %449 : vector<8x1x8xf32> to vector<8x8x8xf32>
    %452 = vector.broadcast %450 : vector<1x8x8xf32> to vector<8x8x8xf32>
    %453 = arith.addf %451, %452 : vector<8x8x8xf32>
    %cst_128 = arith.constant dense<0xFF800000> : vector<8x8xf32>
    %454 = vector.multi_reduction <maximumf>, %453, %cst_128 [2] : vector<8x8x8xf32> to vector<8x8xf32>
    %455 = vector.shape_cast %454 : vector<8x8xf32> to vector<8x8x1xf32>
    %456 = vector.broadcast %455 : vector<8x8x1xf32> to vector<8x8x8xf32>
    %457 = arith.cmpf oeq, %453, %456 : vector<8x8x8xf32>
    %c8_i32_129 = arith.constant 8 : i32
    %458 = vector.broadcast %c8_i32_129 : i32 to vector<8x8x8xi32>
    %459 = arith.select %457, %85, %458 : vector<8x8x8xi1>, vector<8x8x8xi32>
    %cst_130 = arith.constant dense<2147483647> : vector<8x8xi32>
    %460 = vector.multi_reduction <minsi>, %459, %cst_130 [2] : vector<8x8x8xi32> to vector<8x8xi32>
    %461 = arith.select %59, %460, %84 : vector<8x8xi1>, vector<8x8xi32>
    %462 = arith.addf %454, %21 : vector<8x8xf32>
    %463 = arith.select %59, %462, %448 : vector<8x8xi1>, vector<8x8xf32>
    %464 = vector.shape_cast %463 : vector<8x8xf32> to vector<8x1x8xf32>
    %465 = vector.shape_cast %12 : vector<8x8xf32> to vector<1x8x8xf32>
    %466 = vector.broadcast %464 : vector<8x1x8xf32> to vector<8x8x8xf32>
    %467 = vector.broadcast %465 : vector<1x8x8xf32> to vector<8x8x8xf32>
    %468 = arith.addf %466, %467 : vector<8x8x8xf32>
    %cst_131 = arith.constant dense<0xFF800000> : vector<8x8xf32>
    %469 = vector.multi_reduction <maximumf>, %468, %cst_131 [2] : vector<8x8x8xf32> to vector<8x8xf32>
    %470 = vector.shape_cast %469 : vector<8x8xf32> to vector<8x8x1xf32>
    %471 = vector.broadcast %470 : vector<8x8x1xf32> to vector<8x8x8xf32>
    %472 = arith.cmpf oeq, %468, %471 : vector<8x8x8xf32>
    %c8_i32_132 = arith.constant 8 : i32
    %473 = vector.broadcast %c8_i32_132 : i32 to vector<8x8x8xi32>
    %474 = arith.select %472, %85, %473 : vector<8x8x8xi1>, vector<8x8x8xi32>
    %cst_133 = arith.constant dense<2147483647> : vector<8x8xi32>
    %475 = vector.multi_reduction <minsi>, %474, %cst_133 [2] : vector<8x8x8xi32> to vector<8x8xi32>
    %476 = arith.select %63, %475, %84 : vector<8x8xi1>, vector<8x8xi32>
    %477 = arith.addf %469, %22 : vector<8x8xf32>
    %478 = arith.select %63, %477, %463 : vector<8x8xi1>, vector<8x8xf32>
    %479 = vector.shape_cast %478 : vector<8x8xf32> to vector<8x1x8xf32>
    %480 = vector.shape_cast %12 : vector<8x8xf32> to vector<1x8x8xf32>
    %481 = vector.broadcast %479 : vector<8x1x8xf32> to vector<8x8x8xf32>
    %482 = vector.broadcast %480 : vector<1x8x8xf32> to vector<8x8x8xf32>
    %483 = arith.addf %481, %482 : vector<8x8x8xf32>
    %cst_134 = arith.constant dense<0xFF800000> : vector<8x8xf32>
    %484 = vector.multi_reduction <maximumf>, %483, %cst_134 [2] : vector<8x8x8xf32> to vector<8x8xf32>
    %485 = vector.shape_cast %484 : vector<8x8xf32> to vector<8x8x1xf32>
    %486 = vector.broadcast %485 : vector<8x8x1xf32> to vector<8x8x8xf32>
    %487 = arith.cmpf oeq, %483, %486 : vector<8x8x8xf32>
    %c8_i32_135 = arith.constant 8 : i32
    %488 = vector.broadcast %c8_i32_135 : i32 to vector<8x8x8xi32>
    %489 = arith.select %487, %85, %488 : vector<8x8x8xi1>, vector<8x8x8xi32>
    %cst_136 = arith.constant dense<2147483647> : vector<8x8xi32>
    %490 = vector.multi_reduction <minsi>, %489, %cst_136 [2] : vector<8x8x8xi32> to vector<8x8xi32>
    %491 = arith.select %67, %490, %84 : vector<8x8xi1>, vector<8x8xi32>
    %492 = arith.addf %484, %23 : vector<8x8xf32>
    %493 = arith.select %67, %492, %478 : vector<8x8xi1>, vector<8x8xf32>
    %cst_137 = arith.constant dense<0xFF800000> : vector<8xf32>
    %494 = vector.multi_reduction <maximumf>, %493, %cst_137 [1] : vector<8x8xf32> to vector<8xf32>
    %495 = vector.shape_cast %494 : vector<8xf32> to vector<8x1xf32>
    %496 = vector.broadcast %495 : vector<8x1xf32> to vector<8x8xf32>
    %497 = arith.cmpf oeq, %493, %496 : vector<8x8xf32>
    %c8_i32_138 = arith.constant 8 : i32
    %498 = vector.broadcast %c8_i32_138 : i32 to vector<8x8xi32>
    %499 = arith.select %497, %84, %498 : vector<8x8xi1>, vector<8x8xi32>
    %cst_139 = arith.constant dense<2147483647> : vector<8xi32>
    %500 = vector.multi_reduction <minsi>, %499, %cst_139 [1] : vector<8x8xi32> to vector<8xi32>
    %501 = vector.shape_cast %500 : vector<8xi32> to vector<8x1xi32>
    %502 = tpu.iota {dimensions = array<i32: 1>} : vector<8x128xi32>
    %c7_i32_140 = arith.constant 7 : i32
    %503 = vector.broadcast %c7_i32_140 : i32 to vector<8x128xi32>
    %504 = arith.cmpi eq, %502, %503 : vector<8x128xi32>
    %505 = arith.sitofp %501 : vector<8x1xi32> to vector<8x1xf32>
    %cst_141 = arith.constant 0.000000e+00 : f32
    %506 = vector.shape_cast %505 : vector<8x1xf32> to vector<8x1xf32>
    %507 = vector.broadcast %506 : vector<8x1xf32> to vector<8x128xf32>
    %508 = vector.broadcast %cst_141 : f32 to vector<8x128xf32>
    %509 = arith.select %504, %507, %508 : vector<8x128xi1>, vector<8x128xf32>
    %510 = vector.broadcast %501 : vector<8x1xi32> to vector<8x8xi32>
    %511 = arith.cmpi eq, %510, %84 : vector<8x8xi32>
    %c0_i32 = arith.constant 0 : i32
    %512 = vector.broadcast %c0_i32 : i32 to vector<8x8xi32>
    %513 = arith.select %511, %491, %512 : vector<8x8xi1>, vector<8x8xi32>
    %cst_142 = arith.constant dense<0> : vector<8xi32>
    %514 = vector.multi_reduction <add>, %513, %cst_142 [1] : vector<8x8xi32> to vector<8xi32>
    %515 = vector.shape_cast %514 : vector<8xi32> to vector<8x1xi32>
    %c6_i32_143 = arith.constant 6 : i32
    %516 = vector.broadcast %c6_i32_143 : i32 to vector<8x128xi32>
    %517 = arith.cmpi eq, %502, %516 : vector<8x128xi32>
    %518 = arith.sitofp %515 : vector<8x1xi32> to vector<8x1xf32>
    %519 = vector.shape_cast %518 : vector<8x1xf32> to vector<8x1xf32>
    %520 = vector.broadcast %519 : vector<8x1xf32> to vector<8x128xf32>
    %521 = arith.select %517, %520, %509 : vector<8x128xi1>, vector<8x128xf32>
    %522 = vector.broadcast %515 : vector<8x1xi32> to vector<8x8xi32>
    %523 = arith.cmpi eq, %522, %84 : vector<8x8xi32>
    %c0_i32_144 = arith.constant 0 : i32
    %524 = vector.broadcast %c0_i32_144 : i32 to vector<8x8xi32>
    %525 = arith.select %523, %476, %524 : vector<8x8xi1>, vector<8x8xi32>
    %cst_145 = arith.constant dense<0> : vector<8xi32>
    %526 = vector.multi_reduction <add>, %525, %cst_145 [1] : vector<8x8xi32> to vector<8xi32>
    %527 = vector.shape_cast %526 : vector<8xi32> to vector<8x1xi32>
    %c5_i32_146 = arith.constant 5 : i32
    %528 = vector.broadcast %c5_i32_146 : i32 to vector<8x128xi32>
    %529 = arith.cmpi eq, %502, %528 : vector<8x128xi32>
    %530 = arith.sitofp %527 : vector<8x1xi32> to vector<8x1xf32>
    %531 = vector.shape_cast %530 : vector<8x1xf32> to vector<8x1xf32>
    %532 = vector.broadcast %531 : vector<8x1xf32> to vector<8x128xf32>
    %533 = arith.select %529, %532, %521 : vector<8x128xi1>, vector<8x128xf32>
    %534 = vector.broadcast %527 : vector<8x1xi32> to vector<8x8xi32>
    %535 = arith.cmpi eq, %534, %84 : vector<8x8xi32>
    %c0_i32_147 = arith.constant 0 : i32
    %536 = vector.broadcast %c0_i32_147 : i32 to vector<8x8xi32>
    %537 = arith.select %535, %461, %536 : vector<8x8xi1>, vector<8x8xi32>
    %cst_148 = arith.constant dense<0> : vector<8xi32>
    %538 = vector.multi_reduction <add>, %537, %cst_148 [1] : vector<8x8xi32> to vector<8xi32>
    %539 = vector.shape_cast %538 : vector<8xi32> to vector<8x1xi32>
    %c4_i32_149 = arith.constant 4 : i32
    %540 = vector.broadcast %c4_i32_149 : i32 to vector<8x128xi32>
    %541 = arith.cmpi eq, %502, %540 : vector<8x128xi32>
    %542 = arith.sitofp %539 : vector<8x1xi32> to vector<8x1xf32>
    %543 = vector.shape_cast %542 : vector<8x1xf32> to vector<8x1xf32>
    %544 = vector.broadcast %543 : vector<8x1xf32> to vector<8x128xf32>
    %545 = arith.select %541, %544, %533 : vector<8x128xi1>, vector<8x128xf32>
    %546 = vector.broadcast %539 : vector<8x1xi32> to vector<8x8xi32>
    %547 = arith.cmpi eq, %546, %84 : vector<8x8xi32>
    %c0_i32_150 = arith.constant 0 : i32
    %548 = vector.broadcast %c0_i32_150 : i32 to vector<8x8xi32>
    %549 = arith.select %547, %446, %548 : vector<8x8xi1>, vector<8x8xi32>
    %cst_151 = arith.constant dense<0> : vector<8xi32>
    %550 = vector.multi_reduction <add>, %549, %cst_151 [1] : vector<8x8xi32> to vector<8xi32>
    %551 = vector.shape_cast %550 : vector<8xi32> to vector<8x1xi32>
    %c3_i32_152 = arith.constant 3 : i32
    %552 = vector.broadcast %c3_i32_152 : i32 to vector<8x128xi32>
    %553 = arith.cmpi eq, %502, %552 : vector<8x128xi32>
    %554 = arith.sitofp %551 : vector<8x1xi32> to vector<8x1xf32>
    %555 = vector.shape_cast %554 : vector<8x1xf32> to vector<8x1xf32>
    %556 = vector.broadcast %555 : vector<8x1xf32> to vector<8x128xf32>
    %557 = arith.select %553, %556, %545 : vector<8x128xi1>, vector<8x128xf32>
    %558 = vector.broadcast %551 : vector<8x1xi32> to vector<8x8xi32>
    %559 = arith.cmpi eq, %558, %84 : vector<8x8xi32>
    %c0_i32_153 = arith.constant 0 : i32
    %560 = vector.broadcast %c0_i32_153 : i32 to vector<8x8xi32>
    %561 = arith.select %559, %431, %560 : vector<8x8xi1>, vector<8x8xi32>
    %cst_154 = arith.constant dense<0> : vector<8xi32>
    %562 = vector.multi_reduction <add>, %561, %cst_154 [1] : vector<8x8xi32> to vector<8xi32>
    %563 = vector.shape_cast %562 : vector<8xi32> to vector<8x1xi32>
    %c2_i32_155 = arith.constant 2 : i32
    %564 = vector.broadcast %c2_i32_155 : i32 to vector<8x128xi32>
    %565 = arith.cmpi eq, %502, %564 : vector<8x128xi32>
    %566 = arith.sitofp %563 : vector<8x1xi32> to vector<8x1xf32>
    %567 = vector.shape_cast %566 : vector<8x1xf32> to vector<8x1xf32>
    %568 = vector.broadcast %567 : vector<8x1xf32> to vector<8x128xf32>
    %569 = arith.select %565, %568, %557 : vector<8x128xi1>, vector<8x128xf32>
    %570 = vector.broadcast %563 : vector<8x1xi32> to vector<8x8xi32>
    %571 = arith.cmpi eq, %570, %84 : vector<8x8xi32>
    %c0_i32_156 = arith.constant 0 : i32
    %572 = vector.broadcast %c0_i32_156 : i32 to vector<8x8xi32>
    %573 = arith.select %571, %416, %572 : vector<8x8xi1>, vector<8x8xi32>
    %cst_157 = arith.constant dense<0> : vector<8xi32>
    %574 = vector.multi_reduction <add>, %573, %cst_157 [1] : vector<8x8xi32> to vector<8xi32>
    %575 = vector.shape_cast %574 : vector<8xi32> to vector<8x1xi32>
    %c1_i32_158 = arith.constant 1 : i32
    %576 = vector.broadcast %c1_i32_158 : i32 to vector<8x128xi32>
    %577 = arith.cmpi eq, %502, %576 : vector<8x128xi32>
    %578 = arith.sitofp %575 : vector<8x1xi32> to vector<8x1xf32>
    %579 = vector.shape_cast %578 : vector<8x1xf32> to vector<8x1xf32>
    %580 = vector.broadcast %579 : vector<8x1xf32> to vector<8x128xf32>
    %581 = arith.select %577, %580, %569 : vector<8x128xi1>, vector<8x128xf32>
    %582 = vector.broadcast %575 : vector<8x1xi32> to vector<8x8xi32>
    %583 = arith.cmpi eq, %582, %84 : vector<8x8xi32>
    %c0_i32_159 = arith.constant 0 : i32
    %584 = vector.broadcast %c0_i32_159 : i32 to vector<8x8xi32>
    %585 = arith.select %583, %401, %584 : vector<8x8xi1>, vector<8x8xi32>
    %cst_160 = arith.constant dense<0> : vector<8xi32>
    %586 = vector.multi_reduction <add>, %585, %cst_160 [1] : vector<8x8xi32> to vector<8xi32>
    %587 = vector.shape_cast %586 : vector<8xi32> to vector<8x1xi32>
    %c0_i32_161 = arith.constant 0 : i32
    %588 = vector.broadcast %c0_i32_161 : i32 to vector<8x128xi32>
    %589 = arith.cmpi eq, %502, %588 : vector<8x128xi32>
    %590 = arith.sitofp %587 : vector<8x1xi32> to vector<8x1xf32>
    %591 = vector.shape_cast %590 : vector<8x1xf32> to vector<8x1xf32>
    %592 = vector.broadcast %591 : vector<8x1xf32> to vector<8x128xf32>
    %593 = arith.select %589, %592, %581 : vector<8x128xi1>, vector<8x128xf32>
    %c8_i32_162 = arith.constant 8 : i32
    %594 = vector.broadcast %c8_i32_162 : i32 to vector<8x128xi32>
    %595 = arith.cmpi eq, %502, %594 : vector<8x128xi32>
    %596 = vector.shape_cast %388 : vector<8x1xf32> to vector<8x1xf32>
    %597 = vector.broadcast %596 : vector<8x1xf32> to vector<8x128xf32>
    %598 = arith.select %595, %597, %593 : vector<8x128xi1>, vector<8x128xf32>
    %c0_163 = arith.constant 0 : index
    %c0_164 = arith.constant 0 : index
    %599 = vector.load %arg10[%c0_163, %c0_164] : memref<8x128xf32, #tpu.memory_space<vmem>>, vector<8x128xf32>
    tpu.vector_store %arg10[%c0_163, %c0_164], %598 {strides = array<i32>} : memref<8x128xf32, #tpu.memory_space<vmem>>, vector<8x128xf32>,
    return
  }
  func.func @transform_0(%arg0: i32) -> (i32, i32) {
    %c0_i32 = arith.constant 0 : i32
    %c0_i32_0 = arith.constant 0 : i32
    %c0_i32_1 = arith.constant 0 : i32
    return %c0_i32, %c0_i32_0 : i32, i32
  }
  func.func @transform_1(%arg0: i32) -> (i32, i32) {
    %c0_i32 = arith.constant 0 : i32
    %c0_i32_0 = arith.constant 0 : i32
    %c0_i32_1 = arith.constant 0 : i32
    return %c0_i32, %c0_i32_0 : i32, i32
  }
  func.func @transform_2(%arg0: i32) -> (i32, i32) {
    %c0_i32 = arith.constant 0 : i32
    %c0_i32_0 = arith.constant 0 : i32
    %c0_i32_1 = arith.constant 0 : i32
    return %c0_i32, %c0_i32_0 : i32, i32
  }
  func.func @transform_3(%arg0: i32) -> (i32, i32) {
    %c0_i32 = arith.constant 0 : i32
    %c0_i32_0 = arith.constant 0 : i32
    %c0_i32_1 = arith.constant 0 : i32
    return %c0_i32, %c0_i32_0 : i32, i32
  }
  func.func @transform_4(%arg0: i32) -> (i32, i32) {
    %c0_i32 = arith.constant 0 : i32
    %c0_i32_0 = arith.constant 0 : i32
    %c0_i32_1 = arith.constant 0 : i32
    return %c0_i32, %c0_i32_0 : i32, i32
  }
  func.func @transform_5(%arg0: i32) -> (i32, i32) {
    %c0_i32 = arith.constant 0 : i32
    %c0_i32_0 = arith.constant 0 : i32
    %c0_i32_1 = arith.constant 0 : i32
    return %c0_i32, %c0_i32_0 : i32, i32
  }
  func.func @transform_6(%arg0: i32) -> (i32, i32) {
    %c0_i32 = arith.constant 0 : i32
    %c0_i32_0 = arith.constant 0 : i32
    %c0_i32_1 = arith.constant 0 : i32
    return %c0_i32, %c0_i32_0 : i32, i32
  }
  func.func @transform_7(%arg0: i32) -> (i32, i32, i32) {
    %c0_i32 = arith.constant 0 : i32
    %c0_i32_0 = arith.constant 0 : i32
    %c0_i32_1 = arith.constant 0 : i32
    %c0_i32_2 = arith.constant 0 : i32
    return %c0_i32, %c0_i32_0, %c0_i32_1 : i32, i32, i32
  }
  func.func @transform_8(%arg0: i32) -> (i32, i32, i32) {
    %c0_i32 = arith.constant 0 : i32
    %c0_i32_0 = arith.constant 0 : i32
    %c0_i32_1 = arith.constant 0 : i32
    %c0_i32_2 = arith.constant 0 : i32
    return %c0_i32, %c0_i32_0, %c0_i32_1 : i32, i32, i32
  }
  func.func @transform_9(%arg0: i32) -> (i32, i32) {
    %c0_i32 = arith.constant 0 : i32
    %c0_i32_0 = arith.constant 0 : i32
    %c0_i32_1 = arith.constant 0 : i32
    return %c0_i32, %c0_i32_0 : i32, i32
  }
}

</mosaic_0001>

<bundles_post_ra>
// kernel: ner_model_with_crf_forward.1
= control target key start
LH: loop header
LB: loop body
LE: loop exit
PB: predicated region body
PF: predicated region fallthrough
CT: control target
= control target key end

     0   :  { %vm51_vm0 = vcmask 261120   ;;  %v6306_v14 = vmov 0   ;;  %v10032_v41 = vlaneseq  ;;  %vm573_vm1 = vcmask 64512   ;;  %s10022_s1 = inlined_call_operand.vmem [shape: f32[32,32], index: 1, kind: input, shape index: {}]   ;;  %s10023_s0 = inlined_call_operand.vmem [shape: f32[64,32], index: 0, kind: input, shape index: {}]   ;;  %s10024_s3 = inlined_call_operand.vmem [shape: f32[32,128], index: 3, kind: input, shape index: {}]   ;;  %s10025_s7 = inlined_call_operand.vmem [shape: f32[8,8,1], index: 7, kind: input, shape index: {}]   ;;  %s10026_s2 = inlined_call_operand.vmem [shape: f32[1,32], index: 2, kind: input, shape index: {}]   ;;  %s10027_s4 = inlined_call_operand.vmem [shape: f32[1,128], index: 4, kind: input, shape index: {}]   ;;  %s10028_s5 = inlined_call_operand.vmem [shape: f32[8,8], index: 5, kind: input, shape index: {}]   ;;  %s10029_s8 = inlined_call_operand.vmem [shape: s32[8,8,1], index: 8, kind: input, shape index: {}]   ;;  %s10030_s6 = inlined_call_operand.vmem [shape: f32[1,64], index: 6, kind: input, shape index: {}]   ;;  %s10031_s9 = inlined_call_operand.vmem [shape: f32[8,128], index: 9, kind: output, shape index: {}]  }
   0x1   :  { %v43_v0 = vld [vmem:[%s10022_s1 + $0x18] sm:$0xff]  ;;  %v42_v1 = vld [vmem:[%s10022_s1 + $0x10] sm:$0xff]  ;;  %v32_v2 = vld [vmem:[%s10023_s0] sm:$0xff]  ;;  %6042 = vset.pattern.permute.xlu0 %v6306_v14  ;;  %6043 = vset.pattern.permute.xlu1 %v6306_v14  ;;  %vm710_vm2 = vcmask 1041409   ;;  %vm712_vm3 = vcmask 1042434   ;;  %vm714_vm4 = vcmask 1043459  }
   0x2   :  { %5998 = vmatprep.subr.mxu0 %v43_v0  ;;  %v41_v3 = vld [vmem:[%s10022_s1 + $0x8] sm:$0xff]  ;;  %6006 = vmatprep.mubr.msk.f32.mxu0 %vm51_vm0, %v32_v2  ;;  %v40_v4 = vld [vmem:[%s10022_s1] sm:$0xff]  ;;  %v34_v6 = vld [vmem:[%s10023_s0 + $0x10] sm:$0xff]  ;;  %v6445_v42 = vshrl.u32 %v10032_v41, 7  ;;  %vm716_vm5 = vcmask 1044484   ;;  %vm718_vm6 = vcmask 1045509  }
   0x3   :  { %5999 = vmatpush3.msra.mxu0 %v43_v0  ;;  %v33_v5 = vld [vmem:[%s10023_s0 + $0x8] sm:$0xff]  ;;  %v35_v7 = vld [vmem:[%s10023_s0 + $0x18] sm:$0xff]  ;;  %v191_v9 = vld [vmem:[%s10024_s3 + $0x10] sm:$0xff]  ;;  %vm720_vm7 = vcmask 1046534   ;;  %vm722_vm8 = vcmask 1047559  }
   0x4   :  { %6000 = vmatprep.subr.mxu0 %v42_v1  ;;  %v192_v8 = vld [vmem:[%s10024_s3 + $0x18] sm:$0xff]  ;;  %v190_v10 = vld [vmem:[%s10024_s3 + $0x8] sm:$0xff]  ;;  %v189_v11 = vld [vmem:[%s10024_s3] sm:$0xff]  ;;  %v6453_v44 = vsub.s32 0, %v6445_v42  ;;  %v6456_v45 = vsub.s32 1, %v6445_v42  ;;  %v6466_v50 = vsub.s32 3, %v6445_v42 }
   0x5   :  { %6001 = vmatpush3.msra.mxu0 %v42_v1  ;;  %6018 = vmatprep.subr.mxu1 %v192_v8  ;;  %v36_v12 = vld [vmem:[%s10023_s0 + $0x20] sm:$0xff]  ;;  %v37_v13 = vld [vmem:[%s10023_s0 + $0x28] sm:$0xff]  ;;  %v5961_v16 = vld [vmem:[%s10025_s7 + $0x18] sm:$0xff]  ;;  %v6469_v51 = vsub.s32 2, %v6445_v42  ;;  %v6476_v54 = vsub.s32 5, %v6445_v42  ;;  %v6479_v55 = vsub.s32 4, %v6445_v42 }
   0x6   :  { %6002 = vmatprep.subr.mxu0 %v41_v3  ;;  %6019 = vmatpush3.msra.mxu1 %v192_v8  ;;  %v5959_v15 = vld [vmem:[%s10025_s7 + $0x8] sm:$0xff]  ;;  %v5960_v17 = vld [vmem:[%s10025_s7 + $0x10] sm:$0xff]  ;;  %v5962_v18 = vld [vmem:[%s10025_s7 + $0x20] sm:$0xff]  ;;  %10165 = vst [vmem:[#allocation3_spill] sm:$0xff] %v6466_v50  ;;  %v6486_v58 = vsub.s32 7, %v6445_v42  ;;  %v6489_v59 = vsub.s32 6, %v6445_v42 }
   0x7   :  { %6003 = vmatpush3.msra.mxu0 %v41_v3  ;;  %6020 = vmatprep.subr.mxu1 %v191_v9  ;;  %v5963_v19 = vld [vmem:[%s10025_s7 + $0x28] sm:$0xff]  ;;  %v5964_v20 = vld [vmem:[%s10025_s7 + $0x30] sm:$0xff]  ;;  %v5965_v21 = vld [vmem:[%s10025_s7 + $0x38] sm:$0xff]  ;;  %10166 = vst [vmem:[#allocation4_spill] sm:$0xff] %v6476_v54 }
   0x8   :  { %6004 = vmatprep.subr.mxu0 %v40_v4  ;;  %6021 = vmatpush3.msra.mxu1 %v191_v9  ;;  %v6430_v22 = vld [vmem:[%s10026_s2] ss:$0 sm:$0xff]  ;;  %10167 = vst [vmem:[#allocation5_spill] sm:$0xff] %v6479_v55  ;;  %10168 = vst [vmem:[#allocation6_spill] sm:$0xff] %v6489_v59  ;;  %v38_v8 = vld [vmem:[%s10023_s0 + $0x30] sm:$0xff] }
   0x9   :  { %6005 = vmatpush3.msra.mxu0 %v40_v4  ;;  %6022 = vmatprep.subr.mxu1 %v190_v10  ;;  %v6450_v43 = vld [vmem:[%s10027_s4] ss:$0 sm:$0xff]  ;;  %v39_v9 = vld [vmem:[%s10023_s0 + $0x38] sm:$0xff] }
   0xa   :  { %6007 = vmatmul.mubr.msk.f32.vlgmr.msra.gmra.mxu0 %vm51_vm0, %v33_v5  ;;  %6023 = vmatpush3.msra.mxu1 %v190_v10 }
   0xb   :  { %6009 = vmatprep.mubr.msk.f32.mxu0 %vm51_vm0, %v34_v6  ;;  %6024 = vmatprep.subr.mxu1 %v189_v11 }
   0xc   :  { %6025 = vmatpush3.msra.mxu1 %v189_v11  ;;  %354 = vperm.xlu0 %6042, %v5959_v15  }
   0xd   :  { %366 = vperm.xlu1 %6043, %v5961_v16  }
   0xe   :  { %6010 = vmatmul.mubr.msk.f32.gmra.mxu0 %vm51_vm0, %v35_v7 }
   0xf   :  { %6012 = vmatprep.mubr.msk.f32.mxu0 %vm51_vm0, %v36_v12 }
  0x10   :  { %360 = vperm.xlu0 %6042, %v5960_v17  }
  0x11   :  { %372 = vperm.xlu1 %6043, %v5962_v18  }
  0x12   :  { %6013 = vmatmul.mubr.msk.f32.gmra.mxu0 %vm51_vm0, %v37_v13 }
  0x13   :  { %6015 = vmatprep.mubr.msk.f32.mxu0 %vm51_vm0, %v38_v8 }
  0x14   :  { %378 = vperm.xlu0 %6042, %v5963_v19  }
  0x15   :  { %384 = vperm.xlu1 %6043, %v5964_v20  }
  0x16   :  { %6016 = vmatmul.mubr.msk.f32.gmra.mxu0 %vm51_vm0, %v39_v9 }
  0x18   :  { %390 = vperm.xlu0 %6042, %v5965_v21   ;;  %v6307_v21 = vmov 1966171168  }
  0xca   :  { %v6008_v23 = vpop.f32.mrf.mxu0 }
  0xcb   :  { %v148_v24 = vadd.f32 %v6008_v23, %v6430_v22  ;;  %v414_v23 = vunpack.c.l.s4 %v6307_v21 }
  0xcc   :  { %v142_v25 = vpop.f32.mrf.mxu0 }
  0xcd   :  { %v143_v26 = vadd.f32 %v6430_v22, %v142_v25 }
  0xce   :  { %v6011_v27 = vpop.f32.mrf.mxu0 }
  0xcf   :  { %6044 = vtanh.f32 %v143_v26  ;;  %v158_v28 = vadd.f32 %v6011_v27, %v6430_v22  ;;  %v6553_v27 = vpop.permute.xlu0 %354 }
  0xd0   :  { %6046 = vtanh.f32 %v148_v24  ;;  %v152_v29 = vpop.f32.mrf.mxu0  ;;  %v415_v24 = vunpack.c.0.s8 %v414_v23  ;;  %10172 = vst [vmem:[#allocation10_spill] sm:$0xff] %v6553_v27  ;;  %vm10147_vm9 = vcmp.gt.f32.partialorder %v6553_v27, 0.0 }
  0xd1   :  { %v153_v30 = vadd.f32 %v6430_v22, %v152_v29  ;;  %6048 = vtanh.f32 %v158_v28  ;;  %v6557_v29 = vpop.permute.xlu1 %366 }
  0xd2   :  { %v6014_v35 = vpop.f32.mrf.mxu0  ;;  %v6551_v26 = vsub.s32 %v415_v24, %v6445_v42  ;;  %10173 = vst [vmem:[#allocation11_spill] sm:$0xff] %v6557_v29 }
  0xd3   :  { %6050 = vtanh.f32 %v153_v30  ;;  %v168_v36 = vadd.f32 %v6014_v35, %v6430_v22  ;;  %v6559_v30 = vpop.permute.xlu0 %360 }
  0xd4   :  { %v162_v37 = vpop.f32.mrf.mxu0  ;;  %10174 = vst [vmem:[#allocation12_spill] sm:$0xff] %v6559_v30  ;;  %vm10152_vm10 = vcmp.gt.f32.partialorder %v6559_v30, 0.0 }
  0xd5   :  { %v163_v38 = vadd.f32 %v6430_v22, %v162_v37  ;;  %6052 = vtanh.f32 %v168_v36 }
  0xd7   :  { %6054 = vtanh.f32 %v163_v38  ;;  %v6566_v35 = vpop.permute.xlu0 %378 }
  0xd8   :  { %10176 = vst [vmem:[#allocation14_spill] sm:$0xff] %v6566_v35 }
  0xdc   :  { %v6045_v31 = vpop.eup %6044 }
  0xdd   :  { %v6047_v32 = vpop.eup %6046  ;;  %6026 = vmatprep.mubr.msk.f32.mxu1 %vm51_vm0, %v6045_v31 }
  0xde   :  { %6027 = vmatmul.mubr.msk.f32.vlgmr.msra.gmra.mxu1 %vm51_vm0, %v6047_v32  ;;  %v6049_v33 = vpop.eup %6048 }
  0xe0   :  { %v6051_v34 = vpop.eup %6050 }
  0xe1   :  { %6029 = vmatprep.mubr.msk.f32.mxu1 %vm51_vm0, %v6051_v34  ;;  %v6564_v34 = vpop.permute.xlu1 %372 }
  0xe2   :  { %6030 = vmatmul.mubr.msk.f32.gmra.mxu1 %vm51_vm0, %v6049_v33  ;;  %v6053_v39 = vpop.eup %6052  ;;  %10175 = vst [vmem:[#allocation13_spill] sm:$0xff] %v6564_v34 }
  0xe4   :  { %v6055_v40 = vpop.eup %6054 }
  0xe5   :  { %6032 = vmatprep.mubr.msk.f32.mxu1 %vm51_vm0, %v6055_v40 }
  0xe6   :  { %6033 = vmatmul.mubr.msk.f32.gmra.mxu1 %vm51_vm0, %v6053_v39  ;;  %v6573_v39 = vld [vmem:[%s10028_s5] sm:$0xff] }
 0x19e   :  { %v6028_v46 = vpop.f32.mrf.mxu1 }
 0x19f   :  { %v6459_v47 = vadd.f32 %v6028_v46, %v6450_v43 }
 0x1a0   :  { %v290_v62 = vpop.f32.mrf.mxu1 }
 0x1a1   :  { %10164 = vst [vmem:[#allocation2_spill] sm:$0xff] %v6459_v47  ;;  %v519_v48 = vrot.slane %v6459_v47, %v6456_v45  ;;  %v512_v49 = vrot.slane %v6459_v47, %v6453_v44  ;;  %v533_v52 = vrot.slane %v6459_v47, %v6466_v50  ;;  %v526_v53 = vrot.slane %v6459_v47, %v6469_v51 }
 0x1a2   :  { %v547_v56 = vrot.slane %v6459_v47, %v6476_v54  ;;  %v540_v57 = vrot.slane %v6459_v47, %v6479_v55  ;;  %v561_v60 = vrot.slane %v6459_v47, %v6486_v58  ;;  %v554_v61 = vrot.slane %v6459_v47, %v6489_v59  ;;  %v6031_v63 = vpop.f32.mrf.mxu1 }
 0x1a3   :  { %521 = vbcast.lane.b32.xlu0 %v519_v48, 256  ;;  %514 = vbcast.lane.b32.xlu1 %v512_v49, 256  ;;  %v6496_v0 = vadd.f32 %v6031_v63, %v6450_v43  ;;  %v6548_v25 = vadd.f32 %v6450_v43, %v290_v62 }
 0x1a4   :  { %v300_v11 = vpop.f32.mrf.mxu1 }
 0x1a5   :  { %10169 = vst [vmem:[#allocation7_spill] sm:$0xff] %v6496_v0  ;;  %v1148_v1 = vrot.slane %v6496_v0, %v6469_v51  ;;  %v1134_v2 = vrot.slane %v6496_v0, %v6453_v44  ;;  %v1162_v3 = vrot.slane %v6496_v0, %v6479_v55  ;;  %v1141_v4 = vrot.slane %v6496_v0, %v6456_v45 }
 0x1a6   :  { %v6508_v5 = vrot.slane %v6496_v0, %v6489_v59  ;;  %v1155_v6 = vrot.slane %v6496_v0, %v6466_v50  ;;  %v1169_v7 = vrot.slane %v6496_v0, %v6476_v54  ;;  %v6525_v10 = vrot.slane %v6496_v0, %v6486_v58  ;;  %10171 = vst [vmem:[#allocation9_spill] sm:$0xff] %v6548_v25 }
 0x1a7   :  { %535 = vbcast.lane.b32.xlu0 %v533_v52, 256  ;;  %528 = vbcast.lane.b32.xlu1 %v526_v53, 256  ;;  %v6529_v12 = vadd.f32 %v6450_v43, %v300_v11  ;;  %v419_v28 = vrot.slane %v6548_v25, %v6551_v26  ;;  %v412_v31 = vcombine.high %v6548_v25, %v6548_v25 }
 0x1a9   :  { %10170 = vst [vmem:[#allocation8_spill] sm:$0xff] %v6529_v12  ;;  %v834_v13 = vrot.slane %v6529_v12, %v6456_v45  ;;  %v827_v14 = vrot.slane %v6529_v12, %v6453_v44  ;;  %v848_v15 = vrot.slane %v6529_v12, %v6466_v50  ;;  %v841_v16 = vrot.slane %v6529_v12, %v6469_v51 }
 0x1aa   :  { %v862_v17 = vrot.slane %v6529_v12, %v6476_v54  ;;  %v855_v18 = vrot.slane %v6529_v12, %v6479_v55  ;;  %v876_v19 = vrot.slane %v6529_v12, %v6486_v58  ;;  %v869_v20 = vrot.slane %v6529_v12, %v6489_v59 }
 0x1ab   :  { %549 = vbcast.lane.b32.xlu0 %v547_v56, 256  ;;  %542 = vbcast.lane.b32.xlu1 %v540_v57, 256  ;;  %v435_v32 = vrot.slane %v419_v28, %v6551_v26  ;;  %v427_v33 = vcombine.high %v419_v28, %v419_v28  ;;  %v426_v38 = vrot.slane %v412_v31, %v6551_v26 }
 0x1ad   :  { %v464_v36 = vrot.slane %v435_v32, %v6453_v44  ;;  %v457_v37 = vcombine.high %v435_v32, %v435_v32  ;;  %v449_v40 = vrot.slane %v427_v33, %v6551_v26 }
 0x1af   :  { %563 = vbcast.lane.b32.xlu0 %v561_v60, 256  ;;  %556 = vbcast.lane.b32.xlu1 %v554_v61, 256  ;;  %v6577_v46 = vadd.f32 %v464_v36, %v6573_v39 }
 0x1b1   :  { %10177 = vst [vmem:[#allocation15_spill] sm:$0xff] %v6577_v46  ;;  %v2769_v62 = vsel %vm573_vm1, %v6577_v46, -inf }
 0x1b3   :  { %2975 = vbcast.lane.b32.xlu0 %v512_v49, 256  ;;  %2982 = vbcast.lane.b32.xlu1 %v519_v48, 256  ;;  %v472_v48 = vrot.slane %v457_v37, %v6453_v44  ;;  %v442_v49 = vrot.slane %v426_v38, %v6551_v26 }
 0x1b5   :  { %v480_v63 = vrot.slane %v442_v49, %v6453_v44 }
 0x1b7   :  { %2996 = vbcast.lane.b32.xlu0 %v533_v52, 256  ;;  %2989 = vbcast.lane.b32.xlu1 %v526_v53, 256  ;;  %v6581_v52 = vpop.permute.xlu1 %384  ;;  %v468_v53 = vrot.slane %v449_v40, %v6453_v44  ;;  %v6598_v8 = vadd.f32 %v480_v63, %v6573_v39 }
 0x1b8   :  { %10178 = vst [vmem:[#allocation16_spill] sm:$0xff] %v6581_v52 }
 0x1b9   :  { %10182 = vst [vmem:[#allocation20_spill] sm:$0xff] %v6598_v8 }
 0x1bb   :  { %3010 = vbcast.lane.b32.xlu0 %v547_v56, 256  ;;  %3003 = vbcast.lane.b32.xlu1 %v540_v57, 256  ;;  %v459_v56 = vcombine.high %v449_v40, %v449_v40  ;;  %v428_v57 = vcombine.high %v426_v38, %v426_v38 }
 0x1bf   :  { %3024 = vbcast.lane.b32.xlu0 %v561_v60, 256  ;;  %3017 = vbcast.lane.b32.xlu1 %v554_v61, 256  ;;  %v6584_v60 = vpop.permute.xlu0 %390  ;;  %v6587_v61 = vadd.f32 %v472_v48, %v6573_v39 }
 0x1c0   :  { %10179 = vst [vmem:[#allocation17_spill] sm:$0xff] %v6584_v60  ;;  %v6017_v60 = vpop.f32.mrf.mxu0 }
 0x1c1   :  { %10180 = vst [vmem:[#allocation18_spill] sm:$0xff] %v6587_v61  ;;  %v2775_v9 = vsel %vm573_vm1, %v6587_v61, -inf  ;;  %v178_v52 = vadd.f32 %v6017_v60, %v6430_v22 }
 0x1c2   :  { %v172_v34 = vpop.f32.mrf.mxu0 }
 0x1c3   :  { %1150 = vbcast.lane.b32.xlu1 %v1148_v1, 256  ;;  %1136 = vbcast.lane.b32.xlu0 %v1134_v2, 256  ;;  %6056 = vtanh.f32 %v178_v52 }
 0x1c7   :  { %1164 = vbcast.lane.b32.xlu1 %v1162_v3, 256  ;;  %1143 = vbcast.lane.b32.xlu0 %v1141_v4, 256 }
 0x1cb   :  { %1178 = vbcast.lane.b32.xlu1 %v6508_v5, 256  ;;  %1157 = vbcast.lane.b32.xlu0 %v1155_v6, 256 }
 0x1cf   :  { %3863 = vbcast.lane.b32.xlu1 %v1134_v2, 256  ;;  %1171 = vbcast.lane.b32.xlu0 %v1169_v7, 256  ;;  %v6593_v2 = vadd.f32 %v468_v53, %v6573_v39 }
 0x1d1   :  { %10181 = vst [vmem:[#allocation19_spill] sm:$0xff] %v6593_v2 }
 0x1d3   :  { %3877 = vbcast.lane.b32.xlu1 %v1148_v1, 256  ;;  %1185 = vbcast.lane.b32.xlu0 %v6525_v10, 256  ;;  %v458_v1 = vcombine.high %v442_v49, %v442_v49 }
 0x1d5   :  { %v488_v11 = vrot.slane %v458_v1, %v6453_v44 }
 0x1d7   :  { %3884 = vbcast.lane.b32.xlu1 %v1155_v6, 256  ;;  %3870 = vbcast.lane.b32.xlu0 %v1141_v4, 256  ;;  %v456_v4 = vrot.slane %v428_v57, %v6551_v26 }
 0x1db   :  { %3898 = vbcast.lane.b32.xlu1 %v1169_v7, 256  ;;  %3891 = vbcast.lane.b32.xlu0 %v1162_v3, 256  ;;  %v476_v3 = vrot.slane %v459_v56, %v6453_v44 }
 0x1df   :  { %836 = vbcast.lane.b32.xlu0 %v834_v13, 256  ;;  %829 = vbcast.lane.b32.xlu1 %v827_v14, 256 }
 0x1e3   :  { %850 = vbcast.lane.b32.xlu0 %v848_v15, 256  ;;  %843 = vbcast.lane.b32.xlu1 %v841_v16, 256 }
 0x1e7   :  { %864 = vbcast.lane.b32.xlu0 %v862_v17, 256  ;;  %857 = vbcast.lane.b32.xlu1 %v855_v18, 256 }
 0x1eb   :  { %878 = vbcast.lane.b32.xlu0 %v876_v19, 256  ;;  %871 = vbcast.lane.b32.xlu1 %v869_v20, 256 }
 0x1ef   :  { %3419 = vbcast.lane.b32.xlu0 %v827_v14, 256  ;;  %3426 = vbcast.lane.b32.xlu1 %v834_v13, 256  ;;  %v6604_v13 = vadd.f32 %v476_v3, %v6573_v39  ;;  %v484_v14 = vrot.slane %v456_v4, %v6453_v44 }
 0x1f1   :  { %10183 = vst [vmem:[#allocation21_spill] sm:$0xff] %v6604_v13  ;;  %v6615_v21 = vadd.f32 %v484_v14, %v6573_v39  ;;  %v2778_v24 = vsel %vm573_vm1, %v6604_v13, -inf }
 0x1f3   :  { %3440 = vbcast.lane.b32.xlu0 %v848_v15, 256  ;;  %3433 = vbcast.lane.b32.xlu1 %v841_v16, 256  ;;  %v2772_v15 = vsel %vm573_vm1, %v6593_v2, -inf  ;;  %v460_v16 = vcombine.high %v456_v4, %v456_v4  ;;  %10185 = vst [vmem:[#allocation23_spill] sm:$0xff] %v6615_v21  ;;  %v2784_v33 = vsel %vm573_vm1, %v6615_v21, -inf }
 0x1f5   :  { %v492_v23 = vrot.slane %v460_v16, %v6453_v44 }
 0x1f7   :  { %3454 = vbcast.lane.b32.xlu0 %v862_v17, 256  ;;  %3447 = vbcast.lane.b32.xlu1 %v855_v18, 256  ;;  %v6610_v18 = vadd.f32 %v488_v11, %v6573_v39  ;;  %v6626_v32 = vadd.f32 %v492_v23, %v6573_v39 }
 0x1f9   :  { %10184 = vst [vmem:[#allocation22_spill] sm:$0xff] %v6610_v18  ;;  %v2787_v31 = vsel %vm573_vm1, %v6610_v18, -inf  ;;  %10186 = vst [vmem:[#allocation24_spill] sm:$0xff] %v6626_v32  ;;  %v2790_v49 = vsel %vm573_vm1, %v6626_v32, -inf }
 0x1fb   :  { %3468 = vbcast.lane.b32.xlu0 %v876_v19, 256  ;;  %3461 = vbcast.lane.b32.xlu1 %v869_v20, 256  ;;  %v2781_v19 = vsel %vm573_vm1, %v6598_v8, -inf }
 0x215   :  { %v522_v6 = vpop.permute.xlu0 %521  ;;  %v515_v7 = vpop.permute.xlu1 %514 }
 0x216   :  { %v6621_v28 = vadd.f32 %v522_v6, %v6593_v2  ;;  %v6636_v48 = vadd.f32 %v515_v7, %v6577_v46 }
 0x218   :  { %v577_v40 = vsel %vm573_vm1, %v6621_v28, -inf  ;;  %v574_v1 = vsel %vm573_vm1, %v6636_v48, -inf }
 0x219   :  { %v536_v17 = vpop.permute.xlu0 %535  ;;  %v529_v20 = vpop.permute.xlu1 %528 }
 0x21a   :  { %2770 = vmax.xlane.f32.xlu0 %v2769_v62  ;;  %v6631_v38 = vadd.f32 %v529_v20, %v6587_v61  ;;  %v6646_v62 = vadd.f32 %v536_v17, %v6604_v13 }
 0x21c   :  { %v580_v57 = vsel %vm573_vm1, %v6631_v38, -inf  ;;  %v583_v7 = vsel %vm573_vm1, %v6646_v62, -inf }
 0x21d   :  { %v550_v36 = vpop.permute.xlu0 %549  ;;  %v543_v37 = vpop.permute.xlu1 %542 }
 0x21e   :  { %2776 = vmax.xlane.f32.xlu0 %v2775_v9  ;;  %v6641_v53 = vadd.f32 %v543_v37, %v6598_v8  ;;  %v6656_v6 = vadd.f32 %v550_v36, %v6615_v21 }
 0x21f   :  { %2773 = vmax.xlane.f32.xlu1 %v2772_v15 }
 0x220   :  { %v586_v4 = vsel %vm573_vm1, %v6641_v53, -inf  ;;  %v589_v15 = vsel %vm573_vm1, %v6656_v6, -inf }
 0x221   :  { %v564_v56 = vpop.permute.xlu0 %563  ;;  %v557_v63 = vpop.permute.xlu1 %556 }
 0x222   :  { %2782 = vmax.xlane.f32.xlu0 %v2781_v19  ;;  %v6651_v3 = vadd.f32 %v557_v63, %v6610_v18  ;;  %v6665_v14 = vadd.f32 %v564_v56, %v6626_v32 }
 0x223   :  { %2779 = vmax.xlane.f32.xlu1 %v2778_v24  ;;  %v6679_v24 = vpop.f32.mrf.mxu1 }
 0x224   :  { %v592_v11 = vsel %vm573_vm1, %v6651_v3, -inf  ;;  %v595_v19 = vsel %vm573_vm1, %v6665_v14, -inf }
 0x225   :  { %v6660_v9 = vpop.permute.xlu0 %2975  ;;  %v6669_v16 = vpop.permute.xlu1 %2982 }
 0x226   :  { %2788 = vmax.xlane.f32.xlu0 %v2787_v31  ;;  %v310_v36 = vpop.f32.mrf.mxu1 }
 0x227   :  { %2785 = vmax.xlane.f32.xlu1 %v2784_v33  ;;  %v6686_v37 = vadd.f32 %v6450_v43, %v310_v36 }
 0x229   :  { %v6671_v17 = vpop.permute.xlu0 %2996  ;;  %v6675_v20 = vpop.permute.xlu1 %2989  ;;  %10187 = vst [vmem:[#allocation25_spill] sm:$0xff] %v6686_v37  ;;  %v1455_v56 = vrot.slane %v6686_v37, %v6469_v51  ;;  %v1469_v63 = vrot.slane %v6686_v37, %v6479_v55 }
 0x22a   :  { %578 = vmax.xlane.f32.xlu0 %v577_v40 }
 0x22b   :  { %2791 = vmax.xlane.f32.xlu1 %v2790_v49 }
 0x22d   :  { %v6677_v23 = vpop.permute.xlu0 %3010  ;;  %v6681_v31 = vpop.permute.xlu1 %3003 }
 0x22e   :  { %581 = vmax.xlane.f32.xlu0 %v580_v57 }
 0x22f   :  { %575 = vmax.xlane.f32.xlu1 %v574_v1 }
 0x231   :  { %v6683_v33 = vpop.permute.xlu0 %3024  ;;  %v6688_v40 = vpop.permute.xlu1 %3017 }
 0x232   :  { %587 = vmax.xlane.f32.xlu0 %v586_v4  ;;  %v1483_v4 = vrot.slane %v6686_v37, %v6489_v59 }
 0x233   :  { %584 = vmax.xlane.f32.xlu1 %v583_v7 }
 0x235   :  { %v6690_v49 = vpop.permute.xlu0 %1136  ;;  %v6695_v57 = vpop.permute.xlu1 %1150 }
 0x236   :  { %593 = vmax.xlane.f32.xlu0 %v592_v11  ;;  %10188 = vst [vmem:[#allocation26_spill] sm:$0xff] %v6690_v49  ;;  %10189 = vst [vmem:[#allocation27_spill] sm:$0xff] %v6695_v57 }
 0x237   :  { %590 = vmax.xlane.f32.xlu1 %v589_v15 }
 0x239   :  { %v6699_v1 = vpop.permute.xlu0 %1143  ;;  %v6703_v7 = vpop.permute.xlu1 %1164 }
 0x23a   :  { %10190 = vst [vmem:[#allocation28_spill] sm:$0xff] %v6699_v1  ;;  %10191 = vst [vmem:[#allocation29_spill] sm:$0xff] %v6703_v7 }
 0x23b   :  { %596 = vmax.xlane.f32.xlu1 %v595_v19 }
 0x23d   :  { %v6705_v11 = vpop.permute.xlu0 %1157  ;;  %v6711_v15 = vpop.permute.xlu1 %1178 }
 0x23e   :  { %10192 = vst [vmem:[#allocation30_spill] sm:$0xff] %v6705_v11  ;;  %10193 = vst [vmem:[#allocation31_spill] sm:$0xff] %v6711_v15  ;;  %v173_v15 = vadd.f32 %v6430_v22, %v172_v34  ;;  %v6057_v11 = vpop.eup %6056 }
 0x240   :  { %6058 = vtanh.f32 %v173_v15 }
 0x241   :  { %v6714_v19 = vpop.permute.xlu0 %1171  ;;  %v6716_v36 = vpop.permute.xlu1 %3863 }
 0x242   :  { %10194 = vst [vmem:[#allocation32_spill] sm:$0xff] %v6714_v19 }
 0x245   :  { %v6718_v41 = vpop.permute.xlu0 %1185  ;;  %v6720_v18 = vpop.permute.xlu1 %3877 }
 0x246   :  { %10195 = vst [vmem:[#allocation33_spill] sm:$0xff] %v6718_v41 }
 0x249   :  { %v6722_v8 = vpop.permute.xlu0 %3870  ;;  %v6724_v61 = vpop.permute.xlu1 %3884 }
 0x24a   :  { %10196 = vst [vmem:[#allocation34_spill] sm:$0xff] %v6724_v61 }
 0x24c   :  { %3912 = vbcast.lane.b32.xlu1 %v6525_v10, 256  ;;  %v6709_v10 = vrot.slane %v6686_v37, %v6456_v45 }
 0x24d   :  { %v6726_v46 = vpop.permute.xlu0 %3891  ;;  %v6728_v32 = vpop.permute.xlu1 %3898 }
 0x24e   :  { %10197 = vst [vmem:[#allocation35_spill] sm:$0xff] %v6726_v46  ;;  %10198 = vst [vmem:[#allocation36_spill] sm:$0xff] %v6728_v32  ;;  %v6059_v1 = vpop.eup %6058 }
 0x24f   :  { %6035 = vmatprep.mubr.msk.f32.mxu1 %vm51_vm0, %v6059_v1 }
 0x250   :  { %1457 = vbcast.lane.b32.xlu1 %v1455_v56, 256  ;;  %6036 = vmatmul.mubr.msk.f32.gmra.mxu1 %vm51_vm0, %v6057_v11 }
 0x251   :  { %v6730_v21 = vpop.permute.xlu0 %836  ;;  %v6732_v13 = vpop.permute.xlu1 %829 }
 0x254   :  { %1471 = vbcast.lane.b32.xlu1 %v1469_v63, 256 }
 0x255   :  { %v6736_v2 = vpop.permute.xlu1 %843 }
 0x258   :  { %1485 = vbcast.lane.b32.xlu1 %v1483_v4, 256 }
 0x259   :  { %v6740_v0 = vpop.permute.xlu1 %857 }
 0x25c   :  { %4314 = vbcast.lane.b32.xlu1 %v6709_v10, 256 }
 0x25d   :  { %v6744_v12 = vpop.permute.xlu1 %871 }
 0x260   :  { %4321 = vbcast.lane.b32.xlu1 %v1455_v56, 256  ;;  %v6734_v56 = vpop.permute.xlu0 %850 }
 0x261   :  { %v6749_v35 = vpop.permute.xlu1 %3426 }
 0x264   :  { %4335 = vbcast.lane.b32.xlu1 %v1469_v63, 256  ;;  %v6738_v63 = vpop.permute.xlu0 %864 }
 0x265   :  { %v6754_v41 = vpop.permute.xlu1 %3433 }
 0x268   :  { %4349 = vbcast.lane.b32.xlu1 %v1483_v4, 256  ;;  %v6742_v4 = vpop.permute.xlu0 %878 }
 0x269   :  { %v6758_v19 = vpop.permute.xlu1 %3447 }
 0x26c   :  { %v6746_v47 = vpop.permute.xlu0 %3419 }
 0x26d   :  { %v6765_v49 = vpop.permute.xlu1 %3461 }
 0x270   :  { %v6751_v29 = vpop.permute.xlu0 %3440 }
 0x274   :  { %v6756_v7 = vpop.permute.xlu0 %3454 }
 0x278   :  { %v6760_v57 = vpop.permute.xlu0 %3468 }
 0x2a3   :  { %v6762_v60 = vpop.xlane.xlu0 %2770 }
 0x2a4   :  { %10199 = vst [vmem:[#allocation37_spill] sm:$0xff] %v6762_v60  ;;  %v3034_v22 = vadd.f32 %v6660_v9, %v6762_v60 }
 0x2a6   :  { %3051 = vperm.xlu0 %6042, %v3034_v22  }
 0x2a7   :  { %v6770_v34 = vpop.xlane.xlu0 %2776 }
 0x2a8   :  { %10200 = vst [vmem:[#allocation38_spill] sm:$0xff] %v6770_v34  ;;  %v6772_v52 = vpop.xlane.xlu1 %2773  ;;  %v3036_v1 = vadd.f32 %v6675_v20, %v6770_v34 }
 0x2a9   :  { %10201 = vst [vmem:[#allocation39_spill] sm:$0xff] %v6772_v52  ;;  %v3035_v15 = vadd.f32 %v6669_v16, %v6772_v52 }
 0x2ab   :  { %v6776_v32 = vpop.xlane.xlu0 %2782  ;;  %3054 = vperm.xlu0 %6042, %v3035_v15  }
 0x2ac   :  { %10202 = vst [vmem:[#allocation40_spill] sm:$0xff] %v6776_v32  ;;  %v6778_v46 = vpop.xlane.xlu1 %2779  ;;  %v3038_v11 = vadd.f32 %v6681_v31, %v6776_v32 }
 0x2ad   :  { %10203 = vst [vmem:[#allocation41_spill] sm:$0xff] %v6778_v46  ;;  %v3037_v60 = vadd.f32 %v6671_v17, %v6778_v46 }
 0x2af   :  { %v6782_v61 = vpop.xlane.xlu0 %2788  ;;  %3057 = vperm.xlu0 %6042, %v3036_v1  }
 0x2b0   :  { %10204 = vst [vmem:[#allocation42_spill] sm:$0xff] %v6782_v61  ;;  %v6784_v9 = vpop.xlane.xlu1 %2785 }
 0x2b1   :  { %10205 = vst [vmem:[#allocation43_spill] sm:$0xff] %v6784_v9  ;;  %v3039_v34 = vadd.f32 %v6677_v23, %v6784_v9 }
 0x2b3   :  { %v6788_v22 = vpop.xlane.xlu0 %578  ;;  %3063 = vperm.xlu0 %6042, %v3038_v11   ;;  %v3040_v11 = vadd.f32 %v6688_v40, %v6782_v61 }
 0x2b4   :  { %v599_v16 = vsub.f32 %v6621_v28, %v6788_v22  ;;  %v6792_v15 = vpop.xlane.xlu1 %2791 }
 0x2b5   :  { %10206 = vst [vmem:[#allocation44_spill] sm:$0xff] %v6792_v15 }
 0x2b6   :  { %v608_v20 = vmul.f32 1.442695, %v599_v16 }
 0x2b7   :  { %3060 = vperm.xlu0 %6042, %v3037_v60   ;;  %v3041_v60 = vadd.f32 %v6683_v33, %v6792_v15 }
 0x2b8   :  { %6060 = vpow2.f32 %v608_v20  ;;  %v6796_v1 = vpop.xlane.xlu1 %575 }
 0x2bb   :  { %3066 = vperm.xlu0 %6042, %v3039_v34  }
 0x2bc   :  { %v6800_v31 = vpop.xlane.xlu1 %584 }
 0x2bd   :  { %v601_v28 = vsub.f32 %v6646_v62, %v6800_v31 }
 0x2bf   :  { %v612_v32 = vmul.f32 1.442695, %v601_v28  ;;  %3069 = vperm.xlu0 %6042, %v3040_v11   ;;  %v1462_v28 = vrot.slane %v6686_v37, %v6466_v50 }
 0x2c0   :  { %v6806_v17 = vpop.xlane.xlu1 %590 }
 0x2c1   :  { %6062 = vpow2.f32 %v612_v32  ;;  %v603_v23 = vsub.f32 %v6656_v6, %v6806_v17  ;;  %v1441_v32 = vrot.slane %v6686_v37, %v6453_v44 }
 0x2c3   :  { %v616_v34 = vmul.f32 1.442695, %v603_v23  ;;  %3072 = vperm.xlu0 %6042, %v3041_v60  }
 0x2c4   :  { %v6812_v16 = vpop.xlane.xlu1 %596 }
 0x2c5   :  { %v6061_v20 = vpop.eup %6060  ;;  %6064 = vpow2.f32 %v616_v34  ;;  %v605_v62 = vsub.f32 %v6665_v14, %v6812_v16 }
 0x2c6   :  { %v625_v40 = vsel %vm573_vm1, %v6061_v20, 0.0  ;;  %v6833_v20 = vpop.xlane.xlu0 %581 }
 0x2c7   :  { %v620_v11 = vmul.f32 1.442695, %v605_v62  ;;  %3905 = vbcast.lane.b32.xlu0 %v6508_v5, 256  ;;  %626 = vadd.xlane.f32.xlu1 %v625_v40  ;;  %v1476_v5 = vrot.slane %v6686_v37, %v6476_v54  ;;  %v598_v62 = vsub.f32 %v6636_v48, %v6796_v1 }
 0x2c9   :  { %6066 = vpow2.f32 %v620_v11  ;;  %v600_v11 = vsub.f32 %v6631_v38, %v6833_v20 }
 0x2ca   :  { %v6837_v40 = vpop.xlane.xlu0 %587 }
 0x2cb   :  { %1443 = vbcast.lane.b32.xlu0 %v1441_v32, 256 }
 0x2ce   :  { %v6063_v6 = vpop.eup %6062 }
 0x2cf   :  { %1450 = vbcast.lane.b32.xlu0 %v6709_v10, 256  ;;  %v631_v33 = vsel %vm573_vm1, %v6063_v6, 0.0  ;;  %v6830_v10 = vrot.slane %v6686_v37, %v6486_v58  ;;  %v606_v6 = vmul.f32 1.442695, %v598_v62 }
 0x2d0   :  { %632 = vadd.xlane.f32.xlu1 %v631_v33  ;;  %v610_v33 = vmul.f32 1.442695, %v600_v11 }
 0x2d1   :  { %6068 = vpow2.f32 %v606_v6 }
 0x2d2   :  { %v6065_v14 = vpop.eup %6064  ;;  %6070 = vpow2.f32 %v610_v33 }
 0x2d3   :  { %1464 = vbcast.lane.b32.xlu0 %v1462_v28, 256  ;;  %v637_v60 = vsel %vm573_vm1, %v6065_v14, 0.0  ;;  %v602_v14 = vsub.f32 %v6641_v53, %v6837_v40 }
 0x2d4   :  { %638 = vadd.xlane.f32.xlu1 %v637_v60  ;;  %v6843_v60 = vpop.xlane.xlu0 %593 }
 0x2d6   :  { %v6067_v23 = vpop.eup %6066 }
 0x2d7   :  { %1478 = vbcast.lane.b32.xlu0 %v1476_v5, 256  ;;  %v643_v34 = vsel %vm573_vm1, %v6067_v23, 0.0 }
 0x2d8   :  { %644 = vadd.xlane.f32.xlu1 %v643_v34 }
 0x2db   :  { %1492 = vbcast.lane.b32.xlu0 %v6830_v10, 256 }
 0x2df   :  { %4307 = vbcast.lane.b32.xlu0 %v1441_v32, 256  ;;  %v614_v32 = vmul.f32 1.442695, %v602_v14 }
 0x2e1   :  { %6072 = vpow2.f32 %v614_v32 }
 0x2e3   :  { %4328 = vbcast.lane.b32.xlu0 %v1462_v28, 256  ;;  %v604_v28 = vsub.f32 %v6651_v3, %v6843_v60 }
 0x2e5   :  { %v618_v48 = vmul.f32 1.442695, %v604_v28  ;;  %v10207_v28 = vlaneseq }
 0x2e7   :  { %4342 = vbcast.lane.b32.xlu0 %v1476_v5, 256  ;;  %6074 = vpow2.f32 %v618_v48  ;;  %v6069_v5 = vpop.eup %6068  ;;  %v6852_v48 = vand.u32 127, %v10207_v28 }
 0x2e8   :  { %v622_v23 = vsel %vm573_vm1, %v6069_v5, 0.0  ;;  %v6071_v38 = vpop.eup %6070 }
 0x2e9   :  { %v628_v34 = vsel %vm573_vm1, %v6071_v38, 0.0  ;;  %10208 = vst [vmem:[#allocation45_spill] sm:$0xff] %v6852_v48 }
 0x2ee   :  { %v6073_v62 = vpop.eup %6072 }
 0x2ef   :  { %v634_v53 = vsel %vm573_vm1, %v6073_v62, 0.0 }
 0x2f4   :  { %v6075_v11 = vpop.eup %6074 }
 0x2f5   :  { %v640_v6 = vsel %vm573_vm1, %v6075_v11, 0.0 }
 0x306   :  { %623 = vadd.xlane.f32.xlu0 %v622_v23  ;;  %v6856_v23 = vsub.s32 %v6852_v48, %v6445_v42 }
 0x30a   :  { %629 = vadd.xlane.f32.xlu0 %v628_v34 }
 0x30e   :  { %635 = vadd.xlane.f32.xlu0 %v634_v53 }
 0x312   :  { %641 = vadd.xlane.f32.xlu0 %v640_v6 }
 0x321   :  { %v3052_v3 = vpop.permute.xlu0 %3051 }
 0x322   :  { %v3077_v53 = vrot.slane %v3052_v3, %v6856_v23 }
 0x326   :  { %v3055_v33 = vpop.permute.xlu0 %3054 }
 0x327   :  { %v3081_v38 = vrot.slane %v3055_v33, %v6856_v23 }
 0x329   :  { %v3106_v6 = vsel %vm710_vm2, %v3081_v38, %v3077_v53 }
 0x32a   :  { %v3058_v14 = vpop.permute.xlu0 %3057 }
 0x32b   :  { %v3085_v34 = vrot.slane %v3058_v14, %v6856_v23 }
 0x32d   :  { %v3107_v28 = vsel %vm712_vm3, %v3085_v34, %v3106_v6 }
 0x32e   :  { %v3064_v32 = vpop.permute.xlu0 %3063 }
 0x32f   :  { %v3093_v37 = vrot.slane %v3064_v32, %v6856_v23 }
 0x332   :  { %v3061_v5 = vpop.permute.xlu0 %3060 }
 0x333   :  { %v3089_v11 = vrot.slane %v3061_v5, %v6856_v23 }
 0x335   :  { %v3108_v42 = vsel %vm714_vm4, %v3089_v11, %v3107_v28 }
 0x336   :  { %v3067_v62 = vpop.permute.xlu0 %3066  ;;  %v3109_v3 = vsel %vm716_vm5, %v3093_v37, %v3108_v42 }
 0x337   :  { %v3097_v33 = vrot.slane %v3067_v62, %v6856_v23 }
 0x339   :  { %v3110_v38 = vsel %vm718_vm6, %v3097_v33, %v3109_v3 }
 0x33a   :  { %v3070_v61 = vpop.permute.xlu0 %3069 }
 0x33b   :  { %v3101_v14 = vrot.slane %v3070_v61, %v6856_v23 }
 0x33d   :  { %v3111_v53 = vsel %vm720_vm7, %v3101_v14, %v3110_v38 }
 0x33e   :  { %v3073_v5 = vpop.permute.xlu0 %3072 }
 0x33f   :  { %v3105_v34 = vrot.slane %v3073_v5, %v6856_v23 }
 0x341   :  { %v3112_v62 = vsel %vm722_vm8, %v3105_v34, %v3111_v53 }
 0x342   :  { %v6877_v32 = vsel %vm10147_vm9, %v3112_v62, %v6548_v25 }
 0x343   :  { %v3116_v61 = vcombine.high %v6877_v32, %v6877_v32  ;;  %v3123_v37 = vrot.slane %v6877_v32, %v6551_v26 }
 0x345   :  { %v3139_v11 = vrot.slane %v3123_v37, %v6551_v26  ;;  %v3131_v6 = vcombine.high %v3123_v37, %v3123_v37  ;;  %v3130_v28 = vrot.slane %v3116_v61, %v6551_v26 }
 0x347   :  { %v3168_v42 = vrot.slane %v3139_v11, %v6453_v44  ;;  %v3153_v33 = vrot.slane %v3131_v6, %v6551_v26  ;;  %v3161_v14 = vcombine.high %v3139_v11, %v3139_v11  ;;  %v3146_v3 = vrot.slane %v3130_v28, %v6551_v26 }
 0x348   :  { %v3132_v5 = vcombine.high %v3130_v28, %v3130_v28 }
 0x349   :  { %v6889_v38 = vadd.f32 %v3168_v42, %v6573_v39  ;;  %v3172_v34 = vrot.slane %v3153_v33, %v6453_v44  ;;  %v3176_v53 = vrot.slane %v3161_v14, %v6453_v44  ;;  %v3163_v62 = vcombine.high %v3153_v33, %v3153_v33 }
 0x34a   :  { %v3184_v37 = vrot.slane %v3146_v3, %v6453_v44  ;;  %v3160_v61 = vrot.slane %v3132_v5, %v6551_v26  ;;  %v3162_v15 = vcombine.high %v3146_v3, %v3146_v3 }
 0x34b   :  { %10209 = vst [vmem:[#allocation46_spill] sm:$0xff] %v6889_v38  ;;  %v3213_v6 = vsel %vm573_vm1, %v6889_v38, -inf  ;;  %v6898_v11 = vadd.f32 %v3172_v34, %v6573_v39  ;;  %v6901_v28 = vadd.f32 %v3176_v53, %v6573_v39  ;;  %v3180_v42 = vrot.slane %v3163_v62, %v6453_v44 }
 0x34c   :  { %3214 = vmax.xlane.f32.xlu0 %v3213_v6  ;;  %v3188_v3 = vrot.slane %v3160_v61, %v6453_v44  ;;  %v6913_v34 = vadd.f32 %v3184_v37, %v6573_v39  ;;  %v3192_v53 = vrot.slane %v3162_v15, %v6453_v44 }
 0x34d   :  { %10210 = vst [vmem:[#allocation47_spill] sm:$0xff] %v6898_v11  ;;  %10211 = vst [vmem:[#allocation48_spill] sm:$0xff] %v6901_v28  ;;  %v3216_v33 = vsel %vm573_vm1, %v6898_v11, -inf  ;;  %v6907_v14 = vadd.f32 %v3180_v42, %v6573_v39  ;;  %v3219_v5 = vsel %vm573_vm1, %v6901_v28, -inf }
 0x34e   :  { %3217 = vmax.xlane.f32.xlu1 %v3216_v33  ;;  %10213 = vst [vmem:[#allocation50_spill] sm:$0xff] %v6913_v34  ;;  %v6919_v6 = vadd.f32 %v3188_v3, %v6573_v39  ;;  %v3225_v42 = vsel %vm573_vm1, %v6913_v34, -inf  ;;  %v6924_v33 = vadd.f32 %v3192_v53, %v6573_v39  ;;  %v6932_v3 = vadd.f32 %v6679_v24, %v6450_v43 }
 0x34f   :  { %10212 = vst [vmem:[#allocation49_spill] sm:$0xff] %v6907_v14  ;;  %v3222_v62 = vsel %vm573_vm1, %v6907_v14, -inf }
 0x350   :  { %3220 = vmax.xlane.f32.xlu0 %v3219_v5  ;;  %10214 = vst [vmem:[#allocation51_spill] sm:$0xff] %v6919_v6  ;;  %10215 = vst [vmem:[#allocation52_spill] sm:$0xff] %v6924_v33  ;;  %v3228_v37 = vsel %vm573_vm1, %v6919_v6, -inf  ;;  %v3231_v15 = vsel %vm573_vm1, %v6924_v33, -inf  ;;  %v1762_v5 = vrot.slane %v6932_v3, %v6469_v51  ;;  %v1776_v53 = vrot.slane %v6932_v3, %v6479_v55 }
 0x351   :  { %10216 = vst [vmem:[#allocation53_spill] sm:$0xff] %v6932_v3  ;;  %v1748_v43 = vrot.slane %v6932_v3, %v6453_v44  ;;  %v1755_v24 = vrot.slane %v6932_v3, %v6456_v45 }
 0x352   :  { %3223 = vmax.xlane.f32.xlu1 %v3222_v62  ;;  %v6940_v62 = vrot.slane %v6932_v3, %v6489_v59 }
 0x354   :  { %3226 = vmax.xlane.f32.xlu0 %v3225_v42  ;;  %v1769_v42 = vrot.slane %v6932_v3, %v6466_v50 }
 0x356   :  { %3229 = vmax.xlane.f32.xlu1 %v3228_v37  ;;  %v6954_v37 = vrot.slane %v6932_v3, %v6486_v58 }
 0x358   :  { %3232 = vmax.xlane.f32.xlu0 %v3231_v15  ;;  %v6957_v15 = vpop.permute.xlu0 %3905 }
 0x367   :  { %1764 = vbcast.lane.b32.xlu1 %v1762_v5, 256 }
 0x36b   :  { %1778 = vbcast.lane.b32.xlu1 %v1776_v53, 256 }
 0x36e   :  { %4356 = vbcast.lane.b32.xlu0 %v6830_v10, 256  ;;  %v1783_v10 = vrot.slane %v6932_v3, %v6476_v54 }
 0x36f   :  { %1792 = vbcast.lane.b32.xlu1 %v6940_v62, 256 }
 0x372   :  { %1750 = vbcast.lane.b32.xlu0 %v1748_v43, 256 }
 0x373   :  { %4751 = vbcast.lane.b32.xlu1 %v1748_v43, 256  ;;  %v6961_v43 = vpop.permute.xlu1 %3912 }
 0x376   :  { %1757 = vbcast.lane.b32.xlu0 %v1755_v24, 256 }
 0x377   :  { %4765 = vbcast.lane.b32.xlu1 %v1762_v5, 256  ;;  %v6959_v5 = vpop.permute.xlu0 %1443  ;;  %v6965_v46 = vpop.permute.xlu1 %1457 }
 0x378   :  { %10217 = vst [vmem:[#allocation54_spill] sm:$0xff] %v6959_v5  ;;  %10219 = vst [vmem:[#allocation56_spill] sm:$0xff] %v6965_v46 }
 0x37a   :  { %1771 = vbcast.lane.b32.xlu0 %v1769_v42, 256 }
 0x37b   :  { %4772 = vbcast.lane.b32.xlu1 %v1769_v42, 256  ;;  %v3164_v42 = vcombine.high %v3160_v61, %v3160_v61  ;;  %v6963_v9 = vpop.permute.xlu0 %1450 }
 0x37c   :  { %10218 = vst [vmem:[#allocation55_spill] sm:$0xff] %v6963_v9 }
 0x37e   :  { %1785 = vbcast.lane.b32.xlu0 %v1783_v10, 256 }
 0x37f   :  { %4786 = vbcast.lane.b32.xlu1 %v1783_v10, 256  ;;  %v3196_v10 = vrot.slane %v3164_v42, %v6453_v44  ;;  %v6968_v52 = vpop.permute.xlu0 %1464 }
 0x380   :  { %10220 = vst [vmem:[#allocation57_spill] sm:$0xff] %v6968_v52 }
 0x381   :  { %v6971_v3 = vadd.f32 %v3196_v10, %v6573_v39 }
 0x382   :  { %1799 = vbcast.lane.b32.xlu0 %v6954_v37, 256 }
 0x383   :  { %10221 = vst [vmem:[#allocation58_spill] sm:$0xff] %v6971_v3  ;;  %v6977_v33 = vpop.permute.xlu0 %1478 }
 0x384   :  { %10223 = vst [vmem:[#allocation60_spill] sm:$0xff] %v6977_v33 }
 0x386   :  { %4758 = vbcast.lane.b32.xlu0 %v1755_v24, 256  ;;  %v6973_v24 = vpop.permute.xlu1 %1471 }
 0x387   :  { %10222 = vst [vmem:[#allocation59_spill] sm:$0xff] %v6973_v24  ;;  %v6981_v34 = vpop.permute.xlu0 %1492 }
 0x388   :  { %10225 = vst [vmem:[#allocation62_spill] sm:$0xff] %v6981_v34 }
 0x38a   :  { %4779 = vbcast.lane.b32.xlu0 %v1776_v53, 256  ;;  %v3234_v53 = vsel %vm573_vm1, %v6971_v3, -inf  ;;  %v6979_v61 = vpop.permute.xlu1 %1485 }
 0x38b   :  { %10224 = vst [vmem:[#allocation61_spill] sm:$0xff] %v6979_v61  ;;  %v6985_v42 = vpop.permute.xlu0 %4307 }
 0x38e   :  { %v6983_v28 = vpop.permute.xlu1 %4314 }
 0x38f   :  { %v6989_v10 = vpop.permute.xlu0 %4328 }
 0x392   :  { %v6987_v11 = vpop.permute.xlu1 %4321 }
 0x393   :  { %v6993_v6 = vpop.permute.xlu0 %4342 }
 0x394   :  { %10227 = vst [vmem:[#allocation64_spill] sm:$0xff] %v6993_v6 }
 0x396   :  { %v6991_v38 = vpop.permute.xlu1 %4335 }
 0x397   :  { %10226 = vst [vmem:[#allocation63_spill] sm:$0xff] %v6991_v38  ;;  %v624_v14 = vpop.xlane.xlu0 %623 }
 0x398   :  { %6076 = vlog2.f32 %v624_v14 }
 0x39a   :  { %v6995_v3 = vpop.permute.xlu1 %4349 }
 0x39b   :  { %10228 = vst [vmem:[#allocation65_spill] sm:$0xff] %v6995_v3  ;;  %v630_v48 = vpop.xlane.xlu0 %629 }
 0x39c   :  { %6078 = vlog2.f32 %v630_v48 }
 0x39f   :  { %v636_v24 = vpop.xlane.xlu0 %635 }
 0x3a3   :  { %3235 = vmax.xlane.f32.xlu1 %v3234_v53  ;;  %v627_v53 = vpop.xlane.xlu1 %626  ;;  %v642_v33 = vpop.xlane.xlu0 %641 }
 0x3a4   :  { %6080 = vlog2.f32 %v627_v53 }
 0x3a5   :  { %6082 = vlog2.f32 %v636_v24  ;;  %v6077_v3 = vpop.eup %6076 }
 0x3a7   :  { %v633_v61 = vpop.xlane.xlu1 %632 }
 0x3a8   :  { %6084 = vlog2.f32 %v633_v61 }
 0x3a9   :  { %6086 = vlog2.f32 %v642_v33  ;;  %v6079_v14 = vpop.eup %6078 }
 0x3ab   :  { %v639_v34 = vpop.xlane.xlu1 %638 }
 0x3ac   :  { %6088 = vlog2.f32 %v639_v34  ;;  %v647_v34 = vmul.f32 0.6931472, %v6077_v3 }
 0x3ae   :  { %v662_v3 = vadd.f32 %v647_v34, %v6796_v1 }
 0x3af   :  { %v645_v46 = vpop.xlane.xlu1 %644 }
 0x3b0   :  { %6090 = vlog2.f32 %v645_v46  ;;  %v681_v1 = vrot.slane %v662_v3, %v6856_v23 }
 0x3b1   :  { %v6081_v24 = vpop.eup %6080 }
 0x3b2   :  { %v649_v6 = vmul.f32 0.6931472, %v6081_v24 }
 0x3d5   :  { %v6997_v52 = vpop.xlane.xlu0 %3214 }
 0x3d6   :  { %10229 = vst [vmem:[#allocation66_spill] sm:$0xff] %v6997_v52  ;;  %v3478_v9 = vadd.f32 %v6746_v47, %v6997_v52  ;;  %v651_v47 = vmul.f32 0.6931472, %v6079_v14  ;;  %v6083_v52 = vpop.eup %6082 }
 0x3d7   :  { %v7001_v5 = vpop.xlane.xlu1 %3217 }
 0x3d8   :  { %10230 = vst [vmem:[#allocation67_spill] sm:$0xff] %v7001_v5  ;;  %3495 = vperm.xlu1 %6043, %v3478_v9   ;;  %v3479_v48 = vadd.f32 %v6749_v35, %v7001_v5  ;;  %v7013_v9 = vpop.f32.mrf.mxu1  ;;  %v664_v14 = vadd.f32 %v651_v47, %v6833_v20 }
 0x3d9   :  { %v7003_v38 = vpop.xlane.xlu0 %3220  ;;  %10234 = vst [vmem:[#allocation71_spill] sm:$0xff] %v7013_v9  ;;  %v663_v9 = vadd.f32 %v649_v6, %v6788_v22 }
 0x3da   :  { %10231 = vst [vmem:[#allocation68_spill] sm:$0xff] %v7003_v38  ;;  %v3480_v33 = vadd.f32 %v6754_v41, %v7003_v38  ;;  %v6085_v41 = vpop.eup %6084  ;;  %v320_v5 = vpop.f32.mrf.mxu1  ;;  %v689_v22 = vrot.slane %v664_v14, %v6856_v23 }
 0x3db   :  { %v7009_v61 = vpop.xlane.xlu1 %3223  ;;  %v6087_v24 = vpop.eup %6086 }
 0x3dc   :  { %10232 = vst [vmem:[#allocation69_spill] sm:$0xff] %v7009_v61  ;;  %3501 = vperm.xlu0 %6042, %v3480_v33   ;;  %3498 = vperm.xlu1 %6043, %v3479_v48   ;;  %v3481_v46 = vadd.f32 %v6751_v29, %v7009_v61  ;;  %v655_v48 = vmul.f32 0.6931472, %v6083_v52  ;;  %v653_v29 = vmul.f32 0.6931472, %v6085_v41  ;;  %v6089_v61 = vpop.eup %6088 }
 0x3dd   :  { %v7011_v53 = vpop.xlane.xlu0 %3226  ;;  %v6288_v52 = vld [vmem:[%s10027_s4] ss:$0 sm:$0xff]  ;;  %v659_v34 = vmul.f32 0.6931472, %v6087_v24  ;;  %v657_v47 = vmul.f32 0.6931472, %v6089_v61 }
 0x3de   :  { %10233 = vst [vmem:[#allocation70_spill] sm:$0xff] %v7011_v53  ;;  %v3482_v35 = vadd.f32 %v6758_v19, %v7011_v53  ;;  %v7034_v20 = vadd.f32 %v6288_v52, %v320_v5  ;;  %v666_v6 = vadd.f32 %v655_v48, %v6837_v40 }
 0x3df   :  { %v7019_v38 = vpop.xlane.xlu1 %3229  ;;  %v668_v61 = vadd.f32 %v659_v34, %v6843_v60 }
 0x3e0   :  { %10235 = vst [vmem:[#allocation72_spill] sm:$0xff] %v7019_v38  ;;  %3507 = vperm.xlu0 %6042, %v3482_v35   ;;  %3504 = vperm.xlu1 %6043, %v3481_v46   ;;  %v3483_v19 = vadd.f32 %v6756_v7, %v7019_v38  ;;  %10237 = vst [vmem:[#allocation74_spill] sm:$0xff] %v7034_v20  ;;  %v685_v7 = vrot.slane %v663_v9, %v6856_v23  ;;  %v6091_v46 = vpop.eup %6090 }
 0x3e1   :  { %v7023_v33 = vpop.xlane.xlu0 %3232  ;;  %v7045_v5 = vrot.slane %v7034_v20, %v6456_v45  ;;  %v7049_v40 = vrot.slane %v7034_v20, %v6453_v44  ;;  %v661_v41 = vmul.f32 0.6931472, %v6091_v46  ;;  %v7060_v3 = vrot.slane %v7034_v20, %v6466_v50 }
 0x3e2   :  { %10236 = vst [vmem:[#allocation73_spill] sm:$0xff] %v7023_v33  ;;  %v3484_v53 = vadd.f32 %v6765_v49, %v7023_v33  ;;  %v665_v49 = vadd.f32 %v653_v29, %v6800_v31  ;;  %v697_v31 = vrot.slane %v666_v6, %v6856_v23  ;;  %v7065_v14 = vrot.slane %v7034_v20, %v6469_v51 }
 0x3e3   :  { %v705_v48 = vrot.slane %v668_v61, %v6856_v23  ;;  %v669_v24 = vadd.f32 %v661_v41, %v6812_v16  ;;  %v7089_v6 = vrot.slane %v7034_v20, %v6489_v59  ;;  %v7100_v46 = vpop.permute.xlu1 %1764 }
 0x3e4   :  { %3513 = vperm.xlu0 %6042, %v3484_v53   ;;  %3510 = vperm.xlu1 %6043, %v3483_v19   ;;  %v711_v53 = vsel %vm710_vm2, %v685_v7, %v681_v1  ;;  %v693_v35 = vrot.slane %v665_v49, %v6856_v23  ;;  %v7075_v19 = vrot.slane %v7034_v20, %v6476_v54 }
 0x3e5   :  { %v713_v9 = vsel %vm712_vm3, %v689_v22, %v711_v53  ;;  %v7080_v1 = vrot.slane %v7034_v20, %v6479_v55  ;;  %v709_v22 = vrot.slane %v669_v24, %v6856_v23 }
 0x3e8   :  { %4793 = vbcast.lane.b32.xlu0 %v6940_v62, 256  ;;  %4800 = vbcast.lane.b32.xlu1 %v6954_v37, 256  ;;  %v667_v62 = vadd.f32 %v657_v47, %v6806_v17  ;;  %v715_v37 = vsel %vm714_vm4, %v693_v35, %v713_v9  ;;  %v7103_v9 = vpop.permute.xlu1 %1778 }
 0x3e9   :  { %v717_v60 = vsel %vm716_vm5, %v697_v31, %v715_v37 }
 0x3ea   :  { %v701_v17 = vrot.slane %v667_v62, %v6856_v23 }
 0x3ec   :  { %2064 = vbcast.lane.b32.xlu0 %v7045_v5, 256  ;;  %2057 = vbcast.lane.b32.xlu1 %v7049_v40, 256  ;;  %v719_v29 = vsel %vm718_vm6, %v701_v17, %v717_v60  ;;  %v7109_v35 = vpop.permute.xlu1 %1792 }
 0x3ed   :  { %v721_v52 = vsel %vm720_vm7, %v705_v48, %v719_v29 }
 0x3ee   :  { %v723_v16 = vsel %vm722_vm8, %v709_v22, %v721_v52 }
 0x3ef   :  { %v7094_v34 = vsel %vm10147_vm9, %v723_v16, %v6548_v25 }
 0x3f0   :  { %2078 = vbcast.lane.b32.xlu0 %v7060_v3, 256  ;;  %2071 = vbcast.lane.b32.xlu1 %v7065_v14, 256  ;;  %v734_v7 = vrot.slane %v7094_v34, %v6551_v26  ;;  %v7113_v41 = vpop.permute.xlu1 %4751  ;;  %v727_v29 = vcombine.high %v7094_v34, %v7094_v34 }
 0x3f2   :  { %v742_v49 = vcombine.high %v734_v7, %v734_v7  ;;  %v750_v24 = vrot.slane %v734_v7, %v6551_v26  ;;  %v741_v16 = vrot.slane %v727_v29, %v6551_v26 }
 0x3f4   :  { %2092 = vbcast.lane.b32.xlu0 %v7075_v19, 256  ;;  %2085 = vbcast.lane.b32.xlu1 %v7080_v1, 256  ;;  %v764_v47 = vrot.slane %v742_v49, %v6551_v26  ;;  %v7115_v37 = vpop.permute.xlu1 %4765  ;;  %v779_v52 = vrot.slane %v750_v24, %v6453_v44  ;;  %v772_v22 = vcombine.high %v750_v24, %v750_v24 }
 0x3f6   :  { %v783_v53 = vrot.slane %v764_v47, %v6453_v44  ;;  %v816_v49 = vadd.f32 %v779_v52, %v6573_v39  ;;  %v774_v27 = vcombine.high %v764_v47, %v764_v47 }
 0x3f8   :  { %2099 = vbcast.lane.b32.xlu1 %v7089_v6, 256  ;;  %v817_v31 = vadd.f32 %v783_v53, %v6573_v39  ;;  %v7117_v60 = vpop.permute.xlu1 %4772  ;;  %v787_v53 = vrot.slane %v772_v22, %v6453_v44  ;;  %v791_v22 = vrot.slane %v774_v27, %v6453_v44 }
 0x3fa   :  { %v7107_v61 = vadd.f32 %v6730_v21, %v817_v31  ;;  %v757_v31 = vrot.slane %v741_v16, %v6551_v26  ;;  %v818_v7 = vadd.f32 %v787_v53, %v6573_v39  ;;  %v819_v47 = vadd.f32 %v791_v22, %v6573_v39 }
 0x3fc   :  { %v891_v62 = vsel %vm573_vm1, %v7107_v61, -inf  ;;  %v7119_v48 = vpop.permute.xlu1 %4786  ;;  %v7142_v29 = vadd.f32 %v6736_v2, %v818_v7  ;;  %v7157_v27 = vadd.f32 %v6734_v56, %v819_v47  ;;  %v7180_v47 = vpop.permute.xlu0 %4356 }
 0x413   :  { %892 = vmax.xlane.f32.xlu0 %v891_v62  ;;  %v743_v62 = vcombine.high %v741_v16, %v741_v16  ;;  %v894_v16 = vsel %vm573_vm1, %v7142_v29, -inf }
 0x415   :  { %v771_v33 = vrot.slane %v743_v62, %v6551_v26 }
 0x417   :  { %v799_v53 = vrot.slane %v771_v33, %v6453_v44  ;;  %v775_v7 = vcombine.high %v771_v33, %v771_v33 }
 0x42c   :  { %v7121_v17 = vpop.xlane.xlu1 %3235 }
 0x42d   :  { %10238 = vst [vmem:[#allocation75_spill] sm:$0xff] %v7121_v17  ;;  %v3485_v21 = vadd.f32 %v6760_v57, %v7121_v17  ;;  %v7134_v57 = vadd.f32 %v6732_v13, %v816_v49  ;;  %v773_v13 = vcombine.high %v757_v31, %v757_v31 }
 0x42f   :  { %3516 = vperm.xlu1 %6043, %v3485_v21   ;;  %v795_v21 = vrot.slane %v757_v31, %v6453_v44  ;;  %v888_v24 = vsel %vm573_vm1, %v7134_v57, -inf  ;;  %v803_v2 = vrot.slane %v773_v13, %v6453_v44  ;;  %v821_v31 = vadd.f32 %v799_v53, %v6573_v39  ;;  %v7182_v53 = vpop.permute.xlu0 %1750 }
 0x431   :  { %v820_v52 = vadd.f32 %v795_v21, %v6573_v39  ;;  %v7163_v21 = vadd.f32 %v6738_v63, %v821_v31 }
 0x433   :  { %v7149_v49 = vadd.f32 %v6740_v0, %v820_v52  ;;  %v897_v0 = vsel %vm573_vm1, %v7157_v27, -inf  ;;  %v807_v52 = vrot.slane %v775_v7, %v6453_v44  ;;  %v903_v22 = vsel %vm573_vm1, %v7163_v21, -inf }
 0x435   :  { %v900_v62 = vsel %vm573_vm1, %v7149_v49, -inf  ;;  %v823_v33 = vadd.f32 %v807_v52, %v6573_v39 }
 0x437   :  { %v7176_v63 = vadd.f32 %v6742_v4, %v823_v33 }
 0x453   :  { %889 = vmax.xlane.f32.xlu1 %v888_v24  ;;  %v822_v24 = vadd.f32 %v803_v2, %v6573_v39  ;;  %v3496_v2 = vpop.permute.xlu1 %3495 }
 0x454   :  { %v3521_v38 = vrot.slane %v3496_v2, %v6856_v23 }
 0x455   :  { %v7170_v56 = vadd.f32 %v6744_v12, %v822_v24  ;;  %v7184_v12 = vpop.permute.xlu0 %1757 }
 0x457   :  { %895 = vmax.xlane.f32.xlu1 %v894_v16  ;;  %v906_v13 = vsel %vm573_vm1, %v7170_v56, -inf  ;;  %v909_v16 = vsel %vm573_vm1, %v7176_v63, -inf }
 0x459   :  { %v7186_v39 = vpop.permute.xlu0 %1771 }
 0x45a   :  { %10239 = vst [vmem:[#allocation76_spill] sm:$0xff] %v7186_v39 }
 0x45b   :  { %901 = vmax.xlane.f32.xlu1 %v900_v62  ;;  %v3499_v62 = vpop.permute.xlu1 %3498 }
 0x45c   :  { %v3525_v17 = vrot.slane %v3499_v62, %v6856_v23 }
 0x45d   :  { %v7188_v31 = vpop.permute.xlu0 %1785 }
 0x45e   :  { %10240 = vst [vmem:[#allocation77_spill] sm:$0xff] %v7188_v31  ;;  %v3550_v54 = vsel %vm710_vm2, %v3525_v17, %v3521_v38 }
 0x45f   :  { %898 = vmax.xlane.f32.xlu1 %v897_v0  ;;  %v3505_v7 = vpop.permute.xlu1 %3504 }
 0x460   :  { %v3533_v55 = vrot.slane %v3505_v7, %v6856_v23 }
 0x461   :  { %v7190_v4 = vpop.permute.xlu0 %1799 }
 0x462   :  { %10241 = vst [vmem:[#allocation78_spill] sm:$0xff] %v7190_v4 }
 0x463   :  { %904 = vmax.xlane.f32.xlu1 %v903_v22  ;;  %v3511_v0 = vpop.permute.xlu1 %3510 }
 0x464   :  { %v3541_v62 = vrot.slane %v3511_v0, %v6856_v23 }
 0x465   :  { %v7192_v24 = vpop.permute.xlu0 %4758 }
 0x467   :  { %907 = vmax.xlane.f32.xlu1 %v906_v13  ;;  %v7194_v52 = vpop.permute.xlu1 %4800 }
 0x469   :  { %v7198_v33 = vpop.permute.xlu0 %4779 }
 0x46b   :  { %910 = vmax.xlane.f32.xlu1 %v909_v16  ;;  %v7196_v22 = vpop.permute.xlu1 %2057 }
 0x46c   :  { %10242 = vst [vmem:[#allocation79_spill] sm:$0xff] %v7196_v22 }
 0x46d   :  { %v3502_v13 = vpop.permute.xlu0 %3501 }
 0x46e   :  { %v3529_v50 = vrot.slane %v3502_v13, %v6856_v23 }
 0x46f   :  { %v7200_v16 = vpop.permute.xlu1 %2071 }
 0x470   :  { %10243 = vst [vmem:[#allocation80_spill] sm:$0xff] %v7200_v16  ;;  %v3551_v31 = vsel %vm712_vm3, %v3529_v50, %v3550_v54 }
 0x471   :  { %v3508_v25 = vpop.permute.xlu0 %3507  ;;  %v3552_v4 = vsel %vm714_vm4, %v3533_v55, %v3551_v31 }
 0x472   :  { %v3537_v22 = vrot.slane %v3508_v25, %v6856_v23 }
 0x473   :  { %v7205_v59 = vpop.permute.xlu1 %2085 }
 0x474   :  { %10244 = vst [vmem:[#allocation81_spill] sm:$0xff] %v7205_v59  ;;  %v3553_v13 = vsel %vm716_vm5, %v3537_v22, %v3552_v4 }
 0x475   :  { %v3514_v16 = vpop.permute.xlu0 %3513  ;;  %v3554_v59 = vsel %vm718_vm6, %v3541_v62, %v3553_v13 }
 0x476   :  { %v3545_v2 = vrot.slane %v3514_v16, %v6856_v23 }
 0x477   :  { %v7213_v39 = vpop.permute.xlu1 %2099 }
 0x478   :  { %10245 = vst [vmem:[#allocation82_spill] sm:$0xff] %v7213_v39  ;;  %v3555_v25 = vsel %vm720_vm7, %v3545_v2, %v3554_v59  ;;  %v7239_v2 = vld [vmem:[%s10028_s5] sm:$0xff] }
 0x4aa   :  { %v3517_v38 = vpop.permute.xlu1 %3516 }
 0x4ab   :  { %v3549_v17 = vrot.slane %v3517_v38, %v6856_v23 }
 0x4ad   :  { %v3556_v50 = vsel %vm722_vm8, %v3549_v17, %v3555_v25 }
 0x4ae   :  { %v7225_v54 = vsel %vm10152_vm10, %v3556_v50, %v6877_v32 }
 0x4af   :  { %v3560_v55 = vcombine.high %v7225_v54, %v7225_v54  ;;  %v3567_v31 = vrot.slane %v7225_v54, %v6551_v26 }
 0x4b1   :  { %v3583_v7 = vrot.slane %v3567_v31, %v6551_v26  ;;  %v3575_v4 = vcombine.high %v3567_v31, %v3567_v31  ;;  %v3574_v59 = vrot.slane %v3560_v55, %v6551_v26 }
 0x4b3   :  { %v3612_v0 = vrot.slane %v3583_v7, %v6453_v44  ;;  %v3597_v22 = vrot.slane %v3575_v4, %v6551_v26  ;;  %v3605_v16 = vcombine.high %v3583_v7, %v3583_v7  ;;  %v3590_v62 = vrot.slane %v3574_v59, %v6551_v26 }
 0x4b4   :  { %v3576_v32 = vcombine.high %v3574_v59, %v3574_v59 }
 0x4b5   :  { %v7242_v13 = vadd.f32 %v7239_v2, %v3612_v0  ;;  %v3616_v38 = vrot.slane %v3597_v22, %v6453_v44  ;;  %v3620_v17 = vrot.slane %v3605_v16, %v6453_v44  ;;  %v3607_v25 = vcombine.high %v3597_v22, %v3597_v22 }
 0x4b6   :  { %v3628_v50 = vrot.slane %v3590_v62, %v6453_v44  ;;  %v3604_v55 = vrot.slane %v3576_v32, %v6551_v26  ;;  %v3606_v31 = vcombine.high %v3590_v62, %v3590_v62 }
 0x4b7   :  { %10246 = vst [vmem:[#allocation83_spill] sm:$0xff] %v7242_v13  ;;  %v3657_v7 = vsel %vm573_vm1, %v7242_v13, -inf  ;;  %v7251_v4 = vadd.f32 %v7239_v2, %v3616_v38  ;;  %v7254_v59 = vadd.f32 %v7239_v2, %v3620_v17  ;;  %v3624_v0 = vrot.slane %v3607_v25, %v6453_v44 }
 0x4b8   :  { %3658 = vmax.xlane.f32.xlu1 %v3657_v7  ;;  %v3632_v62 = vrot.slane %v3604_v55, %v6453_v44  ;;  %v3608_v32 = vcombine.high %v3604_v55, %v3604_v55  ;;  %v7266_v13 = vadd.f32 %v7239_v2, %v3628_v50  ;;  %v3636_v17 = vrot.slane %v3606_v31, %v6453_v44 }
 0x4b9   :  { %10247 = vst [vmem:[#allocation84_spill] sm:$0xff] %v7251_v4  ;;  %10248 = vst [vmem:[#allocation85_spill] sm:$0xff] %v7254_v59  ;;  %v3660_v22 = vsel %vm573_vm1, %v7251_v4, -inf  ;;  %v7260_v16 = vadd.f32 %v7239_v2, %v3624_v0  ;;  %v3663_v38 = vsel %vm573_vm1, %v7254_v59, -inf }
 0x4ba   :  { %3661 = vmax.xlane.f32.xlu0 %v3660_v22  ;;  %10250 = vst [vmem:[#allocation87_spill] sm:$0xff] %v7266_v13  ;;  %v7272_v7 = vadd.f32 %v7239_v2, %v3632_v62  ;;  %v3640_v0 = vrot.slane %v3608_v32, %v6453_v44  ;;  %v3669_v55 = vsel %vm573_vm1, %v7266_v13, -inf  ;;  %v7278_v22 = vadd.f32 %v7239_v2, %v3636_v17 }
 0x4bb   :  { %10249 = vst [vmem:[#allocation86_spill] sm:$0xff] %v7260_v16  ;;  %v3666_v25 = vsel %vm573_vm1, %v7260_v16, -inf }
 0x4bc   :  { %3664 = vmax.xlane.f32.xlu1 %v3663_v38  ;;  %10251 = vst [vmem:[#allocation88_spill] sm:$0xff] %v7272_v7  ;;  %10252 = vst [vmem:[#allocation89_spill] sm:$0xff] %v7278_v22  ;;  %v3672_v50 = vsel %vm573_vm1, %v7272_v7, -inf  ;;  %v7283_v31 = vadd.f32 %v7239_v2, %v3640_v0  ;;  %v3675_v62 = vsel %vm573_vm1, %v7278_v22, -inf  ;;  %v7287_v38 = vpop.permute.xlu0 %4793  ;;  %v7301_v0 = vrot.slane %v7034_v20, %v6486_v58 }
 0x4be   :  { %3667 = vmax.xlane.f32.xlu0 %v3666_v25  ;;  %10253 = vst [vmem:[#allocation90_spill] sm:$0xff] %v7283_v31  ;;  %v3678_v32 = vsel %vm573_vm1, %v7283_v31, -inf }
 0x4c0   :  { %3670 = vmax.xlane.f32.xlu1 %v3669_v55  ;;  %v7291_v17 = vpop.permute.xlu0 %2064 }
 0x4c2   :  { %3673 = vmax.xlane.f32.xlu0 %v3672_v50 }
 0x4c4   :  { %3676 = vmax.xlane.f32.xlu1 %v3675_v62  ;;  %v7293_v25 = vpop.permute.xlu0 %2078 }
 0x4c5   :  { %10254 = vst [vmem:[#allocation91_spill] sm:$0xff] %v7293_v25 }
 0x4c6   :  { %3679 = vmax.xlane.f32.xlu0 %v3678_v32 }
 0x4c8   :  { %v7295_v55 = vpop.permute.xlu0 %2092 }
 0x4cc   :  { %v7297_v13 = vpop.xlane.xlu0 %892 }
 0x4cd   :  { %v913_v50 = vsub.f32 %v7107_v61, %v7297_v13 }
 0x4cf   :  { %v922_v22 = vmul.f32 1.442695, %v913_v50 }
 0x4dc   :  { %2106 = vbcast.lane.b32.xlu0 %v7301_v0, 256  ;;  %v7306_v62 = vpop.xlane.xlu1 %889 }
 0x4dd   :  { %v912_v32 = vsub.f32 %v7134_v57, %v7306_v62 }
 0x4df   :  { %v920_v59 = vmul.f32 1.442695, %v912_v32 }
 0x4e0   :  { %v7310_v4 = vpop.xlane.xlu1 %895 }
 0x4e1   :  { %6092 = vpow2.f32 %v920_v59  ;;  %v914_v31 = vsub.f32 %v7142_v29, %v7310_v4 }
 0x4e2   :  { %6094 = vpow2.f32 %v922_v22 }
 0x4e3   :  { %v924_v20 = vmul.f32 1.442695, %v914_v31 }
 0x4e4   :  { %v7314_v7 = vpop.xlane.xlu1 %901 }
 0x4e5   :  { %v916_v61 = vsub.f32 %v7149_v49, %v7314_v7  ;;  %6096 = vpow2.f32 %v924_v20 }
 0x4e7   :  { %v928_v16 = vmul.f32 1.442695, %v916_v61 }
 0x4e8   :  { %v7318_v39 = vpop.xlane.xlu1 %898 }
 0x4e9   :  { %v915_v57 = vsub.f32 %v7157_v27, %v7318_v39  ;;  %6098 = vpow2.f32 %v928_v16 }
 0x4eb   :  { %v926_v50 = vmul.f32 1.442695, %v915_v57 }
 0x4ec   :  { %v7322_v59 = vpop.xlane.xlu1 %904 }
 0x4ed   :  { %v917_v29 = vsub.f32 %v7163_v21, %v7322_v59  ;;  %6100 = vpow2.f32 %v926_v50 }
 0x4ee   :  { %v6093_v22 = vpop.eup %6092 }
 0x4ef   :  { %v930_v31 = vmul.f32 1.442695, %v917_v29  ;;  %v936_v32 = vsel %vm573_vm1, %v6093_v22, 0.0  ;;  %v6095_v49 = vpop.eup %6094 }
 0x4f0   :  { %937 = vadd.xlane.f32.xlu1 %v936_v32  ;;  %v7327_v20 = vpop.xlane.xlu1 %907  ;;  %v939_v61 = vsel %vm573_vm1, %v6095_v49, 0.0 }
 0x4f1   :  { %6102 = vpow2.f32 %v930_v31  ;;  %v918_v27 = vsub.f32 %v7170_v56, %v7327_v20 }
 0x4f2   :  { %v6097_v57 = vpop.eup %6096 }
 0x4f3   :  { %v932_v16 = vmul.f32 1.442695, %v918_v27  ;;  %v942_v22 = vsel %vm573_vm1, %v6097_v57, 0.0 }
 0x4f4   :  { %940 = vadd.xlane.f32.xlu1 %v939_v61  ;;  %v7332_v25 = vpop.xlane.xlu1 %910 }
 0x4f5   :  { %6104 = vpow2.f32 %v932_v16  ;;  %v919_v21 = vsub.f32 %v7176_v63, %v7332_v25 }
 0x4f6   :  { %v6099_v50 = vpop.eup %6098 }
 0x4f7   :  { %v934_v29 = vmul.f32 1.442695, %v919_v21  ;;  %v948_v31 = vsel %vm573_vm1, %v6099_v50, 0.0 }
 0x4f8   :  { %943 = vadd.xlane.f32.xlu1 %v942_v22 }
 0x4f9   :  { %6106 = vpow2.f32 %v934_v29 }
 0x4fa   :  { %v6101_v56 = vpop.eup %6100 }
 0x4fb   :  { %949 = vadd.xlane.f32.xlu0 %v948_v31  ;;  %v945_v49 = vsel %vm573_vm1, %v6101_v56, 0.0 }
 0x4fe   :  { %v6103_v32 = vpop.eup %6102 }
 0x4ff   :  { %946 = vadd.xlane.f32.xlu0 %v945_v49  ;;  %v951_v27 = vsel %vm573_vm1, %v6103_v32, 0.0 }
 0x500   :  { %952 = vadd.xlane.f32.xlu1 %v951_v27  ;;  %v10260_v27 = vld [vmem:[#allocation34_spill] sm:$0xff] }
 0x502   :  { %v6105_v16 = vpop.eup %6104 }
 0x503   :  { %v954_v63 = vsel %vm573_vm1, %v6105_v16, 0.0  ;;  %v10261_v16 = vld [vmem:[#allocation35_spill] sm:$0xff] }
 0x504   :  { %955 = vadd.xlane.f32.xlu0 %v954_v63 }
 0x506   :  { %v6107_v61 = vpop.eup %6106 }
 0x507   :  { %v957_v57 = vsel %vm573_vm1, %v6107_v61, 0.0 }
 0x508   :  { %958 = vadd.xlane.f32.xlu1 %v957_v57 }
 0x541   :  { %v7342_v21 = vpop.xlane.xlu1 %3658 }
 0x542   :  { %10255 = vst [vmem:[#allocation92_spill] sm:$0xff] %v7342_v21  ;;  %v3922_v50 = vadd.f32 %v6716_v36, %v7342_v21 }
 0x543   :  { %v7346_v29 = vpop.xlane.xlu0 %3661 }
 0x544   :  { %10256 = vst [vmem:[#allocation93_spill] sm:$0xff] %v7346_v29  ;;  %3939 = vperm.xlu1 %6043, %v3922_v50   ;;  %v3923_v31 = vadd.f32 %v6722_v8, %v7346_v29 }
 0x545   :  { %v7348_v22 = vpop.xlane.xlu1 %3664 }
 0x546   :  { %10257 = vst [vmem:[#allocation94_spill] sm:$0xff] %v7348_v22  ;;  %v3924_v56 = vadd.f32 %v6720_v18, %v7348_v22  ;;  %v10264_v18 = vld [vmem:[#allocation36_spill] sm:$0xff] }
 0x547   :  { %v7354_v32 = vpop.xlane.xlu0 %3667 }
 0x548   :  { %10258 = vst [vmem:[#allocation95_spill] sm:$0xff] %v7354_v32  ;;  %3942 = vperm.xlu1 %6043, %v3923_v31   ;;  %3945 = vperm.xlu0 %6042, %v3924_v56   ;;  %v3925_v36 = vadd.f32 %v10260_v27, %v7354_v32 }
 0x549   :  { %v7356_v49 = vpop.xlane.xlu1 %3670 }
 0x54a   :  { %10259 = vst [vmem:[#allocation96_spill] sm:$0xff] %v7356_v49  ;;  %v3926_v63 = vadd.f32 %v10261_v16, %v7356_v49 }
 0x54b   :  { %v7362_v61 = vpop.xlane.xlu0 %3673 }
 0x54c   :  { %10262 = vst [vmem:[#allocation34_spill] sm:$0xff] %v7362_v61  ;;  %3948 = vperm.xlu1 %6043, %v3925_v36   ;;  %3951 = vperm.xlu0 %6042, %v3926_v63   ;;  %v3927_v57 = vadd.f32 %v10264_v18, %v7362_v61 }
 0x54d   :  { %v7364_v8 = vpop.xlane.xlu1 %3676 }
 0x54e   :  { %10263 = vst [vmem:[#allocation35_spill] sm:$0xff] %v7364_v8  ;;  %v3928_v50 = vadd.f32 %v6957_v15, %v7364_v8 }
 0x54f   :  { %v7370_v31 = vpop.xlane.xlu0 %3679 }
 0x550   :  { %10265 = vst [vmem:[#allocation36_spill] sm:$0xff] %v7370_v31  ;;  %3954 = vperm.xlu1 %6043, %v3927_v57   ;;  %3957 = vperm.xlu0 %6042, %v3928_v50   ;;  %v3929_v56 = vadd.f32 %v6961_v43, %v7370_v31 }
 0x553   :  { %v7374_v36 = vpop.permute.xlu0 %2106 }
 0x554   :  { %3960 = vperm.xlu1 %6043, %v3929_v56  }
 0x579   :  { %v938_v27 = vpop.xlane.xlu1 %937 }
 0x57d   :  { %v941_v16 = vpop.xlane.xlu1 %940 }
 0x57e   :  { %6108 = vlog2.f32 %v941_v16 }
 0x57f   :  { %6110 = vlog2.f32 %v938_v27 }
 0x581   :  { %v944_v63 = vpop.xlane.xlu1 %943 }
 0x582   :  { %6112 = vlog2.f32 %v944_v63 }
 0x584   :  { %v950_v18 = vpop.xlane.xlu0 %949 }
 0x585   :  { %6114 = vlog2.f32 %v950_v18 }
 0x588   :  { %v947_v49 = vpop.xlane.xlu0 %946 }
 0x589   :  { %6116 = vlog2.f32 %v947_v49  ;;  %v953_v15 = vpop.xlane.xlu1 %952 }
 0x58a   :  { %6118 = vlog2.f32 %v953_v15 }
 0x58b   :  { %v6109_v57 = vpop.eup %6108 }
 0x58c   :  { %v6111_v8 = vpop.eup %6110  ;;  %v963_v56 = vmul.f32 0.6931472, %v6109_v57 }
 0x58d   :  { %v956_v50 = vpop.xlane.xlu0 %955  ;;  %v961_v21 = vmul.f32 0.6931472, %v6111_v8 }
 0x58e   :  { %6120 = vlog2.f32 %v956_v50  ;;  %v977_v27 = vadd.f32 %v963_v56, %v7297_v13 }
 0x58f   :  { %v6113_v43 = vpop.eup %6112  ;;  %v976_v49 = vadd.f32 %v961_v21, %v7306_v62 }
 0x590   :  { %v965_v22 = vmul.f32 0.6931472, %v6113_v43  ;;  %v999_v32 = vrot.slane %v977_v27, %v6856_v23 }
 0x591   :  { %v959_v29 = vpop.xlane.xlu1 %958 }
 0x592   :  { %6122 = vlog2.f32 %v959_v29  ;;  %v6115_v16 = vpop.eup %6114  ;;  %v978_v63 = vadd.f32 %v965_v22, %v7310_v4  ;;  %v995_v29 = vrot.slane %v976_v49, %v6856_v23 }
 0x593   :  { %v969_v15 = vmul.f32 0.6931472, %v6115_v16 }
 0x594   :  { %v1003_v57 = vrot.slane %v978_v63, %v6856_v23  ;;  %v1024_v22 = vsel %vm710_vm2, %v999_v32, %v995_v29 }
 0x595   :  { %v980_v13 = vadd.f32 %v969_v15, %v7314_v7 }
 0x596   :  { %v6117_v18 = vpop.eup %6116  ;;  %v1025_v56 = vsel %vm712_vm3, %v1003_v57, %v1024_v22 }
 0x597   :  { %v6119_v31 = vpop.eup %6118  ;;  %v967_v61 = vmul.f32 0.6931472, %v6117_v18 }
 0x598   :  { %v971_v50 = vmul.f32 0.6931472, %v6119_v31 }
 0x599   :  { %v979_v43 = vadd.f32 %v967_v61, %v7318_v39  ;;  %v1011_v39 = vrot.slane %v980_v13, %v6856_v23 }
 0x59a   :  { %v981_v62 = vadd.f32 %v971_v50, %v7322_v59 }
 0x59b   :  { %v6121_v8 = vpop.eup %6120  ;;  %v1007_v4 = vrot.slane %v979_v43, %v6856_v23 }
 0x59c   :  { %v973_v21 = vmul.f32 0.6931472, %v6121_v8  ;;  %v1015_v61 = vrot.slane %v981_v62, %v6856_v23 }
 0x59d   :  { %v1026_v31 = vsel %vm714_vm4, %v1007_v4, %v1025_v56 }
 0x59e   :  { %v982_v16 = vadd.f32 %v973_v21, %v7327_v20  ;;  %v1027_v7 = vsel %vm716_vm5, %v1011_v39, %v1026_v31 }
 0x59f   :  { %v6123_v27 = vpop.eup %6122  ;;  %v1028_v59 = vsel %vm718_vm6, %v1015_v61, %v1027_v7 }
 0x5a0   :  { %v975_v63 = vmul.f32 0.6931472, %v6123_v27  ;;  %v1019_v18 = vrot.slane %v982_v16, %v6856_v23 }
 0x5a2   :  { %v983_v32 = vadd.f32 %v975_v63, %v7332_v25  ;;  %v1029_v15 = vsel %vm720_vm7, %v1019_v18, %v1028_v59  ;;  %v10266_v63 = vld [vmem:[#allocation26_spill] sm:$0xff] }
 0x5a4   :  { %v1023_v49 = vrot.slane %v983_v32, %v6856_v23 }
 0x5a6   :  { %v1030_v20 = vsel %vm722_vm8, %v1023_v49, %v1029_v15 }
 0x5a7   :  { %v7402_v50 = vsel %vm10152_vm10, %v1030_v20, %v7094_v34 }
 0x5a8   :  { %v1041_v57 = vrot.slane %v7402_v50, %v6551_v26  ;;  %v1034_v43 = vcombine.high %v7402_v50, %v7402_v50 }
 0x5aa   :  { %v1057_v25 = vrot.slane %v1041_v57, %v6551_v26  ;;  %v1049_v29 = vcombine.high %v1041_v57, %v1041_v57  ;;  %v1048_v8 = vrot.slane %v1034_v43, %v6551_v26  ;;  %v10267_v57 = vld [vmem:[#allocation28_spill] sm:$0xff] }
 0x5ac   :  { %v1086_v13 = vrot.slane %v1057_v25, %v6453_v44  ;;  %v1071_v4 = vrot.slane %v1049_v29, %v6551_v26  ;;  %v1079_v22 = vcombine.high %v1057_v25, %v1057_v25  ;;  %v1050_v62 = vcombine.high %v1048_v8, %v1048_v8 }
 0x5ad   :  { %v1064_v34 = vrot.slane %v1048_v8, %v6551_v26 }
 0x5ae   :  { %v1123_v21 = vadd.f32 %v7239_v2, %v1086_v13  ;;  %v1090_v56 = vrot.slane %v1071_v4, %v6453_v44  ;;  %v1081_v31 = vcombine.high %v1071_v4, %v1071_v4  ;;  %v1094_v16 = vrot.slane %v1079_v22, %v6453_v44  ;;  %v10268_v22 = vld [vmem:[#allocation30_spill] sm:$0xff] }
 0x5af   :  { %v1078_v27 = vrot.slane %v1050_v62, %v6551_v26  ;;  %v1102_v39 = vrot.slane %v1064_v34, %v6453_v44  ;;  %v1080_v61 = vcombine.high %v1064_v34, %v1064_v34  ;;  %v10269_v34 = vld [vmem:[#allocation27_spill] sm:$0xff] }
 0x5b0   :  { %v7419_v7 = vadd.f32 %v10266_v63, %v1123_v21  ;;  %v1124_v18 = vadd.f32 %v7239_v2, %v1090_v56  ;;  %v1098_v32 = vrot.slane %v1081_v31, %v6453_v44  ;;  %v1125_v59 = vadd.f32 %v7239_v2, %v1094_v16  ;;  %v10270_v16 = vld [vmem:[#allocation32_spill] sm:$0xff] }
 0x5b1   :  { %v1106_v49 = vrot.slane %v1078_v27, %v6453_v44  ;;  %v1082_v15 = vcombine.high %v1078_v27, %v1078_v27  ;;  %v1127_v8 = vadd.f32 %v7239_v2, %v1102_v39  ;;  %v1110_v56 = vrot.slane %v1080_v61, %v6453_v44 }
 0x5b2   :  { %v1195_v20 = vsel %vm573_vm1, %v7419_v7, -inf  ;;  %v7428_v43 = vadd.f32 %v10267_v57, %v1124_v18  ;;  %v1126_v25 = vadd.f32 %v7239_v2, %v1098_v32  ;;  %v7440_v21 = vadd.f32 %v10269_v34, %v1125_v59  ;;  %v10271_v18 = vld [vmem:[#allocation29_spill] sm:$0xff]  ;;  %v10273_v57 = vld [vmem:[#allocation31_spill] sm:$0xff] }
 0x5b3   :  { %1196 = vmax.xlane.f32.xlu1 %v1195_v20  ;;  %v1128_v29 = vadd.f32 %v7239_v2, %v1106_v49  ;;  %v1114_v13 = vrot.slane %v1082_v15, %v6453_v44  ;;  %v7452_v32 = vadd.f32 %v10271_v18, %v1127_v8  ;;  %v1129_v59 = vadd.f32 %v7239_v2, %v1110_v56  ;;  %v10272_v49 = vld [vmem:[#allocation33_spill] sm:$0xff] }
 0x5b4   :  { %v1198_v4 = vsel %vm573_vm1, %v7428_v43, -inf  ;;  %v7437_v62 = vadd.f32 %v10268_v22, %v1126_v25  ;;  %v1201_v63 = vsel %vm573_vm1, %v7440_v21, -inf }
 0x5b5   :  { %1199 = vmax.xlane.f32.xlu0 %v1198_v4  ;;  %v7446_v27 = vadd.f32 %v10270_v16, %v1128_v29  ;;  %v1130_v39 = vadd.f32 %v7239_v2, %v1114_v13  ;;  %v1207_v20 = vsel %vm573_vm1, %v7452_v32, -inf  ;;  %v7463_v25 = vadd.f32 %v10273_v57, %v1129_v59 }
 0x5b6   :  { %v1204_v31 = vsel %vm573_vm1, %v7437_v62, -inf }
 0x5b7   :  { %1205 = vmax.xlane.f32.xlu1 %v1204_v31  ;;  %v1210_v61 = vsel %vm573_vm1, %v7446_v27, -inf  ;;  %v7458_v15 = vadd.f32 %v10272_v49, %v1130_v39  ;;  %v1213_v13 = vsel %vm573_vm1, %v7463_v25, -inf }
 0x5b9   :  { %1202 = vmax.xlane.f32.xlu0 %v1201_v63  ;;  %v1216_v29 = vsel %vm573_vm1, %v7458_v15, -inf }
 0x5bb   :  { %1211 = vmax.xlane.f32.xlu1 %v1210_v61 }
 0x5bd   :  { %1208 = vmax.xlane.f32.xlu0 %v1207_v20 }
 0x5bf   :  { %1217 = vmax.xlane.f32.xlu1 %v1216_v29  ;;  %v3940_v8 = vpop.permute.xlu1 %3939 }
 0x5c0   :  { %v3965_v34 = vrot.slane %v3940_v8, %v6856_v23 }
 0x5c1   :  { %1214 = vmax.xlane.f32.xlu0 %v1213_v13 }
 0x5c3   :  { %v3946_v4 = vpop.permute.xlu0 %3945  ;;  %v3943_v22 = vpop.permute.xlu1 %3942 }
 0x5c4   :  { %v3969_v56 = vrot.slane %v3943_v22, %v6856_v23  ;;  %v3973_v31 = vrot.slane %v3946_v4, %v6856_v23 }
 0x5c6   :  { %v3994_v16 = vsel %vm710_vm2, %v3969_v56, %v3965_v34 }
 0x5c7   :  { %v3952_v39 = vpop.permute.xlu0 %3951  ;;  %v3949_v63 = vpop.permute.xlu1 %3948  ;;  %v3995_v61 = vsel %vm712_vm3, %v3973_v31, %v3994_v16 }
 0x5c8   :  { %v3977_v18 = vrot.slane %v3949_v63, %v6856_v23  ;;  %v3981_v59 = vrot.slane %v3952_v39, %v6856_v23  ;;  %v10274_v39 = vld [vmem:[#allocation11_spill] sm:$0xff] }
 0x5c9   :  { %vm10153_vm11 = vcmp.gt.f32.partialorder %v10274_v39, 0.0 }
 0x5ca   :  { %v3996_v49 = vsel %vm714_vm4, %v3977_v18, %v3995_v61 }
 0x5cb   :  { %v3958_v20 = vpop.permute.xlu0 %3957  ;;  %v3955_v57 = vpop.permute.xlu1 %3954  ;;  %v3997_v13 = vsel %vm716_vm5, %v3981_v59, %v3996_v49 }
 0x5cc   :  { %v3985_v29 = vrot.slane %v3955_v57, %v6856_v23  ;;  %v3989_v8 = vrot.slane %v3958_v20, %v6856_v23 }
 0x5ce   :  { %v3998_v4 = vsel %vm718_vm6, %v3985_v29, %v3997_v13 }
 0x5cf   :  { %v3961_v22 = vpop.permute.xlu1 %3960  ;;  %v3999_v56 = vsel %vm720_vm7, %v3989_v8, %v3998_v4 }
 0x5d0   :  { %v3993_v34 = vrot.slane %v3961_v22, %v6856_v23 }
 0x5d2   :  { %v4000_v31 = vsel %vm722_vm8, %v3993_v34, %v3999_v56 }
 0x5d3   :  { %v7488_v16 = vsel %vm10153_vm11, %v4000_v31, %v7225_v54 }
 0x5d4   :  { %v4004_v63 = vcombine.high %v7488_v16, %v7488_v16  ;;  %v4011_v18 = vrot.slane %v7488_v16, %v6551_v26 }
 0x5d6   :  { %v4027_v59 = vrot.slane %v4011_v18, %v6551_v26  ;;  %v4019_v61 = vcombine.high %v4011_v18, %v4011_v18  ;;  %v4018_v49 = vrot.slane %v4004_v63, %v6551_v26 }
 0x5d8   :  { %v4056_v20 = vrot.slane %v4027_v59, %v6453_v44  ;;  %v4041_v57 = vrot.slane %v4019_v61, %v6551_v26  ;;  %v4049_v29 = vcombine.high %v4027_v59, %v4027_v59  ;;  %v4034_v8 = vrot.slane %v4018_v49, %v6551_v26 }
 0x5d9   :  { %v4020_v54 = vcombine.high %v4018_v49, %v4018_v49 }
 0x5da   :  { %v7500_v13 = vadd.f32 %v7239_v2, %v4056_v20  ;;  %v4060_v4 = vrot.slane %v4041_v57, %v6453_v44  ;;  %v4064_v22 = vrot.slane %v4049_v29, %v6453_v44  ;;  %v4051_v34 = vcombine.high %v4041_v57, %v4041_v57 }
 0x5db   :  { %v4072_v56 = vrot.slane %v4034_v8, %v6453_v44  ;;  %v4048_v31 = vrot.slane %v4020_v54, %v6551_v26  ;;  %v4050_v63 = vcombine.high %v4034_v8, %v4034_v8 }
 0x5dc   :  { %10275 = vst [vmem:[#allocation26_spill] sm:$0xff] %v7500_v13  ;;  %v4101_v18 = vsel %vm573_vm1, %v7500_v13, -inf  ;;  %v7509_v59 = vadd.f32 %v7239_v2, %v4060_v4  ;;  %v7512_v61 = vadd.f32 %v7239_v2, %v4064_v22  ;;  %v4068_v49 = vrot.slane %v4051_v34, %v6453_v44 }
 0x5dd   :  { %4102 = vmax.xlane.f32.xlu0 %v4101_v18  ;;  %v4076_v29 = vrot.slane %v4048_v31, %v6453_v44  ;;  %v7524_v54 = vadd.f32 %v7239_v2, %v4072_v56  ;;  %v4080_v4 = vrot.slane %v4050_v63, %v6453_v44 }
 0x5de   :  { %10276 = vst [vmem:[#allocation28_spill] sm:$0xff] %v7509_v59  ;;  %10277 = vst [vmem:[#allocation30_spill] sm:$0xff] %v7512_v61  ;;  %v4104_v20 = vsel %vm573_vm1, %v7509_v59, -inf  ;;  %v7518_v57 = vadd.f32 %v7239_v2, %v4068_v49  ;;  %v4107_v8 = vsel %vm573_vm1, %v7512_v61, -inf }
 0x5df   :  { %4105 = vmax.xlane.f32.xlu1 %v4104_v20  ;;  %10279 = vst [vmem:[#allocation32_spill] sm:$0xff] %v7524_v54  ;;  %v7530_v34 = vadd.f32 %v7239_v2, %v4076_v29  ;;  %v4113_v18 = vsel %vm573_vm1, %v7524_v54, -inf  ;;  %v7535_v49 = vadd.f32 %v7239_v2, %v4080_v4  ;;  %v4052_v20 = vcombine.high %v4048_v31, %v4048_v31 }
 0x5e0   :  { %10278 = vst [vmem:[#allocation27_spill] sm:$0xff] %v7518_v57  ;;  %v4110_v22 = vsel %vm573_vm1, %v7518_v57, -inf }
 0x5e1   :  { %4108 = vmax.xlane.f32.xlu0 %v4107_v8  ;;  %10280 = vst [vmem:[#allocation29_spill] sm:$0xff] %v7530_v34  ;;  %10281 = vst [vmem:[#allocation33_spill] sm:$0xff] %v7535_v49  ;;  %v4116_v56 = vsel %vm573_vm1, %v7530_v34, -inf  ;;  %v4119_v63 = vsel %vm573_vm1, %v7535_v49, -inf  ;;  %v4084_v29 = vrot.slane %v4052_v20, %v6453_v44 }
 0x5e3   :  { %4111 = vmax.xlane.f32.xlu1 %v4110_v22  ;;  %v7546_v8 = vadd.f32 %v7239_v2, %v4084_v29 }
 0x5e5   :  { %4114 = vmax.xlane.f32.xlu0 %v4113_v18  ;;  %10282 = vst [vmem:[#allocation31_spill] sm:$0xff] %v7546_v8  ;;  %v4122_v4 = vsel %vm573_vm1, %v7546_v8, -inf }
 0x5e7   :  { %4117 = vmax.xlane.f32.xlu1 %v4116_v56 }
 0x5e9   :  { %4120 = vmax.xlane.f32.xlu0 %v4119_v63 }
 0x5f8   :  { %5202 = vbcast.lane.b32.xlu1 %v7045_v5, 256 }
 0x5fc   :  { %5209 = vbcast.lane.b32.xlu1 %v7065_v14, 256 }
 0x5ff   :  { %5195 = vbcast.lane.b32.xlu0 %v7049_v40, 256 }
 0x620   :  { %4123 = vmax.xlane.f32.xlu1 %v4122_v4 }
 0x63c   :  { %v7550_v22 = vpop.xlane.xlu1 %1196 }
 0x63d   :  { %v1219_v18 = vsub.f32 %v7419_v7, %v7550_v22 }
 0x63e   :  { %v7554_v5 = vpop.xlane.xlu0 %1199 }
 0x63f   :  { %v1227_v14 = vmul.f32 1.442695, %v1219_v18  ;;  %v1220_v40 = vsub.f32 %v7428_v43, %v7554_v5 }
 0x640   :  { %v7558_v31 = vpop.xlane.xlu1 %1205 }
 0x641   :  { %6124 = vpow2.f32 %v1227_v14  ;;  %v1229_v56 = vmul.f32 1.442695, %v1220_v40  ;;  %v1222_v29 = vsub.f32 %v7437_v62, %v7558_v31 }
 0x642   :  { %v7560_v63 = vpop.xlane.xlu0 %1202 }
 0x643   :  { %6126 = vpow2.f32 %v1229_v56  ;;  %v1221_v20 = vsub.f32 %v7440_v21, %v7560_v63  ;;  %v1233_v56 = vmul.f32 1.442695, %v1222_v29 }
 0x644   :  { %v7566_v7 = vpop.xlane.xlu1 %1211 }
 0x645   :  { %v1231_v4 = vmul.f32 1.442695, %v1221_v20  ;;  %v1224_v18 = vsub.f32 %v7446_v27, %v7566_v7 }
 0x646   :  { %v7570_v43 = vpop.xlane.xlu0 %1208 }
 0x647   :  { %6128 = vpow2.f32 %v1231_v4  ;;  %v1237_v14 = vmul.f32 1.442695, %v1224_v18  ;;  %v1223_v40 = vsub.f32 %v7452_v32, %v7570_v43 }
 0x648   :  { %v7574_v30 = vpop.xlane.xlu1 %1217 }
 0x649   :  { %6130 = vpow2.f32 %v1237_v14  ;;  %v1235_v21 = vmul.f32 1.442695, %v1223_v40  ;;  %v1226_v62 = vsub.f32 %v7458_v15, %v7574_v30 }
 0x64a   :  { %v7578_v8 = vpop.xlane.xlu0 %1214 }
 0x64b   :  { %6132 = vpow2.f32 %v1235_v21  ;;  %v1241_v20 = vmul.f32 1.442695, %v1226_v62  ;;  %v1225_v27 = vsub.f32 %v7463_v25, %v7578_v8 }
 0x64c   :  { %6134 = vpow2.f32 %v1233_v56 }
 0x64d   :  { %6136 = vpow2.f32 %v1241_v20  ;;  %v1239_v4 = vmul.f32 1.442695, %v1225_v27 }
 0x64e   :  { %v6125_v18 = vpop.eup %6124 }
 0x64f   :  { %v1243_v32 = vsel %vm573_vm1, %v6125_v18, 0.0  ;;  %6138 = vpow2.f32 %v1239_v4 }
 0x650   :  { %v6127_v29 = vpop.eup %6126  ;;  %1244 = vadd.xlane.f32.xlu0 %v1243_v32 }
 0x651   :  { %v1246_v14 = vsel %vm573_vm1, %v6127_v29, 0.0 }
 0x654   :  { %v6129_v40 = vpop.eup %6128  ;;  %1247 = vadd.xlane.f32.xlu0 %v1246_v14 }
 0x655   :  { %v1249_v15 = vsel %vm573_vm1, %v6129_v40, 0.0 }
 0x656   :  { %v6131_v21 = vpop.eup %6130  ;;  %1250 = vadd.xlane.f32.xlu1 %v1249_v15 }
 0x657   :  { %v1258_v56 = vsel %vm573_vm1, %v6131_v21, 0.0 }
 0x658   :  { %v6133_v62 = vpop.eup %6132 }
 0x659   :  { %v6135_v34 = vpop.eup %6134  ;;  %v1255_v25 = vsel %vm573_vm1, %v6133_v62, 0.0 }
 0x65a   :  { %v6137_v20 = vpop.eup %6136  ;;  %1256 = vadd.xlane.f32.xlu0 %v1255_v25  ;;  %1259 = vadd.xlane.f32.xlu1 %v1258_v56  ;;  %v1252_v27 = vsel %vm573_vm1, %v6135_v34, 0.0 }
 0x65b   :  { %v1264_v4 = vsel %vm573_vm1, %v6137_v20, 0.0 }
 0x65c   :  { %v6139_v18 = vpop.eup %6138 }
 0x65d   :  { %v1261_v32 = vsel %vm573_vm1, %v6139_v18, 0.0 }
 0x65e   :  { %1253 = vadd.xlane.f32.xlu0 %v1252_v27  ;;  %1265 = vadd.xlane.f32.xlu1 %v1264_v4  ;;  %v10290_v4 = vld [vmem:[#allocation63_spill] sm:$0xff] }
 0x662   :  { %1262 = vadd.xlane.f32.xlu0 %v1261_v32 }
 0x666   :  { %v7590_v29 = vpop.xlane.xlu0 %4102 }
 0x667   :  { %10283 = vst [vmem:[#allocation97_spill] sm:$0xff] %v7590_v29  ;;  %v4366_v40 = vadd.f32 %v6985_v42, %v7590_v29  ;;  %v10289_v42 = vld [vmem:[#allocation64_spill] sm:$0xff] }
 0x668   :  { %v7592_v14 = vpop.xlane.xlu1 %4105 }
 0x669   :  { %10284 = vst [vmem:[#allocation98_spill] sm:$0xff] %v7592_v14  ;;  %v4367_v34 = vadd.f32 %v6983_v28, %v7592_v14 }
 0x66a   :  { %v7596_v15 = vpop.xlane.xlu0 %4108 }
 0x66b   :  { %10285 = vst [vmem:[#allocation99_spill] sm:$0xff] %v7596_v15  ;;  %v4368_v56 = vadd.f32 %v6987_v11, %v7596_v15 }
 0x66c   :  { %v7598_v21 = vpop.xlane.xlu1 %4111 }
 0x66d   :  { %10286 = vst [vmem:[#allocation100_spill] sm:$0xff] %v7598_v21  ;;  %v4369_v62 = vadd.f32 %v6989_v10, %v7598_v21  ;;  %v10292_v10 = vld [vmem:[#allocation65_spill] sm:$0xff] }
 0x66e   :  { %v7604_v25 = vpop.xlane.xlu0 %4114 }
 0x66f   :  { %4383 = vperm.xlu1 %6043, %v4366_v40   ;;  %10287 = vst [vmem:[#allocation101_spill] sm:$0xff] %v7604_v25  ;;  %v4370_v18 = vadd.f32 %v10290_v4, %v7604_v25 }
 0x670   :  { %v7608_v20 = vpop.xlane.xlu1 %4117 }
 0x671   :  { %10288 = vst [vmem:[#allocation102_spill] sm:$0xff] %v7608_v20  ;;  %v4371_v27 = vadd.f32 %v10289_v42, %v7608_v20 }
 0x672   :  { %v7614_v28 = vpop.xlane.xlu0 %4120 }
 0x673   :  { %4386 = vperm.xlu1 %6043, %v4367_v34   ;;  %10291 = vst [vmem:[#allocation64_spill] sm:$0xff] %v7614_v28  ;;  %v4372_v32 = vadd.f32 %v10292_v10, %v7614_v28 }
 0x674   :  { %v7618_v40 = vpop.permute.xlu1 %5202 }
 0x677   :  { %4392 = vperm.xlu1 %6043, %v4369_v62  }
 0x678   :  { %4389 = vperm.xlu0 %6042, %v4368_v56   ;;  %v7620_v11 = vpop.permute.xlu1 %5209  ;;  %v7626_v56 = vpop.permute.xlu0 %5195 }
 0x67b   :  { %4398 = vperm.xlu1 %6043, %v4371_v27  }
 0x67c   :  { %4395 = vperm.xlu0 %6042, %v4370_v18  }
 0x680   :  { %4401 = vperm.xlu0 %6042, %v4372_v32  }
 0x6a9   :  { %v7622_v34 = vpop.xlane.xlu1 %4123 }
 0x6aa   :  { %10293 = vst [vmem:[#allocation63_spill] sm:$0xff] %v7622_v34  ;;  %v4373_v62 = vadd.f32 %v7180_v47, %v7622_v34 }
 0x6ac   :  { %4404 = vperm.xlu1 %6043, %v4373_v62  }
 0x6d9   :  { %v1245_v42 = vpop.xlane.xlu0 %1244 }
 0x6da   :  { %6140 = vlog2.f32 %v1245_v42 }
 0x6dd   :  { %v1248_v27 = vpop.xlane.xlu0 %1247 }
 0x6de   :  { %6142 = vlog2.f32 %v1248_v27 }
 0x6df   :  { %v1251_v4 = vpop.xlane.xlu1 %1250 }
 0x6e0   :  { %6144 = vlog2.f32 %v1251_v4 }
 0x6e3   :  { %v1257_v18 = vpop.xlane.xlu0 %1256  ;;  %v1260_v10 = vpop.xlane.xlu1 %1259 }
 0x6e4   :  { %6146 = vlog2.f32 %v1257_v18 }
 0x6e5   :  { %6148 = vlog2.f32 %v1260_v10 }
 0x6e7   :  { %v1254_v32 = vpop.xlane.xlu0 %1253  ;;  %v1266_v20 = vpop.xlane.xlu1 %1265 }
 0x6e8   :  { %6150 = vlog2.f32 %v1254_v32  ;;  %v6141_v57 = vpop.eup %6140 }
 0x6e9   :  { %6152 = vlog2.f32 %v1266_v20  ;;  %v1268_v61 = vmul.f32 0.6931472, %v6141_v57 }
 0x6eb   :  { %v6143_v21 = vpop.eup %6142  ;;  %v1263_v47 = vpop.xlane.xlu0 %1262  ;;  %v1283_v59 = vadd.f32 %v1268_v61, %v7550_v22 }
 0x6ec   :  { %v1270_v62 = vmul.f32 0.6931472, %v6143_v21  ;;  %6154 = vlog2.f32 %v1263_v47 }
 0x6ed   :  { %v6145_v34 = vpop.eup %6144  ;;  %v1302_v21 = vrot.slane %v1283_v59, %v6856_v23 }
 0x6ee   :  { %v1272_v42 = vmul.f32 0.6931472, %v6145_v34  ;;  %v1284_v27 = vadd.f32 %v1270_v62, %v7554_v5 }
 0x6f0   :  { %v1285_v18 = vadd.f32 %v1272_v42, %v7560_v63  ;;  %v1306_v32 = vrot.slane %v1284_v27, %v6856_v23 }
 0x6f1   :  { %v6147_v15 = vpop.eup %6146 }
 0x6f2   :  { %v6149_v4 = vpop.eup %6148  ;;  %v1276_v10 = vmul.f32 0.6931472, %v6147_v15  ;;  %v1310_v57 = vrot.slane %v1285_v18, %v6856_v23  ;;  %v1331_v62 = vsel %vm710_vm2, %v1306_v32, %v1302_v21 }
 0x6f3   :  { %v1278_v20 = vmul.f32 0.6931472, %v6149_v4 }
 0x6f4   :  { %v1287_v34 = vadd.f32 %v1276_v10, %v7570_v43  ;;  %v1332_v27 = vsel %vm712_vm3, %v1310_v57, %v1331_v62 }
 0x6f5   :  { %v6151_v14 = vpop.eup %6150  ;;  %v1288_v61 = vadd.f32 %v1278_v20, %v7566_v7 }
 0x6f6   :  { %v6153_v13 = vpop.eup %6152  ;;  %v1274_v47 = vmul.f32 0.6931472, %v6151_v14  ;;  %v1318_v59 = vrot.slane %v1287_v34, %v6856_v23 }
 0x6f7   :  { %v1282_v5 = vmul.f32 0.6931472, %v6153_v13  ;;  %v1322_v4 = vrot.slane %v1288_v61, %v6856_v23 }
 0x6f8   :  { %v1286_v22 = vadd.f32 %v1274_v47, %v7558_v31 }
 0x6f9   :  { %v6155_v63 = vpop.eup %6154  ;;  %v1290_v14 = vadd.f32 %v1282_v5, %v7574_v30 }
 0x6fa   :  { %v1314_v15 = vrot.slane %v1286_v22, %v6856_v23  ;;  %v1280_v42 = vmul.f32 0.6931472, %v6155_v63 }
 0x6fb   :  { %v1330_v10 = vrot.slane %v1290_v14, %v6856_v23 }
 0x6fc   :  { %v1333_v13 = vsel %vm714_vm4, %v1314_v15, %v1332_v27  ;;  %v1289_v43 = vadd.f32 %v1280_v42, %v7578_v8 }
 0x6fd   :  { %v1334_v7 = vsel %vm716_vm5, %v1318_v59, %v1333_v13  ;;  %v10294_v13 = vld [vmem:[#allocation54_spill] sm:$0xff] }
 0x6fe   :  { %v1326_v31 = vrot.slane %v1289_v43, %v6856_v23  ;;  %v1335_v18 = vsel %vm718_vm6, %v1322_v4, %v1334_v7 }
 0x700   :  { %v1336_v32 = vsel %vm720_vm7, %v1326_v31, %v1335_v18 }
 0x701   :  { %v1337_v20 = vsel %vm722_vm8, %v1330_v10, %v1336_v32 }
 0x702   :  { %v7654_v30 = vsel %vm10153_vm11, %v1337_v20, %v7402_v50 }
 0x703   :  { %v1348_v8 = vrot.slane %v7654_v30, %v6551_v26  ;;  %v1341_v21 = vcombine.high %v7654_v30, %v7654_v30 }
 0x705   :  { %v1364_v47 = vrot.slane %v1348_v8, %v6551_v26  ;;  %v1356_v57 = vcombine.high %v1348_v8, %v1348_v8  ;;  %v1355_v34 = vrot.slane %v1341_v21, %v6551_v26  ;;  %v10295_v8 = vld [vmem:[#allocation55_spill] sm:$0xff] }
 0x707   :  { %v1393_v5 = vrot.slane %v1364_v47, %v6453_v44  ;;  %v1378_v62 = vrot.slane %v1356_v57, %v6551_v26  ;;  %v1386_v61 = vcombine.high %v1364_v47, %v1364_v47  ;;  %v1357_v22 = vcombine.high %v1355_v34, %v1355_v34 }
 0x708   :  { %v1371_v50 = vrot.slane %v1355_v34, %v6551_v26 }
 0x709   :  { %v1430_v63 = vadd.f32 %v7239_v2, %v1393_v5  ;;  %v1397_v15 = vrot.slane %v1378_v62, %v6453_v44  ;;  %v1388_v42 = vcombine.high %v1378_v62, %v1378_v62  ;;  %v1401_v27 = vrot.slane %v1386_v61, %v6453_v44  ;;  %v4384_v62 = vpop.permute.xlu1 %4383 }
 0x70a   :  { %v1385_v59 = vrot.slane %v1357_v22, %v6551_v26  ;;  %v1409_v14 = vrot.slane %v1371_v50, %v6453_v44  ;;  %v1387_v4 = vcombine.high %v1371_v50, %v1371_v50  ;;  %v10296_v22 = vld [vmem:[#allocation57_spill] sm:$0xff] }
 0x70b   :  { %v7671_v43 = vadd.f32 %v10294_v13, %v1430_v63  ;;  %v1431_v7 = vadd.f32 %v7239_v2, %v1397_v15  ;;  %v1405_v31 = vrot.slane %v1388_v42, %v6453_v44  ;;  %v1432_v18 = vadd.f32 %v7239_v2, %v1401_v27  ;;  %v10297_v63 = vld [vmem:[#allocation56_spill] sm:$0xff] }
 0x70c   :  { %v1413_v10 = vrot.slane %v1385_v59, %v6453_v44  ;;  %v1389_v32 = vcombine.high %v1385_v59, %v1385_v59  ;;  %v1434_v34 = vadd.f32 %v7239_v2, %v1409_v14  ;;  %v1417_v42 = vrot.slane %v1387_v4, %v6453_v44  ;;  %v10298_v59 = vld [vmem:[#allocation60_spill] sm:$0xff] }
 0x70d   :  { %v1502_v20 = vsel %vm573_vm1, %v7671_v43, -inf  ;;  %v7680_v21 = vadd.f32 %v10295_v8, %v1431_v7  ;;  %v1433_v47 = vadd.f32 %v7239_v2, %v1405_v31  ;;  %v7692_v15 = vadd.f32 %v10297_v63, %v1432_v18  ;;  %v10299_v31 = vld [vmem:[#allocation59_spill] sm:$0xff]  ;;  %v4387_v4 = vpop.permute.xlu1 %4386 }
 0x70e   :  { %1503 = vmax.xlane.f32.xlu1 %v1502_v20  ;;  %v1435_v57 = vadd.f32 %v7239_v2, %v1413_v10  ;;  %v1421_v5 = vrot.slane %v1389_v32, %v6453_v44  ;;  %v7704_v10 = vadd.f32 %v10299_v31, %v1434_v34  ;;  %v1436_v18 = vadd.f32 %v7239_v2, %v1417_v42  ;;  %v10300_v20 = vld [vmem:[#allocation62_spill] sm:$0xff] }
 0x70f   :  { %v1505_v61 = vsel %vm573_vm1, %v7680_v21, -inf  ;;  %v7689_v50 = vadd.f32 %v10296_v22, %v1433_v47  ;;  %v1508_v7 = vsel %vm573_vm1, %v7692_v15, -inf  ;;  %v4390_v47 = vpop.permute.xlu0 %4389  ;;  %v4413_v63 = vrot.slane %v4387_v4, %v6856_v23 }
 0x710   :  { %1506 = vmax.xlane.f32.xlu0 %v1505_v61  ;;  %v7698_v14 = vadd.f32 %v10298_v59, %v1435_v57  ;;  %v1437_v13 = vadd.f32 %v7239_v2, %v1421_v5  ;;  %v1514_v57 = vsel %vm573_vm1, %v7704_v10, -inf  ;;  %v10301_v5 = vld [vmem:[#allocation61_spill] sm:$0xff]  ;;  %v4409_v59 = vrot.slane %v4384_v62, %v6856_v23 }
 0x711   :  { %v1511_v27 = vsel %vm573_vm1, %v7689_v50, -inf  ;;  %v7715_v61 = vadd.f32 %v10301_v5, %v1436_v18  ;;  %v4393_v34 = vpop.permute.xlu1 %4392 }
 0x712   :  { %1512 = vmax.xlane.f32.xlu1 %v1511_v27  ;;  %v1517_v32 = vsel %vm573_vm1, %v7698_v14, -inf  ;;  %v7710_v8 = vadd.f32 %v10300_v20, %v1437_v13  ;;  %v4417_v27 = vrot.slane %v4390_v47, %v6856_v23  ;;  %v4438_v13 = vsel %vm710_vm2, %v4413_v63, %v4409_v59  ;;  %v10302_v63 = vld [vmem:[#allocation13_spill] sm:$0xff] }
 0x713   :  { %v1520_v22 = vsel %vm573_vm1, %v7715_v61, -inf  ;;  %v4396_v42 = vpop.permute.xlu0 %4395  ;;  %vm10154_vm12 = vcmp.gt.f32.partialorder %v10302_v63, 0.0 }
 0x714   :  { %1509 = vmax.xlane.f32.xlu0 %v1508_v7  ;;  %v1523_v2 = vsel %vm573_vm1, %v7710_v8, -inf  ;;  %v4421_v7 = vrot.slane %v4393_v34, %v6856_v23  ;;  %v4439_v31 = vsel %vm712_vm3, %v4417_v27, %v4438_v13  ;;  %v4425_v18 = vrot.slane %v4396_v42, %v6856_v23 }
 0x716   :  { %1518 = vmax.xlane.f32.xlu1 %v1517_v32  ;;  %v4399_v32 = vpop.permute.xlu1 %4398 }
 0x717   :  { %v4402_v20 = vpop.permute.xlu0 %4401  ;;  %v4429_v4 = vrot.slane %v4399_v32, %v6856_v23 }
 0x718   :  { %1515 = vmax.xlane.f32.xlu0 %v1514_v57  ;;  %v4440_v57 = vsel %vm714_vm4, %v4421_v7, %v4439_v31  ;;  %v4433_v47 = vrot.slane %v4402_v20, %v6856_v23 }
 0x719   :  { %v4441_v5 = vsel %vm716_vm5, %v4425_v18, %v4440_v57 }
 0x71a   :  { %1524 = vmax.xlane.f32.xlu1 %v1523_v2  ;;  %v4442_v62 = vsel %vm718_vm6, %v4429_v4, %v4441_v5  ;;  %v7754_v5 = vld [vmem:[%s10028_s5] sm:$0xff] }
 0x71b   :  { %v4443_v34 = vsel %vm720_vm7, %v4433_v47, %v4442_v62 }
 0x71c   :  { %1521 = vmax.xlane.f32.xlu0 %v1520_v22 }
 0x727   :  { %v4405_v2 = vpop.permute.xlu1 %4404 }
 0x728   :  { %v4437_v22 = vrot.slane %v4405_v2, %v6856_v23 }
 0x72a   :  { %v4444_v42 = vsel %vm722_vm8, %v4437_v22, %v4443_v34 }
 0x72b   :  { %v7740_v27 = vsel %vm10154_vm12, %v4444_v42, %v7488_v16 }
 0x72c   :  { %v4448_v59 = vcombine.high %v7740_v27, %v7740_v27  ;;  %v4455_v13 = vrot.slane %v7740_v27, %v6551_v26 }
 0x72e   :  { %v4471_v7 = vrot.slane %v4455_v13, %v6551_v26  ;;  %v4463_v31 = vcombine.high %v4455_v13, %v4455_v13  ;;  %v4462_v18 = vrot.slane %v4448_v59, %v6551_v26 }
 0x730   :  { %v4500_v32 = vrot.slane %v4471_v7, %v6453_v44  ;;  %v4485_v20 = vrot.slane %v4463_v31, %v6551_v26  ;;  %v4493_v57 = vcombine.high %v4471_v7, %v4471_v7  ;;  %v4478_v4 = vrot.slane %v4462_v18, %v6551_v26 }
 0x731   :  { %v4464_v16 = vcombine.high %v4462_v18, %v4462_v18 }
 0x732   :  { %v7757_v47 = vadd.f32 %v7754_v5, %v4500_v32  ;;  %v4504_v2 = vrot.slane %v4485_v20, %v6453_v44  ;;  %v4508_v62 = vrot.slane %v4493_v57, %v6453_v44  ;;  %v4495_v22 = vcombine.high %v4485_v20, %v4485_v20 }
 0x733   :  { %v4516_v34 = vrot.slane %v4478_v4, %v6453_v44  ;;  %v4492_v42 = vrot.slane %v4464_v16, %v6551_v26  ;;  %v4494_v59 = vcombine.high %v4478_v4, %v4478_v4 }
 0x734   :  { %10303 = vst [vmem:[#allocation65_spill] sm:$0xff] %v7757_v47  ;;  %v4545_v13 = vsel %vm573_vm1, %v7757_v47, -inf  ;;  %v7766_v7 = vadd.f32 %v7754_v5, %v4504_v2  ;;  %v7769_v31 = vadd.f32 %v7754_v5, %v4508_v62  ;;  %v4512_v18 = vrot.slane %v4495_v22, %v6453_v44 }
 0x735   :  { %4546 = vmax.xlane.f32.xlu1 %v4545_v13  ;;  %v4520_v57 = vrot.slane %v4492_v42, %v6453_v44  ;;  %v4496_v4 = vcombine.high %v4492_v42, %v4492_v42  ;;  %v7781_v2 = vadd.f32 %v7754_v5, %v4516_v34  ;;  %v4524_v62 = vrot.slane %v4494_v59, %v6453_v44 }
 0x736   :  { %10304 = vst [vmem:[#allocation54_spill] sm:$0xff] %v7766_v7  ;;  %10305 = vst [vmem:[#allocation55_spill] sm:$0xff] %v7769_v31  ;;  %v4548_v32 = vsel %vm573_vm1, %v7766_v7, -inf  ;;  %v7775_v20 = vadd.f32 %v7754_v5, %v4512_v18  ;;  %v4551_v16 = vsel %vm573_vm1, %v7769_v31, -inf }
 0x737   :  { %4549 = vmax.xlane.f32.xlu0 %v4548_v32  ;;  %10307 = vst [vmem:[#allocation56_spill] sm:$0xff] %v7781_v2  ;;  %v7787_v13 = vadd.f32 %v7754_v5, %v4520_v57  ;;  %v4528_v18 = vrot.slane %v4496_v4, %v6453_v44  ;;  %v4557_v42 = vsel %vm573_vm1, %v7781_v2, -inf  ;;  %v7793_v32 = vadd.f32 %v7754_v5, %v4524_v62 }
 0x738   :  { %10306 = vst [vmem:[#allocation57_spill] sm:$0xff] %v7775_v20  ;;  %v4554_v22 = vsel %vm573_vm1, %v7775_v20, -inf }
 0x739   :  { %4552 = vmax.xlane.f32.xlu1 %v4551_v16  ;;  %10308 = vst [vmem:[#allocation60_spill] sm:$0xff] %v7787_v13  ;;  %10309 = vst [vmem:[#allocation59_spill] sm:$0xff] %v7793_v32  ;;  %v4560_v34 = vsel %vm573_vm1, %v7787_v13, -inf  ;;  %v7798_v59 = vadd.f32 %v7754_v5, %v4528_v18  ;;  %v4563_v57 = vsel %vm573_vm1, %v7793_v32, -inf }
 0x73b   :  { %4555 = vmax.xlane.f32.xlu0 %v4554_v22  ;;  %10310 = vst [vmem:[#allocation62_spill] sm:$0xff] %v7798_v59  ;;  %v4566_v4 = vsel %vm573_vm1, %v7798_v59, -inf }
 0x73d   :  { %4558 = vmax.xlane.f32.xlu1 %v4557_v42 }
 0x73f   :  { %4561 = vmax.xlane.f32.xlu0 %v4560_v34 }
 0x741   :  { %4564 = vmax.xlane.f32.xlu1 %v4563_v57 }
 0x743   :  { %4567 = vmax.xlane.f32.xlu0 %v4566_v4 }
 0x752   :  { %5223 = vbcast.lane.b32.xlu1 %v7080_v1, 256 }
 0x759   :  { %5216 = vbcast.lane.b32.xlu0 %v7060_v3, 256 }
 0x797   :  { %v7806_v16 = vpop.xlane.xlu1 %1503 }
 0x798   :  { %v1526_v62 = vsub.f32 %v7671_v43, %v7806_v16 }
 0x799   :  { %v7810_v22 = vpop.xlane.xlu0 %1506 }
 0x79a   :  { %v1534_v18 = vmul.f32 1.442695, %v1526_v62  ;;  %v1527_v42 = vsub.f32 %v7680_v21, %v7810_v22 }
 0x79b   :  { %v7814_v34 = vpop.xlane.xlu1 %1512 }
 0x79c   :  { %6156 = vpow2.f32 %v1534_v18  ;;  %v1536_v57 = vmul.f32 1.442695, %v1527_v42  ;;  %v1529_v1 = vsub.f32 %v7689_v50, %v7814_v34 }
 0x79d   :  { %v7818_v4 = vpop.xlane.xlu0 %1509 }
 0x79e   :  { %6158 = vpow2.f32 %v1536_v57  ;;  %v1540_v3 = vmul.f32 1.442695, %v1529_v1  ;;  %v1528_v43 = vsub.f32 %v7692_v15, %v7818_v4 }
 0x79f   :  { %v7822_v39 = vpop.xlane.xlu1 %1518 }
 0x7a0   :  { %6160 = vpow2.f32 %v1540_v3  ;;  %v1538_v62 = vmul.f32 1.442695, %v1528_v43  ;;  %v1531_v21 = vsub.f32 %v7698_v14, %v7822_v39 }
 0x7a1   :  { %v7826_v29 = vpop.xlane.xlu0 %1515 }
 0x7a2   :  { %6162 = vpow2.f32 %v1538_v62  ;;  %v1544_v18 = vmul.f32 1.442695, %v1531_v21  ;;  %v1530_v50 = vsub.f32 %v7704_v10, %v7826_v29 }
 0x7a3   :  { %v7830_v42 = vpop.xlane.xlu1 %1524 }
 0x7a4   :  { %6164 = vpow2.f32 %v1544_v18  ;;  %v1542_v57 = vmul.f32 1.442695, %v1530_v50  ;;  %v1533_v15 = vsub.f32 %v7710_v8, %v7830_v42 }
 0x7a5   :  { %v7834_v1 = vpop.xlane.xlu0 %1521 }
 0x7a6   :  { %6166 = vpow2.f32 %v1542_v57  ;;  %v1548_v3 = vmul.f32 1.442695, %v1533_v15  ;;  %v1532_v14 = vsub.f32 %v7715_v61, %v7834_v1 }
 0x7a8   :  { %6168 = vpow2.f32 %v1548_v3  ;;  %v1546_v43 = vmul.f32 1.442695, %v1532_v14 }
 0x7a9   :  { %v6157_v62 = vpop.eup %6156 }
 0x7aa   :  { %6170 = vpow2.f32 %v1546_v43  ;;  %v1550_v10 = vsel %vm573_vm1, %v6157_v62, 0.0 }
 0x7ab   :  { %v6159_v21 = vpop.eup %6158  ;;  %1551 = vadd.xlane.f32.xlu1 %v1550_v10 }
 0x7ac   :  { %v1553_v18 = vsel %vm573_vm1, %v6159_v21, 0.0 }
 0x7ad   :  { %v6161_v50 = vpop.eup %6160  ;;  %1554 = vadd.xlane.f32.xlu0 %v1553_v18 }
 0x7ae   :  { %v1559_v8 = vsel %vm573_vm1, %v6161_v50, 0.0 }
 0x7af   :  { %v6163_v49 = vpop.eup %6162  ;;  %1560 = vadd.xlane.f32.xlu1 %v1559_v8 }
 0x7b0   :  { %v1556_v57 = vsel %vm573_vm1, %v6163_v49, 0.0 }
 0x7b1   :  { %v6165_v15 = vpop.eup %6164  ;;  %1557 = vadd.xlane.f32.xlu0 %v1556_v57 }
 0x7b2   :  { %v1565_v61 = vsel %vm573_vm1, %v6165_v15, 0.0 }
 0x7b3   :  { %v6167_v3 = vpop.eup %6166  ;;  %1566 = vadd.xlane.f32.xlu1 %v1565_v61 }
 0x7b4   :  { %v1562_v14 = vsel %vm573_vm1, %v6167_v3, 0.0 }
 0x7b5   :  { %v6169_v43 = vpop.eup %6168  ;;  %1563 = vadd.xlane.f32.xlu0 %v1562_v14 }
 0x7b6   :  { %v1571_v62 = vsel %vm573_vm1, %v6169_v43, 0.0 }
 0x7b7   :  { %v6171_v10 = vpop.eup %6170  ;;  %1572 = vadd.xlane.f32.xlu1 %v1571_v62 }
 0x7b8   :  { %v1568_v21 = vsel %vm573_vm1, %v6171_v10, 0.0 }
 0x7b9   :  { %1569 = vadd.xlane.f32.xlu0 %v1568_v21 }
 0x7be   :  { %v7846_v18 = vpop.xlane.xlu1 %4546 }
 0x7bf   :  { %10311 = vst [vmem:[#allocation61_spill] sm:$0xff] %v7846_v18  ;;  %v4810_v3 = vadd.f32 %v7113_v41, %v7846_v18 }
 0x7c0   :  { %v7848_v49 = vpop.xlane.xlu0 %4549 }
 0x7c1   :  { %10312 = vst [vmem:[#allocation103_spill] sm:$0xff] %v7848_v49  ;;  %v4811_v8 = vadd.f32 %v7192_v24, %v7848_v49 }
 0x7c2   :  { %v7850_v50 = vpop.xlane.xlu1 %4552 }
 0x7c3   :  { %10313 = vst [vmem:[#allocation104_spill] sm:$0xff] %v7850_v50  ;;  %v4812_v15 = vadd.f32 %v7115_v37, %v7850_v50 }
 0x7c4   :  { %v7858_v61 = vpop.xlane.xlu0 %4555 }
 0x7c5   :  { %10315 = vst [vmem:[#allocation106_spill] sm:$0xff] %v7858_v61  ;;  %v4813_v24 = vadd.f32 %v7117_v60, %v7858_v61 }
 0x7c6   :  { %v7854_v57 = vpop.xlane.xlu1 %4558 }
 0x7c7   :  { %10314 = vst [vmem:[#allocation105_spill] sm:$0xff] %v7854_v57  ;;  %v4814_v14 = vadd.f32 %v7198_v33, %v7854_v57 }
 0x7c8   :  { %4830 = vperm.xlu1 %6043, %v4811_v8   ;;  %v7866_v62 = vpop.xlane.xlu0 %4561 }
 0x7c9   :  { %10317 = vst [vmem:[#allocation108_spill] sm:$0xff] %v7866_v62  ;;  %v4815_v41 = vadd.f32 %v7119_v48, %v7866_v62 }
 0x7ca   :  { %v7864_v43 = vpop.xlane.xlu1 %4564 }
 0x7cb   :  { %10316 = vst [vmem:[#allocation107_spill] sm:$0xff] %v7864_v43  ;;  %v4816_v37 = vadd.f32 %v7287_v38, %v7864_v43 }
 0x7cc   :  { %4833 = vperm.xlu1 %6043, %v4812_v15   ;;  %v7874_v10 = vpop.xlane.xlu0 %4567 }
 0x7cd   :  { %10318 = vst [vmem:[#allocation109_spill] sm:$0xff] %v7874_v10  ;;  %v4817_v33 = vadd.f32 %v7194_v52, %v7874_v10 }
 0x7ce   :  { %v7881_v60 = vpop.permute.xlu1 %5223 }
 0x7cf   :  { %4827 = vperm.xlu0 %6042, %v4810_v3  }
 0x7d0   :  { %4839 = vperm.xlu1 %6043, %v4814_v14   ;;  %v7883_v38 = vpop.permute.xlu0 %5216 }
 0x7d3   :  { %4836 = vperm.xlu0 %6042, %v4813_v24  }
 0x7d4   :  { %4845 = vperm.xlu1 %6043, %v4816_v37  }
 0x7d7   :  { %4842 = vperm.xlu0 %6042, %v4815_v41  }
 0x7d8   :  { %5237 = vbcast.lane.b32.xlu1 %v7089_v6, 256 }
 0x7db   :  { %4848 = vperm.xlu0 %6042, %v4817_v33  }
 0x7df   :  { %5230 = vbcast.lane.b32.xlu0 %v7075_v19, 256 }
 0x7e3   :  { %5244 = vbcast.lane.b32.xlu0 %v7301_v0, 256 }
 0x834   :  { %v1552_v21 = vpop.xlane.xlu1 %1551 }
 0x835   :  { %6172 = vlog2.f32 %v1552_v21 }
 0x836   :  { %v1555_v8 = vpop.xlane.xlu0 %1554 }
 0x837   :  { %6174 = vlog2.f32 %v1555_v8 }
 0x838   :  { %v1561_v48 = vpop.xlane.xlu1 %1560 }
 0x83a   :  { %v1558_v15 = vpop.xlane.xlu0 %1557 }
 0x83b   :  { %6176 = vlog2.f32 %v1558_v15 }
 0x83c   :  { %v1567_v3 = vpop.xlane.xlu1 %1566  ;;  %6178 = vlog2.f32 %v1561_v48 }
 0x83e   :  { %v1564_v14 = vpop.xlane.xlu0 %1563 }
 0x83f   :  { %6180 = vlog2.f32 %v1564_v14 }
 0x840   :  { %v7885_v24 = vpop.xlane.xlu1 %1572 }
 0x842   :  { %v1570_v37 = vpop.xlane.xlu0 %1569 }
 0x843   :  { %6182 = vlog2.f32 %v1570_v37 }
 0x844   :  { %v4831_v6 = vpop.permute.xlu1 %4830  ;;  %6184 = vlog2.f32 %v1567_v3 }
 0x845   :  { %v4857_v19 = vrot.slane %v4831_v6, %v6856_v23  ;;  %6186 = vlog2.f32 %v7885_v24 }
 0x848   :  { %v4834_v52 = vpop.permute.xlu1 %4833 }
 0x849   :  { %v4861_v25 = vrot.slane %v4834_v52, %v6856_v23 }
 0x84a   :  { %v4828_v41 = vpop.permute.xlu0 %4827 }
 0x84b   :  { %v4853_v0 = vrot.slane %v4828_v41, %v6856_v23 }
 0x84c   :  { %v4840_v33 = vpop.permute.xlu1 %4839 }
 0x84d   :  { %v4882_v28 = vsel %vm710_vm2, %v4857_v19, %v4853_v0  ;;  %v4869_v32 = vrot.slane %v4840_v33, %v6856_v23 }
 0x84e   :  { %v4837_v54 = vpop.permute.xlu0 %4836  ;;  %v4883_v10 = vsel %vm712_vm3, %v4861_v25, %v4882_v28  ;;  %v10319_v25 = vld [vmem:[#allocation14_spill] sm:$0xff] }
 0x84f   :  { %v4865_v59 = vrot.slane %v4837_v54, %v6856_v23  ;;  %vm10163_vm13 = vcmp.gt.f32.partialorder %v10319_v25, 0.0 }
 0x850   :  { %v4846_v62 = vpop.permute.xlu1 %4845 }
 0x851   :  { %v4884_v43 = vsel %vm714_vm4, %v4865_v59, %v4883_v10  ;;  %v4877_v19 = vrot.slane %v4846_v62, %v6856_v23 }
 0x852   :  { %v4843_v13 = vpop.permute.xlu0 %4842  ;;  %v4885_v41 = vsel %vm716_vm5, %v4869_v32, %v4884_v43 }
 0x853   :  { %v4873_v6 = vrot.slane %v4843_v13, %v6856_v23 }
 0x855   :  { %v4886_v2 = vsel %vm718_vm6, %v4873_v6, %v4885_v41 }
 0x856   :  { %v4849_v0 = vpop.permute.xlu0 %4848  ;;  %v4887_v54 = vsel %vm720_vm7, %v4877_v19, %v4886_v2 }
 0x857   :  { %v4881_v52 = vrot.slane %v4849_v0, %v6856_v23 }
 0x859   :  { %v4888_v28 = vsel %vm722_vm8, %v4881_v52, %v4887_v54 }
 0x85a   :  { %v7906_v59 = vsel %vm10163_vm13, %v4888_v28, %v7740_v27 }
 0x85b   :  { %v4892_v13 = vcombine.high %v7906_v59, %v7906_v59  ;;  %v4899_v32 = vrot.slane %v7906_v59, %v6551_v26 }
 0x85d   :  { %v4915_v43 = vrot.slane %v4899_v32, %v6551_v26  ;;  %v4907_v2 = vcombine.high %v4899_v32, %v4899_v32  ;;  %v4906_v62 = vrot.slane %v4892_v13, %v6551_v26 }
 0x85f   :  { %v4944_v10 = vrot.slane %v4915_v43, %v6453_v44  ;;  %v4929_v33 = vrot.slane %v4907_v2, %v6551_v26  ;;  %v4937_v27 = vcombine.high %v4915_v43, %v4915_v43  ;;  %v4922_v6 = vrot.slane %v4906_v62, %v6551_v26 }
 0x860   :  { %v4908_v41 = vcombine.high %v4906_v62, %v4906_v62 }
 0x861   :  { %v7918_v19 = vadd.f32 %v7754_v5, %v4944_v10  ;;  %v4948_v21 = vrot.slane %v4929_v33, %v6453_v44  ;;  %v4952_v8 = vrot.slane %v4937_v27, %v6453_v44  ;;  %v4939_v0 = vcombine.high %v4929_v33, %v4929_v33  ;;  %v6173_v27 = vpop.eup %6172 }
 0x862   :  { %v4960_v15 = vrot.slane %v4922_v6, %v6453_v44  ;;  %v7924_v52 = vrot.slane %v4908_v41, %v6551_v26  ;;  %v4938_v54 = vcombine.high %v4922_v6, %v4922_v6 }
 0x863   :  { %v4989_v28 = vsel %vm573_vm1, %v7918_v19, -inf  ;;  %v7929_v48 = vadd.f32 %v7754_v5, %v4948_v21  ;;  %v7932_v13 = vadd.f32 %v7754_v5, %v4952_v8  ;;  %v4956_v32 = vrot.slane %v4939_v0, %v6453_v44  ;;  %v6175_v21 = vpop.eup %6174 }
 0x864   :  { %4990 = vmax.xlane.f32.xlu0 %v4989_v28  ;;  %v4964_v2 = vrot.slane %v7924_v52, %v6453_v44  ;;  %v7945_v10 = vadd.f32 %v7754_v5, %v4960_v15  ;;  %v4968_v33 = vrot.slane %v4938_v54, %v6453_v44  ;;  %v6177_v37 = vpop.eup %6176  ;;  %v1577_v15 = vmul.f32 0.6931472, %v6175_v21 }
 0x865   :  { %10320 = vst [vmem:[#allocation110_spill] sm:$0xff] %v7929_v48  ;;  %10321 = vst [vmem:[#allocation111_spill] sm:$0xff] %v7932_v13  ;;  %v4992_v14 = vsel %vm573_vm1, %v7929_v48, -inf  ;;  %v7938_v43 = vadd.f32 %v7754_v5, %v4956_v32  ;;  %v4995_v62 = vsel %vm573_vm1, %v7932_v13, -inf  ;;  %v6179_v0 = vpop.eup %6178  ;;  %v1579_v28 = vmul.f32 0.6931472, %v6177_v37 }
 0x866   :  { %4993 = vmax.xlane.f32.xlu1 %v4992_v14  ;;  %v7951_v41 = vadd.f32 %v7754_v5, %v4964_v2  ;;  %v5001_v3 = vsel %vm573_vm1, %v7945_v10, -inf  ;;  %v7957_v8 = vadd.f32 %v7754_v5, %v4968_v33  ;;  %v6181_v32 = vpop.eup %6180  ;;  %v1575_v14 = vmul.f32 0.6931472, %v6173_v27 }
 0x867   :  { %10322 = vst [vmem:[#allocation112_spill] sm:$0xff] %v7938_v43  ;;  %v4998_v6 = vsel %vm573_vm1, %v7938_v43, -inf  ;;  %v1591_v24 = vadd.f32 %v1577_v15, %v7810_v22  ;;  %v1583_v33 = vmul.f32 0.6931472, %v6181_v32  ;;  %v1581_v21 = vmul.f32 0.6931472, %v6179_v0 }
 0x868   :  { %4996 = vmax.xlane.f32.xlu0 %v4995_v62  ;;  %10323 = vst [vmem:[#allocation113_spill] sm:$0xff] %v7951_v41  ;;  %v5004_v54 = vsel %vm573_vm1, %v7951_v41, -inf  ;;  %v5007_v2 = vsel %vm573_vm1, %v7957_v8, -inf  ;;  %v1592_v62 = vadd.f32 %v1579_v28, %v7818_v4  ;;  %v6291_v4 = vld [vmem:[%s10027_s4] ss:$0 sm:$0xff] }
 0x869   :  { %v1613_v31 = vrot.slane %v1591_v24, %v6856_v23  ;;  %v1594_v27 = vadd.f32 %v1583_v33, %v7826_v29 }
 0x86a   :  { %4999 = vmax.xlane.f32.xlu1 %v4998_v6  ;;  %v6183_v6 = vpop.eup %6182  ;;  %v1617_v37 = vrot.slane %v1592_v62, %v6856_v23 }
 0x86b   :  { %v6185_v57 = vpop.eup %6184  ;;  %v1625_v29 = vrot.slane %v1594_v27, %v6856_v23 }
 0x86c   :  { %5002 = vmax.xlane.f32.xlu0 %v5001_v3  ;;  %v1590_v3 = vadd.f32 %v1575_v14, %v7806_v16  ;;  %v1585_v22 = vmul.f32 0.6931472, %v6185_v57  ;;  %v6187_v15 = vpop.eup %6186  ;;  %v10324_v16 = vld [vmem:[#allocation71_spill] sm:$0xff] }
 0x86d   :  { %v7975_v0 = vadd.f32 %v6291_v4, %v10324_v16  ;;  %v1589_v57 = vmul.f32 0.6931472, %v6187_v15 }
 0x86e   :  { %5005 = vmax.xlane.f32.xlu1 %v5004_v54  ;;  %v1587_v54 = vmul.f32 0.6931472, %v6183_v6  ;;  %v1609_v50 = vrot.slane %v1590_v3, %v6856_v23 }
 0x86f   :  { %10325 = vst [vmem:[#allocation71_spill] sm:$0xff] %v7975_v0  ;;  %v2362_v33 = vrot.slane %v7975_v0, %v6453_v44  ;;  %v1597_v3 = vadd.f32 %v1589_v57, %v7830_v42 }
 0x870   :  { %5008 = vmax.xlane.f32.xlu0 %v5007_v2  ;;  %v1593_v2 = vadd.f32 %v1581_v21, %v7814_v34  ;;  %v1638_v28 = vsel %vm710_vm2, %v1613_v31, %v1609_v50  ;;  %v1596_v14 = vadd.f32 %v1587_v54, %v7834_v1  ;;  %v1595_v34 = vadd.f32 %v1585_v22, %v7822_v39 }
 0x871   :  { %v1639_v32 = vsel %vm712_vm3, %v1617_v37, %v1638_v28  ;;  %v7993_v39 = vrot.slane %v7975_v0, %v6456_v45  ;;  %v1637_v37 = vrot.slane %v1597_v3, %v6856_v23  ;;  %v8001_v54 = vrot.slane %v7975_v0, %v6469_v51 }
 0x872   :  { %v1621_v24 = vrot.slane %v1593_v2, %v6856_v23  ;;  %v1633_v31 = vrot.slane %v1596_v14, %v6856_v23  ;;  %v1629_v50 = vrot.slane %v1595_v34, %v6856_v23 }
 0x874   :  { %v1640_v62 = vsel %vm714_vm4, %v1621_v24, %v1639_v32  ;;  %v4940_v24 = vcombine.high %v7924_v52, %v7924_v52 }
 0x875   :  { %v1641_v6 = vsel %vm716_vm5, %v1625_v29, %v1640_v62 }
 0x876   :  { %v1642_v1 = vsel %vm718_vm6, %v1629_v50, %v1641_v6 }
 0x877   :  { %v1643_v21 = vsel %vm720_vm7, %v1633_v31, %v1642_v1  ;;  %v4972_v31 = vrot.slane %v4940_v24, %v6453_v44  ;;  %v10327_v24 = vld [vmem:[#allocation76_spill] sm:$0xff] }
 0x878   :  { %v1644_v27 = vsel %vm722_vm8, %v1637_v37, %v1643_v21 }
 0x879   :  { %v8007_v45 = vsel %vm10154_vm12, %v1644_v27, %v7654_v30  ;;  %v8038_v27 = vadd.f32 %v7754_v5, %v4972_v31  ;;  %v10329_v31 = vld [vmem:[#allocation77_spill] sm:$0xff] }
 0x87a   :  { %v1655_v42 = vrot.slane %v8007_v45, %v6551_v26  ;;  %v1648_v51 = vcombine.high %v8007_v45, %v8007_v45 }
 0x87b   :  { %10326 = vst [vmem:[#allocation114_spill] sm:$0xff] %v8038_v27 }
 0x87c   :  { %v1663_v2 = vcombine.high %v1655_v42, %v1655_v42  ;;  %v1671_v15 = vrot.slane %v1655_v42, %v6551_v26  ;;  %v1662_v28 = vrot.slane %v1648_v51, %v6551_v26 }
 0x87e   :  { %v1685_v22 = vrot.slane %v1663_v2, %v6551_v26  ;;  %v1693_v16 = vcombine.high %v1671_v15, %v1671_v15  ;;  %v1678_v29 = vrot.slane %v1662_v28, %v6551_v26  ;;  %v1664_v14 = vcombine.high %v1662_v28, %v1662_v28 }
 0x87f   :  { %5639 = vbcast.lane.b32.xlu1 %v2362_v33, 256  ;;  %v1700_v50 = vrot.slane %v1671_v15, %v6453_v44 }
 0x880   :  { %v1704_v4 = vrot.slane %v1685_v22, %v6453_v44  ;;  %v1708_v30 = vrot.slane %v1693_v16, %v6453_v44  ;;  %v1716_v62 = vrot.slane %v1678_v29, %v6453_v44  ;;  %v1692_v6 = vrot.slane %v1664_v14, %v6551_v26 }
 0x881   :  { %v1695_v3 = vcombine.high %v1685_v22, %v1685_v22  ;;  %v1737_v42 = vadd.f32 %v7754_v5, %v1700_v50 }
 0x882   :  { %v1738_v32 = vadd.f32 %v7754_v5, %v1704_v4  ;;  %v1739_v57 = vadd.f32 %v7754_v5, %v1708_v30  ;;  %v1696_v37 = vcombine.high %v1692_v6, %v1692_v6  ;;  %v5010_v4 = vsel %vm573_vm1, %v8038_v27, -inf }
 0x883   :  { %5646 = vbcast.lane.b32.xlu1 %v7993_v39, 256  ;;  %v1712_v2 = vrot.slane %v1695_v3, %v6453_v44  ;;  %v8052_v16 = vadd.f32 %v7182_v53, %v1737_v42 }
 0x884   :  { %v8023_v34 = vadd.f32 %v7184_v12, %v1738_v32  ;;  %v8033_v52 = vadd.f32 %v7100_v46, %v1739_v57  ;;  %v1741_v12 = vadd.f32 %v7754_v5, %v1716_v62  ;;  %v1728_v51 = vrot.slane %v1696_v37, %v6453_v44  ;;  %v5238_v37 = vpop.permute.xlu1 %5237 }
 0x885   :  { %v1740_v28 = vadd.f32 %v7754_v5, %v1712_v2  ;;  %v1720_v32 = vrot.slane %v1692_v6, %v6453_v44  ;;  %v1809_v14 = vsel %vm573_vm1, %v8052_v16, -inf }
 0x886   :  { %2364 = vbcast.lane.b32.xlu0 %v2362_v33, 256  ;;  %v1694_v33 = vcombine.high %v1678_v29, %v1678_v29  ;;  %v1812_v1 = vsel %vm573_vm1, %v8023_v34, -inf  ;;  %v1815_v22 = vsel %vm573_vm1, %v8033_v52, -inf  ;;  %v8045_v15 = vadd.f32 %v7103_v9, %v1741_v12  ;;  %v5231_v12 = vpop.permute.xlu0 %5230 }
 0x887   :  { %5653 = vbcast.lane.b32.xlu1 %v8001_v54, 256  ;;  %v1744_v29 = vadd.f32 %v7754_v5, %v1728_v51  ;;  %v8065_v53 = vadd.f32 %v10327_v24, %v1740_v28  ;;  %v1742_v57 = vadd.f32 %v7754_v5, %v1720_v32  ;;  %v10334_v24 = vld [vmem:[#allocation5_spill] sm:$0xff] }
 0x888   :  { %v1724_v21 = vrot.slane %v1694_v33, %v6453_v44  ;;  %v1821_v9 = vsel %vm573_vm1, %v8045_v15, -inf  ;;  %v10328_v33 = vld [vmem:[#allocation78_spill] sm:$0xff] }
 0x889   :  { %v8071_v6 = vadd.f32 %v10328_v33, %v1744_v29  ;;  %v8076_v50 = vadd.f32 %v10329_v31, %v1742_v57  ;;  %v10335_v57 = vld [vmem:[#allocation4_spill] sm:$0xff]  ;;  %v10336_v33 = vld [vmem:[#allocation6_spill] sm:$0xff] }
 0x88a   :  { %v1743_v46 = vadd.f32 %v7754_v5, %v1724_v21  ;;  %v5245_v21 = vpop.permute.xlu0 %5244 }
 0x88b   :  { %v1830_v3 = vsel %vm573_vm1, %v8071_v6, -inf }
 0x88c   :  { %v8059_v30 = vadd.f32 %v7109_v35, %v1743_v46  ;;  %v1818_v35 = vsel %vm573_vm1, %v8065_v53, -inf }
 0x88e   :  { %v1827_v62 = vsel %vm573_vm1, %v8059_v30, -inf }
 0x8a5   :  { %1813 = vmax.xlane.f32.xlu0 %v1812_v1  ;;  %v1824_v1 = vsel %vm573_vm1, %v8076_v50, -inf }
 0x8a9   :  { %1816 = vmax.xlane.f32.xlu0 %v1815_v22 }
 0x8ab   :  { %5011 = vmax.xlane.f32.xlu1 %v5010_v4 }
 0x8ad   :  { %1822 = vmax.xlane.f32.xlu0 %v1821_v9 }
 0x8af   :  { %1810 = vmax.xlane.f32.xlu1 %v1809_v14 }
 0x8b1   :  { %1828 = vmax.xlane.f32.xlu0 %v1827_v62  ;;  %v2397_v62 = vrot.slane %v7975_v0, %v10335_v57 }
 0x8b3   :  { %1819 = vmax.xlane.f32.xlu1 %v1818_v35  ;;  %v8119_v35 = vrot.slane %v7975_v0, %v6486_v58 }
 0x8b5   :  { %1831 = vmax.xlane.f32.xlu0 %v1830_v3 }
 0x8b7   :  { %1825 = vmax.xlane.f32.xlu1 %v1824_v1 }
 0x8ed   :  { %v8082_v42 = vpop.xlane.xlu0 %4990 }
 0x8ee   :  { %v5254_v2 = vadd.f32 %v7626_v56, %v8082_v42  ;;  %vm5013_vm12 = vcmp.eq.f32.partialorder %v7918_v19, %v8082_v42 }
 0x8ef   :  { %v8086_v22 = vpop.xlane.xlu1 %4993 }
 0x8f0   :  { %10330 = vst [vmem:[#allocation76_spill] sm:$0xff] %v8086_v22  ;;  %v5255_v46 = vadd.f32 %v7618_v40, %v8086_v22  ;;  %5271 = vperm.xlu0 %6042, %v5254_v2  }
 0x8f1   :  { %v8090_v51 = vpop.xlane.xlu0 %4996 }
 0x8f2   :  { %10331 = vst [vmem:[#allocation78_spill] sm:$0xff] %v8090_v51  ;;  %5274 = vperm.xlu1 %6043, %v5255_v46   ;;  %v5256_v28 = vadd.f32 %v7620_v11, %v8090_v51 }
 0x8f3   :  { %v8092_v4 = vpop.xlane.xlu1 %4999 }
 0x8f4   :  { %10332 = vst [vmem:[#allocation77_spill] sm:$0xff] %v8092_v4  ;;  %v5257_v32 = vadd.f32 %v7883_v38, %v8092_v4  ;;  %v2390_v38 = vrot.slane %v7975_v0, %v10334_v24 }
 0x8f5   :  { %v8098_v9 = vpop.xlane.xlu0 %5002 }
 0x8f6   :  { %5277 = vperm.xlu1 %6043, %v5256_v28   ;;  %5280 = vperm.xlu0 %6042, %v5257_v32   ;;  %v5258_v40 = vadd.f32 %v7881_v60, %v8098_v9  ;;  %v8114_v60 = vrot.slane %v7975_v0, %v10336_v33  ;;  %v10338_v32 = vld [vmem:[#allocation3_spill] sm:$0xff] }
 0x8f7   :  { %v8100_v56 = vpop.xlane.xlu1 %5005 }
 0x8f8   :  { %10333 = vst [vmem:[#allocation115_spill] sm:$0xff] %v8100_v56  ;;  %v5259_v29 = vadd.f32 %v5231_v12, %v8100_v56 }
 0x8f9   :  { %v8105_v14 = vpop.xlane.xlu0 %5008 }
 0x8fa   :  { %5283 = vperm.xlu1 %6043, %v5258_v40   ;;  %5286 = vperm.xlu0 %6042, %v5259_v29   ;;  %v5260_v11 = vadd.f32 %v5238_v37, %v8105_v14  ;;  %v2383_v40 = vrot.slane %v7975_v0, %v10338_v32 }
 0x8fb   :  { %v8124_v31 = vpop.permute.xlu1 %5639 }
 0x8fd   :  { %v8126_v3 = vpop.permute.xlu0 %2364 }
 0x8fe   :  { %5289 = vperm.xlu1 %6043, %v5260_v11  }
 0x8ff   :  { %v8128_v1 = vpop.permute.xlu1 %5646 }
 0x902   :  { %5667 = vbcast.lane.b32.xlu1 %v2390_v38, 256 }
 0x903   :  { %v8132_v37 = vpop.permute.xlu1 %5653 }
 0x906   :  { %5674 = vbcast.lane.b32.xlu1 %v2397_v62, 256 }
 0x90a   :  { %5681 = vbcast.lane.b32.xlu1 %v8114_v60, 256 }
 0x90e   :  { %5688 = vbcast.lane.b32.xlu1 %v8119_v35, 256 }
 0x912   :  { %2371 = vbcast.lane.b32.xlu1 %v7993_v39, 256 }
 0x916   :  { %2378 = vbcast.lane.b32.xlu1 %v8001_v54, 256 }
 0x91a   :  { %2392 = vbcast.lane.b32.xlu1 %v2390_v38, 256 }
 0x92e   :  { %v8130_v12 = vpop.xlane.xlu0 %1813 }
 0x932   :  { %v8134_v2 = vpop.xlane.xlu0 %1816 }
 0x934   :  { %v8136_v58 = vpop.xlane.xlu1 %5011 }
 0x935   :  { %10337 = vst [vmem:[#allocation5_spill] sm:$0xff] %v8136_v58  ;;  %v5261_v46 = vadd.f32 %v5245_v21, %v8136_v58 }
 0x936   :  { %v8139_v39 = vpop.xlane.xlu0 %1822 }
 0x937   :  { %5292 = vperm.xlu0 %6042, %v5261_v46  }
 0x938   :  { %v8141_v54 = vpop.xlane.xlu1 %1810 }
 0x939   :  { %v1833_v28 = vsub.f32 %v8052_v16, %v8141_v54 }
 0x93a   :  { %v8147_v29 = vpop.xlane.xlu0 %1828 }
 0x93b   :  { %v1841_v11 = vmul.f32 1.442695, %v1833_v28  ;;  %5660 = vbcast.lane.b32.xlu0 %v2383_v40, 256 }
 0x93c   :  { %v8149_v24 = vpop.xlane.xlu1 %1819 }
 0x93d   :  { %6188 = vpow2.f32 %v1841_v11  ;;  %v1836_v21 = vsub.f32 %v8065_v53, %v8149_v24  ;;  %v1834_v53 = vsub.f32 %v8023_v34, %v8130_v12 }
 0x93e   :  { %v8153_v38 = vpop.xlane.xlu0 %1831 }
 0x93f   :  { %v1847_v57 = vmul.f32 1.442695, %v1836_v21  ;;  %v1840_v33 = vsub.f32 %v8071_v6, %v8153_v38  ;;  %2385 = vbcast.lane.b32.xlu0 %v2383_v40, 256  ;;  %v1843_v6 = vmul.f32 1.442695, %v1834_v53  ;;  %v1835_v40 = vsub.f32 %v8033_v52, %v8134_v2 }
 0x940   :  { %v8157_v16 = vpop.xlane.xlu1 %1825 }
 0x941   :  { %6190 = vpow2.f32 %v1847_v57  ;;  %v1838_v46 = vsub.f32 %v8076_v50, %v8157_v16  ;;  %v1855_v28 = vmul.f32 1.442695, %v1840_v33  ;;  %v1845_v50 = vmul.f32 1.442695, %v1835_v40 }
 0x943   :  { %v1851_v32 = vmul.f32 1.442695, %v1838_v46  ;;  %2399 = vbcast.lane.b32.xlu0 %v2397_v62, 256  ;;  %v1837_v62 = vsub.f32 %v8045_v15, %v8139_v39 }
 0x945   :  { %6192 = vpow2.f32 %v1851_v32  ;;  %v1839_v32 = vsub.f32 %v8059_v30, %v8147_v29 }
 0x946   :  { %6194 = vpow2.f32 %v1855_v28  ;;  %v1849_v28 = vmul.f32 1.442695, %v1837_v62 }
 0x947   :  { %6196 = vpow2.f32 %v1843_v6 }
 0x948   :  { %6198 = vpow2.f32 %v1845_v50 }
 0x949   :  { %6200 = vpow2.f32 %v1849_v28 }
 0x94a   :  { %v6189_v11 = vpop.eup %6188 }
 0x94b   :  { %v1857_v21 = vsel %vm573_vm1, %v6189_v11, 0.0 }
 0x94c   :  { %1858 = vadd.xlane.f32.xlu1 %v1857_v21 }
 0x94e   :  { %v6191_v57 = vpop.eup %6190 }
 0x94f   :  { %v1866_v0 = vsel %vm573_vm1, %v6191_v57, 0.0 }
 0x950   :  { %1867 = vadd.xlane.f32.xlu1 %v1866_v0  ;;  %v1853_v0 = vmul.f32 1.442695, %v1839_v32 }
 0x952   :  { %v6193_v33 = vpop.eup %6192  ;;  %6202 = vpow2.f32 %v1853_v0 }
 0x953   :  { %v1872_v34 = vsel %vm573_vm1, %v6193_v33, 0.0  ;;  %v6195_v46 = vpop.eup %6194 }
 0x954   :  { %1873 = vadd.xlane.f32.xlu1 %v1872_v34  ;;  %v1878_v52 = vsel %vm573_vm1, %v6195_v46, 0.0  ;;  %v6197_v53 = vpop.eup %6196 }
 0x955   :  { %v1860_v11 = vsel %vm573_vm1, %v6197_v53, 0.0  ;;  %v6199_v15 = vpop.eup %6198 }
 0x956   :  { %v1863_v21 = vsel %vm573_vm1, %v6199_v15, 0.0  ;;  %v6201_v6 = vpop.eup %6200 }
 0x957   :  { %v1869_v40 = vsel %vm573_vm1, %v6201_v6, 0.0 }
 0x958   :  { %1879 = vadd.xlane.f32.xlu1 %v1878_v52 }
 0x95f   :  { %v6203_v57 = vpop.eup %6202 }
 0x960   :  { %v1875_v30 = vsel %vm573_vm1, %v6203_v57, 0.0 }
 0x962   :  { %1861 = vadd.xlane.f32.xlu0 %v1860_v11 }
 0x966   :  { %1864 = vadd.xlane.f32.xlu0 %v1863_v21 }
 0x96a   :  { %1870 = vadd.xlane.f32.xlu0 %v1869_v40 }
 0x96b   :  { %v5272_v33 = vpop.permute.xlu0 %5271 }
 0x96c   :  { %v5297_v52 = vrot.slane %v5272_v33, %v6856_v23 }
 0x96d   :  { %v5275_v50 = vpop.permute.xlu1 %5274 }
 0x96e   :  { %1876 = vadd.xlane.f32.xlu0 %v1875_v30  ;;  %v5301_v46 = vrot.slane %v5275_v50, %v6856_v23 }
 0x970   :  { %v5326_v0 = vsel %vm710_vm2, %v5301_v46, %v5297_v52 }
 0x971   :  { %v5278_v62 = vpop.permute.xlu1 %5277  ;;  %v5281_v34 = vpop.permute.xlu0 %5280 }
 0x972   :  { %v5305_v32 = vrot.slane %v5278_v62, %v6856_v23  ;;  %v5309_v53 = vrot.slane %v5281_v34, %v6856_v23 }
 0x974   :  { %v5327_v11 = vsel %vm712_vm3, %v5305_v32, %v5326_v0  ;;  %v10339_v32 = vld [vmem:[#allocation16_spill] sm:$0xff] }
 0x975   :  { %v5284_v28 = vpop.permute.xlu1 %5283  ;;  %v5287_v15 = vpop.permute.xlu0 %5286  ;;  %v5328_v57 = vsel %vm714_vm4, %v5309_v53, %v5327_v11  ;;  %vm387_vm14 = vcmp.gt.f32.partialorder %v10339_v32, 0.0 }
 0x976   :  { %v5313_v21 = vrot.slane %v5284_v28, %v6856_v23  ;;  %v5317_v40 = vrot.slane %v5287_v15, %v6856_v23 }
 0x978   :  { %v5329_v30 = vsel %vm716_vm5, %v5313_v21, %v5328_v57 }
 0x979   :  { %v5290_v6 = vpop.permute.xlu1 %5289  ;;  %v5330_v33 = vsel %vm718_vm6, %v5317_v40, %v5329_v30 }
 0x97a   :  { %v5321_v50 = vrot.slane %v5290_v6, %v6856_v23 }
 0x97c   :  { %v5331_v34 = vsel %vm720_vm7, %v5321_v50, %v5330_v33 }
 0x97d   :  { %v8193_v52 = vpop.permute.xlu1 %5667 }
 0x9b2   :  { %v5293_v62 = vpop.permute.xlu0 %5292 }
 0x9b3   :  { %v5325_v46 = vrot.slane %v5293_v62, %v6856_v23 }
 0x9b5   :  { %v5332_v28 = vsel %vm722_vm8, %v5325_v46, %v5331_v34 }
 0x9b6   :  { %v8198_v0 = vsel %vm387_vm14, %v5332_v28, %v7906_v59  ;;  %v8209_v59 = vpop.permute.xlu1 %5674 }
 0x9b7   :  { %v5336_v53 = vcombine.high %v8198_v0, %v8198_v0  ;;  %v5343_v11 = vrot.slane %v8198_v0, %v6551_v26 }
 0x9b9   :  { %v5359_v15 = vrot.slane %v5343_v11, %v6551_v26  ;;  %v5351_v21 = vcombine.high %v5343_v11, %v5343_v11  ;;  %v5350_v6 = vrot.slane %v5336_v53, %v6551_v26 }
 0x9bb   :  { %v5388_v40 = vrot.slane %v5359_v15, %v6453_v44  ;;  %v5373_v57 = vrot.slane %v5351_v21, %v6551_v26  ;;  %v5366_v30 = vrot.slane %v5350_v6, %v6551_v26  ;;  %v5381_v50 = vcombine.high %v5359_v15, %v5359_v15  ;;  %v8225_v21 = vpop.permute.xlu1 %5681 }
 0x9bc   :  { %v5352_v63 = vcombine.high %v5350_v6, %v5350_v6 }
 0x9bd   :  { %v8212_v62 = vadd.f32 %v7754_v5, %v5388_v40  ;;  %v5392_v33 = vrot.slane %v5373_v57, %v6453_v44  ;;  %v5382_v46 = vcombine.high %v5366_v30, %v5366_v30  ;;  %v5396_v11 = vrot.slane %v5381_v50, %v6453_v44 }
 0x9be   :  { %v5404_v40 = vrot.slane %v5366_v30, %v6453_v44  ;;  %v5380_v30 = vrot.slane %v5352_v63, %v6551_v26 }
 0x9bf   :  { %v5433_v34 = vsel %vm573_vm1, %v8212_v62, -inf  ;;  %v8218_v28 = vadd.f32 %v7754_v5, %v5392_v33  ;;  %v5412_v53 = vrot.slane %v5382_v46, %v6453_v44  ;;  %v8233_v61 = vadd.f32 %v7754_v5, %v5396_v11 }
 0x9c0   :  { %5434 = vmax.xlane.f32.xlu1 %v5433_v34  ;;  %v5383_v46 = vcombine.high %v5373_v57, %v5373_v57  ;;  %v8238_v34 = vadd.f32 %v7754_v5, %v5404_v40 }
 0x9c1   :  { %v8223_v15 = vadd.f32 %v7754_v5, %v5412_v53  ;;  %v5436_v20 = vsel %vm573_vm1, %v8218_v28, -inf  ;;  %v5439_v50 = vsel %vm573_vm1, %v8233_v61, -inf  ;;  %v8242_v53 = vpop.permute.xlu1 %5688 }
 0x9c2   :  { %v5400_v6 = vrot.slane %v5383_v46, %v6453_v44  ;;  %v5445_v11 = vsel %vm573_vm1, %v8238_v34, -inf }
 0x9c3   :  { %v5451_v33 = vsel %vm573_vm1, %v8223_v15, -inf }
 0x9c4   :  { %5437 = vmax.xlane.f32.xlu1 %v5436_v20  ;;  %5452 = vmax.xlane.f32.xlu0 %v5451_v33  ;;  %v8247_v57 = vadd.f32 %v7754_v5, %v5400_v6  ;;  %v5408_v20 = vrot.slane %v5380_v30, %v6453_v44  ;;  %v5384_v33 = vcombine.high %v5380_v30, %v5380_v30 }
 0x9c5   :  { %v8250_v7 = vpop.permute.xlu1 %2371 }
 0x9c6   :  { %v5442_v40 = vsel %vm573_vm1, %v8247_v57, -inf  ;;  %v8255_v63 = vadd.f32 %v7754_v5, %v5408_v20  ;;  %v5416_v46 = vrot.slane %v5384_v33, %v6453_v44  ;;  %v8270_v20 = vpop.permute.xlu0 %5660 }
 0x9c8   :  { %5440 = vmax.xlane.f32.xlu1 %v5439_v50  ;;  %v5448_v50 = vsel %vm573_vm1, %v8255_v63, -inf  ;;  %v8261_v6 = vadd.f32 %v7754_v5, %v5416_v46 }
 0x9c9   :  { %v8263_v49 = vpop.permute.xlu1 %2378 }
 0x9ca   :  { %v5454_v30 = vsel %vm573_vm1, %v8261_v6, -inf }
 0x9cc   :  { %5446 = vmax.xlane.f32.xlu1 %v5445_v11 }
 0x9cd   :  { %v8267_v11 = vpop.permute.xlu1 %2392 }
 0x9d0   :  { %5443 = vmax.xlane.f32.xlu1 %v5442_v40  ;;  %v8272_v40 = vpop.permute.xlu0 %2385 }
 0x9d4   :  { %5449 = vmax.xlane.f32.xlu1 %v5448_v50  ;;  %v8274_v18 = vpop.permute.xlu0 %2399 }
 0x9d5   :  { %v1859_v33 = vpop.xlane.xlu1 %1858 }
 0x9d6   :  { %6204 = vlog2.f32 %v1859_v33 }
 0x9d8   :  { %5455 = vmax.xlane.f32.xlu1 %v5454_v30 }
 0x9d9   :  { %v1868_v47 = vpop.xlane.xlu1 %1867 }
 0x9da   :  { %2413 = vbcast.lane.b32.xlu0 %v8119_v35, 256 }
 0x9dd   :  { %v1874_v5 = vpop.xlane.xlu1 %1873 }
 0x9e1   :  { %v1880_v30 = vpop.xlane.xlu1 %1879 }
 0x9e3   :  { %v6205_v27 = vpop.eup %6204 }
 0x9e4   :  { %v1882_v56 = vmul.f32 0.6931472, %v6205_v27 }
 0x9e9   :  { %2406 = vbcast.lane.b32.xlu1 %v8114_v60, 256 }
 0x9eb   :  { %v1862_v46 = vpop.xlane.xlu0 %1861 }
 0x9ec   :  { %6206 = vlog2.f32 %v1862_v46  ;;  %v1897_v46 = vadd.f32 %v1882_v56, %v8141_v54 }
 0x9ed   :  { %6208 = vlog2.f32 %v1868_v47 }
 0x9ef   :  { %v1865_v50 = vpop.xlane.xlu0 %1864 }
 0x9f0   :  { %6210 = vlog2.f32 %v1865_v50 }
 0x9f1   :  { %6212 = vlog2.f32 %v1874_v5 }
 0x9f2   :  { %6214 = vlog2.f32 %v1880_v30 }
 0x9f3   :  { %v1871_v35 = vpop.xlane.xlu0 %1870 }
 0x9f4   :  { %6216 = vlog2.f32 %v1871_v35 }
 0x9f7   :  { %v1877_v58 = vpop.xlane.xlu0 %1876 }
 0x9f8   :  { %6218 = vlog2.f32 %v1877_v58  ;;  %v1916_v58 = vrot.slane %v1897_v46, %v6856_v23 }
 0x9f9   :  { %v6207_v41 = vpop.eup %6206 }
 0x9fa   :  { %v6209_v43 = vpop.eup %6208  ;;  %v1884_v33 = vmul.f32 0.6931472, %v6207_v41 }
 0x9fb   :  { %v1888_v47 = vmul.f32 0.6931472, %v6209_v43 }
 0x9fc   :  { %v1898_v60 = vadd.f32 %v1884_v33, %v8130_v12 }
 0x9fd   :  { %v6211_v4 = vpop.eup %6210  ;;  %v1900_v27 = vadd.f32 %v1888_v47, %v8149_v24 }
 0x9fe   :  { %v6213_v13 = vpop.eup %6212  ;;  %v1886_v51 = vmul.f32 0.6931472, %v6211_v4  ;;  %v1920_v5 = vrot.slane %v1898_v60, %v6856_v23 }
 0x9ff   :  { %v6215_v50 = vpop.eup %6214  ;;  %v1892_v48 = vmul.f32 0.6931472, %v6213_v13  ;;  %v1928_v60 = vrot.slane %v1900_v27, %v6856_v23 }
 0xa00   :  { %v1899_v30 = vadd.f32 %v1886_v51, %v8134_v2  ;;  %v1896_v33 = vmul.f32 0.6931472, %v6215_v50  ;;  %v1945_v56 = vsel %vm710_vm2, %v1920_v5, %v1916_v58 }
 0xa01   :  { %v6217_v35 = vpop.eup %6216  ;;  %v1902_v51 = vadd.f32 %v1892_v48, %v8157_v16 }
 0xa02   :  { %v1924_v41 = vrot.slane %v1899_v30, %v6856_v23  ;;  %v1890_v12 = vmul.f32 0.6931472, %v6217_v35  ;;  %v1904_v13 = vadd.f32 %v1896_v33, %v8153_v38 }
 0xa03   :  { %v1936_v50 = vrot.slane %v1902_v51, %v6856_v23 }
 0xa04   :  { %v1946_v43 = vsel %vm712_vm3, %v1924_v41, %v1945_v56  ;;  %v1901_v4 = vadd.f32 %v1890_v12, %v8139_v39  ;;  %v1944_v30 = vrot.slane %v1904_v13, %v6856_v23 }
 0xa05   :  { %v6219_v54 = vpop.eup %6218  ;;  %v1947_v24 = vsel %vm714_vm4, %v1928_v60, %v1946_v43 }
 0xa06   :  { %v1932_v2 = vrot.slane %v1901_v4, %v6856_v23  ;;  %v1894_v46 = vmul.f32 0.6931472, %v6219_v54  ;;  %v8317_v54 = vld [vmem:[%s10028_s5] sm:$0xff] }
 0xa08   :  { %v1948_v47 = vsel %vm716_vm5, %v1932_v2, %v1947_v24  ;;  %v1903_v5 = vadd.f32 %v1894_v46, %v8147_v29 }
 0xa09   :  { %v1949_v35 = vsel %vm718_vm6, %v1936_v50, %v1948_v47 }
 0xa0a   :  { %v1940_v39 = vrot.slane %v1903_v5, %v6856_v23  ;;  %v10340_v5 = vld [vmem:[#allocation79_spill] sm:$0xff] }
 0xa0c   :  { %v1950_v48 = vsel %vm720_vm7, %v1940_v39, %v1949_v35 }
 0xa0d   :  { %v1951_v16 = vsel %vm722_vm8, %v1944_v30, %v1950_v48 }
 0xa0e   :  { %v8303_v38 = vsel %vm10163_vm13, %v1951_v16, %v8007_v45 }
 0xa0f   :  { %v1962_v29 = vrot.slane %v8303_v38, %v6551_v26  ;;  %v1955_v58 = vcombine.high %v8303_v38, %v8303_v38 }
 0xa11   :  { %v1978_v27 = vrot.slane %v1962_v29, %v6551_v26  ;;  %v1970_v41 = vcombine.high %v1962_v29, %v1962_v29  ;;  %v1969_v12 = vrot.slane %v1955_v58, %v6551_v26 }
 0xa13   :  { %v2007_v33 = vrot.slane %v1978_v27, %v6453_v44  ;;  %v1992_v56 = vrot.slane %v1970_v41, %v6551_v26  ;;  %v2000_v43 = vcombine.high %v1978_v27, %v1978_v27  ;;  %v1985_v4 = vrot.slane %v1969_v12, %v6551_v26  ;;  %v10341_v41 = vld [vmem:[#allocation80_spill] sm:$0xff] }
 0xa14   :  { %v1971_v45 = vcombine.high %v1969_v12, %v1969_v12 }
 0xa15   :  { %v2044_v60 = vadd.f32 %v8317_v54, %v2007_v33  ;;  %v2011_v51 = vrot.slane %v1992_v56, %v6453_v44  ;;  %v2015_v2 = vrot.slane %v2000_v43, %v6453_v44  ;;  %v2023_v46 = vrot.slane %v1985_v4, %v6453_v44 }
 0xa16   :  { %v1999_v13 = vrot.slane %v1971_v45, %v6551_v26  ;;  %v2002_v24 = vcombine.high %v1992_v56, %v1992_v56  ;;  %v2001_v47 = vcombine.high %v1985_v4, %v1985_v4  ;;  %v10342_v4 = vld [vmem:[#allocation81_spill] sm:$0xff] }
 0xa17   :  { %v8325_v50 = vadd.f32 %v10340_v5, %v2044_v60  ;;  %v2045_v39 = vadd.f32 %v8317_v54, %v2011_v51  ;;  %v2046_v30 = vadd.f32 %v8317_v54, %v2015_v2  ;;  %v2048_v35 = vadd.f32 %v8317_v54, %v2023_v46 }
 0xa18   :  { %v2027_v48 = vrot.slane %v1999_v13, %v6453_v44  ;;  %v2019_v16 = vrot.slane %v2002_v24, %v6453_v44  ;;  %v2003_v29 = vcombine.high %v1999_v13, %v1999_v13  ;;  %v2031_v51 = vrot.slane %v2001_v47, %v6453_v44  ;;  %v10343_v24 = vld [vmem:[#allocation91_spill] sm:$0xff] }
 0xa19   :  { %v2116_v58 = vsel %vm573_vm1, %v8325_v50, -inf  ;;  %v8335_v27 = vadd.f32 %v7291_v17, %v2045_v39  ;;  %v8338_v12 = vadd.f32 %v10341_v41, %v2046_v30  ;;  %v2112_v45 = vadd.f32 %v10342_v4, %v2048_v35  ;;  %v10344_v35 = vld [vmem:[#allocation82_spill] sm:$0xff] }
 0xa1a   :  { %2117 = vmax.xlane.f32.xlu1 %v2116_v58  ;;  %v2049_v33 = vadd.f32 %v8317_v54, %v2027_v48  ;;  %v2035_v56 = vrot.slane %v2003_v29, %v6453_v44  ;;  %v2047_v60 = vadd.f32 %v8317_v54, %v2019_v16  ;;  %v2050_v39 = vadd.f32 %v8317_v54, %v2031_v51 }
 0xa1b   :  { %v2119_v43 = vsel %vm573_vm1, %v8335_v27, -inf  ;;  %v2122_v17 = vsel %vm573_vm1, %v8338_v12, -inf  ;;  %v2128_v13 = vsel %vm573_vm1, %v2112_v45, -inf }
 0xa1c   :  { %2120 = vmax.xlane.f32.xlu0 %v2119_v43  ;;  %v8350_v2 = vadd.f32 %v7295_v55, %v2049_v33  ;;  %v2051_v46 = vadd.f32 %v8317_v54, %v2035_v56  ;;  %v2111_v5 = vadd.f32 %v10343_v24, %v2047_v60  ;;  %v2114_v48 = vadd.f32 %v10344_v35, %v2050_v39 }
 0xa1e   :  { %2123 = vmax.xlane.f32.xlu1 %v2122_v17  ;;  %v2131_v47 = vsel %vm573_vm1, %v8350_v2, -inf  ;;  %v8359_v30 = vadd.f32 %v7374_v36, %v2051_v46  ;;  %v2125_v55 = vsel %vm573_vm1, %v2111_v5, -inf  ;;  %v2134_v29 = vsel %vm573_vm1, %v2114_v48, -inf }
 0xa20   :  { %2129 = vmax.xlane.f32.xlu0 %v2128_v13  ;;  %v2137_v16 = vsel %vm573_vm1, %v8359_v30, -inf }
 0xa22   :  { %2132 = vmax.xlane.f32.xlu1 %v2131_v47 }
 0xa24   :  { %2126 = vmax.xlane.f32.xlu0 %v2125_v55 }
 0xa26   :  { %2138 = vmax.xlane.f32.xlu1 %v2137_v16 }
 0xa28   :  { %2135 = vmax.xlane.f32.xlu0 %v2134_v29 }
 0xa49   :  { %v8366_v58 = vpop.xlane.xlu1 %5434 }
 0xa4a   :  { %v5698_v41 = vadd.f32 %v8124_v31, %v8366_v58 }
 0xa4c   :  { %5715 = vperm.xlu1 %6043, %v5698_v41  }
 0xa4d   :  { %v5438_v36 = vpop.xlane.xlu1 %5437  ;;  %v8376_v51 = vpop.xlane.xlu0 %5452 }
 0xa4e   :  { %v5699_v33 = vadd.f32 %v8128_v1, %v5438_v36  ;;  %v5704_v31 = vadd.f32 %v8225_v21, %v8376_v51  ;;  %vm5458_vm15 = vcmp.eq.f32.partialorder %v8218_v28, %v5438_v36  ;;  %vm5463_vm10 = vcmp.eq.f32.partialorder %v8223_v15, %v8376_v51 }
 0xa50   :  { %5718 = vperm.xlu0 %6042, %v5699_v33  }
 0xa51   :  { %v5441_v56 = vpop.xlane.xlu1 %5440 }
 0xa52   :  { %v5700_v43 = vadd.f32 %v8132_v37, %v5441_v56  ;;  %vm5459_vm0 = vcmp.eq.f32.partialorder %v8233_v61, %v5441_v56 }
 0xa54   :  { %5721 = vperm.xlu1 %6043, %v5700_v43  }
 0xa55   :  { %v8372_v4 = vpop.xlane.xlu1 %5446 }
 0xa56   :  { %v5702_v60 = vadd.f32 %v8193_v52, %v8372_v4  ;;  %v8386_v52 = vld [vmem:[%s10029_s8] sm:$0xff] }
 0xa58   :  { %5727 = vperm.xlu1 %6043, %v5702_v60  }
 0xa59   :  { %v5444_v17 = vpop.xlane.xlu1 %5443 }
 0xa5a   :  { %v5701_v46 = vadd.f32 %v8270_v20, %v5444_v17  ;;  %v8391_v20 = vpop.permute.xlu0 %2413  ;;  %vm5460_vm9 = vcmp.eq.f32.partialorder %v8247_v57, %v5444_v17 }
 0xa5c   :  { %5733 = vperm.xlu1 %6043, %v5704_v31   ;;  %5724 = vperm.xlu0 %6042, %v5701_v46  }
 0xa5d   :  { %v5450_v1 = vpop.xlane.xlu1 %5449 }
 0xa5e   :  { %v5703_v37 = vadd.f32 %v8209_v59, %v5450_v1 }
 0xa60   :  { %5730 = vperm.xlu0 %6042, %v5703_v37  }
 0xa61   :  { %v5456_v13 = vpop.xlane.xlu1 %5455 }
 0xa62   :  { %v5705_v24 = vadd.f32 %v8242_v53, %v5456_v13 }
 0xa64   :  { %5736 = vperm.xlu0 %6042, %v5705_v24   ;;  %v10345_v24 = vld [vmem:[#allocation45_spill] sm:$0xff] }
 0xa65   :  { %v8389_v21 = vpop.permute.xlu1 %2406  ;;  %v5468_v61 = vsel %vm5460_vm9, %v10345_v24, 8 }
 0xa68   :  { %2581 = vperm.xlu0 %6042, %v8386_v52  }
 0xaa3   :  { %v8393_v39 = vpop.xlane.xlu1 %2117 }
 0xaa4   :  { %v2140_v59 = vsub.f32 %v8325_v50, %v8393_v39 }
 0xaa5   :  { %v8397_v47 = vpop.xlane.xlu0 %2120 }
 0xaa6   :  { %v2148_v53 = vmul.f32 1.442695, %v2140_v59  ;;  %v5466_v59 = vsel %vm5458_vm15, %v10345_v24, 8  ;;  %vm5462_vm15 = vcmp.eq.f32.partialorder %v8255_v63, %v5450_v1 }
 0xaa7   :  { %v5470_v57 = vsel %vm5462_vm15, %v10345_v24, 8  ;;  %v8443_v1 = vpop.xlane.xlu1 %2123 }
 0xaa8   :  { %6220 = vpow2.f32 %v2148_v53 }
 0xaa9   :  { %v8399_v55 = vpop.xlane.xlu0 %2129 }
 0xaaa   :  { %v2144_v35 = vsub.f32 %v2112_v45, %v8399_v55 }
 0xaac   :  { %v2156_v16 = vmul.f32 1.442695, %v2144_v35  ;;  %v5467_v35 = vsel %vm5459_vm0, %v10345_v24, 8  ;;  %vm5464_vm0 = vcmp.eq.f32.partialorder %v8261_v6, %v5456_v13  ;;  %v2141_v6 = vsub.f32 %v8335_v27, %v8397_v47 }
 0xaad   :  { %v8402_v29 = vpop.xlane.xlu0 %2126  ;;  %v5472_v63 = vsel %vm5464_vm0, %v10345_v24, 8  ;;  %vm5457_vm0 = vcmp.eq.f32.partialorder %v8212_v62, %v8366_v58  ;;  %v5471_v62 = vsel %vm5463_vm10, %v10345_v24, 8  ;;  %vm2595_vm10 = vcmask 523264  }
 0xaae   :  { %6222 = vpow2.f32 %v2156_v16  ;;  %v2143_v41 = vsub.f32 %v2111_v5, %v8402_v29 }
 0xab0   :  { %v2154_v33 = vmul.f32 1.442695, %v2143_v41  ;;  %v8422_v41 = vsel %vm573_vm1, %v5467_v35, 2147483647  ;;  %v2150_v35 = vmul.f32 1.442695, %v2141_v6 }
 0xab1   :  { %v8405_v43 = vpop.xlane.xlu0 %2135 }
 0xab2   :  { %6224 = vpow2.f32 %v2154_v33  ;;  %v2146_v50 = vsub.f32 %v2114_v48, %v8405_v43  ;;  %v8415_v48 = vsel %vm573_vm1, %v5466_v59, 2147483647  ;;  %v5505_v33 = vshra.s32 %v8422_v41, 16 }
 0xab3   :  { %v5490_v36 = vshra.s32 %v8415_v48, 16 }
 0xab4   :  { %v2160_v60 = vmul.f32 1.442695, %v2146_v50  ;;  %v8430_v50 = vsel %vm573_vm1, %v5468_v61, 2147483647  ;;  %v8435_v17 = vcvt.s32.f32 %v5505_v33 }
 0xab5   :  { %v6221_v31 = vpop.eup %6220  ;;  %v8426_v56 = vcvt.s32.f32 %v5490_v36 }
 0xab6   :  { %6226 = vpow2.f32 %v2160_v60  ;;  %v2164_v46 = vsel %vm573_vm1, %v6221_v31, 0.0  ;;  %v5520_v60 = vshra.s32 %v8430_v50, 16  ;;  %v8439_v31 = vsel %vm573_vm1, %v5470_v57, 2147483647 }
 0xab7   :  { %2165 = vadd.xlane.f32.xlu0 %v2164_v46  ;;  %6228 = vpow2.f32 %v2150_v35  ;;  %v10348_v35 = vld [vmem:[#allocation9_spill] sm:$0xff] }
 0xab8   :  { %v8445_v46 = vcvt.s32.f32 %v5520_v60 }
 0xabb   :  { %v6223_v45 = vpop.eup %6222 }
 0xabc   :  { %v2176_v37 = vsel %vm573_vm1, %v6223_v45, 0.0  ;;  %v5550_v45 = vshra.s32 %v8439_v31, 16 }
 0xabd   :  { %2177 = vadd.xlane.f32.xlu0 %v2176_v37  ;;  %v8449_v37 = vsel %vm573_vm1, %v5472_v63, 2147483647 }
 0xabe   :  { %10346 = vst [vmem:[#allocation4_spill] sm:$0xff] %v8449_v37  ;;  %v8454_v59 = vcvt.s32.f32 %v5550_v45 }
 0xabf   :  { %v6225_v5 = vpop.eup %6224 }
 0xac0   :  { %v2173_v53 = vsel %vm573_vm1, %v6225_v5, 0.0  ;;  %v5580_v5 = vshra.s32 %v8449_v37, 16 }
 0xac1   :  { %2174 = vadd.xlane.f32.xlu0 %v2173_v53  ;;  %v8457_v53 = vpop.xlane.xlu1 %2132 }
 0xac2   :  { %v2145_v61 = vsub.f32 %v8350_v2, %v8457_v53 }
 0xac3   :  { %v6227_v28 = vpop.eup %6226 }
 0xac4   :  { %v2182_v16 = vsel %vm573_vm1, %v6227_v28, 0.0  ;;  %v2142_v28 = vsub.f32 %v8338_v12, %v8443_v1  ;;  %v2158_v60 = vmul.f32 1.442695, %v2145_v61 }
 0xac5   :  { %2183 = vadd.xlane.f32.xlu0 %v2182_v16  ;;  %v8462_v16 = vcvt.s32.f32 %v5580_v5  ;;  %v8467_v33 = vpop.xlane.xlu1 %2138 }
 0xac6   :  { %v2152_v27 = vmul.f32 1.442695, %v2142_v28  ;;  %v2147_v63 = vsub.f32 %v8359_v30, %v8467_v33 }
 0xac7   :  { %10347 = vst [vmem:[#allocation6_spill] sm:$0xff] %v8462_v16 }
 0xac8   :  { %6230 = vpow2.f32 %v2152_v27  ;;  %v2162_v6 = vmul.f32 1.442695, %v2147_v63  ;;  %v6229_v27 = vpop.eup %6228 }
 0xac9   :  { %5493 = vmin.xlane.f32.xlu0 %v8426_v56  ;;  %v5716_v45 = vpop.permute.xlu1 %5715  ;;  %6232 = vpow2.f32 %v2158_v60 }
 0xaca   :  { %6234 = vpow2.f32 %v2162_v6  ;;  %v5741_v30 = vrot.slane %v5716_v45, %v6856_v23 }
 0xacb   :  { %v5719_v13 = vpop.permute.xlu0 %5718 }
 0xacc   :  { %v5745_v2 = vrot.slane %v5719_v13, %v6856_v23 }
 0xacd   :  { %5508 = vmin.xlane.f32.xlu0 %v8435_v17 }
 0xace   :  { %v5770_v63 = vsel %vm710_vm2, %v5745_v2, %v5741_v30 }
 0xacf   :  { %v5722_v5 = vpop.permute.xlu1 %5721 }
 0xad0   :  { %v5749_v61 = vrot.slane %v5722_v5, %v6856_v23 }
 0xad1   :  { %5523 = vmin.xlane.f32.xlu0 %v8445_v46 }
 0xad2   :  { %v5771_v6 = vsel %vm712_vm3, %v5749_v61, %v5770_v63  ;;  %v10349_v63 = vld [vmem:[#allocation17_spill] sm:$0xff] }
 0xad3   :  { %v5728_v37 = vpop.permute.xlu1 %5727  ;;  %vm393_vm15 = vcmp.gt.f32.partialorder %v10349_v63, 0.0  ;;  %v10372_v63 = vld [vmem:[#allocation54_spill] sm:$0xff] }
 0xad4   :  { %v5757_v5 = vrot.slane %v5728_v37, %v6856_v23 }
 0xad5   :  { %5553 = vmin.xlane.f32.xlu0 %v8454_v59  ;;  %v6231_v22 = vpop.eup %6230 }
 0xad6   :  { %v2170_v45 = vsel %vm573_vm1, %v6231_v22, 0.0 }
 0xad7   :  { %v5725_v36 = vpop.permute.xlu0 %5724 }
 0xad8   :  { %v5753_v60 = vrot.slane %v5725_v36, %v6856_v23 }
 0xad9   :  { %5583 = vmin.xlane.f32.xlu0 %v8462_v16 }
 0xada   :  { %v5772_v13 = vsel %vm714_vm4, %v5753_v60, %v5771_v6  ;;  %v2588_v6 = vmul.u32 8, %v8386_v52 }
 0xadb   :  { %v5731_v57 = vpop.permute.xlu0 %5730  ;;  %v5773_v36 = vsel %vm716_vm5, %v5757_v5, %v5772_v13  ;;  %v8505_v13 = vld [vmem:[%s10029_s8 + $0x8] sm:$0xff] }
 0xadf   :  { %v5737_v12 = vpop.permute.xlu0 %5736 }
 0xae3   :  { %v2582_v25 = vpop.permute.xlu0 %2581 }
 0xae4   :  { %vm2583_vm9 = vcmp.eq.s32.totalorder %v2582_v25, %v10345_v24  ;;  %v2167_v25 = vsel %vm573_vm1, %v6229_v27, 0.0  ;;  %v5769_v27 = vrot.slane %v5737_v12, %v6856_v23 }
 0xae5   :  { %v2584_v28 = vsel %vm2583_vm9, %v10348_v35, 0.0  ;;  %v5761_v35 = vrot.slane %v5731_v57, %v6856_v23  ;;  %vm5461_vm9 = vcmp.eq.f32.partialorder %v8238_v34, %v8372_v4  ;;  %v8528_v34 = vsel %vm573_vm1, %v5471_v62, 2147483647 }
 0xae6   :  { %v2585_v16 = vsel %vm573_vm1, %v2584_v28, 0.0  ;;  %v6233_v28 = vpop.eup %6232  ;;  %v5469_v52 = vsel %vm5461_vm9, %v10345_v24, 8  ;;  %v5565_v15 = vshra.s32 %v8528_v34, 16 }
 0xae7   :  { %2586 = vadd.xlane.f32.xlu1 %v2585_v16  ;;  %v5734_v16 = vpop.permute.xlu1 %5733  ;;  %v5774_v2 = vsel %vm718_vm6, %v5761_v35, %v5773_v36  ;;  %v2179_v30 = vsel %vm573_vm1, %v6233_v28, 0.0  ;;  %v6235_v60 = vpop.eup %6234  ;;  %v2589_v35 = vadd.s32 %v8505_v13, %v2588_v6 }
 0xae8   :  { %v5765_v61 = vrot.slane %v5734_v16, %v6856_v23  ;;  %v2185_v22 = vsel %vm573_vm1, %v6235_v60, 0.0  ;;  %v8535_v51 = vcvt.s32.f32 %v5565_v15 }
 0xaea   :  { %v5775_v57 = vsel %vm720_vm7, %v5765_v61, %v5774_v2 }
 0xaeb   :  { %2168 = vadd.xlane.f32.xlu1 %v2167_v25  ;;  %v5776_v37 = vsel %vm722_vm8, %v5769_v27, %v5775_v57 }
 0xaec   :  { %v8497_v25 = vsel %vm393_vm15, %v5776_v37, %v8198_v0  ;;  %v5465_v0 = vsel %vm5457_vm0, %v10345_v24, 8 }
 0xaed   :  { %v5779_v12 = vsel %vm573_vm1, %v8497_v25, -inf  ;;  %v8514_v5 = vsel %vm573_vm1, %v5465_v0, 2147483647 }
 0xaee   :  { %v5475_v16 = vshra.s32 %v8514_v5, 16 }
 0xaef   :  { %2171 = vadd.xlane.f32.xlu1 %v2170_v45  ;;  %v8521_v45 = vsel %vm573_vm1, %v5469_v52, 2147483647 }
 0xaf0   :  { %v8524_v58 = vcvt.s32.f32 %v5475_v16  ;;  %v5535_v28 = vshra.s32 %v8521_v45, 16 }
 0xaf2   :  { %v8531_v4 = vcvt.s32.f32 %v5535_v28 }
 0xaf3   :  { %2180 = vadd.xlane.f32.xlu1 %v2179_v30 }
 0xaf7   :  { %2186 = vadd.xlane.f32.xlu1 %v2185_v22 }
 0xafb   :  { %5780 = vmax.xlane.f32.xlu1 %v5779_v12 }
 0xb0c   :  { %2591 = vperm.xlu1 %6043, %v2589_v35  }
 0xb30   :  { %5478 = vmin.xlane.f32.xlu1 %v8524_v58 }
 0xb34   :  { %5538 = vmin.xlane.f32.xlu1 %v8531_v4 }
 0xb38   :  { %5568 = vmin.xlane.f32.xlu1 %v8535_v51 }
 0xb40   :  { %v2166_v36 = vpop.xlane.xlu0 %2165 }
 0xb41   :  { %6236 = vlog2.f32 %v2166_v36 }
 0xb46   :  { %v2178_v2 = vpop.xlane.xlu0 %2177 }
 0xb47   :  { %6238 = vlog2.f32 %v2178_v2 }
 0xb4a   :  { %v2175_v61 = vpop.xlane.xlu0 %2174 }
 0xb4b   :  { %6240 = vlog2.f32 %v2175_v61 }
 0xb4e   :  { %v2184_v60 = vpop.xlane.xlu0 %2183  ;;  %v6237_v22 = vpop.eup %6236 }
 0xb4f   :  { %v2189_v52 = vmul.f32 0.6931472, %v6237_v22 }
 0xb51   :  { %v2204_v61 = vadd.f32 %v2189_v52, %v8393_v39 }
 0xb54   :  { %v6239_v12 = vpop.eup %6238 }
 0xb55   :  { %v2197_v15 = vmul.f32 0.6931472, %v6239_v12 }
 0xb57   :  { %v2208_v12 = vadd.f32 %v2197_v15, %v8399_v55 }
 0xb58   :  { %v6241_v35 = vpop.eup %6240 }
 0xb59   :  { %v2195_v62 = vmul.f32 0.6931472, %v6241_v35  ;;  %v2223_v35 = vrot.slane %v2204_v61, %v6856_v23  ;;  %v2239_v55 = vrot.slane %v2208_v12, %v6856_v23 }
 0xb70   :  { %v8538_v27 = vpop.xlane.xlu1 %2586 }
 0xb71   :  { %10350 = vst [vmem:[#allocation3_spill] sm:$0xff] %v8538_v27 }
 0xb74   :  { %v2169_v30 = vpop.xlane.xlu1 %2168 }
 0xb75   :  { %6242 = vlog2.f32 %v2169_v30 }
 0xb78   :  { %v2172_v57 = vpop.xlane.xlu1 %2171 }
 0xb79   :  { %6244 = vlog2.f32 %v2172_v57  ;;  %v8547_v57 = vld [vmem:[%s10030_s6] ss:$0 sm:$0xff] }
 0xb7a   :  { %6246 = vlog2.f32 %v2184_v60 }
 0xb7c   :  { %v2181_v37 = vpop.xlane.xlu1 %2180 }
 0xb7d   :  { %6248 = vlog2.f32 %v2181_v37  ;;  %v2207_v37 = vadd.f32 %v2195_v62, %v8402_v29 }
 0xb7f   :  { %v2235_v62 = vrot.slane %v2207_v37, %v6856_v23 }
 0xb80   :  { %v2187_v6 = vpop.xlane.xlu1 %2186 }
 0xb81   :  { %6250 = vlog2.f32 %v2187_v6 }
 0xb82   :  { %v6243_v0 = vpop.eup %6242 }
 0xb83   :  { %v2191_v16 = vmul.f32 0.6931472, %v6243_v0 }
 0xb84   :  { %v8540_v28 = vpop.xlane.xlu1 %5780 }
 0xb85   :  { %v2205_v36 = vadd.f32 %v2191_v16, %v8397_v47  ;;  %vm5782_vm9 = vcmp.eq.f32.partialorder %v8497_v25, %v8540_v28 }
 0xb86   :  { %v6245_v2 = vpop.eup %6244 }
 0xb87   :  { %v6247_v30 = vpop.eup %6246  ;;  %v2193_v60 = vmul.f32 0.6931472, %v6245_v2  ;;  %v2227_v22 = vrot.slane %v2205_v36, %v6856_v23 }
 0xb88   :  { %v2592_v6 = vpop.permute.xlu1 %2591  ;;  %v2201_v0 = vmul.f32 0.6931472, %v6247_v30 }
 0xb89   :  { %v2206_v47 = vadd.f32 %v2193_v60, %v8443_v1  ;;  %vm2593_vm0 = vcmp.eq.s32.totalorder %v2592_v6, %v10345_v24  ;;  %v2252_v36 = vsel %vm710_vm2, %v2227_v22, %v2223_v35 }
 0xb8a   :  { %v6249_v39 = vpop.eup %6248  ;;  %v2594_v52 = vsel %vm2593_vm0, %v8547_v57, 0.0  ;;  %v2210_v30 = vadd.f32 %v2201_v0, %v8405_v43  ;;  %vm5017_vm0 = vcmp.eq.f32.partialorder %v7945_v10, %v8098_v9 }
 0xb8b   :  { %v2231_v16 = vrot.slane %v2206_v47, %v6856_v23  ;;  %v2199_v2 = vmul.f32 0.6931472, %v6249_v39  ;;  %v2596_v29 = vsel %vm2595_vm10, %v2594_v52, 0.0 }
 0xb8c   :  { %2597 = vadd.xlane.f32.xlu0 %v2596_v29  ;;  %v2247_v12 = vrot.slane %v2210_v30, %v6856_v23 }
 0xb8d   :  { %v2253_v1 = vsel %vm712_vm3, %v2231_v16, %v2252_v36  ;;  %v2209_v15 = vadd.f32 %v2199_v2, %v8457_v53 }
 0xb8e   :  { %v6251_v61 = vpop.eup %6250  ;;  %v2254_v60 = vsel %vm714_vm4, %v2235_v62, %v2253_v1 }
 0xb8f   :  { %v2255_v6 = vsel %vm716_vm5, %v2239_v55, %v2254_v60  ;;  %v2243_v47 = vrot.slane %v2209_v15, %v6856_v23  ;;  %v2203_v39 = vmul.f32 0.6931472, %v6251_v61 }
 0xb91   :  { %v2256_v37 = vsel %vm718_vm6, %v2243_v47, %v2255_v6  ;;  %v2211_v22 = vadd.f32 %v2203_v39, %v8467_v33 }
 0xb92   :  { %v2257_v53 = vsel %vm720_vm7, %v2247_v12, %v2256_v37 }
 0xb93   :  { %v2251_v35 = vrot.slane %v2211_v22, %v6856_v23 }
 0xb95   :  { %v2258_v52 = vsel %vm722_vm8, %v2251_v35, %v2257_v53 }
 0xb96   :  { %v8576_v43 = vsel %vm387_vm14, %v2258_v52, %v8303_v38 }
 0xb97   :  { %10351 = vst [vmem:[#allocation79_spill] sm:$0xff] %v8576_v43  ;;  %v2269_v0 = vrot.slane %v8576_v43, %v6551_v26  ;;  %v2262_v16 = vcombine.high %v8576_v43, %v8576_v43 }
 0xb99   :  { %v2285_v33 = vrot.slane %v2269_v0, %v6551_v26  ;;  %v2277_v2 = vcombine.high %v2269_v0, %v2269_v0  ;;  %v2276_v29 = vrot.slane %v2262_v16, %v6551_v26 }
 0xb9b   :  { %v2314_v62 = vrot.slane %v2285_v33, %v6453_v44  ;;  %v2299_v36 = vrot.slane %v2277_v2, %v6551_v26  ;;  %v2292_v55 = vrot.slane %v2276_v29, %v6551_v26  ;;  %v2307_v1 = vcombine.high %v2285_v33, %v2285_v33 }
 0xb9c   :  { %v2278_v38 = vcombine.high %v2276_v29, %v2276_v29 }
 0xb9d   :  { %v2351_v15 = vadd.f32 %v8317_v54, %v2314_v62  ;;  %v2318_v61 = vrot.slane %v2299_v36, %v6453_v44  ;;  %v2330_v30 = vrot.slane %v2292_v55, %v6453_v44  ;;  %v2322_v60 = vrot.slane %v2307_v1, %v6453_v44 }
 0xb9e   :  { %v2308_v6 = vcombine.high %v2292_v55, %v2292_v55  ;;  %v2309_v47 = vcombine.high %v2299_v36, %v2299_v36  ;;  %v2306_v39 = vrot.slane %v2278_v38, %v6551_v26 }
 0xb9f   :  { %v8595_v37 = vadd.f32 %v8126_v3, %v2351_v15  ;;  %v2352_v22 = vadd.f32 %v8317_v54, %v2318_v61  ;;  %v2355_v12 = vadd.f32 %v8317_v54, %v2330_v30  ;;  %v2353_v35 = vadd.f32 %v8317_v54, %v2322_v60 }
 0xba0   :  { %v2338_v53 = vrot.slane %v2308_v6, %v6453_v44  ;;  %v2326_v52 = vrot.slane %v2309_v47, %v6453_v44  ;;  %v5783_v3 = vsel %vm5782_vm9, %v10345_v24, 8  ;;  %v2334_v16 = vrot.slane %v2306_v39, %v6453_v44 }
 0xba1   :  { %v2423_v25 = vsel %vm573_vm1, %v8595_v37, -inf  ;;  %v8605_v28 = vadd.f32 %v8250_v7, %v2352_v22  ;;  %v8608_v26 = vadd.f32 %v8267_v11, %v2355_v12  ;;  %v8616_v2 = vadd.f32 %v8263_v49, %v2353_v35 }
 0xba2   :  { %2424 = vmax.xlane.f32.xlu1 %v2423_v25  ;;  %v2357_v0 = vadd.f32 %v8317_v54, %v2338_v53  ;;  %v2354_v29 = vadd.f32 %v8317_v54, %v2326_v52  ;;  %v2310_v7 = vcombine.high %v2306_v39, %v2306_v39  ;;  %v8620_v11 = vsel %vm573_vm1, %v5783_v3, 2147483647  ;;  %v8687_v25 = vld [vmem:[%s10029_s8 + $0x10] sm:$0xff] }
 0xba3   :  { %v2426_v33 = vsel %vm573_vm1, %v8605_v28, -inf  ;;  %v2435_v62 = vsel %vm573_vm1, %v8608_v26, -inf  ;;  %v2429_v55 = vsel %vm573_vm1, %v8616_v2, -inf  ;;  %v2356_v1 = vadd.f32 %v8317_v54, %v2334_v16  ;;  %10352 = vst [vmem:[#allocation80_spill] sm:$0xff] %v8687_v25 }
 0xba4   :  { %2427 = vmax.xlane.f32.xlu0 %v2426_v33  ;;  %v8625_v36 = vadd.f32 %v8389_v21, %v2357_v0  ;;  %v8630_v49 = vadd.f32 %v8272_v40, %v2354_v29  ;;  %v2342_v38 = vrot.slane %v2310_v7, %v6453_v44  ;;  %v5786_v15 = vshra.s32 %v8620_v11, 16 }
 0xba5   :  { %v8640_v30 = vadd.f32 %v8274_v18, %v2356_v1  ;;  %v8654_v18 = vpop.xlane.xlu0 %5493  ;;  %v5025_v39 = vsel %vm5017_vm0, %v10345_v24, 8  ;;  %vm5019_vm9 = vcmp.eq.f32.partialorder %v7957_v8, %v8105_v14  ;;  %v5519_v22 = vand.u32 65535, %v8430_v50 }
 0xba6   :  { %2436 = vmax.xlane.f32.xlu1 %v2435_v62  ;;  %v2441_v61 = vsel %vm573_vm1, %v8625_v36, -inf  ;;  %v2432_v21 = vsel %vm573_vm1, %v8630_v49, -inf  ;;  %v2358_v40 = vadd.f32 %v8317_v54, %v2342_v38  ;;  %v8643_v60 = vcvt.s32.f32 %v5786_v15  ;;  %v10353_v38 = vld [vmem:[#allocation2_spill] sm:$0xff] }
 0xba7   :  { %v2438_v44 = vsel %vm573_vm1, %v8640_v30, -inf  ;;  %v8667_v12 = vsel %vm573_vm1, %v5025_v39, 2147483647  ;;  %v5027_v35 = vsel %vm5019_vm9, %v10345_v24, 8  ;;  %v5521_v53 = vcvt.s32.f32 %v5519_v22 }
 0xba8   :  { %2430 = vmax.xlane.f32.xlu0 %v2429_v55  ;;  %v8649_v6 = vadd.f32 %v8391_v20, %v2358_v40  ;;  %v5091_v10 = vshra.s32 %v8667_v12, 16  ;;  %v8674_v52 = vsel %vm573_vm1, %v5027_v35, 2147483647  ;;  %v5474_v1 = vand.u32 65535, %v8514_v5 }
 0xba9   :  { %v8656_v54 = vpop.xlane.xlu0 %5508  ;;  %v5121_v14 = vshra.s32 %v8674_v52, 16  ;;  %v5489_v40 = vand.u32 65535, %v8415_v48  ;;  %vm5495_vm9 = vcmp.eq.f32.partialorder %v8426_v56, %v8654_v18  ;;  %v5504_v39 = vand.u32 65535, %v8422_v41 }
 0xbaa   :  { %2442 = vmax.xlane.f32.xlu1 %v2441_v61  ;;  %v2444_v47 = vsel %vm573_vm1, %v8649_v6, -inf  ;;  %v8676_v8 = vcvt.s32.f32 %v5091_v10  ;;  %v5534_v35 = vand.u32 65535, %v8521_v45  ;;  %v5549_v56 = vand.u32 65535, %v8439_v31  ;;  %v10355_v31 = vld [vmem:[#allocation110_spill] sm:$0xff] }
 0xbab   :  { %v8680_v50 = vcvt.s32.f32 %v5121_v14  ;;  %v5506_v22 = vcvt.s32.f32 %v5504_v39 }
 0xbac   :  { %2433 = vmax.xlane.f32.xlu0 %v2432_v21  ;;  %v5476_v21 = vcvt.s32.f32 %v5474_v1  ;;  %v5551_v41 = vcvt.s32.f32 %v5549_v56  ;;  %v10358_v1 = vld [vmem:[#allocation78_spill] sm:$0xff] }
 0xbad   :  { %v8663_v20 = vpop.xlane.xlu0 %5523 }
 0xbae   :  { %5789 = vmin.xlane.f32.xlu1 %v8643_v60  ;;  %vm5525_vm11 = vcmp.eq.f32.partialorder %v8445_v46, %v8663_v20  ;;  %v2611_v46 = vmul.u32 8, %v8505_v13 }
 0xbaf   :  { %v5526_v9 = vsel %vm5525_vm11, %v5521_v53, inf  ;;  %v5536_v53 = vcvt.s32.f32 %v5534_v35 }
 0xbb0   :  { %2439 = vmax.xlane.f32.xlu0 %v2438_v44  ;;  %v2612_v3 = vadd.s32 %v8687_v25, %v2611_v46 }
 0xbb1   :  { %v8719_v48 = vpop.xlane.xlu0 %5553 }
 0xbb4   :  { %2445 = vmax.xlane.f32.xlu0 %v2444_v47  ;;  %v5491_v47 = vcvt.s32.f32 %v5489_v40 }
 0xbb5   :  { %v8732_v14 = vpop.xlane.xlu0 %5583 }
 0xbb6   :  { %v5496_v5 = vsel %vm5495_vm9, %v5491_v47, inf  ;;  %vm5555_vm9 = vcmp.eq.f32.partialorder %v8454_v59, %v8719_v48  ;;  %v10356_v59 = vld [vmem:[#allocation4_spill] sm:$0xff] }
 0xbb7   :  { %v5556_v45 = vsel %vm5555_vm9, %v5551_v41, inf  ;;  %v10361_v47 = vld [vmem:[#allocation112_spill] sm:$0xff] }
 0xbb9   :  { %v8690_v0 = vpop.xlane.xlu1 %5478 }
 0xbba   :  { %vm5480_vm0 = vcmp.eq.f32.partialorder %v8524_v58, %v8690_v0 }
 0xbbb   :  { %v5481_v44 = vsel %vm5480_vm0, %v5476_v21, inf }
 0xbbd   :  { %v8692_v16 = vpop.xlane.xlu1 %5538 }
 0xbbe   :  { %vm5540_vm0 = vcmp.eq.f32.partialorder %v8531_v4, %v8692_v16  ;;  %v10354_v4 = vld [vmem:[#allocation76_spill] sm:$0xff] }
 0xbbf   :  { %2604 = vperm.xlu1 %6043, %v8505_v13   ;;  %v5541_v10 = vsel %vm5540_vm0, %v5536_v53, inf  ;;  %vm5014_vm0 = vcmp.eq.f32.partialorder %v10355_v31, %v10354_v4  ;;  %v10363_v53 = vld [vmem:[#allocation113_spill] sm:$0xff] }
 0xbc0   :  { %v5022_v42 = vsel %vm5014_vm0, %v10345_v24, 8 }
 0xbc1   :  { %v8694_v33 = vpop.xlane.xlu1 %5568  ;;  %v8745_v21 = vsel %vm573_vm1, %v5022_v42, 2147483647 }
 0xbc2   :  { %v5045_v43 = vand.u32 65535, %v8745_v21 }
 0xbe3   :  { %5527 = vmin.xlane.f32.xlu1 %v5526_v9  ;;  %v5021_v9 = vsel %vm5013_vm12, %v10345_v24, 8 }
 0xbe4   :  { %v8736_v19 = vsel %vm573_vm1, %v5021_v9, 2147483647  ;;  %v10365_v9 = vld [vmem:[#allocation114_spill] sm:$0xff] }
 0xbe7   :  { %5094 = vmin.xlane.f32.xlu1 %v8676_v8 }
 0xbeb   :  { %5124 = vmin.xlane.f32.xlu1 %v8680_v50 }
 0xbfc   :  { %2614 = vperm.xlu1 %6043, %v2612_v3   ;;  %v5579_v3 = vand.u32 65535, %v10356_v59 }
 0xc2b   :  { %v8696_v29 = vpop.xlane.xlu1 %2424 }
 0xc2f   :  { %v8698_v7 = vpop.xlane.xlu1 %2436 }
 0xc33   :  { %v8700_v62 = vpop.xlane.xlu1 %2442 }
 0xc37   :  { %v8702_v13 = vpop.xlane.xlu1 %5789 }
 0xc3b   :  { %v2605_v55 = vpop.permute.xlu1 %2604 }
 0xc3c   :  { %vm2606_vm11 = vcmp.eq.s32.totalorder %v2605_v55, %v10345_v24 }
 0xc3d   :  { %v2607_v15 = vsel %vm2606_vm11, %v10353_v38, 0.0  ;;  %vm5510_vm11 = vcmp.eq.f32.partialorder %v8435_v17, %v8656_v54  ;;  %v5564_v17 = vand.u32 65535, %v8528_v34  ;;  %v10357_v34 = vld [vmem:[#allocation6_spill] sm:$0xff]  ;;  %v5581_v38 = vcvt.s32.f32 %v5579_v3 }
 0xc3e   :  { %v2608_v61 = vsel %vm573_vm1, %v2607_v15, 0.0  ;;  %v5511_v58 = vsel %vm5510_vm11, %v5506_v22, inf  ;;  %vm5570_vm11 = vcmp.eq.f32.partialorder %v8535_v51, %v8694_v33  ;;  %vm5585_vm12 = vcmp.eq.f32.partialorder %v10357_v34, %v8732_v14  ;;  %v10359_v51 = vld [vmem:[#allocation111_spill] sm:$0xff] }
 0xc3f   :  { %2609 = vadd.xlane.f32.xlu0 %v2608_v61  ;;  %v5566_v46 = vcvt.s32.f32 %v5564_v17  ;;  %vm5015_vm9 = vcmp.eq.f32.partialorder %v10359_v51, %v10358_v1  ;;  %v5031_v15 = vshra.s32 %v8736_v19, 16  ;;  %v5586_v61 = vsel %vm5585_vm12, %v5581_v38, inf }
 0xc40   :  { %v5023_v40 = vsel %vm5015_vm9, %v10345_v24, 8 }
 0xc41   :  { %v5571_v55 = vsel %vm5570_vm11, %v5566_v46, inf  ;;  %v8750_v39 = vcvt.s32.f32 %v5031_v15  ;;  %v8754_v22 = vsel %vm573_vm1, %v5023_v40, 2147483647 }
 0xc43   :  { %5482 = vmin.xlane.f32.xlu0 %v5481_v44  ;;  %v10360_v44 = vld [vmem:[#allocation77_spill] sm:$0xff] }
 0xc44   :  { %vm5016_vm11 = vcmp.eq.f32.partialorder %v10361_v47, %v10360_v44  ;;  %v5785_v44 = vand.u32 65535, %v8620_v11 }
 0xc45   :  { %v5024_v35 = vsel %vm5016_vm11, %v10345_v24, 8  ;;  %vm5791_vm11 = vcmp.eq.f32.partialorder %v8643_v60, %v8702_v13 }
 0xc46   :  { %v8764_v41 = vsel %vm573_vm1, %v5024_v35, 2147483647  ;;  %v5787_v35 = vcvt.s32.f32 %v5785_v44  ;;  %v10369_v44 = vld [vmem:[#allocation61_spill] sm:$0xff] }
 0xc47   :  { %5497 = vmin.xlane.f32.xlu0 %v5496_v5  ;;  %v5046_v5 = vshra.s32 %v8745_v21, 16  ;;  %v5076_v31 = vshra.s32 %v8764_v41, 16 }
 0xc49   :  { %v8760_v56 = vcvt.s32.f32 %v5046_v5  ;;  %v8778_v3 = vcvt.s32.f32 %v5076_v31 }
 0xc4b   :  { %5512 = vmin.xlane.f32.xlu0 %v5511_v58  ;;  %v10362_v58 = vld [vmem:[#allocation115_spill] sm:$0xff] }
 0xc4c   :  { %vm5018_vm0 = vcmp.eq.f32.partialorder %v10363_v53, %v10362_v58  ;;  %v5792_v58 = vsel %vm5791_vm11, %v5787_v35, inf  ;;  %v8805_v53 = vpop.xlane.xlu0 %2597  ;;  %v5030_v35 = vand.u32 65535, %v8736_v19 }
 0xc4d   :  { %v5026_v17 = vsel %vm5018_vm0, %v10345_v24, 8  ;;  %10366 = vst [vmem:[#allocation81_spill] sm:$0xff] %v8805_v53 }
 0xc4e   :  { %v8774_v46 = vsel %vm573_vm1, %v5026_v17, 2147483647  ;;  %v5032_v53 = vcvt.s32.f32 %v5030_v35 }
 0xc4f   :  { %5542 = vmin.xlane.f32.xlu0 %v5541_v10  ;;  %v5061_v10 = vshra.s32 %v8754_v22, 16 }
 0xc51   :  { %v8770_v4 = vcvt.s32.f32 %v5061_v10  ;;  %v8807_v10 = vpop.xlane.xlu0 %2427 }
 0xc52   :  { %10367 = vst [vmem:[#allocation91_spill] sm:$0xff] %v8807_v10 }
 0xc53   :  { %5557 = vmin.xlane.f32.xlu0 %v5556_v45  ;;  %v10364_v45 = vld [vmem:[#allocation5_spill] sm:$0xff] }
 0xc54   :  { %vm5020_vm12 = vcmp.eq.f32.partialorder %v10365_v9, %v10364_v45 }
 0xc55   :  { %v5028_v59 = vsel %vm5020_vm12, %v10345_v24, 8  ;;  %v8809_v17 = vpop.xlane.xlu0 %2430 }
 0xc56   :  { %v8782_v42 = vsel %vm573_vm1, %v5028_v59, 2147483647 }
 0xc57   :  { %5572 = vmin.xlane.f32.xlu0 %v5571_v55  ;;  %v5106_v55 = vshra.s32 %v8774_v46, 16  ;;  %v5136_v51 = vshra.s32 %v8782_v42, 16 }
 0xc59   :  { %v8787_v1 = vcvt.s32.f32 %v5106_v55  ;;  %v8793_v15 = vcvt.s32.f32 %v5136_v51  ;;  %v8811_v11 = vpop.xlane.xlu0 %2433 }
 0xc5b   :  { %5587 = vmin.xlane.f32.xlu0 %v5586_v61 }
 0xc5f   :  { %5034 = vmin.xlane.f32.xlu0 %v8750_v39 }
 0xc63   :  { %5049 = vmin.xlane.f32.xlu0 %v8760_v56 }
 0xc67   :  { %5064 = vmin.xlane.f32.xlu0 %v8770_v4 }
 0xc6b   :  { %5079 = vmin.xlane.f32.xlu0 %v8778_v3 }
 0xc6c   :  { %v8785_v34 = vpop.xlane.xlu1 %5527 }
 0xc6f   :  { %5109 = vmin.xlane.f32.xlu0 %v8787_v1 }
 0xc70   :  { %v8791_v38 = vpop.xlane.xlu1 %5094 }
 0xc73   :  { %5139 = vmin.xlane.f32.xlu0 %v8793_v15 }
 0xc74   :  { %v8796_v61 = vpop.xlane.xlu1 %5124 }
 0xc78   :  { %v2615_v40 = vpop.permute.xlu1 %2614 }
 0xc79   :  { %vm2616_vm9 = vcmp.eq.s32.totalorder %v2615_v40, %v10345_v24 }
 0xc7a   :  { %v2617_v47 = vsel %vm2616_vm9, %v8547_v57, 0.0  ;;  %v8813_v57 = vpop.xlane.xlu0 %2439 }
 0xc7b   :  { %v2618_v5 = vsel %vm2595_vm10, %v2617_v47, 0.0  ;;  %v10370_v47 = vld [vmem:[#allocation65_spill] sm:$0xff] }
 0xc7c   :  { %2619 = vadd.xlane.f32.xlu0 %v2618_v5  ;;  %vm4569_vm0 = vcmp.eq.f32.partialorder %v10370_v47, %v10369_v44  ;;  %v2450_v44 = vsub.f32 %v8630_v49, %v8811_v11 }
 0xc7e   :  { %v8815_v45 = vpop.xlane.xlu0 %2445  ;;  %v2461_v49 = vmul.f32 1.442695, %v2450_v44 }
 0xc80   :  { %5793 = vmin.xlane.f32.xlu0 %v5792_v58  ;;  %v4577_v58 = vsel %vm4569_vm0, %v10345_v24, 8  ;;  %vm5096_vm0 = vcmp.eq.f32.partialorder %v8676_v8, %v8791_v38 }
 0xc81   :  { %v8843_v32 = vsel %vm573_vm1, %v4577_v58, 2147483647  ;;  %v5047_v58 = vcvt.s32.f32 %v5045_v43  ;;  %v5075_v43 = vand.u32 65535, %v8764_v41  ;;  %v2453_v41 = vsub.f32 %v8625_v36, %v8700_v62 }
 0xc96   :  { %2626 = vperm.xlu0 %6042, %v8687_v25   ;;  %v10371_v25 = vld [vmem:[#allocation103_spill] sm:$0xff] }
 0xc97   :  { %vm4570_vm12 = vcmp.eq.f32.partialorder %v10372_v63, %v10371_v25  ;;  %v5090_v63 = vand.u32 65535, %v8667_v12  ;;  %v2447_v25 = vsub.f32 %v8595_v37, %v8696_v29 }
 0xc98   :  { %v4578_v35 = vsel %vm4570_vm12, %v10345_v24, 8 }
 0xc99   :  { %v8869_v12 = vsel %vm573_vm1, %v4578_v35, 2147483647  ;;  %v2455_v44 = vmul.f32 1.442695, %v2447_v25 }
 0xc9a   :  { %v4602_v36 = vshra.s32 %v8869_v12, 16 }
 0xcc8   :  { %v8817_v9 = vpop.xlane.xlu0 %2609 }
 0xcc9   :  { %10368 = vst [vmem:[#allocation82_spill] sm:$0xff] %v8817_v9  ;;  %v2448_v9 = vsub.f32 %v8605_v28, %v8807_v10  ;;  %v4587_v28 = vshra.s32 %v8843_v32, 16  ;;  %v5060_v10 = vand.u32 65535, %v8754_v22 }
 0xccb   :  { %v2457_v19 = vmul.f32 1.442695, %v2448_v9  ;;  %v8866_v22 = vcvt.s32.f32 %v4587_v28  ;;  %v5092_v9 = vcvt.s32.f32 %v5090_v63 }
 0xccc   :  { %v8819_v60 = vpop.xlane.xlu0 %5482 }
 0xccd   :  { %6252 = vpow2.f32 %v2457_v19  ;;  %v5120_v19 = vand.u32 65535, %v8674_v52  ;;  %v5077_v52 = vcvt.s32.f32 %v5075_v43 }
 0xcce   :  { %6254 = vpow2.f32 %v2461_v49  ;;  %v2467_v49 = vmul.f32 1.442695, %v2453_v41 }
 0xccf   :  { %v5122_v8 = vcvt.s32.f32 %v5120_v19  ;;  %6256 = vpow2.f32 %v2455_v44  ;;  %v5484_v44 = vcvt.f32.s32 %v8819_v60 }
 0xcd0   :  { %v8821_v31 = vpop.xlane.xlu0 %5497 }
 0xcd4   :  { %v8823_v59 = vpop.xlane.xlu0 %5512 }
 0xcd5   :  { %v5514_v19 = vcvt.f32.s32 %v8823_v59  ;;  %v5590_v59 = vcvt.f32.s32 %v8732_v14 }
 0xcd8   :  { %v8825_v55 = vpop.xlane.xlu0 %5542 }
 0xcdc   :  { %v8827_v51 = vpop.xlane.xlu0 %5557 }
 0xce0   :  { %v8829_v40 = vpop.xlane.xlu0 %5572 }
 0xce4   :  { %v8833_v5 = vpop.xlane.xlu0 %5587 }
 0xce8   :  { %v8839_v27 = vpop.xlane.xlu0 %5034 }
 0xce9   :  { %vm5036_vm9 = vcmp.eq.f32.partialorder %v8750_v39, %v8839_v27  ;;  %v2452_v39 = vsub.f32 %v8640_v30, %v8813_v57  ;;  %v5105_v30 = vand.u32 65535, %v8774_v46  ;;  %v5500_v46 = vcvt.f32.s32 %v8654_v18 }
 0xcea   :  { %v5037_v47 = vsel %vm5036_vm9, %v5032_v53, inf  ;;  %vm5126_vm9 = vcmp.eq.f32.partialorder %v8680_v50, %v8796_v61  ;;  %v5485_v18 = vcvt.f32.s32 %v8690_v0  ;;  %v5560_v0 = vcvt.f32.s32 %v8719_v48 }
 0xceb   :  { %5038 = vmin.xlane.f32.xlu1 %v5037_v47  ;;  %v2449_v47 = vsub.f32 %v8616_v2, %v8809_v17  ;;  %v2465_v28 = vmul.f32 1.442695, %v2452_v39  ;;  %v5135_v2 = vand.u32 65535, %v8782_v42  ;;  %v5107_v50 = vcvt.s32.f32 %v5105_v30 }
 0xcec   :  { %v8853_v21 = vpop.xlane.xlu0 %5049  ;;  %v5127_v39 = vsel %vm5126_vm9, %v5122_v8, inf  ;;  %v5501_v43 = vshll.u32 %v5500_v46, 16  ;;  %v5530_v30 = vcvt.f32.s32 %v8663_v20  ;;  %v5486_v41 = vshll.u32 %v5485_v18, 16 }
 0xced   :  { %vm5051_vm11 = vcmp.eq.f32.partialorder %v8760_v56, %v8853_v21  ;;  %v5062_v56 = vcvt.s32.f32 %v5060_v10  ;;  %v5097_v10 = vsel %vm5096_vm0, %v5092_v9, inf  ;;  %v2459_v25 = vmul.f32 1.442695, %v2449_v47  ;;  %v6253_v47 = vpop.eup %6252 }
 0xcee   :  { %v5052_v53 = vsel %vm5051_vm11, %v5047_v58, inf  ;;  %v2451_v58 = vsub.f32 %v8608_v26, %v8698_v7  ;;  %6258 = vpow2.f32 %v2465_v28  ;;  %v5137_v26 = vcvt.s32.f32 %v5135_v2 }
 0xcef   :  { %5053 = vmin.xlane.f32.xlu0 %v5052_v53  ;;  %v5499_v53 = vcvt.f32.s32 %v8821_v31  ;;  %6260 = vpow2.f32 %v2459_v25  ;;  %v5575_v20 = vcvt.f32.s32 %v8694_v33  ;;  %v5544_v48 = vcvt.f32.s32 %v8825_v55 }
 0xcf0   :  { %v8871_v37 = vpop.xlane.xlu0 %5064  ;;  %v2463_v9 = vmul.f32 1.442695, %v2451_v58  ;;  %6262 = vpow2.f32 %v2467_v49  ;;  %v5574_v2 = vcvt.f32.s32 %v8829_v40  ;;  %v2474_v33 = vsel %vm573_vm1, %v6253_v47, 0.0 }
 0xcf1   :  { %vm5066_vm12 = vcmp.eq.f32.partialorder %v8770_v4, %v8871_v37  ;;  %v5515_v4 = vcvt.f32.s32 %v8656_v54  ;;  %v5545_v54 = vcvt.f32.s32 %v8692_v16  ;;  %v2454_v16 = vsub.f32 %v8649_v6, %v8815_v45 }
 0xcf2   :  { %v5067_v35 = vsel %vm5066_vm12, %v5062_v56, inf  ;;  %6264 = vpow2.f32 %v2463_v9  ;;  %v5529_v6 = vcvt.f32.s32 %v8785_v34  ;;  %v5531_v58 = vshll.u32 %v5530_v30, 16 }
 0xcf3   :  { %5068 = vmin.xlane.f32.xlu1 %v5067_v35  ;;  %5098 = vmin.xlane.f32.xlu0 %v5097_v10  ;;  %v5516_v56 = vshll.u32 %v5515_v4, 16  ;;  %v5546_v28 = vshll.u32 %v5545_v54, 16  ;;  %v5502_v35 = vadd.s32 %v5501_v43, %v5499_v53  ;;  %v5487_v10 = vadd.s32 %v5486_v41, %v5484_v44  ;;  %v6255_v4 = vpop.eup %6254 }
 0xcf4   :  { %v8892_v63 = vpop.xlane.xlu0 %5079  ;;  %v2469_v14 = vmul.f32 1.442695, %v2454_v16  ;;  %v5561_v8 = vshll.u32 %v5560_v0, 16  ;;  %v5589_v25 = vcvt.f32.s32 %v8833_v5  ;;  %v5576_v34 = vshll.u32 %v5575_v20, 16  ;;  %v6257_v18 = vpop.eup %6256 }
 0xcf5   :  { %vm5081_vm11 = vcmp.eq.f32.partialorder %v8778_v3, %v8892_v63  ;;  %v5600_v55 = vrot.slane %v5502_v35, %v6856_v23  ;;  %v5591_v40 = vshll.u32 %v5590_v59, 16  ;;  %v5532_v49 = vadd.s32 %v5531_v58, %v5529_v6  ;;  %v10375_v35 = vld [vmem:[#allocation57_spill] sm:$0xff]  ;;  %v10377_v6 = vld [vmem:[#allocation55_spill] sm:$0xff] }
 0xcf6   :  { %v5082_v42 = vsel %vm5081_vm11, %v5077_v52, inf  ;;  %v5559_v52 = vcvt.f32.s32 %v8827_v51  ;;  %6266 = vpow2.f32 %v2469_v14  ;;  %v5577_v54 = vadd.s32 %v5576_v34, %v5574_v2  ;;  %v10378_v34 = vld [vmem:[#allocation105_spill] sm:$0xff] }
 0xcf7   :  { %5083 = vmin.xlane.f32.xlu1 %v5082_v42  ;;  %5128 = vmin.xlane.f32.xlu0 %v5127_v39  ;;  %v5596_v42 = vrot.slane %v5487_v10, %v6856_v23  ;;  %v2480_v5 = vsel %vm573_vm1, %v6255_v4, 0.0  ;;  %v5592_v43 = vadd.s32 %v5591_v40, %v5589_v25  ;;  %v5796_v9 = vcvt.f32.s32 %v8702_v13  ;;  %v10374_v13 = vld [vmem:[#allocation106_spill] sm:$0xff] }
 0xcf8   :  { %v8900_v3 = vpop.xlane.xlu0 %5109  ;;  %v5562_v39 = vadd.s32 %v5561_v8, %v5559_v52  ;;  %v5620_v16 = vrot.slane %v5577_v54, %v6856_v23  ;;  %vm4572_vm9 = vcmp.eq.f32.partialorder %v10375_v35, %v10374_v13  ;;  %v10381_v54 = vld [vmem:[#allocation108_spill] sm:$0xff] }
 0xcf9   :  { %vm5111_vm0 = vcmp.eq.f32.partialorder %v8787_v1, %v8900_v3  ;;  %v5517_v1 = vadd.s32 %v5516_v56, %v5514_v19  ;;  %v5608_v19 = vrot.slane %v5532_v49, %v6856_v23  ;;  %v5797_v10 = vshll.u32 %v5796_v9, 16  ;;  %v10383_v9 = vld [vmem:[#allocation107_spill] sm:$0xff] }
 0xcfa   :  { %v5112_v31 = vsel %vm5111_vm0, %v5107_v50, inf  ;;  %v5547_v50 = vadd.s32 %v5546_v28, %v5544_v48  ;;  %v5616_v30 = vrot.slane %v5562_v39, %v6856_v23  ;;  %v5624_v28 = vrot.slane %v5592_v43, %v6856_v23  ;;  %v10376_v48 = vld [vmem:[#allocation104_spill] sm:$0xff] }
 0xcfb   :  { %5113 = vmin.xlane.f32.xlu1 %v5112_v31  ;;  %4590 = vmin.xlane.f32.xlu0 %v8866_v22  ;;  %v5604_v51 = vrot.slane %v5517_v1, %v6856_v23  ;;  %v6259_v53 = vpop.eup %6258  ;;  %v2471_v31 = vsel %vm573_vm1, %v6257_v18, 0.0  ;;  %vm4571_vm11 = vcmp.eq.f32.partialorder %v10377_v6, %v10376_v48  ;;  %v4580_v58 = vsel %vm4572_vm9, %v10345_v24, 8 }
 0xcfc   :  { %v8913_v60 = vpop.xlane.xlu0 %5139  ;;  %v5612_v56 = vrot.slane %v5547_v50, %v6856_v23  ;;  %v6261_v0 = vpop.eup %6260  ;;  %v2486_v47 = vsel %vm573_vm1, %v6259_v53, 0.0  ;;  %v4579_v25 = vsel %vm4571_vm11, %v10345_v24, 8 }
 0xcfd   :  { %vm5141_vm12 = vcmp.eq.f32.partialorder %v8793_v15, %v8913_v60  ;;  %v8926_v15 = vcvt.s32.f32 %v4602_v36  ;;  %v6263_v59 = vpop.eup %6262 }
 0xcfe   :  { %v5142_v46 = vsel %vm5141_vm12, %v5137_v26, inf  ;;  %v5625_v26 = vsel %vm710_vm2, %v5600_v55, %v5596_v42  ;;  %v2489_v4 = vsel %vm573_vm1, %v6263_v59, 0.0  ;;  %v8967_v42 = vsel %vm573_vm1, %v4580_v58, 2147483647  ;;  %v10386_v59 = vld [vmem:[#allocation62_spill] sm:$0xff] }
 0xcff   :  { %5143 = vmin.xlane.f32.xlu1 %v5142_v46  ;;  %2475 = vadd.xlane.f32.xlu0 %v2474_v33  ;;  %v5626_v36 = vsel %vm712_vm3, %v5604_v51, %v5625_v26  ;;  %v6265_v1 = vpop.eup %6264  ;;  %v2477_v33 = vsel %vm573_vm1, %v6261_v0, 0.0  ;;  %v10379_v51 = vld [vmem:[#allocation56_spill] sm:$0xff]  ;;  %v8973_v26 = vsel %vm573_vm1, %v4579_v25, 2147483647 }
 0xd00   :  { %v5627_v41 = vsel %vm714_vm4, %v5608_v19, %v5626_v36  ;;  %vm4573_vm0 = vcmp.eq.f32.partialorder %v10379_v51, %v10378_v34  ;;  %v2483_v50 = vsel %vm573_vm1, %v6265_v1, 0.0  ;;  %v10384_v19 = vld [vmem:[#allocation59_spill] sm:$0xff]  ;;  %v10387_v51 = vld [vmem:[#allocation8_spill] sm:$0xff] }
 0xd01   :  { %v5628_v20 = vsel %vm716_vm5, %v5612_v56, %v5627_v41  ;;  %v4581_v43 = vsel %vm4573_vm0, %v10345_v24, 8  ;;  %v4632_v56 = vshra.s32 %v8967_v42, 16  ;;  %vm4575_vm11 = vcmp.eq.f32.partialorder %v10384_v19, %v10383_v9 }
 0xd02   :  { %v5629_v52 = vsel %vm718_vm6, %v5616_v30, %v5628_v20  ;;  %v8985_v41 = vsel %vm573_vm1, %v4581_v43, 2147483647 }
 0xd03   :  { %4605 = vmin.xlane.f32.xlu1 %v8926_v15  ;;  %2481 = vadd.xlane.f32.xlu0 %v2480_v5  ;;  %v5630_v2 = vsel %vm720_vm7, %v5620_v16, %v5629_v52  ;;  %v6267_v39 = vpop.eup %6266  ;;  %v10382_v5 = vld [vmem:[#allocation60_spill] sm:$0xff]  ;;  %v8988_v13 = vcvt.s32.f32 %v4632_v56  ;;  %v4647_v6 = vshra.s32 %v8985_v41, 16 }
 0xd04   :  { %v5631_v8 = vsel %vm722_vm8, %v5624_v28, %v5630_v2  ;;  %vm4574_vm9 = vcmp.eq.f32.partialorder %v10382_v5, %v10381_v54  ;;  %v2492_v30 = vsel %vm573_vm1, %v6267_v39, 0.0  ;;  %v4583_v28 = vsel %vm4575_vm11, %v10345_v24, 8  ;;  %v10388_v39 = vld [vmem:[#allocation80_spill] sm:$0xff]  ;;  %v9027_v54 = vld [vmem:[%s10029_s8 + $0x18] sm:$0xff] }
 0xd05   :  { %v8937_v44 = vpop.xlane.xlu0 %2619  ;;  %v5632_v49 = vsel %vm393_vm15, %v5631_v8, %v10345_v24  ;;  %v4582_v0 = vsel %vm4574_vm9, %v10345_v24, 8 }
 0xd06   :  { %10373 = vst [vmem:[#allocation45_spill] sm:$0xff] %v8937_v44  ;;  %v8991_v20 = vsel %vm573_vm1, %v4582_v0, 2147483647 }
 0xd07   :  { %2472 = vadd.xlane.f32.xlu1 %v2471_v31  ;;  %2487 = vadd.xlane.f32.xlu0 %v2486_v47  ;;  %v4617_v31 = vshra.s32 %v8973_v26, 16  ;;  %v10385_v47 = vld [vmem:[#allocation109_spill] sm:$0xff] }
 0xd09   :  { %v5794_v14 = vpop.xlane.xlu0 %5793  ;;  %v8995_v48 = vcvt.s32.f32 %v4617_v31 }
 0xd0a   :  { %v5795_v46 = vcvt.f32.s32 %v5794_v14  ;;  %v4662_v14 = vshra.s32 %v8991_v20, 16 }
 0xd0b   :  { %2478 = vadd.xlane.f32.xlu1 %v2477_v33  ;;  %2490 = vadd.xlane.f32.xlu0 %v2489_v4  ;;  %v9006_v33 = vcvt.s32.f32 %v4647_v6 }
 0xd0c   :  { %v8955_v55 = vadd.s32 %v5797_v10, %v5795_v46  ;;  %v8999_v10 = vsel %vm573_vm1, %v4583_v28, 2147483647  ;;  %v9010_v58 = vcvt.s32.f32 %v4662_v14 }
 0xd0d   :  { %v4677_v4 = vshra.s32 %v8999_v10, 16 }
 0xd0e   :  { %vm5802_vm12 = vcmp.eq.s32.totalorder %v8955_v55, %v10345_v24 }
 0xd0f   :  { %2484 = vadd.xlane.f32.xlu1 %v2483_v50  ;;  %v5803_v18 = vsel %vm5802_vm12, %v5632_v49, 0  ;;  %vm4576_vm12 = vcmp.eq.f32.partialorder %v10386_v59, %v10385_v47  ;;  %v9015_v25 = vcvt.s32.f32 %v4677_v4  ;;  %v10391_v4 = vld [vmem:[#allocation32_spill] sm:$0xff] }
 0xd10   :  { %v5804_v53 = vsel %vm573_vm1, %v5803_v18, 0  ;;  %v4584_v1 = vsel %vm4576_vm12, %v10345_v24, 8  ;;  %v2633_v18 = vmul.u32 8, %v10388_v39 }
 0xd11   :  { %v5806_v36 = vshrl.u32 %v5804_v53, 16  ;;  %v5805_v35 = vand.u32 65535, %v5804_v53  ;;  %v9004_v2 = vsel %vm573_vm1, %v4584_v1, 2147483647  ;;  %v2627_v46 = vpop.permute.xlu0 %2626 }
 0xd12   :  { %v4692_v8 = vshra.s32 %v9004_v2, 16  ;;  %vm2628_vm0 = vcmp.eq.s32.totalorder %v2627_v46, %v10345_v24  ;;  %v2634_v5 = vadd.s32 %v9027_v54, %v2633_v18  ;;  %v10390_v46 = vld [vmem:[#allocation101_spill] sm:$0xff] }
 0xd13   :  { %2493 = vadd.xlane.f32.xlu1 %v2492_v30  ;;  %v5808_v16 = vcvt.s32.f32 %v5806_v36  ;;  %v5807_v52 = vcvt.s32.f32 %v5805_v35  ;;  %v2629_v50 = vsel %vm2628_vm0, %v10387_v51, 0.0  ;;  %v4586_v30 = vand.u32 65535, %v8843_v32  ;;  %v10394_v51 = vld [vmem:[#allocation97_spill] sm:$0xff] }
 0xd14   :  { %v9018_v34 = vcvt.s32.f32 %v4692_v8  ;;  %v2630_v49 = vsel %vm573_vm1, %v2629_v50, 0.0  ;;  %v4601_v35 = vand.u32 65535, %v8869_v12  ;;  %vm4129_vm12 = vcmp.eq.f32.partialorder %v10391_v4, %v10390_v46  ;;  %v10393_v8 = vld [vmem:[#allocation33_spill] sm:$0xff]  ;;  %v10395_v50 = vld [vmem:[#allocation26_spill] sm:$0xff] }
 0xd15   :  { %5811 = vadd.xlane.f32.xlu0 %v5808_v16  ;;  %v4588_v31 = vcvt.s32.f32 %v4586_v30  ;;  %v4137_v39 = vsel %vm4129_vm12, %v10345_v24, 8  ;;  %v10397_v30 = vld [vmem:[#allocation28_spill] sm:$0xff] }
 0xd16   :  { %v4603_v6 = vcvt.s32.f32 %v4601_v35 }
 0xd17   :  { %4635 = vmin.xlane.f32.xlu1 %v8988_v13 }
 0xd19   :  { %4620 = vmin.xlane.f32.xlu0 %v8995_v48 }
 0xd1b   :  { %5809 = vadd.xlane.f32.xlu1 %v5807_v52 }
 0xd1d   :  { %4650 = vmin.xlane.f32.xlu0 %v9006_v33 }
 0xd1f   :  { %4665 = vmin.xlane.f32.xlu1 %v9010_v58 }
 0xd21   :  { %4680 = vmin.xlane.f32.xlu0 %v9015_v25 }
 0xd23   :  { %4695 = vmin.xlane.f32.xlu1 %v9018_v34 }
 0xd25   :  { %2631 = vadd.xlane.f32.xlu0 %v2630_v49 }
 0xd34   :  { %2636 = vperm.xlu1 %6043, %v2634_v5   ;;  %v10396_v5 = vld [vmem:[#allocation98_spill] sm:$0xff] }
 0xd74   :  { %v9030_v53 = vpop.xlane.xlu1 %5038 }
 0xd78   :  { %v9032_v43 = vpop.xlane.xlu0 %5053 }
 0xd7c   :  { %v9034_v36 = vpop.xlane.xlu0 %5098  ;;  %v9036_v56 = vpop.xlane.xlu1 %5068 }
 0xd80   :  { %v9038_v9 = vpop.xlane.xlu0 %5128  ;;  %v9040_v19 = vpop.xlane.xlu1 %5083 }
 0xd84   :  { %v9043_v0 = vpop.xlane.xlu0 %4590  ;;  %v9045_v16 = vpop.xlane.xlu1 %5113 }
 0xd85   :  { %10389 = vst [vmem:[#allocation9_spill] sm:$0xff] %v9043_v0  ;;  %vm4592_vm9 = vcmp.eq.f32.partialorder %v8866_v22, %v9043_v0  ;;  %v10392_v22 = vld [vmem:[#allocation64_spill] sm:$0xff] }
 0xd86   :  { %v4593_v47 = vsel %vm4592_vm9, %v4588_v31, inf  ;;  %vm4131_vm0 = vcmp.eq.f32.partialorder %v10393_v8, %v10392_v22  ;;  %vm4125_vm9 = vcmp.eq.f32.partialorder %v10395_v50, %v10394_v51  ;;  %v10400_v8 = vld [vmem:[#allocation99_spill] sm:$0xff]  ;;  %v10401_v51 = vld [vmem:[#allocation30_spill] sm:$0xff] }
 0xd87   :  { %4594 = vmin.xlane.f32.xlu0 %v4593_v47  ;;  %v4139_v18 = vsel %vm4131_vm0, %v10345_v24, 8  ;;  %v9068_v47 = vsel %vm573_vm1, %v4137_v39, 2147483647  ;;  %vm4127_vm12 = vcmp.eq.f32.partialorder %v10401_v51, %v10400_v8  ;;  %v4616_v39 = vand.u32 65535, %v8973_v26 }
 0xd88   :  { %v2476_v59 = vpop.xlane.xlu0 %2475  ;;  %v9049_v28 = vpop.xlane.xlu1 %5143  ;;  %10398 = vst [vmem:[#allocation2_spill] sm:$0xff] %v9068_v47  ;;  %v9071_v35 = vsel %vm573_vm1, %v4139_v18, 2147483647  ;;  %v4203_v4 = vshra.s32 %v9068_v47, 16  ;;  %v4661_v18 = vand.u32 65535, %v8991_v20  ;;  %v9092_v8 = vsel %vm4127_vm12, %v10345_v24, 8 }
 0xd89   :  { %10399 = vst [vmem:[#allocation76_spill] sm:$0xff] %v9071_v35  ;;  %v4233_v22 = vshra.s32 %v9071_v35, 16  ;;  %v5056_v20 = vcvt.f32.s32 %v8853_v21  ;;  %v5101_v47 = vcvt.f32.s32 %v8791_v38  ;;  %v5131_v21 = vcvt.f32.s32 %v8796_v61 }
 0xd8a   :  { %v9094_v26 = vcvt.s32.f32 %v4203_v4  ;;  %v4663_v35 = vcvt.s32.f32 %v4661_v18  ;;  %vm5799_vm0 = vcmp.eq.s32.totalorder %v10345_v24, 7  ;;  %v5040_v38 = vcvt.f32.s32 %v9030_v53 }
 0xd8b   :  { %v5800_v61 = vcvt.s32.f32 %v8955_v55  ;;  %vm5817_vm12 = vcmp.eq.s32.totalorder %v10345_v24, 6 }
 0xd8c   :  { %v9052_v1 = vpop.xlane.xlu1 %4605  ;;  %v2482_v32 = vpop.xlane.xlu0 %2481 }
 0xd8d   :  { %vm4607_vm11 = vcmp.eq.f32.partialorder %v8926_v15, %v9052_v1  ;;  %v4133_v15 = vsel %vm4125_vm9, %v10345_v24, 8 }
 0xd8e   :  { %v4608_v52 = vsel %vm4607_vm11, %v4603_v6, inf  ;;  %vm4126_vm11 = vcmp.eq.f32.partialorder %v10397_v30, %v10396_v5  ;;  %v4676_v5 = vand.u32 65535, %v8999_v10  ;;  %v4691_v30 = vand.u32 65535, %v9004_v2 }
 0xd8f   :  { %4609 = vmin.xlane.f32.xlu0 %v4608_v52  ;;  %v9074_v52 = vsel %vm573_vm1, %v4133_v15, 2147483647  ;;  %v4134_v46 = vsel %vm4126_vm11, %v10345_v24, 8  ;;  %v4618_v2 = vcvt.s32.f32 %v4616_v39 }
 0xd90   :  { %v2473_v14 = vpop.xlane.xlu1 %2472  ;;  %v2488_v12 = vpop.xlane.xlu0 %2487  ;;  %v9089_v44 = vsel %vm573_vm1, %v4134_v46, 2147483647 }
 0xd91   :  { %6268 = vlog2.f32 %v2473_v14  ;;  %v4646_v14 = vand.u32 65535, %v8985_v41  ;;  %v5041_v41 = vcvt.f32.s32 %v8839_v27  ;;  %v9109_v27 = vcvt.s32.f32 %v4691_v30 }
 0xd93   :  { %v4648_v46 = vcvt.s32.f32 %v4646_v14  ;;  %v5042_v39 = vshll.u32 %v5041_v41, 16  ;;  %v5057_v14 = vshll.u32 %v5056_v20, 16  ;;  %v5116_v41 = vcvt.f32.s32 %v8900_v3 }
 0xd94   :  { %v2479_v49 = vpop.xlane.xlu1 %2478  ;;  %v2491_v6 = vpop.xlane.xlu0 %2490 }
 0xd95   :  { %6270 = vlog2.f32 %v2479_v49  ;;  %v4631_v49 = vand.u32 65535, %v8967_v42  ;;  %v9096_v42 = vcvt.s32.f32 %v4233_v22  ;;  %v9107_v22 = vcvt.s32.f32 %v4676_v5 }
 0xd96   :  { %6272 = vlog2.f32 %v2476_v59 }
 0xd97   :  { %v4633_v15 = vcvt.s32.f32 %v4631_v49 }
 0xd98   :  { %v2485_v31 = vpop.xlane.xlu1 %2484 }
 0xd99   :  { %6274 = vlog2.f32 %v2485_v31  ;;  %v5071_v31 = vcvt.f32.s32 %v8871_v37  ;;  %v5055_v37 = vcvt.f32.s32 %v9032_v43 }
 0xd9a   :  { %6276 = vlog2.f32 %v2482_v32  ;;  %v5086_v32 = vcvt.f32.s32 %v8892_v63 }
 0xd9b   :  { %6278 = vlog2.f32 %v2488_v12  ;;  %v5072_v49 = vshll.u32 %v5071_v31, 16  ;;  %v5070_v31 = vcvt.f32.s32 %v9036_v56 }
 0xd9c   :  { %v2494_v50 = vpop.xlane.xlu1 %2493  ;;  %v5087_v0 = vshll.u32 %v5086_v32, 16  ;;  %6280 = vlog2.f32 %v2491_v6 }
 0xd9d   :  { %6282 = vlog2.f32 %v2494_v50  ;;  %v5801_v50 = vsel %vm5799_vm0, %v5800_v61, 0.0 }
 0xd9e   :  { %v5812_v59 = vpop.xlane.xlu0 %5811  ;;  %v6269_v30 = vpop.eup %6268 }
 0xd9f   :  { %v5814_v51 = vcvt.f32.s32 %v5812_v59  ;;  %v2496_v6 = vmul.f32 0.6931472, %v6269_v30 }
 0xda0   :  { %v9101_v10 = vpop.xlane.xlu1 %4635 }
 0xda1   :  { %v5815_v63 = vshll.u32 %v5814_v51, 16  ;;  %vm4637_vm11 = vcmp.eq.f32.partialorder %v8988_v13, %v9101_v10  ;;  %v5043_v13 = vadd.s32 %v5042_v39, %v5040_v38  ;;  %v5100_v38 = vcvt.f32.s32 %v9034_v36 }
 0xda2   :  { %v9105_v4 = vpop.xlane.xlu0 %4620  ;;  %v6271_v12 = vpop.eup %6270  ;;  %v4638_v51 = vsel %vm4637_vm11, %v4633_v15, inf  ;;  %v2511_v61 = vadd.f32 %v2496_v6, %v8696_v29  ;;  %v10404_v29 = vld [vmem:[#allocation91_spill] sm:$0xff]  ;;  %v5145_v6 = vcvt.f32.s32 %v9049_v28 }
 0xda3   :  { %vm4622_vm9 = vcmp.eq.f32.partialorder %v8995_v48, %v9105_v4  ;;  %v5058_v48 = vadd.s32 %v5057_v14, %v5055_v37  ;;  %v6273_v20 = vpop.eup %6272  ;;  %v2500_v32 = vmul.f32 0.6931472, %v6271_v12  ;;  %v5152_v30 = vrot.slane %v5043_v13, %v6856_v23 }
 0xda4   :  { %v5810_v18 = vpop.xlane.xlu1 %5809  ;;  %v4623_v5 = vsel %vm4622_vm9, %v4618_v2, inf  ;;  %v5085_v2 = vcvt.f32.s32 %v9040_v19  ;;  %v5102_v19 = vshll.u32 %v5101_v47, 16  ;;  %v5132_v47 = vshll.u32 %v5131_v21, 16 }
 0xda5   :  { %v5813_v59 = vcvt.f32.s32 %v5810_v18  ;;  %4624 = vmin.xlane.f32.xlu0 %v4623_v5  ;;  %v5156_v14 = vrot.slane %v5058_v48, %v6856_v23  ;;  %v2498_v18 = vmul.f32 0.6931472, %v6273_v20  ;;  %v10402_v48 = vld [vmem:[#allocation100_spill] sm:$0xff]  ;;  %v10403_v20 = vld [vmem:[#allocation27_spill] sm:$0xff]  ;;  %v2513_v36 = vadd.f32 %v2500_v32, %v8809_v17  ;;  %v9175_v32 = vld [vmem:[%s10030_s6] ss:$0 sm:$0xff] }
 0xda6   :  { %v9118_v43 = vpop.xlane.xlu0 %4650  ;;  %v6275_v56 = vpop.eup %6274  ;;  %vm4128_vm0 = vcmp.eq.f32.partialorder %v10403_v20, %v10402_v48 }
 0xda7   :  { %v9123_v53 = vadd.s32 %v5815_v63, %v5813_v59  ;;  %vm4652_vm9 = vcmp.eq.f32.partialorder %v9006_v33, %v9118_v43  ;;  %v6277_v39 = vpop.eup %6276  ;;  %v5088_v63 = vadd.s32 %v5087_v0, %v5085_v2  ;;  %v5115_v59 = vcvt.f32.s32 %v9045_v16 }
 0xda8   :  { %v9128_v55 = vpop.xlane.xlu1 %4665  ;;  %v4653_v37 = vsel %vm4652_vm9, %v4648_v46, inf  ;;  %v5073_v46 = vadd.s32 %v5072_v49, %v5070_v31  ;;  %v2504_v0 = vmul.f32 0.6931472, %v6275_v56  ;;  %v5146_v16 = vcvt.f32.s32 %v8913_v60 }
 0xda9   :  { %v5818_v3 = vcvt.s32.f32 %v9123_v53  ;;  %4639 = vmin.xlane.f32.xlu0 %v4638_v51  ;;  %vm4667_vm13 = vcmp.eq.f32.partialorder %v9010_v58, %v9128_v55  ;;  %4654 = vmin.xlane.f32.xlu1 %v4653_v37  ;;  %v5181_v21 = vsel %vm710_vm2, %v5156_v14, %v5152_v30  ;;  %v2512_v49 = vadd.f32 %v2498_v18, %v10404_v29  ;;  %v6279_v58 = vpop.eup %6278 }
 0xdaa   :  { %v9142_v15 = vpop.xlane.xlu0 %4680  ;;  %v4668_v12 = vsel %vm4667_vm13, %v4663_v35, inf  ;;  %v2502_v31 = vmul.f32 0.6931472, %v6277_v39  ;;  %v5103_v35 = vadd.s32 %v5102_v19, %v5100_v38  ;;  %v5164_v17 = vrot.slane %v5088_v63, %v6856_v23  ;;  %v6281_v37 = vpop.eup %6280 }
 0xdab   :  { %v9140_v33 = vsel %vm5817_vm12, %v5818_v3, %v5801_v50  ;;  %v5117_v3 = vshll.u32 %v5116_v41, 16  ;;  %vm4682_vm11 = vcmp.eq.f32.partialorder %v9015_v25, %v9142_v15  ;;  %v5160_v41 = vrot.slane %v5073_v46, %v6856_v23 }
 0xdac   :  { %v9146_v5 = vpop.xlane.xlu1 %4695  ;;  %v2530_v25 = vrot.slane %v2511_v61, %v6856_v23  ;;  %v4683_v60 = vsel %vm4682_vm11, %v9107_v22, inf  ;;  %v2538_v51 = vrot.slane %v2513_v36, %v6856_v23  ;;  %v2515_v50 = vadd.f32 %v2504_v0, %v8698_v7  ;;  %v6283_v7 = vpop.eup %6282 }
 0xdad   :  { %4669 = vmin.xlane.f32.xlu0 %v4668_v12  ;;  %4206 = vmin.xlane.f32.xlu1 %v9094_v26  ;;  %v5118_v2 = vadd.s32 %v5117_v3, %v5115_v59  ;;  %vm4697_vm12 = vcmp.eq.f32.partialorder %v9018_v34, %v9146_v5  ;;  %v5130_v56 = vcvt.f32.s32 %v9038_v9  ;;  %v2534_v22 = vrot.slane %v2512_v49, %v6856_v23 }
 0xdae   :  { %v2514_v19 = vadd.f32 %v2502_v31, %v8811_v11  ;;  %v2506_v14 = vmul.f32 0.6931472, %v6279_v58  ;;  %v5147_v18 = vshll.u32 %v5146_v16, 16  ;;  %v5168_v39 = vrot.slane %v5103_v35, %v6856_v23 }
 0xdaf   :  { %v5182_v38 = vsel %vm712_vm3, %v5160_v41, %v5181_v21  ;;  %v5172_v59 = vrot.slane %v5118_v2, %v6856_v23  ;;  %v2559_v9 = vsel %vm710_vm2, %v2534_v22, %v2530_v25  ;;  %v4698_v11 = vsel %vm4697_vm12, %v9109_v27, inf }
 0xdb0   :  { %v2637_v13 = vpop.permute.xlu1 %2636  ;;  %v5183_v63 = vsel %vm714_vm4, %v5164_v17, %v5182_v38  ;;  %v5148_v30 = vadd.s32 %v5147_v18, %v5145_v6  ;;  %v2508_v61 = vmul.f32 0.6931472, %v6281_v37  ;;  %v2560_v12 = vsel %vm712_vm3, %v2538_v51, %v2559_v9  ;;  %v10408_v38 = vld [vmem:[#allocation102_spill] sm:$0xff] }
 0xdb1   :  { %vm2638_vm13 = vcmp.eq.s32.totalorder %v2637_v13, %v10345_v24  ;;  %4684 = vmin.xlane.f32.xlu0 %v4683_v60  ;;  %4236 = vmin.xlane.f32.xlu1 %v9096_v42  ;;  %v2546_v3 = vrot.slane %v2515_v50, %v6856_v23  ;;  %v5133_v36 = vadd.s32 %v5132_v47, %v5130_v56  ;;  %v2510_v21 = vmul.f32 0.6931472, %v6283_v7 }
 0xdb2   :  { %v2639_v28 = vsel %vm2638_vm13, %v9175_v32, 0.0  ;;  %v2542_v0 = vrot.slane %v2514_v19, %v6856_v23  ;;  %v2516_v16 = vadd.f32 %v2506_v14, %v8813_v57  ;;  %v10405_v29 = vshra.s32 %v9074_v52, 16 }
 0xdb3   :  { %v2640_v46 = vsel %vm2595_vm10, %v2639_v28, 0.0  ;;  %v4158_v34 = vshra.s32 %v9089_v44, 16  ;;  %v4136_v27 = vsel %vm4128_vm0, %v10345_v24, 8  ;;  %v5184_v31 = vsel %vm716_vm5, %v5168_v39, %v5183_v63 }
 0xdb4   :  { %v9198_v49 = vcvt.s32.f32 %v10405_v29  ;;  %v9208_v47 = vsel %vm573_vm1, %v9092_v8, 2147483647  ;;  %v2561_v57 = vsel %vm714_vm4, %v2542_v0, %v2560_v12  ;;  %v5185_v58 = vsel %vm718_vm6, %v5172_v59, %v5184_v31 }
 0xdb5   :  { %4699 = vmin.xlane.f32.xlu0 %v4698_v11  ;;  %2641 = vadd.xlane.f32.xlu1 %v2640_v46  ;;  %v5180_v35 = vrot.slane %v5148_v30, %v6856_v23  ;;  %v2517_v41 = vadd.f32 %v2508_v61, %v8700_v62  ;;  %v2562_v17 = vsel %vm716_vm5, %v2546_v3, %v2561_v57  ;;  %v9219_v8 = vcvt.s32.f32 %v4158_v34  ;;  %v10409_v46 = vld [vmem:[#allocation29_spill] sm:$0xff]  ;;  %v10410_v11 = vld [vmem:[#allocation63_spill] sm:$0xff] }
 0xdb6   :  { %v5176_v48 = vrot.slane %v5133_v36, %v6856_v23  ;;  %v2550_v20 = vrot.slane %v2516_v16, %v6856_v23  ;;  %v2518_v2 = vadd.f32 %v2510_v21, %v8815_v45  ;;  %v4173_v13 = vshra.s32 %v9208_v47, 16  ;;  %v10411_v30 = vld [vmem:[#allocation31_spill] sm:$0xff] }
 0xdb7   :  { %v9223_v6 = vsel %vm573_vm1, %v4136_v27, 2147483647  ;;  %v2554_v60 = vrot.slane %v2517_v41, %v6856_v23  ;;  %vm5820_vm9 = vcmp.eq.s32.totalorder %v9123_v53, %v10345_v24  ;;  %v10407_v53 = vld [vmem:[#allocation79_spill] sm:$0xff]  ;;  %vm4130_vm0 = vcmp.eq.f32.partialorder %v10409_v46, %v10408_v38  ;;  %v9274_v27 = vpop.xlane.xlu0 %2631 }
 0xdb8   :  { %v2563_v25 = vsel %vm718_vm6, %v2550_v20, %v2562_v17  ;;  %v5186_v62 = vsel %vm720_vm7, %v5176_v48, %v5185_v58  ;;  %v2558_v50 = vrot.slane %v2518_v2, %v6856_v23  ;;  %v9233_v45 = vcvt.s32.f32 %v4173_v13  ;;  %v10412_v58 = vld [vmem:[#allocation95_spill] sm:$0xff]  ;;  %v10414_v2 = vld [vmem:[#allocation34_spill] sm:$0xff]  ;;  %v10415_v13 = vld [vmem:[#allocation88_spill] sm:$0xff] }
 0xdb9   :  { %4146 = vmin.xlane.f32.xlu0 %v9198_v49  ;;  %v5187_v51 = vsel %vm722_vm8, %v5180_v35, %v5186_v62  ;;  %v4188_v28 = vshra.s32 %v9223_v6, 16  ;;  %v2564_v37 = vsel %vm720_vm7, %v2554_v60, %v2563_v25  ;;  %v4138_v9 = vsel %vm4130_vm0, %v10345_v24, 8  ;;  %v10413_v35 = vld [vmem:[#allocation86_spill] sm:$0xff]  ;;  %v10416_v25 = vld [vmem:[#allocation9_spill] sm:$0xff] }
 0xdba   :  { %v5188_v22 = vsel %vm387_vm14, %v5187_v51, %v10345_v24  ;;  %v2565_v14 = vsel %vm722_vm8, %v2558_v50, %v2564_v37  ;;  %vm4132_vm14 = vcmp.eq.f32.partialorder %v10411_v30, %v10410_v11  ;;  %v9259_v3 = vsel %vm573_vm1, %v4138_v9, 2147483647  ;;  %v10418_v9 = vld [vmem:[#allocation36_spill] sm:$0xff]  ;;  %v10419_v11 = vld [vmem:[#allocation90_spill] sm:$0xff] }
 0xdbb   :  { %v5821_v19 = vsel %vm5820_vm9, %v5188_v22, 0  ;;  %v9242_v7 = vcvt.s32.f32 %v4188_v28  ;;  %v9249_v39 = vsel %vm393_vm15, %v2565_v14, %v10407_v53  ;;  %v4140_v40 = vsel %vm4132_vm14, %v10345_v24, 8  ;;  %v10417_v14 = vld [vmem:[#allocation2_spill] sm:$0xff] }
 0xdbc   :  { %v5822_v18 = vsel %vm573_vm1, %v5821_v19, 0  ;;  %v2568_v59 = vsel %vm573_vm1, %v9249_v39, -inf  ;;  %v4218_v0 = vshra.s32 %v9259_v3, 16  ;;  %v9264_v16 = vsel %vm573_vm1, %v4140_v40, 2147483647 }
 0xdbd   :  { %4161 = vmin.xlane.f32.xlu0 %v9219_v8  ;;  %v5824_v63 = vshrl.u32 %v5822_v18, 16  ;;  %v5823_v12 = vand.u32 65535, %v5822_v18  ;;  %v4248_v29 = vshra.s32 %v9264_v16, 16  ;;  %vm3684_vm15 = vcmp.eq.f32.partialorder %v10413_v35, %v10412_v58 }
 0xdbe   :  { %v9266_v21 = vcvt.s32.f32 %v4218_v0  ;;  %v4612_v17 = vcvt.f32.s32 %v9052_v1  ;;  %v3692_v48 = vsel %vm3684_vm15, %v10345_v24, 8  ;;  %v4627_v20 = vcvt.f32.s32 %v9105_v4 }
 0xdbf   :  { %v5826_v61 = vcvt.s32.f32 %v5824_v63  ;;  %v5825_v36 = vcvt.s32.f32 %v5823_v12  ;;  %v9270_v34 = vcvt.s32.f32 %v4248_v29  ;;  %vm3686_vm11 = vcmp.eq.f32.partialorder %v10415_v13, %v10414_v2 }
 0xdc0   :  { %v4597_v62 = vcvt.f32.s32 %v10416_v25  ;;  %v4642_v60 = vcvt.f32.s32 %v9101_v10  ;;  %v4613_v37 = vshll.u32 %v4612_v17, 16  ;;  %v4202_v1 = vand.u32 65535, %v10417_v14 }
 0xdc1   :  { %4176 = vmin.xlane.f32.xlu0 %v9233_v45  ;;  %v3694_v18 = vsel %vm3686_vm11, %v10345_v24, 8  ;;  %v4628_v53 = vshll.u32 %v4627_v20, 16  ;;  %v4657_v4 = vcvt.f32.s32 %v9118_v43  ;;  %v9289_v38 = vsel %vm573_vm1, %v3692_v48, 2147483647 }
 0xdc2   :  { %v4598_v46 = vshll.u32 %v4597_v62, 16  ;;  %v4643_v63 = vshll.u32 %v4642_v60, 16  ;;  %v4672_v10 = vcvt.f32.s32 %v9128_v55  ;;  %vm3688_vm13 = vcmp.eq.f32.partialorder %v10419_v11, %v10418_v9 }
 0xdc3   :  { %v4687_v30 = vcvt.f32.s32 %v9142_v15  ;;  %v3744_v55 = vshra.s32 %v9289_v38, 16  ;;  %v9301_v58 = vsel %vm573_vm1, %v3694_v18, 2147483647  ;;  %v3696_v15 = vsel %vm3688_vm13, %v10345_v24, 8 }
 0xdc4   :  { %v4673_v35 = vshll.u32 %v4672_v10, 16  ;;  %v4702_v20 = vcvt.f32.s32 %v9146_v5  ;;  %v9314_v5 = vsel %vm573_vm1, %v3696_v15, 2147483647  ;;  %vm5835_vm9 = vcmp.eq.s32.totalorder %v10345_v24, 5 }
 0xdc5   :  { %4191 = vmin.xlane.f32.xlu0 %v9242_v7  ;;  %v4688_v48 = vshll.u32 %v4687_v30, 16  ;;  %v3804_v10 = vshra.s32 %v9314_v5, 16 }
 0xdc9   :  { %2569 = vmax.xlane.f32.xlu0 %v2568_v59 }
 0xdcd   :  { %5829 = vadd.xlane.f32.xlu0 %v5826_v61 }
 0xdd1   :  { %5827 = vadd.xlane.f32.xlu0 %v5825_v36 }
 0xdd5   :  { %4221 = vmin.xlane.f32.xlu0 %v9266_v21 }
 0xdd9   :  { %4251 = vmin.xlane.f32.xlu0 %v9270_v34 }
 0xdef   :  { %2648 = vperm.xlu0 %6042, %v9027_v54  }
 0xe10   :  { %v4595_v31 = vpop.xlane.xlu0 %4594 }
 0xe11   :  { %v4596_v56 = vcvt.f32.s32 %v4595_v31  ;;  %v4204_v31 = vcvt.s32.f32 %v4202_v1  ;;  %v4703_v1 = vshll.u32 %v4702_v20, 16 }
 0xe13   :  { %v4599_v36 = vadd.s32 %v4598_v46, %v4596_v56 }
 0xe18   :  { %v4610_v57 = vpop.xlane.xlu0 %4609 }
 0xe19   :  { %v4611_v51 = vcvt.f32.s32 %v4610_v57  ;;  %v4658_v57 = vshll.u32 %v4657_v4, 16 }
 0xe1b   :  { %v4614_v59 = vadd.s32 %v4613_v37, %v4611_v51 }
 0xe2e   :  { %v4625_v41 = vpop.xlane.xlu0 %4624 }
 0xe2f   :  { %v4626_v50 = vcvt.f32.s32 %v4625_v41  ;;  %v4712_v41 = vrot.slane %v4614_v59, %v6856_v23 }
 0xe31   :  { %v4629_v61 = vadd.s32 %v4628_v53, %v4626_v50  ;;  %v9309_v50 = vcvt.s32.f32 %v3744_v55 }
 0xe32   :  { %v4640_v28 = vpop.xlane.xlu0 %4639  ;;  %v4655_v19 = vpop.xlane.xlu1 %4654 }
 0xe33   :  { %v4641_v22 = vcvt.f32.s32 %v4640_v28  ;;  %v4656_v12 = vcvt.f32.s32 %v4655_v19  ;;  %v4716_v2 = vrot.slane %v4629_v61, %v6856_v23  ;;  %v3774_v28 = vshra.s32 %v9301_v58, 16 }
 0xe35   :  { %v4644_v0 = vadd.s32 %v4643_v63, %v4641_v22  ;;  %v4659_v13 = vadd.s32 %v4658_v57, %v4656_v12  ;;  %v9322_v63 = vcvt.s32.f32 %v3774_v28 }
 0xe36   :  { %v4670_v40 = vpop.xlane.xlu0 %4669  ;;  %v9295_v43 = vpop.xlane.xlu1 %4206 }
 0xe37   :  { %v4671_v29 = vcvt.f32.s32 %v4670_v40  ;;  %vm4208_vm12 = vcmp.eq.f32.partialorder %v9094_v26, %v9295_v43  ;;  %v4708_v26 = vrot.slane %v4599_v36, %v6856_v23  ;;  %v4720_v62 = vrot.slane %v4644_v0, %v6856_v23 }
 0xe38   :  { %v4209_v17 = vsel %vm4208_vm12, %v4204_v31, inf  ;;  %v4724_v19 = vrot.slane %v4659_v13, %v6856_v23  ;;  %v9332_v40 = vcvt.s32.f32 %v3804_v10 }
 0xe39   :  { %4210 = vmin.xlane.f32.xlu0 %v4209_v17  ;;  %v4674_v60 = vadd.s32 %v4673_v35, %v4671_v29  ;;  %v4737_v37 = vsel %vm710_vm2, %v4712_v41, %v4708_v26 }
 0xe3a   :  { %v4685_v25 = vpop.xlane.xlu0 %4684  ;;  %v4738_v22 = vsel %vm712_vm3, %v4716_v2, %v4737_v37 }
 0xe3b   :  { %v4686_v51 = vcvt.f32.s32 %v4685_v25  ;;  %v4739_v18 = vsel %vm714_vm4, %v4720_v62, %v4738_v22  ;;  %v4728_v53 = vrot.slane %v4674_v60, %v6856_v23  ;;  %v4142_v62 = vand.u32 65535, %v9074_v52  ;;  %v10420_v60 = vld [vmem:[#allocation7_spill] sm:$0xff] }
 0xe3c   :  { %v4740_v9 = vsel %vm716_vm5, %v4724_v19, %v4739_v18  ;;  %v4172_v19 = vand.u32 65535, %v9208_v47  ;;  %v4217_v18 = vand.u32 65535, %v9259_v3  ;;  %v10421_v47 = vld [vmem:[#allocation92_spill] sm:$0xff]  ;;  %v10424_v3 = vld [vmem:[#allocation93_spill] sm:$0xff] }
 0xe3d   :  { %v4689_v56 = vadd.s32 %v4688_v48, %v4686_v51  ;;  %3747 = vmin.xlane.f32.xlu0 %v9309_v50  ;;  %v4741_v30 = vsel %vm718_vm6, %v4728_v53, %v4740_v9  ;;  %v4144_v37 = vcvt.s32.f32 %v4142_v62  ;;  %v10422_v53 = vld [vmem:[#allocation83_spill] sm:$0xff] }
 0xe3e   :  { %v4700_v14 = vpop.xlane.xlu0 %4699 }
 0xe3f   :  { %v4701_v4 = vcvt.f32.s32 %v4700_v14  ;;  %v4732_v46 = vrot.slane %v4689_v56, %v6856_v23  ;;  %v4157_v56 = vand.u32 65535, %v9089_v44  ;;  %v4174_v14 = vcvt.s32.f32 %v4172_v19 }
 0xe41   :  { %v4704_v59 = vadd.s32 %v4703_v1, %v4701_v4  ;;  %3777 = vmin.xlane.f32.xlu0 %v9322_v63  ;;  %v4742_v12 = vsel %vm720_vm7, %v4732_v46, %v4741_v30  ;;  %v4159_v22 = vcvt.s32.f32 %v4157_v56  ;;  %v4187_v1 = vand.u32 65535, %v9223_v6  ;;  %v10423_v6 = vld [vmem:[#allocation76_spill] sm:$0xff] }
 0xe42   :  { %v9327_v11 = vpop.xlane.xlu0 %4146  ;;  %v4219_v4 = vcvt.s32.f32 %v4217_v18  ;;  %v4232_v46 = vand.u32 65535, %v10423_v6  ;;  %v4247_v30 = vand.u32 65535, %v9264_v16 }
 0xe43   :  { %v4736_v61 = vrot.slane %v4704_v59, %v6856_v23  ;;  %vm4148_vm14 = vcmp.eq.f32.partialorder %v9198_v49, %v9327_v11  ;;  %v4189_v44 = vcvt.s32.f32 %v4187_v1 }
 0xe44   :  { %v4234_v9 = vcvt.s32.f32 %v4232_v46 }
 0xe45   :  { %v9335_v36 = vsel %vm722_vm8, %v4736_v61, %v4742_v12  ;;  %3807 = vmin.xlane.f32.xlu0 %v9332_v40 }
 0xe46   :  { %v9338_v0 = vpop.xlane.xlu0 %4161 }
 0xe47   :  { %vm4163_vm15 = vcmp.eq.f32.partialorder %v9219_v8, %v9338_v0 }
 0xe48   :  { %v4164_v52 = vsel %vm4163_vm15, %v4159_v22, inf }
 0xe4a   :  { %v9340_v29 = vpop.xlane.xlu0 %4176 }
 0xe4b   :  { %vm4178_vm11 = vcmp.eq.f32.partialorder %v9233_v45, %v9340_v29  ;;  %v9377_v45 = vpop.xlane.xlu1 %4236 }
 0xe4c   :  { %v4179_v49 = vsel %vm4178_vm11, %v4174_v14, inf }
 0xe4e   :  { %v9342_v31 = vpop.xlane.xlu0 %4191 }
 0xe4f   :  { %vm4193_vm13 = vcmp.eq.f32.partialorder %v9242_v7, %v9342_v31 }
 0xe50   :  { %v4194_v8 = vsel %vm4193_vm13, %v4189_v44, inf  ;;  %v10433_v44 = vld [vmem:[#allocation89_spill] sm:$0xff] }
 0xe52   :  { %v9344_v57 = vpop.xlane.xlu0 %2569 }
 0xe53   :  { %v2571_v7 = vsub.f32 %v9249_v39, %v9344_v57 }
 0xe55   :  { %v2572_v61 = vmul.f32 1.442695, %v2571_v7 }
 0xe56   :  { %v5830_v55 = vpop.xlane.xlu0 %5829 }
 0xe57   :  { %v5832_v15 = vcvt.f32.s32 %v5830_v55  ;;  %6284 = vpow2.f32 %v2572_v61 }
 0xe59   :  { %v5833_v41 = vshll.u32 %v5832_v15, 16  ;;  %v10426_v15 = vld [vmem:[#allocation94_spill] sm:$0xff] }
 0xe5a   :  { %v5828_v35 = vpop.xlane.xlu0 %5827 }
 0xe5b   :  { %v5831_v17 = vcvt.f32.s32 %v5828_v35  ;;  %v4249_v35 = vcvt.s32.f32 %v4247_v30  ;;  %v4213_v30 = vcvt.f32.s32 %v9295_v43 }
 0xe5d   :  { %v9346_v48 = vadd.s32 %v5833_v41, %v5831_v17 }
 0xe5e   :  { %v9350_v2 = vpop.xlane.xlu0 %4221 }
 0xe5f   :  { %v5836_v20 = vcvt.s32.f32 %v9346_v48  ;;  %vm4223_vm12 = vcmp.eq.f32.partialorder %v9266_v21, %v9350_v2  ;;  %v10425_v21 = vld [vmem:[#allocation84_spill] sm:$0xff]  ;;  %vm5838_vm13 = vcmp.eq.s32.totalorder %v9346_v48, %v10345_v24 }
 0xe60   :  { %v4224_v10 = vsel %vm4223_vm12, %v4219_v4, inf  ;;  %v10430_v48 = vld [vmem:[#allocation96_spill] sm:$0xff] }
 0xe61   :  { %v9353_v13 = vsel %vm5835_vm9, %v5836_v20, %v9140_v33  ;;  %v4149_v33 = vsel %vm4148_vm14, %v4144_v37, inf  ;;  %vm3681_vm9 = vcmp.eq.f32.partialorder %v10422_v53, %v10421_v47  ;;  %vm3682_vm14 = vcmp.eq.f32.partialorder %v10425_v21, %v10424_v3  ;;  %v9447_v21 = vld [vmem:[%s10029_s8 + $0x20] sm:$0xff] }
 0xe62   :  { %v9355_v25 = vpop.xlane.xlu0 %4251  ;;  %v3689_v59 = vsel %vm3681_vm9, %v10345_v24, 8  ;;  %v3690_v39 = vsel %vm3682_vm14, %v10345_v24, 8  ;;  %v2655_v3 = vmul.u32 8, %v9027_v54 }
 0xe63   :  { %v9389_v55 = vsel %vm573_vm1, %v3689_v59, 2147483647  ;;  %vm4253_vm15 = vcmp.eq.f32.partialorder %v9270_v34, %v9355_v25  ;;  %v9398_v16 = vsel %vm573_vm1, %v3690_v39, 2147483647 }
 0xe64   :  { %v3699_v41 = vshra.s32 %v9389_v55, 16  ;;  %v4254_v17 = vsel %vm4253_vm15, %v4249_v35, inf  ;;  %v3714_v62 = vshra.s32 %v9398_v16, 16  ;;  %v6285_v19 = vpop.eup %6284  ;;  %v10435_v35 = vld [vmem:[#allocation49_spill] sm:$0xff] }
 0xe65   :  { %v2574_v1 = vsel %vm573_vm1, %v6285_v19, 0.0 }
 0xe6a   :  { %v2649_v26 = vpop.permute.xlu0 %2648 }
 0xe6b   :  { %vm2650_vm0 = vcmp.eq.s32.totalorder %v2649_v26, %v10345_v24  ;;  %v9401_v26 = vcvt.s32.f32 %v3699_v41  ;;  %v10436_v41 = vld [vmem:[#allocation72_spill] sm:$0xff] }
 0xe6c   :  { %v2651_v51 = vsel %vm2650_vm0, %v10420_v60, 0.0  ;;  %vm4238_vm0 = vcmp.eq.f32.partialorder %v9096_v42, %v9377_v45  ;;  %v10427_v42 = vld [vmem:[#allocation85_spill] sm:$0xff]  ;;  %v9410_v60 = vcvt.s32.f32 %v3714_v62  ;;  %v3743_v62 = vand.u32 65535, %v9289_v38 }
 0xe6d   :  { %v2652_v28 = vsel %vm573_vm1, %v2651_v51, 0.0  ;;  %v4239_v12 = vsel %vm4238_vm0, %v4234_v9, inf  ;;  %vm3683_vm11 = vcmp.eq.f32.partialorder %v10427_v42, %v10426_v15  ;;  %v2656_v9 = vadd.s32 %v9447_v21, %v2655_v3  ;;  %v10434_v42 = vld [vmem:[#allocation69_spill] sm:$0xff] }
 0xe6e   :  { %2653 = vadd.xlane.f32.xlu1 %v2652_v28  ;;  %v3691_v20 = vsel %vm3683_vm11, %v10345_v24, 8  ;;  %v10428_v28 = vld [vmem:[#allocation14_spill] sm:$0xff]  ;;  %vm3240_vm14 = vcmp.eq.f32.partialorder %v10435_v35, %v10434_v42  ;;  %v4183_v3 = vcvt.f32.s32 %v9340_v29  ;;  %v4228_v29 = vcvt.f32.s32 %v9350_v2 }
 0xe6f   :  { %v9405_v34 = vsel %vm573_vm1, %v3691_v20, 2147483647  ;;  %vm10429_vm12 = vcmp.gt.f32.partialorder %v10428_v28, 0.0  ;;  %v3248_v54 = vsel %vm3240_vm14, %v10345_v24, 8  ;;  %v10438_v28 = vld [vmem:[#allocation75_spill] sm:$0xff] }
 0xe70   :  { %v3729_v51 = vshra.s32 %v9405_v34, 16  ;;  %v4744_v37 = vsel %vm10429_vm12, %v9335_v36, %v10345_v24  ;;  %v10432_v36 = vld [vmem:[#allocation35_spill] sm:$0xff]  ;;  %v4184_v42 = vshll.u32 %v4183_v3, 16  ;;  %vm5853_vm12 = vcmp.eq.s32.totalorder %v10345_v24, 4 }
 0xe71   :  { %v5839_v56 = vsel %vm5838_vm13, %v4744_v37, 0  ;;  %vm3687_vm0 = vcmp.eq.f32.partialorder %v10433_v44, %v10432_v36  ;;  %v10439_v37 = vld [vmem:[#allocation58_spill] sm:$0xff]  ;;  %v9488_v44 = vpop.xlane.xlu1 %2641 }
 0xe72   :  { %4150 = vmin.xlane.f32.xlu1 %v4149_v33  ;;  %v9418_v33 = vcvt.s32.f32 %v3729_v51  ;;  %v5840_v22 = vsel %vm573_vm1, %v5839_v56, 0  ;;  %v3695_v53 = vsel %vm3687_vm0, %v10345_v24, 8  ;;  %v9462_v51 = vsel %vm573_vm1, %v3248_v54, 2147483647 }
 0xe73   :  { %v5842_v14 = vshrl.u32 %v5840_v22, 16  ;;  %v9434_v46 = vsel %vm573_vm1, %v3695_v53, 2147483647  ;;  %vm3244_vm13 = vcmp.eq.f32.partialorder %v10439_v37, %v10438_v28  ;;  %v3745_v56 = vcvt.s32.f32 %v3743_v62 }
 0xe74   :  { %v3252_v38 = vsel %vm3244_vm13, %v10345_v24, 8  ;;  %v4198_v54 = vcvt.f32.s32 %v9342_v31  ;;  %v4243_v31 = vcvt.f32.s32 %v9377_v45 }
 0xe75   :  { %v5844_v18 = vcvt.s32.f32 %v5842_v14 }
 0xe76   :  { %4165 = vmin.xlane.f32.xlu1 %v4164_v52  ;;  %v10431_v52 = vld [vmem:[#allocation87_spill] sm:$0xff]  ;;  %v4199_v28 = vshll.u32 %v4198_v54, 16  ;;  %v4244_v3 = vshll.u32 %v4243_v31, 16 }
 0xe77   :  { %vm3685_vm9 = vcmp.eq.f32.partialorder %v10431_v52, %v10430_v48 }
 0xe7a   :  { %4180 = vmin.xlane.f32.xlu1 %v4179_v49  ;;  %v3693_v49 = vsel %vm3685_vm9, %v10345_v24, 8 }
 0xe7b   :  { %v9429_v47 = vsel %vm573_vm1, %v3693_v49, 2147483647 }
 0xe7c   :  { %v3759_v6 = vshra.s32 %v9429_v47, 16 }
 0xe7e   :  { %4195 = vmin.xlane.f32.xlu1 %v4194_v8  ;;  %v5841_v8 = vand.u32 65535, %v5840_v22  ;;  %v9436_v7 = vcvt.s32.f32 %v3759_v6  ;;  %v3300_v22 = vshra.s32 %v9462_v51, 16 }
 0xe80   :  { %v5843_v4 = vcvt.s32.f32 %v5841_v8  ;;  %v9474_v52 = vcvt.s32.f32 %v3300_v22  ;;  %v4153_v8 = vcvt.f32.s32 %v9327_v11 }
 0xe82   :  { %4225 = vmin.xlane.f32.xlu1 %v4224_v10  ;;  %v3789_v10 = vshra.s32 %v9434_v46, 16 }
 0xe84   :  { %v9440_v59 = vcvt.s32.f32 %v3789_v10  ;;  %v4154_v10 = vshll.u32 %v4153_v8, 16 }
 0xe86   :  { %4240 = vmin.xlane.f32.xlu1 %v4239_v12  ;;  %v4214_v12 = vshll.u32 %v4213_v30, 16 }
 0xe8a   :  { %4255 = vmin.xlane.f32.xlu1 %v4254_v17  ;;  %v10437_v17 = vld [vmem:[#allocation51_spill] sm:$0xff] }
 0xe8b   :  { %vm3242_vm15 = vcmp.eq.f32.partialorder %v10437_v17, %v10436_v41 }
 0xe8c   :  { %v3250_v43 = vsel %vm3242_vm15, %v10345_v24, 8 }
 0xe8d   :  { %v9471_v48 = vsel %vm573_vm1, %v3250_v43, 2147483647 }
 0xe8e   :  { %3702 = vmin.xlane.f32.xlu1 %v9401_v26  ;;  %v3330_v14 = vshra.s32 %v9471_v48, 16 }
 0xe92   :  { %3717 = vmin.xlane.f32.xlu1 %v9410_v60 }
 0xe96   :  { %3732 = vmin.xlane.f32.xlu1 %v9418_v33 }
 0xe9a   :  { %2575 = vadd.xlane.f32.xlu1 %v2574_v1  ;;  %v9478_v1 = vsel %vm573_vm1, %v3252_v38, 2147483647 }
 0xe9b   :  { %v3360_v49 = vshra.s32 %v9478_v1, 16 }
 0xe9d   :  { %v9485_v36 = vcvt.s32.f32 %v3360_v49 }
 0xe9e   :  { %5847 = vadd.xlane.f32.xlu1 %v5844_v18 }
 0xea2   :  { %5845 = vadd.xlane.f32.xlu1 %v5843_v4  ;;  %v4168_v4 = vcvt.f32.s32 %v9338_v0 }
 0xea4   :  { %v4169_v30 = vshll.u32 %v4168_v4, 16 }
 0xea6   :  { %3762 = vmin.xlane.f32.xlu1 %v9436_v7 }
 0xeaa   :  { %3792 = vmin.xlane.f32.xlu1 %v9440_v59 }
 0xebb   :  { %2658 = vperm.xlu1 %6043, %v2656_v9  }
 0xec2   :  { %v4211_v61 = vpop.xlane.xlu0 %4210 }
 0xec3   :  { %v4212_v39 = vcvt.f32.s32 %v4211_v61 }
 0xec5   :  { %v9451_v15 = vadd.s32 %v4214_v12, %v4212_v39 }
 0xec6   :  { %v9458_v20 = vpop.xlane.xlu0 %3747 }
 0xec7   :  { %vm3749_vm11 = vcmp.eq.f32.partialorder %v9309_v50, %v9458_v20  ;;  %v9481_v50 = vcvt.s32.f32 %v3330_v14  ;;  %v4229_v14 = vshll.u32 %v4228_v29, 16 }
 0xec8   :  { %v3750_v19 = vsel %vm3749_vm11, %v3745_v56, inf }
 0xedf   :  { %3751 = vmin.xlane.f32.xlu1 %v3750_v19 }
 0xee3   :  { %3303 = vmin.xlane.f32.xlu1 %v9474_v52 }
 0xee7   :  { %3333 = vmin.xlane.f32.xlu1 %v9481_v50 }
 0xeeb   :  { %3363 = vmin.xlane.f32.xlu1 %v9485_v36 }
 0xef7   :  { %v9490_v18 = vpop.xlane.xlu1 %2653 }
 0xefb   :  { %v4151_v53 = vpop.xlane.xlu1 %4150 }
 0xefc   :  { %v4152_v6 = vcvt.f32.s32 %v4151_v53  ;;  %v4280_v53 = vrot.slane %v9451_v15, %v6856_v23 }
 0xefe   :  { %v4155_v61 = vadd.s32 %v4154_v10, %v4152_v6 }
 0xeff   :  { %v4166_v9 = vpop.xlane.xlu1 %4165 }
 0xf00   :  { %v4167_v12 = vcvt.f32.s32 %v4166_v9  ;;  %v4264_v41 = vrot.slane %v4155_v61, %v6856_v23  ;;  %v4258_v9 = vcvt.f32.s32 %v9355_v25 }
 0xf02   :  { %v4170_v39 = vadd.s32 %v4169_v30, %v4167_v12 }
 0xf03   :  { %v4181_v35 = vpop.xlane.xlu1 %4180 }
 0xf04   :  { %v4268_v11 = vrot.slane %v4170_v39, %v6856_v23  ;;  %v4182_v17 = vcvt.f32.s32 %v4181_v35 }
 0xf06   :  { %v4293_v0 = vsel %vm710_vm2, %v4268_v11, %v4264_v41  ;;  %v4185_v62 = vadd.s32 %v4184_v42, %v4182_v17  ;;  %v4259_v42 = vshll.u32 %v4258_v9, 16  ;;  %v3728_v9 = vand.u32 65535, %v9405_v34  ;;  %v10440_v34 = vld [vmem:[#allocation66_spill] sm:$0xff] }
 0xf07   :  { %v4196_v43 = vpop.xlane.xlu1 %4195 }
 0xf08   :  { %v4272_v37 = vrot.slane %v4185_v62, %v6856_v23  ;;  %v4197_v56 = vcvt.f32.s32 %v4196_v43 }
 0xf0a   :  { %v4294_v22 = vsel %vm712_vm3, %v4272_v37, %v4293_v0  ;;  %v4200_v19 = vadd.s32 %v4199_v28, %v4197_v56 }
 0xf0b   :  { %v4226_v38 = vpop.xlane.xlu1 %4225 }
 0xf0c   :  { %v4276_v49 = vrot.slane %v4200_v19, %v6856_v23  ;;  %v4227_v8 = vcvt.f32.s32 %v4226_v38 }
 0xf0e   :  { %v4295_v4 = vsel %vm714_vm4, %v4276_v49, %v4294_v22  ;;  %v4230_v6 = vadd.s32 %v4229_v14, %v4227_v8 }
 0xf0f   :  { %v4296_v2 = vsel %vm716_vm5, %v4280_v53, %v4295_v4  ;;  %v4241_v10 = vpop.xlane.xlu1 %4240  ;;  %v3698_v53 = vand.u32 65535, %v9389_v55 }
 0xf10   :  { %v4284_v30 = vrot.slane %v4230_v6, %v6856_v23  ;;  %v4242_v61 = vcvt.f32.s32 %v4241_v10  ;;  %v3713_v10 = vand.u32 65535, %v9398_v16  ;;  %v9551_v16 = vpop.xlane.xlu0 %3777 }
 0xf11   :  { %vm3779_vm13 = vcmp.eq.f32.partialorder %v9322_v63, %v9551_v16 }
 0xf12   :  { %v4297_v45 = vsel %vm718_vm6, %v4284_v30, %v4296_v2  ;;  %v4245_v12 = vadd.s32 %v4244_v3, %v4242_v61  ;;  %v3700_v2 = vcvt.s32.f32 %v3698_v53  ;;  %v3715_v3 = vcvt.s32.f32 %v3713_v10 }
 0xf13   :  { %v4256_v39 = vpop.xlane.xlu1 %4255  ;;  %v3773_v61 = vand.u32 65535, %v9301_v58  ;;  %v10443_v58 = vld [vmem:[#allocation47_spill] sm:$0xff] }
 0xf14   :  { %v4288_v35 = vrot.slane %v4245_v12, %v6856_v23  ;;  %v4257_v15 = vcvt.f32.s32 %v4256_v39 }
 0xf15   :  { %v3775_v12 = vcvt.s32.f32 %v3773_v61 }
 0xf16   :  { %v4298_v54 = vsel %vm720_vm7, %v4288_v35, %v4297_v45  ;;  %v4260_v41 = vadd.s32 %v4259_v42, %v4257_v15  ;;  %v10442_v42 = vld [vmem:[#allocation67_spill] sm:$0xff]  ;;  %v9564_v35 = vpop.xlane.xlu0 %3807  ;;  %v3803_v15 = vand.u32 65535, %v9314_v5 }
 0xf17   :  { %v9513_v11 = vpop.xlane.xlu1 %3702  ;;  %v3780_v39 = vsel %vm3779_vm13, %v3775_v12, inf }
 0xf18   :  { %v4292_v17 = vrot.slane %v4260_v41, %v6856_v23  ;;  %vm3704_vm0 = vcmp.eq.f32.partialorder %v9401_v26, %v9513_v11  ;;  %v3758_v26 = vand.u32 65535, %v9429_v47  ;;  %v3788_v47 = vand.u32 65535, %v9434_v46 }
 0xf1a   :  { %v9517_v25 = vsel %vm722_vm8, %v4292_v17, %v4298_v54  ;;  %v3790_v63 = vcvt.s32.f32 %v3788_v47  ;;  %v10445_v17 = vld [vmem:[#allocation48_spill] sm:$0xff] }
 0xf1b   :  { %v9519_v0 = vpop.xlane.xlu1 %3717 }
 0xf1c   :  { %vm3719_vm14 = vcmp.eq.f32.partialorder %v9410_v60, %v9519_v0  ;;  %v3760_v60 = vcvt.s32.f32 %v3758_v26  ;;  %v10450_v26 = vld [vmem:[#allocation13_spill] sm:$0xff] }
 0xf1d   :  { %v3720_v55 = vsel %vm3719_vm14, %v3715_v3, inf  ;;  %vm3809_vm14 = vcmp.eq.f32.partialorder %v9332_v40, %v9564_v35 }
 0xf1f   :  { %v9521_v62 = vpop.xlane.xlu1 %3732 }
 0xf20   :  { %vm3734_vm15 = vcmp.eq.f32.partialorder %v9418_v33, %v9521_v62  ;;  %v10441_v33 = vld [vmem:[#allocation46_spill] sm:$0xff] }
 0xf23   :  { %v9523_v43 = vpop.xlane.xlu1 %2575 }
 0xf24   :  { %6286 = vlog2.f32 %v9523_v43 }
 0xf27   :  { %v5848_v28 = vpop.xlane.xlu1 %5847 }
 0xf28   :  { %v5850_v29 = vcvt.f32.s32 %v5848_v28  ;;  %v3805_v28 = vcvt.s32.f32 %v3803_v15  ;;  %v10453_v15 = vld [vmem:[#allocation3_spill] sm:$0xff] }
 0xf2a   :  { %v5851_v56 = vshll.u32 %v5850_v29, 16 }
 0xf2b   :  { %v5846_v37 = vpop.xlane.xlu1 %5845 }
 0xf2c   :  { %v5849_v22 = vcvt.f32.s32 %v5846_v37  ;;  %v3810_v37 = vsel %vm3809_vm14, %v3805_v28, inf  ;;  %v9641_v28 = vld [vmem:[%s10025_s7 + $0x10] sm:$0xff] }
 0xf2e   :  { %v9525_v19 = vadd.s32 %v5851_v56, %v5849_v22  ;;  %v10446_v22 = vld [vmem:[#allocation70_spill] sm:$0xff] }
 0xf2f   :  { %v9528_v38 = vpop.xlane.xlu1 %3762 }
 0xf30   :  { %v5854_v31 = vcvt.s32.f32 %v9525_v19  ;;  %vm3764_vm11 = vcmp.eq.f32.partialorder %v9436_v7, %v9528_v38 }
 0xf31   :  { %v3765_v45 = vsel %vm3764_vm11, %v3760_v60, inf }
 0xf32   :  { %v9532_v14 = vsel %vm5853_vm12, %v5854_v31, %v9353_v13  ;;  %v3705_v13 = vsel %vm3704_vm0, %v3700_v2, inf  ;;  %vm3237_vm12 = vcmp.eq.f32.partialorder %v10441_v33, %v10440_v34  ;;  %vm3238_vm0 = vcmp.eq.f32.partialorder %v10443_v58, %v10442_v42  ;;  %v10447_v31 = vld [vmem:[#allocation50_spill] sm:$0xff]  ;;  %v10449_v2 = vld [vmem:[#allocation52_spill] sm:$0xff]  ;;  %v9630_v42 = vld [vmem:[%s10025_s7 + $0x8] sm:$0xff] }
 0xf33   :  { %v9534_v49 = vpop.xlane.xlu1 %3792  ;;  %v3245_v7 = vsel %vm3237_vm12, %v10345_v24, 8  ;;  %v3246_v46 = vsel %vm3238_vm0, %v10345_v24, 8  ;;  %vm3241_vm11 = vcmp.eq.f32.partialorder %v10447_v31, %v10446_v22  ;;  %vm5856_vm12 = vcmp.eq.s32.totalorder %v9525_v19, %v10345_v24  ;;  %v10452_v58 = vld [vmem:[#allocation81_spill] sm:$0xff] }
 0xf34   :  { %v9568_v41 = vsel %vm573_vm1, %v3245_v7, 2147483647  ;;  %v9577_v56 = vsel %vm573_vm1, %v3246_v46, 2147483647  ;;  %v9625_v7 = vld [vmem:[%s10025_s7] sm:$0xff]  ;;  %v2643_v22 = vmul.f32 %v9641_v28, %v9274_v27 }
 0xf35   :  { %v3255_v29 = vshra.s32 %v9568_v41, 16  ;;  %v3270_v40 = vshra.s32 %v9577_v56, 16  ;;  %v10454_v46 = vld [vmem:[#allocation82_spill] sm:$0xff] }
 0xf36   :  { %v9659_v27 = vld [vmem:[%s10025_s7 + $0x20] sm:$0xff] }
 0xf37   :  { %v2659_v8 = vpop.permute.xlu1 %2658  ;;  %v9592_v10 = vcvt.s32.f32 %v3270_v40  ;;  %v9650_v40 = vld [vmem:[%s10025_s7 + $0x18] sm:$0xff] }
 0xf38   :  { %vm2660_vm9 = vcmp.eq.s32.totalorder %v2659_v8, %v10345_v24  ;;  %v9582_v8 = vcvt.s32.f32 %v3255_v29  ;;  %v10455_v29 = vld [vmem:[#allocation45_spill] sm:$0xff] }
 0xf39   :  { %v2661_v4 = vsel %vm2660_vm9, %v9175_v32, 0.0  ;;  %v3730_v32 = vcvt.s32.f32 %v3728_v9  ;;  %vm3794_vm9 = vcmp.eq.f32.partialorder %v9440_v59, %v9534_v49  ;;  %v10444_v59 = vld [vmem:[#allocation68_spill] sm:$0xff] }
 0xf3a   :  { %v2662_v6 = vsel %vm2595_vm10, %v2661_v4, 0.0  ;;  %v3795_v54 = vsel %vm3794_vm9, %v3790_v63, inf  ;;  %v3249_v4 = vsel %vm3241_vm11, %v10345_v24, 8  ;;  %vm10451_vm9 = vcmp.gt.f32.partialorder %v10450_v26, 0.0 }
 0xf3b   :  { %2663 = vadd.xlane.f32.xlu0 %v2662_v6  ;;  %v3735_v30 = vsel %vm3734_vm15, %v3730_v32, inf  ;;  %vm3239_vm15 = vcmp.eq.f32.partialorder %v10445_v17, %v10444_v59  ;;  %v10448_v6 = vld [vmem:[#allocation73_spill] sm:$0xff]  ;;  %v9596_v3 = vsel %vm573_vm1, %v3249_v4, 2147483647  ;;  %v2601_v63 = vmul.f32 %v9630_v42, %v10452_v58 }
 0xf3c   :  { %v3247_v5 = vsel %vm3239_vm15, %v10345_v24, 8  ;;  %vm3243_vm13 = vcmp.eq.f32.partialorder %v10449_v2, %v10448_v6  ;;  %v3315_v32 = vshra.s32 %v9596_v3, 16  ;;  %v2621_v59 = vmul.f32 %v9630_v42, %v10454_v46 }
 0xf3d   :  { %v9586_v53 = vsel %vm573_vm1, %v3247_v5, 2147483647  ;;  %v3251_v9 = vsel %vm3243_vm13, %v10345_v24, 8  ;;  %v2645_v4 = vmul.f32 %v9650_v40, %v9488_v44  ;;  %v2665_v2 = vmul.f32 %v9650_v40, %v9490_v18 }
 0xf3e   :  { %v9610_v60 = vsel %vm573_vm1, %v3251_v9, 2147483647  ;;  %v3724_v44 = vcvt.f32.s32 %v9519_v0 }
 0xf3f   :  { %3706 = vmin.xlane.f32.xlu0 %v3705_v13  ;;  %v3285_v13 = vshra.s32 %v9586_v53, 16  ;;  %v3345_v34 = vshra.s32 %v9610_v60, 16 }
 0xf40   :  { %v3725_v58 = vshll.u32 %v3724_v44, 16  ;;  %v3799_v44 = vcvt.f32.s32 %v9534_v49 }
 0xf41   :  { %v9618_v33 = vcvt.s32.f32 %v3345_v34 }
 0xf43   :  { %3721 = vmin.xlane.f32.xlu0 %v3720_v55  ;;  %v9602_v55 = vcvt.s32.f32 %v3285_v13 }
 0xf47   :  { %3736 = vmin.xlane.f32.xlu0 %v3735_v30  ;;  %v4300_v30 = vsel %vm10451_vm9, %v9517_v25, %v10345_v24 }
 0xf48   :  { %v5857_v61 = vsel %vm5856_vm12, %v4300_v30, 0  ;;  %v3709_v30 = vcvt.f32.s32 %v9513_v11 }
 0xf49   :  { %v5858_v19 = vsel %vm573_vm1, %v5857_v61, 0 }
 0xf4a   :  { %v5860_v12 = vshrl.u32 %v5858_v19, 16  ;;  %v5859_v47 = vand.u32 65535, %v5858_v19 }
 0xf4b   :  { %3766 = vmin.xlane.f32.xlu0 %v3765_v45  ;;  %v9613_v45 = vcvt.s32.f32 %v3315_v32 }
 0xf4c   :  { %v5862_v25 = vcvt.s32.f32 %v5860_v12  ;;  %v3710_v12 = vshll.u32 %v3709_v30, 16 }
 0xf4f   :  { %3781 = vmin.xlane.f32.xlu0 %v3780_v39  ;;  %v5861_v39 = vcvt.s32.f32 %v5859_v47  ;;  %v3739_v47 = vcvt.f32.s32 %v9521_v62 }
 0xf51   :  { %v3740_v11 = vshll.u32 %v3739_v47, 16  ;;  %v3800_v47 = vshll.u32 %v3799_v44, 16 }
 0xf53   :  { %3796 = vmin.xlane.f32.xlu0 %v3795_v54  ;;  %v2599_v54 = vmul.f32 %v10453_v15, %v9625_v7 }
 0xf55   :  { %v2602_v17 = vadd.f32 %v2601_v63, %v2599_v54 }
 0xf57   :  { %3811 = vmin.xlane.f32.xlu0 %v3810_v37  ;;  %v2623_v37 = vmul.f32 %v9641_v28, %v10455_v29  ;;  %v2622_v5 = vadd.f32 %v2621_v59, %v2602_v17  ;;  %v3769_v29 = vcvt.f32.s32 %v9528_v38 }
 0xf59   :  { %v2624_v31 = vadd.f32 %v2623_v37, %v2622_v5 }
 0xf5b   :  { %3258 = vmin.xlane.f32.xlu0 %v9582_v8  ;;  %v2644_v6 = vadd.f32 %v2643_v22, %v2624_v31 }
 0xf5d   :  { %v2646_v13 = vadd.f32 %v2645_v4, %v2644_v6  ;;  %v3784_v4 = vcvt.f32.s32 %v9551_v16  ;;  %v3770_v6 = vshll.u32 %v3769_v29, 16  ;;  %v3269_v29 = vand.u32 65535, %v9577_v56 }
 0xf5e   :  { %v3299_v56 = vand.u32 65535, %v9462_v51 }
 0xf5f   :  { %3273 = vmin.xlane.f32.xlu0 %v9592_v10  ;;  %v2666_v32 = vadd.f32 %v2665_v2, %v2646_v13 }
 0xf60   :  { %v3301_v51 = vcvt.s32.f32 %v3299_v56 }
 0xf63   :  { %3288 = vmin.xlane.f32.xlu0 %v9602_v55 }
 0xf67   :  { %3318 = vmin.xlane.f32.xlu0 %v9613_v45 }
 0xf68   :  { %v3752_v18 = vpop.xlane.xlu1 %3751 }
 0xf69   :  { %v3753_v54 = vcvt.f32.s32 %v3752_v18 }
 0xf6b   :  { %3348 = vmin.xlane.f32.xlu0 %v9618_v33 }
 0xf6f   :  { %5865 = vadd.xlane.f32.xlu0 %v5862_v25  ;;  %v3754_v25 = vcvt.f32.s32 %v9458_v20 }
 0xf71   :  { %v3755_v59 = vshll.u32 %v3754_v25, 16 }
 0xf73   :  { %5863 = vadd.xlane.f32.xlu0 %v5861_v39  ;;  %v3756_v22 = vadd.s32 %v3755_v59, %v3753_v54 }
 0xf89   :  { %2670 = vperm.xlu0 %6042, %v9447_v21  }
 0xfc4   :  { %v2664_v9 = vpop.xlane.xlu0 %2663 }
 0xfc5   :  { %v2667_v26 = vmul.f32 %v9659_v27, %v2664_v9  ;;  %v3832_v9 = vrot.slane %v3756_v22, %v6856_v23  ;;  %v3271_v22 = vcvt.s32.f32 %v3269_v29 }
 0xfc7   :  { %v9663_v61 = vadd.f32 %v2667_v26, %v2666_v32 }
 0xfc8   :  { %v3707_v34 = vpop.xlane.xlu0 %3706 }
 0xfc9   :  { %v3708_v19 = vcvt.f32.s32 %v3707_v34  ;;  %v3785_v34 = vshll.u32 %v3784_v4, 16  ;;  %v3314_v4 = vand.u32 65535, %v9596_v3  ;;  %v3329_v3 = vand.u32 65535, %v9471_v48 }
 0xfcb   :  { %v3711_v63 = vadd.s32 %v3710_v12, %v3708_v19 }
 0xfcc   :  { %v3722_v39 = vpop.xlane.xlu0 %3721 }
 0xfcd   :  { %v3723_v15 = vcvt.f32.s32 %v3722_v39  ;;  %v3820_v0 = vrot.slane %v3711_v63, %v6856_v23 }
 0xfcf   :  { %v3726_v46 = vadd.s32 %v3725_v58, %v3723_v15 }
 0xfd0   :  { %v3737_v17 = vpop.xlane.xlu0 %3736 }
 0xfd1   :  { %v3824_v37 = vrot.slane %v3726_v46, %v6856_v23  ;;  %v3738_v5 = vcvt.f32.s32 %v3737_v17  ;;  %v3254_v46 = vand.u32 65535, %v9568_v41  ;;  %v3284_v41 = vand.u32 65535, %v9586_v53 }
 0xfd3   :  { %v3849_v20 = vsel %vm710_vm2, %v3824_v37, %v3820_v0  ;;  %v3741_v62 = vadd.s32 %v3740_v11, %v3738_v5  ;;  %v3256_v17 = vcvt.s32.f32 %v3254_v46  ;;  %v9692_v37 = vpop.xlane.xlu1 %3303 }
 0xfd4   :  { %v3767_v31 = vpop.xlane.xlu0 %3766  ;;  %vm3305_vm13 = vcmp.eq.f32.partialorder %v9474_v52, %v9692_v37 }
 0xfd5   :  { %v3828_v2 = vrot.slane %v3741_v62, %v6856_v23  ;;  %v3768_v13 = vcvt.f32.s32 %v3767_v31  ;;  %v3286_v31 = vcvt.s32.f32 %v3284_v41  ;;  %v3306_v52 = vsel %vm3305_vm13, %v3301_v51, inf }
 0xfd7   :  { %v3850_v38 = vsel %vm712_vm3, %v3828_v2, %v3849_v20  ;;  %v3771_v32 = vadd.s32 %v3770_v6, %v3768_v13  ;;  %v2735_v20 = vadd.f32 %v9630_v42, %v9625_v7  ;;  %v9710_v53 = vpop.xlane.xlu1 %3333  ;;  %v10456_v42 = vld [vmem:[#allocation39_spill] sm:$0xff] }
 0xfd8   :  { %v3851_v26 = vsel %vm714_vm4, %v3832_v9, %v3850_v38  ;;  %v3782_v30 = vpop.xlane.xlu0 %3781  ;;  %v10457_v2 = vld [vmem:[#allocation19_spill] sm:$0xff] }
 0xfd9   :  { %v3836_v19 = vrot.slane %v3771_v32, %v6856_v23  ;;  %v3783_v12 = vcvt.f32.s32 %v3782_v30  ;;  %v2736_v6 = vadd.f32 %v9641_v28, %v2735_v20  ;;  %vm2794_vm11 = vcmp.eq.f32.partialorder %v10457_v2, %v10456_v42  ;;  %v10458_v30 = vld [vmem:[#allocation41_spill] sm:$0xff]  ;;  %v10462_v42 = vld [vmem:[#allocation44_spill] sm:$0xff] }
 0xfda   :  { %v3316_v28 = vcvt.s32.f32 %v3314_v4  ;;  %v2802_v38 = vsel %vm2794_vm11, %v10345_v24, 8  ;;  %v10463_v2 = vld [vmem:[#allocation24_spill] sm:$0xff] }
 0xfdb   :  { %v3852_v16 = vsel %vm716_vm5, %v3836_v19, %v3851_v26  ;;  %v3786_v18 = vadd.s32 %v3785_v34, %v3783_v12  ;;  %v2737_v9 = vadd.f32 %v9650_v40, %v2736_v6  ;;  %v3331_v34 = vcvt.s32.f32 %v3329_v3  ;;  %v9785_v3 = vld [vmem:[%s10025_s7 + $0x38] sm:$0xff] }
 0xfdc   :  { %v3797_v25 = vpop.xlane.xlu0 %3796  ;;  %v9740_v12 = vsel %vm573_vm1, %v2802_v38, 2147483647  ;;  %vm2800_vm13 = vcmp.eq.f32.partialorder %v10463_v2, %v10462_v42  ;;  %v5972_v2 = vld [vmem:[%s10029_s8 + $0x38] sm:$0xff] }
 0xfdd   :  { %v3840_v39 = vrot.slane %v3786_v18, %v6856_v23  ;;  %v3798_v58 = vcvt.f32.s32 %v3797_v25  ;;  %v2738_v19 = vadd.f32 %v9659_v27, %v2737_v9 }
 0xfdf   :  { %v3853_v63 = vsel %vm718_vm6, %v3840_v39, %v3852_v16  ;;  %v3801_v15 = vadd.s32 %v3800_v47, %v3798_v58  ;;  %v10460_v47 = vld [vmem:[#allocation43_spill] sm:$0xff] }
 0xfe0   :  { %v3812_v54 = vpop.xlane.xlu0 %3811  ;;  %v10461_v39 = vld [vmem:[#allocation23_spill] sm:$0xff] }
 0xfe1   :  { %v3844_v59 = vrot.slane %v3801_v15, %v6856_v23  ;;  %v3813_v32 = vcvt.f32.s32 %v3812_v54 }
 0xfe3   :  { %v9685_v49 = vsel %vm720_vm7, %v3844_v59, %v3853_v63  ;;  %v9753_v63 = vld [vmem:[%s10025_s7 + $0x28] sm:$0xff] }
 0xfe4   :  { %v9687_v11 = vpop.xlane.xlu0 %3258  ;;  %v2739_v15 = vadd.f32 %v9753_v63, %v2738_v19 }
 0xfe5   :  { %vm3260_vm0 = vcmp.eq.f32.partialorder %v9582_v8, %v9687_v11 }
 0xfe6   :  { %v3261_v0 = vsel %vm3260_vm0, %v3256_v17, inf  ;;  %vm3335_vm0 = vcmp.eq.f32.partialorder %v9481_v50, %v9710_v53 }
 0xfe7   :  { %3262 = vmin.xlane.f32.xlu0 %v3261_v0  ;;  %v3336_v18 = vsel %vm3335_vm0, %v3331_v34, inf }
 0xfe8   :  { %v9694_v5 = vpop.xlane.xlu0 %3273 }
 0xfe9   :  { %vm3275_vm14 = vcmp.eq.f32.partialorder %v9592_v10, %v9694_v5  ;;  %v3814_v10 = vcvt.f32.s32 %v9564_v35  ;;  %v10459_v35 = vld [vmem:[#allocation21_spill] sm:$0xff] }
 0xfea   :  { %v9701_v62 = vsel %vm3275_vm14, %v3271_v22, inf  ;;  %vm2796_vm9 = vcmp.eq.f32.partialorder %v10459_v35, %v10458_v30  ;;  %v9767_v22 = vld [vmem:[%s10025_s7 + $0x30] sm:$0xff] }
 0xfeb   :  { %v3815_v48 = vshll.u32 %v3814_v10, 16  ;;  %v2804_v50 = vsel %vm2796_vm9, %v10345_v24, 8  ;;  %v2740_v20 = vadd.f32 %v9767_v22, %v2739_v15  ;;  %v6301_v15 = vld [vmem:[%s10029_s8] sm:$0xff] }
 0xfec   :  { %v9704_v8 = vpop.xlane.xlu0 %3288  ;;  %v9757_v46 = vsel %vm573_vm1, %v2804_v50, 2147483647 }
 0xfed   :  { %vm3290_vm15 = vcmp.eq.f32.partialorder %v9602_v55, %v9704_v8  ;;  %v3344_v55 = vand.u32 65535, %v9610_v60  ;;  %v9731_v60 = vpop.xlane.xlu1 %3363  ;;  %v3816_v16 = vadd.s32 %v3815_v48, %v3813_v32  ;;  %v2856_v41 = vshra.s32 %v9757_v46, 16 }
 0xfee   :  { %v3291_v7 = vsel %vm3290_vm15, %v3286_v31, inf  ;;  %vm2798_vm15 = vcmp.eq.f32.partialorder %v10461_v39, %v10460_v47  ;;  %vm3365_vm11 = vcmp.eq.f32.partialorder %v9485_v36, %v9731_v60  ;;  %v2808_v32 = vsel %vm2800_vm13, %v10345_v24, 8 }
 0xfef   :  { %3292 = vmin.xlane.f32.xlu0 %v3291_v7  ;;  %v3346_v44 = vcvt.s32.f32 %v3344_v55  ;;  %v2806_v59 = vsel %vm2798_vm15, %v10345_v24, 8  ;;  %v3848_v36 = vrot.slane %v3816_v16, %v6856_v23  ;;  %v9779_v51 = vcvt.s32.f32 %v2856_v41  ;;  %v6304_v41 = vld [vmem:[%s10029_s8 + $0x18] sm:$0xff] }
 0xff0   :  { %v9717_v13 = vpop.xlane.xlu0 %3318  ;;  %v9771_v4 = vsel %vm573_vm1, %v2806_v59, 2147483647  ;;  %v9806_v50 = vsel %vm573_vm1, %v2808_v32, 2147483647 }
 0xff1   :  { %vm3320_vm12 = vcmp.eq.f32.partialorder %v9613_v45, %v9717_v13  ;;  %v3359_v45 = vand.u32 65535, %v9478_v1  ;;  %v3855_v6 = vsel %vm722_vm8, %v3848_v36, %v9685_v49  ;;  %v2886_v10 = vshra.s32 %v9771_v4, 16  ;;  %v10464_v49 = vld [vmem:[#allocation11_spill] sm:$0xff] }
 0xff2   :  { %v9725_v26 = vsel %vm3320_vm12, %v3316_v28, inf  ;;  %vm5871_vm12 = vcmp.eq.s32.totalorder %v10345_v24, 3  ;;  %v2741_v28 = vadd.f32 %v9785_v3, %v2740_v20  ;;  %vm10465_vm9 = vcmp.gt.f32.partialorder %v10464_v49, 0.0  ;;  %v10467_v49 = vld [vmem:[#allocation37_spill] sm:$0xff] }
 0xff3   :  { %3307 = vmin.xlane.f32.xlu0 %v3306_v52  ;;  %v3361_v58 = vcvt.s32.f32 %v3359_v45  ;;  %v3856_v55 = vsel %vm10465_vm9, %v3855_v6, %v10345_v24  ;;  %v9801_v34 = vcvt.s32.f32 %v2886_v10  ;;  %v2916_v47 = vshra.s32 %v9806_v50, 16  ;;  %v5971_v6 = vld [vmem:[%s10029_s8 + $0x30] sm:$0xff] }
 0xff4   :  { %v9733_v40 = vpop.xlane.xlu0 %3348  ;;  %v6038_v48 = vtrunc.f32 %v2741_v28 }
 0xff5   :  { %vm3350_vm14 = vcmp.eq.f32.partialorder %v9618_v33, %v9733_v40  ;;  %v2826_v33 = vshra.s32 %v9740_v12, 16  ;;  %v3366_v17 = vsel %vm3365_vm11, %v3361_v58, inf  ;;  %v2677_v58 = vmul.u32 8, %v9447_v21 }
 0xff6   :  { %v9743_v25 = vsel %vm3350_vm14, %v3346_v44, inf  ;;  %v10466_v44 = vld [vmem:[#allocation25_spill] sm:$0xff]  ;;  %v6039_v16 = vcvt.f32.s32 %v6038_v48  ;;  %v10471_v48 = vld [vmem:[#allocation40_spill] sm:$0xff] }
 0xff7   :  { %3337 = vmin.xlane.f32.xlu0 %v3336_v18  ;;  %v9761_v0 = vcvt.s32.f32 %v2826_v33  ;;  %v5970_v33 = vld [vmem:[%s10029_s8 + $0x28] sm:$0xff] }
 0xff8   :  { %v5866_v1 = vpop.xlane.xlu0 %5865  ;;  %v5973_v39 = vadd.s32 4294967295, %v6039_v16  ;;  %v2678_v36 = vadd.s32 %v5970_v33, %v2677_v58  ;;  %v10474_v16 = vld [vmem:[#allocation22_spill] sm:$0xff] }
 0xff9   :  { %v5868_v54 = vcvt.f32.s32 %v5866_v1  ;;  %v9811_v1 = vcvt.s32.f32 %v2916_v47 }
 0xffa   :  { %vm2744_vm15 = vcmp.eq.s32.totalorder %v5973_v39, 1  ;;  %vm2746_vm11 = vcmp.eq.s32.totalorder %v5973_v39, 2  ;;  %vm2748_vm13 = vcmp.eq.s32.totalorder %v5973_v39, 3  ;;  %vm2752_vm9 = vcmp.eq.s32.totalorder %v5973_v39, 5 }
 0xffb   :  { %3367 = vmin.xlane.f32.xlu0 %v3366_v17  ;;  %v5869_v56 = vshll.u32 %v5868_v54, 16  ;;  %v6302_v54 = vld [vmem:[%s10029_s8 + $0x8] sm:$0xff]  ;;  %v6303_v17 = vld [vmem:[%s10029_s8 + $0x10] sm:$0xff] }
 0xffc   :  { %v5864_v29 = vpop.xlane.xlu0 %5863  ;;  %v2745_v59 = vsel %vm2744_vm15, %v6302_v54, %v6301_v15 }
 0xffd   :  { %v5867_v31 = vcvt.f32.s32 %v5864_v29  ;;  %v2747_v29 = vsel %vm2746_vm11, %v6303_v17, %v2745_v59 }
 0xffe   :  { %v2749_v20 = vsel %vm2748_vm13, %v6304_v41, %v2747_v29  ;;  %v2721_v41 = vmul.u32 8, %v5971_v6 }
 0xfff   :  { %v5870_v7 = vadd.s32 %v5869_v56, %v5867_v31  ;;  %2829 = vmin.xlane.f32.xlu0 %v9761_v0  ;;  %v2699_v56 = vmul.u32 8, %v5970_v33 }
0x1001   :  { %v5872_v9 = vcvt.s32.f32 %v5870_v7  ;;  %vm5874_vm0 = vcmp.eq.s32.totalorder %v5870_v7, %v10345_v24  ;;  %v2700_v42 = vadd.s32 %v5971_v6, %v2699_v56  ;;  %v2722_v56 = vadd.s32 %v5972_v2, %v2721_v41 }
0x1002   :  { %v5875_v38 = vsel %vm5874_vm0, %v3856_v55, 0  ;;  %vm2754_vm0 = vcmp.eq.s32.totalorder %v5973_v39, 6  ;;  %v10468_v55 = vld [vmem:[#allocation15_spill] sm:$0xff] }
0x1003   :  { %v9794_v52 = vsel %vm5871_vm12, %v5872_v9, %v9532_v14  ;;  %2859 = vmin.xlane.f32.xlu0 %v9779_v51  ;;  %v9798_v30 = vsel %vm573_vm1, %v5875_v38, 0  ;;  %vm2750_vm12 = vcmp.eq.s32.totalorder %v5973_v39, 4  ;;  %vm2793_vm15 = vcmp.eq.f32.partialorder %v10468_v55, %v10467_v49  ;;  %v10469_v9 = vld [vmem:[#allocation38_spill] sm:$0xff] }
0x1004   :  { %v2671_v35 = vpop.permute.xlu0 %2670  ;;  %v5877_v45 = vand.u32 65535, %v9798_v30  ;;  %v2751_v31 = vsel %vm2750_vm12, %v9447_v21, %v2749_v20  ;;  %v2801_v21 = vsel %vm2793_vm15, %v10345_v24, 8  ;;  %v10470_v38 = vld [vmem:[#allocation18_spill] sm:$0xff]  ;;  %v5878_v17 = vshrl.u32 %v9798_v30, 16 }
0x1005   :  { %vm2672_vm14 = vcmp.eq.s32.totalorder %v2671_v35, %v10345_v24  ;;  %v2753_v7 = vsel %vm2752_vm9, %v5970_v33, %v2751_v31  ;;  %vm2795_vm11 = vcmp.eq.f32.partialorder %v10470_v38, %v10469_v9  ;;  %v9844_v32 = vsel %vm573_vm1, %v2801_v21, 2147483647 }
0x1006   :  { %v2673_v19 = vsel %vm2672_vm14, %v10466_v44, 0.0  ;;  %v5879_v18 = vcvt.s32.f32 %v5877_v45  ;;  %v2755_v10 = vsel %vm2754_vm0, %v5971_v6, %v2753_v7  ;;  %vm2756_vm14 = vcmp.eq.s32.totalorder %v5973_v39, 7  ;;  %v10472_v45 = vld [vmem:[#allocation20_spill] sm:$0xff] }
0x1007   :  { %2889 = vmin.xlane.f32.xlu0 %v9801_v34  ;;  %v2674_v14 = vsel %vm573_vm1, %v2673_v19, 0.0  ;;  %v2757_v28 = vsel %vm2756_vm14, %v5972_v2, %v2755_v10  ;;  %v2803_v35 = vsel %vm2795_vm11, %v10345_v24, 8  ;;  %vm2797_vm13 = vcmp.eq.f32.partialorder %v10472_v45, %v10471_v48 }
0x1008   :  { %2675 = vadd.xlane.f32.xlu1 %v2674_v14  ;;  %v2811_v44 = vshra.s32 %v9844_v32, 16  ;;  %v9852_v19 = vsel %vm573_vm1, %v2803_v35, 2147483647  ;;  %v10473_v14 = vld [vmem:[#allocation42_spill] sm:$0xff]  ;;  %v5880_v29 = vcvt.s32.f32 %v5878_v17  ;;  %v3265_v20 = vcvt.f32.s32 %v9687_v11 }
0x1009   :  { %vm2799_vm12 = vcmp.eq.f32.partialorder %v10474_v16, %v10473_v14  ;;  %v2841_v47 = vshra.s32 %v9852_v19, 16  ;;  %v3310_v30 = vcvt.f32.s32 %v9692_v37  ;;  %v2825_v14 = vand.u32 65535, %v9740_v12 }
0x100a   :  { %v2807_v39 = vsel %vm2799_vm12, %v10345_v24, 8  ;;  %v3266_v7 = vshll.u32 %v3265_v20, 16  ;;  %v3325_v12 = vcvt.f32.s32 %v9717_v13 }
0x100b   :  { %5881 = vadd.xlane.f32.xlu0 %v5879_v18  ;;  %v9858_v18 = vcvt.s32.f32 %v2811_v44  ;;  %v9866_v58 = vcvt.s32.f32 %v2841_v47  ;;  %v3311_v35 = vshll.u32 %v3310_v30, 16  ;;  %v2827_v16 = vcvt.s32.f32 %v2825_v14 }
0x100f   :  { %2919 = vmin.xlane.f32.xlu0 %v9811_v1 }
0x1019   :  { %2680 = vperm.xlu1 %6043, %v2678_v36  }
0x1025   :  { %2702 = vperm.xlu0 %6042, %v2700_v42  }
0x1029   :  { %2759 = vperm.xlu0 %6042, %v2757_v28   ;;  %v3295_v28 = vcvt.f32.s32 %v9704_v8 }
0x102b   :  { %v3296_v55 = vshll.u32 %v3295_v28, 16 }
0x103d   :  { %3277 = vmin.xlane.f32.xlu1 %v9701_v62  ;;  %v2805_v62 = vsel %vm2797_vm13, %v10345_v24, 8 }
0x1041   :  { %3322 = vmin.xlane.f32.xlu1 %v9725_v26  ;;  %v9862_v26 = vsel %vm573_vm1, %v2805_v62, 2147483647 }
0x1042   :  { %v2871_v15 = vshra.s32 %v9862_v26, 16 }
0x1044   :  { %v9873_v54 = vcvt.s32.f32 %v2871_v15 }
0x1045   :  { %3352 = vmin.xlane.f32.xlu1 %v9743_v25  ;;  %v9870_v25 = vsel %vm573_vm1, %v2807_v39, 2147483647 }
0x1046   :  { %v2901_v59 = vshra.s32 %v9870_v25, 16 }
0x1048   :  { %v9877_v36 = vcvt.s32.f32 %v2901_v59  ;;  %v3280_v59 = vcvt.f32.s32 %v9694_v5 }
0x1049   :  { %2814 = vmin.xlane.f32.xlu1 %v9858_v18 }
0x104d   :  { %2844 = vmin.xlane.f32.xlu1 %v9866_v58 }
0x1051   :  { %2874 = vmin.xlane.f32.xlu1 %v9873_v54 }
0x1055   :  { %2904 = vmin.xlane.f32.xlu1 %v9877_v36 }
0x1059   :  { %5883 = vadd.xlane.f32.xlu1 %v5880_v29  ;;  %v3281_v29 = vshll.u32 %v3280_v59, 16 }
0x106a   :  { %2692 = vperm.xlu1 %6043, %v5970_v33   ;;  %v3340_v33 = vcvt.f32.s32 %v9710_v53 }
0x106c   :  { %v3341_v48 = vshll.u32 %v3340_v33, 16 }
0x106e   :  { %2714 = vperm.xlu1 %6043, %v5971_v6  }
0x1070   :  { %v3263_v31 = vpop.xlane.xlu0 %3262 }
0x1071   :  { %v3264_v42 = vcvt.f32.s32 %v3263_v31  ;;  %v3326_v31 = vshll.u32 %v3325_v12, 16 }
0x1072   :  { %2724 = vperm.xlu1 %6043, %v2722_v56   ;;  %v3370_v56 = vcvt.f32.s32 %v9731_v60 }
0x1073   :  { %v3267_v10 = vadd.s32 %v3266_v7, %v3264_v42 }
0x1078   :  { %v3293_v49 = vpop.xlane.xlu0 %3292 }
0x1079   :  { %v3294_v21 = vcvt.f32.s32 %v3293_v49 }
0x107b   :  { %v3297_v9 = vadd.s32 %v3296_v55, %v3294_v21  ;;  %v3371_v21 = vshll.u32 %v3370_v56, 16 }
0x107c   :  { %v3308_v38 = vpop.xlane.xlu0 %3307 }
0x107d   :  { %v3309_v11 = vcvt.f32.s32 %v3308_v38  ;;  %v3384_v5 = vrot.slane %v3297_v9, %v6856_v23 }
0x107f   :  { %v3312_v2 = vadd.s32 %v3311_v35, %v3309_v11 }
0x1080   :  { %v3338_v6 = vpop.xlane.xlu0 %3337 }
0x1081   :  { %v3339_v45 = vcvt.f32.s32 %v3338_v6  ;;  %v3388_v49 = vrot.slane %v3312_v2, %v6856_v23 }
0x1083   :  { %v3342_v44 = vadd.s32 %v3341_v48, %v3339_v45 }
0x1084   :  { %v3368_v62 = vpop.xlane.xlu0 %3367 }
0x1085   :  { %v3369_v13 = vcvt.f32.s32 %v3368_v62  ;;  %v3396_v6 = vrot.slane %v3342_v44, %v6856_v23  ;;  %v2840_v62 = vand.u32 65535, %v9852_v19 }
0x1087   :  { %v3372_v2 = vadd.s32 %v3371_v21, %v3369_v13  ;;  %v2842_v12 = vcvt.s32.f32 %v2840_v62  ;;  %v10477_v62 = vld [vmem:[#allocation53_spill] sm:$0xff] }
0x1088   :  { %v9886_v8 = vpop.xlane.xlu0 %2829 }
0x1089   :  { %vm2831_vm9 = vcmp.eq.f32.partialorder %v9761_v0, %v9886_v8  ;;  %v3404_v44 = vrot.slane %v3372_v2, %v6856_v23 }
0x108a   :  { %v2832_v37 = vsel %vm2831_vm9, %v2827_v16, inf }
0x108b   :  { %2833 = vmin.xlane.f32.xlu0 %v2832_v37 }
0x108c   :  { %v9898_v20 = vpop.xlane.xlu0 %2859 }
0x108d   :  { %vm2861_vm14 = vcmp.eq.f32.partialorder %v9779_v51, %v9898_v20 }
0x1090   :  { %v9907_v38 = vpop.xlane.xlu0 %2889 }
0x1091   :  { %v2676_v47 = vpop.xlane.xlu1 %2675  ;;  %vm2891_vm11 = vcmp.eq.f32.partialorder %v9801_v34, %v9907_v38 }
0x1092   :  { %v2687_v53 = vmul.f32 %v9659_v27, %v2676_v47  ;;  %v3355_v27 = vcvt.f32.s32 %v9733_v40  ;;  %v2810_v40 = vand.u32 65535, %v9844_v32  ;;  %v2855_v32 = vand.u32 65535, %v9757_v46 }
0x1093   :  { %v2885_v46 = vand.u32 65535, %v9771_v4 }
0x1094   :  { %v9892_v39 = vadd.f32 %v2687_v53, %v9663_v61  ;;  %v3376_v61 = vrot.slane %v3267_v10, %v6856_v23  ;;  %v3356_v10 = vshll.u32 %v3355_v27, 16  ;;  %v2812_v37 = vcvt.s32.f32 %v2810_v40  ;;  %v5882_v53 = vpop.xlane.xlu0 %5881 }
0x1095   :  { %v9894_v15 = vpop.permute.xlu1 %2680  ;;  %v2900_v27 = vand.u32 65535, %v9870_v25  ;;  %v5885_v13 = vcvt.f32.s32 %v5882_v53 }
0x1098   :  { %v9936_v51 = vpop.xlane.xlu0 %2919 }
0x1099   :  { %vm2921_vm12 = vcmp.eq.f32.partialorder %v9811_v1, %v9936_v51  ;;  %v10475_v1 = vld [vmem:[#allocation12_spill] sm:$0xff] }
0x10c6   :  { %v3278_v17 = vpop.xlane.xlu1 %3277 }
0x10c7   :  { %v3279_v41 = vcvt.f32.s32 %v3278_v17 }
0x10c9   :  { %v3282_v0 = vadd.s32 %v3281_v29, %v3279_v41  ;;  %v2857_v29 = vcvt.s32.f32 %v2855_v32  ;;  %v2870_v41 = vand.u32 65535, %v9862_v26  ;;  %v2915_v26 = vand.u32 65535, %v9806_v50 }
0x10ca   :  { %v3323_v7 = vpop.xlane.xlu1 %3322 }
0x10cb   :  { %v3380_v42 = vrot.slane %v3282_v0, %v6856_v23  ;;  %v3324_v28 = vcvt.f32.s32 %v3323_v7  ;;  %v2862_v0 = vsel %vm2861_vm14, %v2857_v29, inf  ;;  %v2887_v7 = vcvt.s32.f32 %v2885_v46 }
0x10cc   :  { %v2872_v4 = vcvt.s32.f32 %v2870_v41  ;;  %vm10476_vm14 = vcmp.gt.f32.partialorder %v10475_v1, 0.0 }
0x10cd   :  { %v3405_v30 = vsel %vm710_vm2, %v3380_v42, %v3376_v61  ;;  %v3327_v55 = vadd.s32 %v3326_v31, %v3324_v28  ;;  %v2917_v42 = vcvt.s32.f32 %v2915_v26  ;;  %v2902_v28 = vcvt.s32.f32 %v2900_v27 }
0x10ce   :  { %v3406_v60 = vsel %vm712_vm3, %v3384_v5, %v3405_v30  ;;  %v3353_v35 = vpop.xlane.xlu1 %3352  ;;  %v2866_v27 = vcvt.f32.s32 %v9898_v20 }
0x10cf   :  { %v3407_v33 = vsel %vm714_vm4, %v3388_v49, %v3406_v60  ;;  %v3392_v11 = vrot.slane %v3327_v55, %v6856_v23  ;;  %v3354_v9 = vcvt.f32.s32 %v3353_v35  ;;  %v2922_v50 = vsel %vm2921_vm12, %v2917_v42, inf }
0x10d1   :  { %v3408_v48 = vsel %vm716_vm5, %v3392_v11, %v3407_v33  ;;  %v3357_v45 = vadd.s32 %v3356_v10, %v3354_v9  ;;  %v2703_v10 = vpop.permute.xlu0 %2702 }
0x10d2   :  { %v3409_v14 = vsel %vm718_vm6, %v3396_v6, %v3408_v48  ;;  %v9917_v16 = vpop.xlane.xlu1 %2814  ;;  %v6305_v48 = vld [vmem:[%s10030_s6] ss:$0 sm:$0xff]  ;;  %vm2704_vm12 = vcmp.eq.s32.totalorder %v2703_v10, %v10345_v24 }
0x10d3   :  { %v3400_v47 = vrot.slane %v3357_v45, %v6856_v23  ;;  %vm2816_vm0 = vcmp.eq.f32.partialorder %v9858_v18, %v9917_v16 }
0x10d4   :  { %v2817_v59 = vsel %vm2816_vm0, %v2812_v37, inf  ;;  %vm5889_vm0 = vcmp.eq.s32.totalorder %v10345_v24, 2 }
0x10d5   :  { %v3410_v19 = vsel %vm720_vm7, %v3400_v47, %v3409_v14  ;;  %2818 = vmin.xlane.f32.xlu1 %v2817_v59  ;;  %v2705_v47 = vsel %vm2704_vm12, %v6305_v48, 0.0 }
0x10d6   :  { %v9927_v17 = vpop.xlane.xlu1 %2844  ;;  %v3411_v18 = vsel %vm722_vm8, %v3404_v44, %v3410_v19  ;;  %v10478_v44 = vld [vmem:[#allocation74_spill] sm:$0xff]  ;;  %v2706_v59 = vsel %vm2595_vm10, %v2705_v47, 0.0 }
0x10d7   :  { %vm2846_vm15 = vcmp.eq.f32.partialorder %v9866_v58, %v9927_v17  ;;  %v2892_v58 = vsel %vm2891_vm11, %v2887_v7, inf  ;;  %v3412_v21 = vsel %vm10476_vm14, %v3411_v18, %v10345_v24  ;;  %vm2682_vm11 = vcmp.eq.s32.totalorder %v9894_v15, %v10345_v24 }
0x10d8   :  { %v2847_v56 = vsel %vm2846_vm15, %v2842_v12, inf  ;;  %v2683_v45 = vsel %vm2682_vm11, %v6305_v48, 0.0  ;;  %v10479_v12 = vld [vmem:[#allocation71_spill] sm:$0xff]  ;;  %v2821_v7 = vcvt.f32.s32 %v9917_v16 }
0x10d9   :  { %2863 = vmin.xlane.f32.xlu1 %v2862_v0  ;;  %2848 = vmin.xlane.f32.xlu0 %v2847_v56  ;;  %v2684_v15 = vsel %vm2595_vm10, %v2683_v45, 0.0  ;;  %v2836_v56 = vcvt.f32.s32 %v9886_v8 }
0x10da   :  { %v9938_v31 = vpop.xlane.xlu1 %2874  ;;  %v2822_v42 = vshll.u32 %v2821_v7, 16 }
0x10db   :  { %vm2876_vm13 = vcmp.eq.f32.partialorder %v9873_v54, %v9938_v31  ;;  %v2837_v26 = vshll.u32 %v2836_v56, 16 }
0x10dc   :  { %v2877_v61 = vsel %vm2876_vm13, %v2872_v4, inf }
0x10dd   :  { %2893 = vmin.xlane.f32.xlu1 %v2892_v58  ;;  %2878 = vmin.xlane.f32.xlu0 %v2877_v61  ;;  %v2851_v58 = vcvt.f32.s32 %v9927_v17 }
0x10de   :  { %v9946_v34 = vpop.xlane.xlu1 %2904 }
0x10df   :  { %vm2906_vm9 = vcmp.eq.f32.partialorder %v9877_v36, %v9946_v34 }
0x10e0   :  { %v2907_v5 = vsel %vm2906_vm9, %v2902_v28, inf }
0x10e1   :  { %2923 = vmin.xlane.f32.xlu1 %v2922_v50  ;;  %2908 = vmin.xlane.f32.xlu0 %v2907_v5 }
0x10e2   :  { %v5884_v25 = vpop.xlane.xlu1 %5883 }
0x10e3   :  { %v5886_v54 = vcvt.f32.s32 %v5884_v25  ;;  %v2867_v25 = vshll.u32 %v2866_v27, 16 }
0x10e5   :  { %v5887_v49 = vshll.u32 %v5886_v54, 16  ;;  %v2896_v54 = vcvt.f32.s32 %v9907_v38  ;;  %v2911_v38 = vcvt.f32.s32 %v9946_v34 }
0x10e6   :  { %v2693_v30 = vpop.permute.xlu1 %2692 }
0x10e7   :  { %v5888_v55 = vadd.s32 %v5887_v49, %v5885_v13  ;;  %vm2694_vm13 = vcmp.eq.s32.totalorder %v2693_v30, %v10345_v24  ;;  %v2852_v13 = vshll.u32 %v2851_v58, 16  ;;  %v2881_v49 = vcvt.f32.s32 %v9938_v31 }
0x10e8   :  { %v2695_v14 = vsel %vm2694_vm13, %v10477_v62, 0.0 }
0x10e9   :  { %v5890_v60 = vcvt.s32.f32 %v5888_v55  ;;  %vm5892_vm15 = vcmp.eq.s32.totalorder %v5888_v55, %v10345_v24  ;;  %v2696_v32 = vsel %vm573_vm1, %v2695_v14, 0.0  ;;  %v2882_v10 = vshll.u32 %v2881_v49, 16 }
0x10ea   :  { %v5893_v36 = vsel %vm5892_vm15, %v3412_v21, 0  ;;  %v2715_v33 = vpop.permute.xlu1 %2714 }
0x10eb   :  { %v5894_v35 = vsel %vm573_vm1, %v5893_v36, 0  ;;  %v9957_v40 = vsel %vm5889_vm0, %v5890_v60, %v9794_v52  ;;  %vm2716_vm9 = vcmp.eq.s32.totalorder %v2715_v33, %v10345_v24  ;;  %v2760_v52 = vpop.permute.xlu0 %2759  ;;  %v2897_v36 = vshll.u32 %v2896_v54, 16 }
0x10ec   :  { %v5896_v11 = vshrl.u32 %v5894_v35, 16  ;;  %v5895_v9 = vand.u32 65535, %v5894_v35  ;;  %v2717_v53 = vsel %vm2716_vm9, %v10478_v44, 0.0  ;;  %vm2761_vm0 = vcmp.eq.s32.totalorder %v2760_v52, %v10345_v24 }
0x10ed   :  { %v2718_v19 = vsel %vm573_vm1, %v2717_v53, 0.0  ;;  %v2762_v29 = vsel %vm2761_vm0, %v10479_v12, 0.0  ;;  %v2926_v35 = vcvt.f32.s32 %v9936_v51  ;;  %v2912_v52 = vshll.u32 %v2911_v38, 16 }
0x10ee   :  { %v5898_v6 = vcvt.s32.f32 %v5896_v11  ;;  %v5897_v2 = vcvt.s32.f32 %v5895_v9  ;;  %v2725_v37 = vpop.permute.xlu1 %2724  ;;  %v2763_v41 = vsel %vm573_vm1, %v2762_v29, 0.0 }
0x10ef   :  { %vm2726_vm14 = vcmp.eq.s32.totalorder %v2725_v37, %v10345_v24  ;;  %v2927_v14 = vshll.u32 %v2926_v35, 16 }
0x10f0   :  { %5901 = vadd.xlane.f32.xlu0 %v5898_v6  ;;  %5899 = vadd.xlane.f32.xlu1 %v5897_v2  ;;  %v2727_v46 = vsel %vm2726_vm14, %v6305_v48, 0.0 }
0x10f1   :  { %v2728_v18 = vsel %vm2595_vm10, %v2727_v46, 0.0 }
0x10f4   :  { %2685 = vadd.xlane.f32.xlu0 %v2684_v15  ;;  %2697 = vadd.xlane.f32.xlu1 %v2696_v32 }
0x10f8   :  { %2707 = vadd.xlane.f32.xlu0 %v2706_v59  ;;  %2719 = vadd.xlane.f32.xlu1 %v2718_v19 }
0x10fc   :  { %2764 = vadd.xlane.f32.xlu1 %v2763_v41  ;;  %2729 = vadd.xlane.f32.xlu0 %v2728_v18 }
0x1114   :  { %v2834_v0 = vpop.xlane.xlu0 %2833 }
0x1115   :  { %v2835_v4 = vcvt.f32.s32 %v2834_v0 }
0x1117   :  { %v2838_v28 = vadd.s32 %v2837_v26, %v2835_v4 }
0x1119   :  { %v2936_v16 = vrot.slane %v2838_v28, %v6856_v23  ;;  %v10480_v28 = vld [vmem:[#allocation10_spill] sm:$0xff] }
0x115e   :  { %v2819_v61 = vpop.xlane.xlu1 %2818 }
0x115f   :  { %v2820_v50 = vcvt.f32.s32 %v2819_v61 }
0x1161   :  { %v2823_v5 = vadd.s32 %v2822_v42, %v2820_v50 }
0x1162   :  { %v2849_v8 = vpop.xlane.xlu0 %2848  ;;  %v2864_v30 = vpop.xlane.xlu1 %2863 }
0x1163   :  { %v2932_v55 = vrot.slane %v2823_v5, %v6856_v23  ;;  %v2850_v20 = vcvt.f32.s32 %v2849_v8  ;;  %v2865_v1 = vcvt.f32.s32 %v2864_v30 }
0x1165   :  { %v2961_v17 = vsel %vm710_vm2, %v2936_v16, %v2932_v55  ;;  %v2853_v21 = vadd.s32 %v2852_v13, %v2850_v20  ;;  %v2868_v60 = vadd.s32 %v2867_v25, %v2865_v1  ;;  %vm10481_vm2 = vcmp.gt.f32.partialorder %v10480_v28, 0.0  ;;  %v6287_v16 = vpop.eup %6286 }
0x1166   :  { %v2879_v33 = vpop.xlane.xlu0 %2878  ;;  %v2894_v31 = vpop.xlane.xlu1 %2893  ;;  %v2578_v35 = vmul.f32 0.6931472, %v6287_v16 }
0x1167   :  { %v2940_v11 = vrot.slane %v2853_v21, %v6856_v23  ;;  %v2944_v9 = vrot.slane %v2868_v60, %v6856_v23  ;;  %v2880_v6 = vcvt.f32.s32 %v2879_v33  ;;  %v2895_v2 = vcvt.f32.s32 %v2894_v31 }
0x1169   :  { %v2962_v48 = vsel %vm712_vm3, %v2940_v11, %v2961_v17  ;;  %v2883_v45 = vadd.s32 %v2882_v10, %v2880_v6  ;;  %v2898_v62 = vadd.s32 %v2897_v36, %v2895_v2  ;;  %vm5907_vm3 = vcmp.eq.s32.totalorder %v10345_v24, 1 }
0x116a   :  { %v2963_v37 = vsel %vm714_vm4, %v2944_v9, %v2962_v48  ;;  %v2909_v51 = vpop.xlane.xlu0 %2908  ;;  %v2924_v15 = vpop.xlane.xlu1 %2923  ;;  %v2579_v11 = vadd.f32 %v2578_v35, %v9344_v57 }
0x116b   :  { %v2948_v34 = vrot.slane %v2883_v45, %v6856_v23  ;;  %v2952_v32 = vrot.slane %v2898_v62, %v6856_v23  ;;  %v2910_v47 = vcvt.f32.s32 %v2909_v51  ;;  %v2925_v44 = vcvt.f32.s32 %v2924_v15 }
0x116d   :  { %v2964_v53 = vsel %vm716_vm5, %v2948_v34, %v2963_v37  ;;  %v2913_v59 = vadd.s32 %v2912_v52, %v2910_v47  ;;  %v2928_v19 = vadd.s32 %v2927_v14, %v2925_v44  ;;  %vm5928_vm5 = vcmp.eq.s32.totalorder %v10345_v24, 8 }
0x116e   :  { %v2965_v12 = vsel %vm718_vm6, %v2952_v32, %v2964_v53 }
0x116f   :  { %v2956_v29 = vrot.slane %v2913_v59, %v6856_v23  ;;  %v2960_v46 = vrot.slane %v2928_v19, %v6856_v23 }
0x1171   :  { %v2966_v41 = vsel %vm720_vm7, %v2956_v29, %v2965_v12 }
0x1172   :  { %v2967_v18 = vsel %vm722_vm8, %v2960_v46, %v2966_v41 }
0x1173   :  { %v2968_v23 = vsel %vm10481_vm2, %v2967_v18, %v10345_v24 }
0x1179   :  { %v5902_v0 = vpop.xlane.xlu0 %5901  ;;  %v5900_v56 = vpop.xlane.xlu1 %5899 }
0x117a   :  { %v5904_v7 = vcvt.f32.s32 %v5902_v0  ;;  %v5903_v26 = vcvt.f32.s32 %v5900_v56 }
0x117c   :  { %v5905_v4 = vshll.u32 %v5904_v7, 16 }
0x117d   :  { %v2686_v27 = vpop.xlane.xlu0 %2685  ;;  %v2698_v58 = vpop.xlane.xlu1 %2697 }
0x117e   :  { %v5906_v61 = vadd.s32 %v5905_v4, %v5903_v26  ;;  %v2689_v42 = vmul.f32 %v9753_v63, %v2686_v27  ;;  %v2709_v5 = vmul.f32 %v9753_v63, %v2698_v58 }
0x1180   :  { %v5908_v50 = vcvt.s32.f32 %v5906_v61  ;;  %vm5910_vm4 = vcmp.eq.s32.totalorder %v5906_v61, %v10345_v24  ;;  %v2690_v43 = vadd.f32 %v2689_v42, %v9892_v39 }
0x1181   :  { %v5911_v25 = vsel %vm5910_vm4, %v2968_v23, 0  ;;  %v2708_v54 = vpop.xlane.xlu0 %2707  ;;  %v2720_v13 = vpop.xlane.xlu1 %2719 }
0x1182   :  { %v2710_v49 = vadd.f32 %v2709_v5, %v2690_v43  ;;  %v2711_v8 = vmul.f32 %v9767_v22, %v2708_v54  ;;  %v5912_v30 = vsel %vm573_vm1, %v5911_v25, 0  ;;  %v5909_v1 = vsel %vm5907_vm3, %v5908_v50, %v9957_v40 }
0x1183   :  { %v5914_v55 = vshrl.u32 %v5912_v30, 16  ;;  %v5913_v20 = vand.u32 65535, %v5912_v30  ;;  %v2731_v21 = vmul.f32 %v9767_v22, %v2720_v13  ;;  %vm5925_vm1 = vcmp.eq.s32.totalorder %v10345_v24, 0 }
0x1184   :  { %v2712_v17 = vadd.f32 %v2711_v8, %v2710_v49 }
0x1185   :  { %v2730_v60 = vpop.xlane.xlu0 %2729  ;;  %v2765_v39 = vpop.xlane.xlu1 %2764  ;;  %v5916_v36 = vcvt.s32.f32 %v5914_v55  ;;  %v5915_v63 = vcvt.s32.f32 %v5913_v20 }
0x1186   :  { %v2732_v10 = vadd.f32 %v2731_v21, %v2712_v17  ;;  %v2733_v38 = vmul.f32 %v9785_v3, %v2730_v60  ;;  %v2766_v31 = vmul.f32 %v9785_v3, %v2765_v39 }
0x1187   :  { %5919 = vadd.xlane.f32.xlu1 %v5916_v36  ;;  %5917 = vadd.xlane.f32.xlu0 %v5915_v63 }
0x1188   :  { %v2734_v33 = vadd.f32 %v2733_v38, %v2732_v10 }
0x118a   :  { %v2767_v9 = vadd.f32 %v2766_v31, %v2734_v33 }
0x118c   :  { %v2768_v40 = vsub.f32 %v2579_v11, %v2767_v9 }
0x119d   :  { %5931 = vperm.xlu0 %6042, %v2768_v40  }
0x1210   :  { %v5918_v6 = vpop.xlane.xlu0 %5917  ;;  %v5920_v22 = vpop.xlane.xlu1 %5919 }
0x1211   :  { %v5922_v2 = vcvt.f32.s32 %v5920_v22  ;;  %v5921_v48 = vcvt.f32.s32 %v5918_v6 }
0x1213   :  { %v5923_v45 = vshll.u32 %v5922_v2, 16 }
0x1215   :  { %v5924_v62 = vadd.s32 %v5923_v45, %v5921_v48 }
0x1217   :  { %v5926_v14 = vcvt.s32.f32 %v5924_v62 }
0x1218   :  { %v5932_v52 = vpop.permute.xlu0 %5931 }
0x1219   :  { %v5927_v37 = vsel %vm5925_vm1, %v5926_v14, %v5909_v1 }
0x121a   :  { %v5934_v51 = vsel %vm5928_vm5, %v5932_v52, %v5927_v37 }
0x121b   :  { %5935 = vst [vmem:[%s10031_s9] sm:$0xff] %v5934_v51 }

</bundles_post_ra>
